<compile_context>
chip_gen: v7x
topology: tpu7x:2x2x1
jax: 0.10.0
libtpu: 0.0.40
codegen_flags: <defaults>
</compile_context>

<pallas_src>
import jax
import jax.numpy as jnp
import numpy as np
from jax.experimental import pallas as pl
from jax.experimental.pallas import tpu as pltpu

D = 512
LEAKY = 0.2
BN_EPS = 1e-5


def _leaky(x):
    return jnp.where(x > 0, x, LEAKY * x)


# ----------------- fused kernel: Relation MLP + sum_j + Fusion(Lin+BN+LReLU) ----
def fused_kernel(f_ref, w1ab_ref, b1_ref, w2_ref, b2_ref, w3_ref, b3_ref,
                 wfa_ref, wfb_ref, bf_ref, gamma_ref, beta_ref, o_ref):
    B, n_view, _ = f_ref.shape
    N = B * n_view

    f_flat = f_ref[...].reshape(N, D)                                   # (N, D)

    # ---- Relation layer 1: one wide matmul, concat replaced by split halves ----
    #   cat(F_i, F_j) @ W1  ==  F_i @ W1a + F_j @ W1b
    ab = jnp.dot(f_flat, w1ab_ref[...], preferred_element_type=jnp.float32)  # (N, 2D)
    a = (ab[:, :D] + b1_ref[...]).reshape(B, n_view, D)                 # b1 folded here
    b = ab[:, D:].reshape(B, n_view, D)

    # Pairwise pre-activations: h1[b, i, j] = F[b,i]@W1a + F[b,j]@W1b + b1
    h1 = _leaky(a[:, :, None, :] + b[:, None, :, :])                    # (B, nv, nv, D)
    h1 = h1.reshape(B * n_view * n_view, D)                             # (128, D)

    # ---- Relation layers 2 & 3 on the full (B*nv^2, D) slab ----
    h2 = _leaky(jnp.dot(h1, w2_ref[...], preferred_element_type=jnp.float32) + b2_ref[...])
    h3 = _leaky(jnp.dot(h2, w3_ref[...], preferred_element_type=jnp.float32) + b3_ref[...])

    # sum over j
    m = jnp.sum(h3.reshape(B, n_view, n_view, D), axis=2).reshape(N, D)  # (N, D)

    # ---- Fusion: Linear(2D->D) as two halves + BatchNorm1d (training stats) ----
    y = (jnp.dot(f_flat, wfa_ref[...], preferred_element_type=jnp.float32)
         + jnp.dot(m, wfb_ref[...], preferred_element_type=jnp.float32)
         + bf_ref[...])                                                 # (N, D)
    mean = jnp.mean(y, axis=0, keepdims=True)
    var = jnp.mean((y - mean) ** 2, axis=0, keepdims=True)              # biased variance
    z = gamma_ref[...] * (y - mean) * jax.lax.rsqrt(var + BN_EPS) + beta_ref[...]

    o_ref[...] = _leaky(z).reshape(B, n_view, D)


# ----------------- parameter packing (done ONCE, outside the hot path) ---------
def prepare_params(params):
    w1, b1, w2, b2, w3, b3, wf, bf, gamma, beta = params
    # w1: (2D, D)  ->  [W1a | W1b] packed as (D, 2D) so one matmul covers both.
    w1ab = jnp.concatenate([w1[:D], w1[D:]], axis=1)
    wfa, wfb = wf[:D], wf[D:]
    return (w1ab, b1, w2, b2, w3, b3, wfa, wfb, bf, gamma, beta)


def old_non_local_mp(F, packed):
    w1ab, b1, w2, b2, w3, b3, wfa, wfb, bf, gamma, beta = packed
    B, n_view, _ = F.shape
    N = B * n_view

    args = (F, w1ab, b1, w2, b2, w3, b3, wfa, wfb, bf, gamma, beta)

    flops = (2 * N * D * (2 * D)                 # relation layer 1 (N-wide = 2D)
             + 2 * (N * n_view) * D * D * 2      # relation layers 2 & 3 on (B*nv^2, D)
             + 2 * N * D * D * 2)                # fusion Linear (two D-wide halves)
    bytes_accessed = (sum(int(np.prod(a.shape)) * a.dtype.itemsize for a in args)
                      + N * D * 4)

    def full_spec(arr):
        nd = arr.ndim
        return pl.BlockSpec(tuple(arr.shape), lambda i, _nd=nd: (0,) * _nd)

    return pl.pallas_call(
        fused_kernel,
        out_shape=jax.ShapeDtypeStruct((B, n_view, D), jnp.float32),
        grid=(1,),
        in_specs=[full_spec(a) for a in args],
        out_specs=pl.BlockSpec((B, n_view, D), lambda i: (0, 0, 0)),
        compiler_params=pltpu.CompilerParams(
            dimension_semantics=("arbitrary",),
            vmem_limit_bytes=48 * 1024 * 1024),
        cost_estimate=pl.CostEstimate(flops=flops, transcendentals=D,
                                      bytes_accessed=bytes_accessed),
    )(*args)


# -------------------- pure-JAX reference (mirrors the PyTorch forward) ----------
def reference(F, params):
    w1, b1, w2, b2, w3, b3, wf, bf, gamma, beta = params
    B, n_view, _ = F.shape
    Fi = jnp.repeat(F[:, :, None, :], n_view, axis=2)
    Fj = jnp.repeat(F[:, None, :, :], n_view, axis=1)
    M = jnp.concatenate([Fi, Fj], axis=3)
    h = _leaky(M @ w1 + b1[0])
    h = _leaky(h @ w2 + b2[0])
    h = _leaky(h @ w3 + b3[0])
    Msum = jnp.sum(h, axis=2)
    X = jnp.concatenate([F, Msum], axis=2).reshape(-1, 2 * D)
    y = X @ wf + bf[0]
    mean = jnp.mean(y, axis=0)
    var = jnp.mean((y - mean) ** 2, axis=0)
    z = gamma[0] * (y - mean) / jnp.sqrt(var + BN_EPS) + beta[0]
    return _leaky(z).reshape(B, n_view, D)


if __name__ == "__main__":
    B, n_view = 2, 8
    key = jax.random.PRNGKey(0)
    ks = jax.random.split(key, 10)

    def init(k, fan_in, shape):
        return (jax.random.normal(k, shape, jnp.float32) / np.sqrt(fan_in)).astype(jnp.float32)

    F = jax.random.normal(ks[0], (B, n_view, D), jnp.float32)
    w1 = init(ks[1], 2 * D, (2 * D, D)); b1 = init(ks[2], 2 * D, (1, D))
    w2 = init(ks[3], D, (D, D));         b2 = init(ks[4], D, (1, D))
    w3 = init(ks[5], D, (D, D));         b3 = init(ks[6], D, (1, D))
    wf = init(ks[7], 2 * D, (2 * D, D)); bf = init(ks[8], 2 * D, (1, D))
    gamma = jnp.ones((1, D), jnp.float32)
    beta = jnp.zeros((1, D), jnp.float32)
    params = (w1, b1, w2, b2, w3, b3, wf, bf, gamma, beta)

    packed = prepare_params(params)          # one-time weight packing / splitting
    out = old_non_local_mp(F, packed)
    out = jax.block_until_ready(out)

    ref = jax.block_until_ready(reference(F, params))
    assert out.shape == (B, n_view, D)
    np.testing.assert_allclose(np.asarray(out), np.asarray(ref), rtol=2e-3, atol=2e-3)
    print("KERNEL_OK")
</pallas_src>

<mosaic_0001>
module attributes {stable_mosaic.version = 11 : i64} {
  func.func @fused_kernel(%arg0: i32, %arg1: memref<2x8x512xf32, #tpu.memory_space<vmem>>, %arg2: memref<512x1024xf32, #tpu.memory_space<vmem>>, %arg3: memref<1x512xf32, #tpu.memory_space<vmem>>, %arg4: memref<512x512xf32, #tpu.memory_space<vmem>>, %arg5: memref<1x512xf32, #tpu.memory_space<vmem>>, %arg6: memref<512x512xf32, #tpu.memory_space<vmem>>, %arg7: memref<1x512xf32, #tpu.memory_space<vmem>>, %arg8: memref<512x512xf32, #tpu.memory_space<vmem>>, %arg9: memref<512x512xf32, #tpu.memory_space<vmem>>, %arg10: memref<1x512xf32, #tpu.memory_space<vmem>>, %arg11: memref<1x512xf32, #tpu.memory_space<vmem>>, %arg12: memref<1x512xf32, #tpu.memory_space<vmem>>, %arg13: memref<2x8x512xf32, #tpu.memory_space<vmem>>) attributes {dimension_semantics = [#tpu.dimension_semantics<arbitrary>], iteration_bounds = array<i64: 1>, scalar_prefetch = 0 : i64, scratch_operands = 0 : i64, tpu.core_type = #tpu.core_type<tc>, window_params = [{pipeline_mode = #tpu.pipeline_mode<synchronous>, transform_indices = @transform_0, window_bounds = array<i64: 2, 8, 512>}, {pipeline_mode = #tpu.pipeline_mode<synchronous>, transform_indices = @transform_1, window_bounds = array<i64: 512, 1024>}, {pipeline_mode = #tpu.pipeline_mode<synchronous>, transform_indices = @transform_2, window_bounds = array<i64: 1, 512>}, {pipeline_mode = #tpu.pipeline_mode<synchronous>, transform_indices = @transform_3, window_bounds = array<i64: 512, 512>}, {pipeline_mode = #tpu.pipeline_mode<synchronous>, transform_indices = @transform_4, window_bounds = array<i64: 1, 512>}, {pipeline_mode = #tpu.pipeline_mode<synchronous>, transform_indices = @transform_5, window_bounds = array<i64: 512, 512>}, {pipeline_mode = #tpu.pipeline_mode<synchronous>, transform_indices = @transform_6, window_bounds = array<i64: 1, 512>}, {pipeline_mode = #tpu.pipeline_mode<synchronous>, transform_indices = @transform_7, window_bounds = array<i64: 512, 512>}, {pipeline_mode = #tpu.pipeline_mode<synchronous>, transform_indices = @transform_8, window_bounds = array<i64: 512, 512>}, {pipeline_mode = #tpu.pipeline_mode<synchronous>, transform_indices = @transform_9, window_bounds = array<i64: 1, 512>}, {pipeline_mode = #tpu.pipeline_mode<synchronous>, transform_indices = @transform_10, window_bounds = array<i64: 1, 512>}, {pipeline_mode = #tpu.pipeline_mode<synchronous>, transform_indices = @transform_11, window_bounds = array<i64: 1, 512>}, {pipeline_mode = #tpu.pipeline_mode<synchronous>, transform_indices = @transform_12, window_bounds = array<i64: 2, 8, 512>}]} {
    %c0 = arith.constant 0 : index
    %c0_0 = arith.constant 0 : index
    %c0_1 = arith.constant 0 : index
    %0 = vector.load %arg1[%c0, %c0_0, %c0_1] : memref<2x8x512xf32, #tpu.memory_space<vmem>>, vector<2x8x512xf32>
    %1 = vector.shape_cast %0 : vector<2x8x512xf32> to vector<16x512xf32>
    %c0_2 = arith.constant 0 : index
    %c0_3 = arith.constant 0 : index
    %2 = vector.load %arg2[%c0_2, %c0_3] : memref<512x1024xf32, #tpu.memory_space<vmem>>, vector<512x1024xf32>
    %cst = arith.constant dense<0.000000e+00> : vector<16x1024xf32>
    %3 = tpu.matmul %1, %2, %cst {dimension_numbers = #tpu.dot_dimension_numbers<[1], [0], [0], [1], [0, 0, 1, 1], [], []>} : vector<16x512xf32>, vector<512x1024xf32>, vector<16x1024xf32> -> vector<16x1024xf32>
    %4 = vector.extract_strided_slice %3 {offsets = [0, 0], sizes = [16, 512], strides = [1, 1]} : vector<16x1024xf32> to vector<16x512xf32>
    %c0_4 = arith.constant 0 : index
    %c0_5 = arith.constant 0 : index
    %5 = vector.load %arg3[%c0_4, %c0_5] : memref<1x512xf32, #tpu.memory_space<vmem>>, vector<1x512xf32>
    %6 = vector.broadcast %5 : vector<1x512xf32> to vector<16x512xf32>
    %7 = arith.addf %4, %6 : vector<16x512xf32>
    %8 = vector.shape_cast %7 : vector<16x512xf32> to vector<2x8x512xf32>
    %9 = vector.extract_strided_slice %3 {offsets = [0, 512], sizes = [16, 512], strides = [1, 1]} : vector<16x1024xf32> to vector<16x512xf32>
    %10 = vector.shape_cast %9 : vector<16x512xf32> to vector<2x8x512xf32>
    %11 = vector.shape_cast %8 : vector<2x8x512xf32> to vector<2x8x1x512xf32>
    %12 = vector.shape_cast %10 : vector<2x8x512xf32> to vector<2x1x8x512xf32>
    %13 = vector.broadcast %11 : vector<2x8x1x512xf32> to vector<2x8x8x512xf32>
    %14 = vector.broadcast %12 : vector<2x1x8x512xf32> to vector<2x8x8x512xf32>
    %15 = arith.addf %13, %14 : vector<2x8x8x512xf32>
    %cst_6 = arith.constant 0.000000e+00 : f32
    %16 = vector.broadcast %cst_6 : f32 to vector<2x8x8x512xf32>
    %17 = arith.cmpf ogt, %15, %16 : vector<2x8x8x512xf32>
    %cst_7 = arith.constant 2.000000e-01 : f32
    %18 = vector.broadcast %cst_7 : f32 to vector<2x8x8x512xf32>
    %19 = arith.mulf %18, %15 : vector<2x8x8x512xf32>
    %20 = arith.select %17, %15, %19 : vector<2x8x8x512xi1>, vector<2x8x8x512xf32>
    %21 = vector.shape_cast %20 : vector<2x8x8x512xf32> to vector<128x512xf32>
    %c0_8 = arith.constant 0 : index
    %c0_9 = arith.constant 0 : index
    %22 = vector.load %arg4[%c0_8, %c0_9] : memref<512x512xf32, #tpu.memory_space<vmem>>, vector<512x512xf32>
    %cst_10 = arith.constant dense<0.000000e+00> : vector<128x512xf32>
    %23 = tpu.matmul %21, %22, %cst_10 {dimension_numbers = #tpu.dot_dimension_numbers<[1], [0], [0], [1], [0, 0, 1, 1], [], []>} : vector<128x512xf32>, vector<512x512xf32>, vector<128x512xf32> -> vector<128x512xf32>
    %c0_11 = arith.constant 0 : index
    %c0_12 = arith.constant 0 : index
    %24 = vector.load %arg5[%c0_11, %c0_12] : memref<1x512xf32, #tpu.memory_space<vmem>>, vector<1x512xf32>
    %25 = vector.broadcast %24 : vector<1x512xf32> to vector<128x512xf32>
    %26 = arith.addf %23, %25 : vector<128x512xf32>
    %cst_13 = arith.constant 0.000000e+00 : f32
    %27 = vector.broadcast %cst_13 : f32 to vector<128x512xf32>
    %28 = arith.cmpf ogt, %26, %27 : vector<128x512xf32>
    %cst_14 = arith.constant 2.000000e-01 : f32
    %29 = vector.broadcast %cst_14 : f32 to vector<128x512xf32>
    %30 = arith.mulf %29, %26 : vector<128x512xf32>
    %31 = arith.select %28, %26, %30 : vector<128x512xi1>, vector<128x512xf32>
    %c0_15 = arith.constant 0 : index
    %c0_16 = arith.constant 0 : index
    %32 = vector.load %arg6[%c0_15, %c0_16] : memref<512x512xf32, #tpu.memory_space<vmem>>, vector<512x512xf32>
    %cst_17 = arith.constant dense<0.000000e+00> : vector<128x512xf32>
    %33 = tpu.matmul %31, %32, %cst_17 {dimension_numbers = #tpu.dot_dimension_numbers<[1], [0], [0], [1], [0, 0, 1, 1], [], []>} : vector<128x512xf32>, vector<512x512xf32>, vector<128x512xf32> -> vector<128x512xf32>
    %c0_18 = arith.constant 0 : index
    %c0_19 = arith.constant 0 : index
    %34 = vector.load %arg7[%c0_18, %c0_19] : memref<1x512xf32, #tpu.memory_space<vmem>>, vector<1x512xf32>
    %35 = vector.broadcast %34 : vector<1x512xf32> to vector<128x512xf32>
    %36 = arith.addf %33, %35 : vector<128x512xf32>
    %cst_20 = arith.constant 0.000000e+00 : f32
    %37 = vector.broadcast %cst_20 : f32 to vector<128x512xf32>
    %38 = arith.cmpf ogt, %36, %37 : vector<128x512xf32>
    %cst_21 = arith.constant 2.000000e-01 : f32
    %39 = vector.broadcast %cst_21 : f32 to vector<128x512xf32>
    %40 = arith.mulf %39, %36 : vector<128x512xf32>
    %41 = arith.select %38, %36, %40 : vector<128x512xi1>, vector<128x512xf32>
    %42 = vector.shape_cast %41 : vector<128x512xf32> to vector<2x8x8x512xf32>
    %cst_22 = arith.constant dense<0.000000e+00> : vector<2x8x512xf32>
    %43 = vector.multi_reduction <add>, %42, %cst_22 [2] : vector<2x8x8x512xf32> to vector<2x8x512xf32>
    %44 = vector.shape_cast %43 : vector<2x8x512xf32> to vector<16x512xf32>
    %c0_23 = arith.constant 0 : index
    %c0_24 = arith.constant 0 : index
    %45 = vector.load %arg8[%c0_23, %c0_24] : memref<512x512xf32, #tpu.memory_space<vmem>>, vector<512x512xf32>
    %cst_25 = arith.constant dense<0.000000e+00> : vector<16x512xf32>
    %46 = tpu.matmul %1, %45, %cst_25 {dimension_numbers = #tpu.dot_dimension_numbers<[1], [0], [0], [1], [0, 0, 1, 1], [], []>} : vector<16x512xf32>, vector<512x512xf32>, vector<16x512xf32> -> vector<16x512xf32>
    %c0_26 = arith.constant 0 : index
    %c0_27 = arith.constant 0 : index
    %47 = vector.load %arg9[%c0_26, %c0_27] : memref<512x512xf32, #tpu.memory_space<vmem>>, vector<512x512xf32>
    %cst_28 = arith.constant dense<0.000000e+00> : vector<16x512xf32>
    %48 = tpu.matmul %44, %47, %cst_28 {dimension_numbers = #tpu.dot_dimension_numbers<[1], [0], [0], [1], [0, 0, 1, 1], [], []>} : vector<16x512xf32>, vector<512x512xf32>, vector<16x512xf32> -> vector<16x512xf32>
    %49 = arith.addf %46, %48 : vector<16x512xf32>
    %c0_29 = arith.constant 0 : index
    %c0_30 = arith.constant 0 : index
    %50 = vector.load %arg10[%c0_29, %c0_30] : memref<1x512xf32, #tpu.memory_space<vmem>>, vector<1x512xf32>
    %51 = vector.broadcast %50 : vector<1x512xf32> to vector<16x512xf32>
    %52 = arith.addf %49, %51 : vector<16x512xf32>
    %cst_31 = arith.constant dense<0.000000e+00> : vector<512xf32>
    %53 = vector.multi_reduction <add>, %52, %cst_31 [0] : vector<16x512xf32> to vector<512xf32>
    %54 = vector.shape_cast %53 : vector<512xf32> to vector<1x512xf32>
    %cst_32 = arith.constant 1.600000e+01 : f32
    %55 = vector.broadcast %cst_32 : f32 to vector<1x512xf32>
    %56 = arith.divf %54, %55 : vector<1x512xf32>
    %57 = vector.broadcast %56 : vector<1x512xf32> to vector<16x512xf32>
    %58 = arith.subf %52, %57 : vector<16x512xf32>
    %59 = arith.mulf %58, %58 : vector<16x512xf32>
    %cst_33 = arith.constant dense<0.000000e+00> : vector<512xf32>
    %60 = vector.multi_reduction <add>, %59, %cst_33 [0] : vector<16x512xf32> to vector<512xf32>
    %61 = vector.shape_cast %60 : vector<512xf32> to vector<1x512xf32>
    %cst_34 = arith.constant 1.600000e+01 : f32
    %62 = vector.broadcast %cst_34 : f32 to vector<1x512xf32>
    %63 = arith.divf %61, %62 : vector<1x512xf32>
    %c0_35 = arith.constant 0 : index
    %c0_36 = arith.constant 0 : index
    %64 = vector.load %arg11[%c0_35, %c0_36] : memref<1x512xf32, #tpu.memory_space<vmem>>, vector<1x512xf32>
    %65 = vector.broadcast %56 : vector<1x512xf32> to vector<16x512xf32>
    %66 = arith.subf %52, %65 : vector<16x512xf32>
    %67 = vector.broadcast %64 : vector<1x512xf32> to vector<16x512xf32>
    %68 = arith.mulf %67, %66 : vector<16x512xf32>
    %cst_37 = arith.constant 9.99999974E-6 : f32
    %69 = vector.broadcast %cst_37 : f32 to vector<1x512xf32>
    %70 = arith.addf %63, %69 : vector<1x512xf32>
    %71 = math.rsqrt %70 : vector<1x512xf32>
    %72 = vector.broadcast %71 : vector<1x512xf32> to vector<16x512xf32>
    %73 = arith.mulf %68, %72 : vector<16x512xf32>
    %c0_38 = arith.constant 0 : index
    %c0_39 = arith.constant 0 : index
    %74 = vector.load %arg12[%c0_38, %c0_39] : memref<1x512xf32, #tpu.memory_space<vmem>>, vector<1x512xf32>
    %75 = vector.broadcast %74 : vector<1x512xf32> to vector<16x512xf32>
    %76 = arith.addf %73, %75 : vector<16x512xf32>
    %cst_40 = arith.constant 0.000000e+00 : f32
    %77 = vector.broadcast %cst_40 : f32 to vector<16x512xf32>
    %78 = arith.cmpf ogt, %76, %77 : vector<16x512xf32>
    %cst_41 = arith.constant 2.000000e-01 : f32
    %79 = vector.broadcast %cst_41 : f32 to vector<16x512xf32>
    %80 = arith.mulf %79, %76 : vector<16x512xf32>
    %81 = arith.select %78, %76, %80 : vector<16x512xi1>, vector<16x512xf32>
    %82 = vector.shape_cast %81 : vector<16x512xf32> to vector<2x8x512xf32>
    %c0_42 = arith.constant 0 : index
    %c0_43 = arith.constant 0 : index
    %c0_44 = arith.constant 0 : index
    %83 = vector.load %arg13[%c0_42, %c0_43, %c0_44] : memref<2x8x512xf32, #tpu.memory_space<vmem>>, vector<2x8x512xf32>
    tpu.vector_store %arg13[%c0_42, %c0_43, %c0_44], %82 {strides = array<i32>} : memref<2x8x512xf32, #tpu.memory_space<vmem>>, vector<2x8x512xf32>,
    return
  }
  func.func @transform_0(%arg0: i32) -> (i32, i32, i32) {
    %c0_i32 = arith.constant 0 : i32
    %c0_i32_0 = arith.constant 0 : i32
    %c0_i32_1 = arith.constant 0 : i32
    %c0_i32_2 = arith.constant 0 : i32
    return %c0_i32, %c0_i32_0, %c0_i32_1 : i32, i32, i32
  }
  func.func @transform_1(%arg0: i32) -> (i32, i32) {
    %c0_i32 = arith.constant 0 : i32
    %c0_i32_0 = arith.constant 0 : i32
    %c0_i32_1 = arith.constant 0 : i32
    return %c0_i32, %c0_i32_0 : i32, i32
  }
  func.func @transform_2(%arg0: i32) -> (i32, i32) {
    %c0_i32 = arith.constant 0 : i32
    %c0_i32_0 = arith.constant 0 : i32
    %c0_i32_1 = arith.constant 0 : i32
    return %c0_i32, %c0_i32_0 : i32, i32
  }
  func.func @transform_3(%arg0: i32) -> (i32, i32) {
    %c0_i32 = arith.constant 0 : i32
    %c0_i32_0 = arith.constant 0 : i32
    %c0_i32_1 = arith.constant 0 : i32
    return %c0_i32, %c0_i32_0 : i32, i32
  }
  func.func @transform_4(%arg0: i32) -> (i32, i32) {
    %c0_i32 = arith.constant 0 : i32
    %c0_i32_0 = arith.constant 0 : i32
    %c0_i32_1 = arith.constant 0 : i32
    return %c0_i32, %c0_i32_0 : i32, i32
  }
  func.func @transform_5(%arg0: i32) -> (i32, i32) {
    %c0_i32 = arith.constant 0 : i32
    %c0_i32_0 = arith.constant 0 : i32
    %c0_i32_1 = arith.constant 0 : i32
    return %c0_i32, %c0_i32_0 : i32, i32
  }
  func.func @transform_6(%arg0: i32) -> (i32, i32) {
    %c0_i32 = arith.constant 0 : i32
    %c0_i32_0 = arith.constant 0 : i32
    %c0_i32_1 = arith.constant 0 : i32
    return %c0_i32, %c0_i32_0 : i32, i32
  }
  func.func @transform_7(%arg0: i32) -> (i32, i32) {
    %c0_i32 = arith.constant 0 : i32
    %c0_i32_0 = arith.constant 0 : i32
    %c0_i32_1 = arith.constant 0 : i32
    return %c0_i32, %c0_i32_0 : i32, i32
  }
  func.func @transform_8(%arg0: i32) -> (i32, i32) {
    %c0_i32 = arith.constant 0 : i32
    %c0_i32_0 = arith.constant 0 : i32
    %c0_i32_1 = arith.constant 0 : i32
    return %c0_i32, %c0_i32_0 : i32, i32
  }
  func.func @transform_9(%arg0: i32) -> (i32, i32) {
    %c0_i32 = arith.constant 0 : i32
    %c0_i32_0 = arith.constant 0 : i32
    %c0_i32_1 = arith.constant 0 : i32
    return %c0_i32, %c0_i32_0 : i32, i32
  }
  func.func @transform_10(%arg0: i32) -> (i32, i32) {
    %c0_i32 = arith.constant 0 : i32
    %c0_i32_0 = arith.constant 0 : i32
    %c0_i32_1 = arith.constant 0 : i32
    return %c0_i32, %c0_i32_0 : i32, i32
  }
  func.func @transform_11(%arg0: i32) -> (i32, i32) {
    %c0_i32 = arith.constant 0 : i32
    %c0_i32_0 = arith.constant 0 : i32
    %c0_i32_1 = arith.constant 0 : i32
    return %c0_i32, %c0_i32_0 : i32, i32
  }
  func.func @transform_12(%arg0: i32) -> (i32, i32, i32) {
    %c0_i32 = arith.constant 0 : i32
    %c0_i32_0 = arith.constant 0 : i32
    %c0_i32_1 = arith.constant 0 : i32
    %c0_i32_2 = arith.constant 0 : i32
    return %c0_i32, %c0_i32_0, %c0_i32_1 : i32, i32, i32
  }
}

</mosaic_0001>

<bundles_post_ra>
// kernel: tpu_custom_call.1
= control target key start
LH: loop header
LB: loop body
LE: loop exit
PB: predicated region body
PF: predicated region fallthrough
CT: control target
= control target key end

     0   :  { %17 = vsyncpa [#allocation3], 0  ;;  %s10564_s0 = inlined_call_operand.hbm [shape: f32[2,8,512], index: 0, kind: input, shape index: {}]   ;;  %s10565_s1 = inlined_call_operand.hbm [shape: f32[512,1024], index: 1, kind: input, shape index: {}]   ;;  %s10566_s2 = inlined_call_operand.hbm [shape: f32[1,512], index: 2, kind: input, shape index: {}]   ;;  %s10567_s3 = inlined_call_operand.hbm [shape: f32[512,512], index: 3, kind: input, shape index: {}]   ;;  %s10568_s4 = inlined_call_operand.hbm [shape: f32[1,512], index: 4, kind: input, shape index: {}]   ;;  %s10569_s5 = inlined_call_operand.hbm [shape: f32[512,512], index: 5, kind: input, shape index: {}]   ;;  %s10570_s6 = inlined_call_operand.hbm [shape: f32[1,512], index: 6, kind: input, shape index: {}]   ;;  %s10571_s7 = inlined_call_operand.hbm [shape: f32[512,512], index: 7, kind: input, shape index: {}]   ;;  %s10572_s8 = inlined_call_operand.hbm [shape: f32[512,512], index: 8, kind: input, shape index: {}]   ;;  %s10573_s9 = inlined_call_operand.hbm [shape: f32[1,512], index: 9, kind: input, shape index: {}]   ;;  %s10574_s10 = inlined_call_operand.hbm [shape: f32[1,512], index: 10, kind: input, shape index: {}]   ;;  %s10575_s11 = inlined_call_operand.hbm [shape: f32[1,512], index: 11, kind: input, shape index: {}]   ;;  %s10576_s12 = inlined_call_operand.hbm [shape: f32[2,8,512], index: 12, kind: output, shape index: {}]  }
   0x1   :  { %18 = vsyncpa [#allocation6], 0 }
   0x2   :  { %19 = vsyncpa [#allocation9], 0 }
   0x3   :  { %20 = vsyncpa [#allocation12], 0 }
   0x4   :  { %21 = vsyncpa [#allocation15], 0 }
   0x5   :  { %22 = vsyncpa [#allocation18], 0 }
   0x6   :  { %23 = vsyncpa [#allocation21], 0 }
   0x7   :  { %24 = vsyncpa [#allocation4], 0  ;;  %s8368_s21 = smov [#allocation5]   ;;  %s8066_s25 = scalar_lea.hbm %s10565_s1, 65536 }
   0x8   :  { %s42_s22 = sshll.u32 %s8368_s21, 4  ;;  %p8067_p0 = scmp.ne.s32.totalorder %s10565_s1, %s8066_s25  ;;  %s43_s22 = int_to_ptr.vmem [resolvable:$true] %s42_s22 }
   0x9   :  { %p8070_p1 = scmp.lt.u32.totalorder %s8066_s25, %s10565_s1 }
   0xb   :  { %p8072_p2 = pnand %p8070_p1, %p8067_p0 }
   0xd   :  { %8075 = shalt.err (!%p8072_p2)
}
   0xe   :  { %s8076_s30 = scalar_lea.vmem %s43_s22, 65536  ;;  %p8081_p4 = scmp.lt.s32.totalorder %s43_s22, %s43_s22 }
   0xf   :  { %p8077_p3 = scmp.ne.s32.totalorder %s43_s22, %s8076_s30  ;;  %p8082_p5 = scmp.lt.s32.totalorder %s8076_s30, %s8076_s30 }
  0x11   :  { %p8083_p6 = por %p8082_p5, %p8081_p4 }
  0x13   :  { %p8084_p7 = pnand %p8083_p6, %p8077_p3 }
  0x15   :  { %8087 = shalt.err (!%p8084_p7)
}
  0x16   :  { %s8369_s13 = smov 1024   ;;  %s8370_s14 = smov 64  }
  0x17   :  { %48 = dma.hbm_to_vmem [thread:$0]  %s10565_s1, 65536, %s43_s22, [#allocation6], %s8369_s13, %s8369_s13, %s8370_s14  }
  0x18   :  { %s8371_s17 = smov [#allocation8]   ;;  %s8372_s19 = smov [#allocation11]  }
  0x19   :  { %s64_s18 = sshll.u32 %s8371_s17, 4  ;;  %s86_s20 = sshll.u32 %s8372_s19, 4  ;;  %s65_s18 = int_to_ptr.vmem [resolvable:$true] %s64_s18  ;;  %s87_s20 = int_to_ptr.vmem [resolvable:$true] %s86_s20 }
  0x1a   :  { %s8088_s24 = scalar_lea.hbm %s10567_s3, 32768 }
  0x1b   :  { %p8089_p8 = scmp.ne.s32.totalorder %s10567_s3, %s8088_s24  ;;  %p8092_p9 = scmp.lt.u32.totalorder %s8088_s24, %s10567_s3 }
  0x1d   :  { %p8094_p10 = pnand %p8092_p9, %p8089_p8 }
  0x1f   :  { %8097 = shalt.err (!%p8094_p10)
}
  0x20   :  { %s8098_s1 = scalar_lea.vmem %s65_s18, 32768  ;;  %p8103_p12 = scmp.lt.s32.totalorder %s65_s18, %s65_s18 }
  0x21   :  { %p8099_p11 = scmp.ne.s32.totalorder %s65_s18, %s8098_s1  ;;  %p8104_p13 = scmp.lt.s32.totalorder %s8098_s1, %s8098_s1 }
  0x23   :  { %p8105_p0 = por %p8104_p13, %p8103_p12 }
  0x25   :  { %p8106_p1 = pnand %p8105_p0, %p8099_p11 }
  0x27   :  { %8109 = shalt.err (!%p8106_p1)
}
  0x28   :  { %s8373_s22 = smov 512   ;;  %s8374_s29 = smov 32  }
  0x29   :  { %70 = dma.hbm_to_vmem [thread:$0]  %s10567_s3, 32768, %s65_s18, [#allocation9], %s8373_s22, %s8373_s22, %s8374_s29  }
  0x2a   :  { %s8110_s16 = scalar_lea.hbm %s10569_s5, 32768 }
  0x2b   :  { %p8111_p2 = scmp.ne.s32.totalorder %s10569_s5, %s8110_s16  ;;  %p8114_p3 = scmp.lt.u32.totalorder %s8110_s16, %s10569_s5 }
  0x2d   :  { %p8116_p4 = pnand %p8114_p3, %p8111_p2 }
  0x2f   :  { %8119 = shalt.err (!%p8116_p4)
}
  0x30   :  { %s8120_s24 = scalar_lea.vmem %s87_s20, 32768  ;;  %p8125_p6 = scmp.lt.s32.totalorder %s87_s20, %s87_s20 }
  0x31   :  { %p8121_p5 = scmp.ne.s32.totalorder %s87_s20, %s8120_s24  ;;  %p8126_p7 = scmp.lt.s32.totalorder %s8120_s24, %s8120_s24 }
  0x33   :  { %p8127_p8 = por %p8126_p7, %p8125_p6 }
  0x35   :  { %p8128_p9 = pnand %p8127_p8, %p8121_p5 }
  0x37   :  { %8131 = shalt.err (!%p8128_p9)
}
  0x38   :  { %92 = dma.hbm_to_vmem [thread:$0]  %s10569_s5, 32768, %s87_s20, [#allocation12], %s8373_s22, %s8373_s22, %s8374_s29  }
  0x39   :  { %s8375_s25 = smov [#allocation14]   ;;  %s8376_s27 = smov [#allocation17]  }
  0x3a   :  { %s108_s26 = sshll.u32 %s8375_s25, 4  ;;  %s133_s28 = sshll.u32 %s8376_s27, 4  ;;  %s109_s26 = int_to_ptr.vmem [resolvable:$true] %s108_s26  ;;  %s134_s28 = int_to_ptr.vmem [resolvable:$true] %s133_s28 }
  0x3b   :  { %s8132_s13 = scalar_lea.hbm %s10571_s7, 32768 }
  0x3c   :  { %p8133_p10 = scmp.ne.s32.totalorder %s10571_s7, %s8132_s13  ;;  %p8136_p11 = scmp.lt.u32.totalorder %s8132_s13, %s10571_s7 }
  0x3e   :  { %p8138_p12 = pnand %p8136_p11, %p8133_p10 }
  0x40   :  { %8141 = shalt.err (!%p8138_p12)
}
  0x41   :  { %s8142_s5 = scalar_lea.vmem %s109_s26, 32768  ;;  %p8147_p0 = scmp.lt.s32.totalorder %s109_s26, %s109_s26 }
  0x42   :  { %p8143_p13 = scmp.ne.s32.totalorder %s109_s26, %s8142_s5  ;;  %p8148_p1 = scmp.lt.s32.totalorder %s8142_s5, %s8142_s5 }
  0x44   :  { %p8149_p2 = por %p8148_p1, %p8147_p0 }
  0x46   :  { %p8150_p3 = pnand %p8149_p2, %p8143_p13 }
  0x48   :  { %8153 = shalt.err (!%p8150_p3)
}
  0x49   :  { %114 = dma.hbm_to_vmem [thread:$0]  %s10571_s7, 32768, %s109_s26, [#allocation15], %s8373_s22, %s8373_s22, %s8374_s29  }
  0x4a   :  { %s8154_s24 = scalar_lea.hbm %s10573_s9, 64 }
  0x4b   :  { %p8155_p4 = scmp.ne.s32.totalorder %s10573_s9, %s8154_s24  ;;  %p8158_p5 = scmp.lt.u32.totalorder %s8154_s24, %s10573_s9 }
  0x4d   :  { %p8160_p6 = pnand %p8158_p5, %p8155_p4 }
  0x4f   :  { %8163 = shalt.err (!%p8160_p6)
}
  0x50   :  { %s8164_s1 = scalar_lea.vmem %s134_s28, 64  ;;  %p8169_p8 = scmp.lt.s32.totalorder %s134_s28, %s134_s28 }
  0x51   :  { %p8165_p7 = scmp.ne.s32.totalorder %s134_s28, %s8164_s1  ;;  %p8170_p9 = scmp.lt.s32.totalorder %s8164_s1, %s8164_s1 }
  0x53   :  { %p8171_p10 = por %p8170_p9, %p8169_p8 }
  0x55   :  { %p8172_p11 = pnand %p8171_p10, %p8165_p7 }
  0x57   :  { %8175 = shalt.err (!%p8172_p11)
}
  0x58   :  { %136 = dma.hbm_to_vmem [thread:$0]  %s10573_s9, 64, %s134_s28, [#allocation18]  }
  0x59   :  { %s8377_s30 = smov [#allocation2]   ;;  %s8378_s14 = smov [#allocation7]  }
  0x5a   :  { %s30_s13 = sshll.u32 %s8377_s30, 4  ;;  %s55_s15 = sshll.u32 %s8378_s14, 4  ;;  %s31_s13 = int_to_ptr.vmem [resolvable:$true] %s30_s13  ;;  %s56_s15 = int_to_ptr.vmem [resolvable:$true] %s55_s15 }
  0x5b   :  { %s8176_s5 = scalar_lea.hbm %s10564_s0, 1024 }
  0x5c   :  { %p8177_p12 = scmp.ne.s32.totalorder %s10564_s0, %s8176_s5  ;;  %p8180_p13 = scmp.lt.u32.totalorder %s8176_s5, %s10564_s0 }
  0x5e   :  { %p8182_p0 = pnand %p8180_p13, %p8177_p12 }
  0x60   :  { %8185 = shalt.err (!%p8182_p0)
}
  0x61   :  { %s8186_s9 = scalar_lea.vmem %s31_s13, 1024  ;;  %p8191_p2 = scmp.lt.s32.totalorder %s31_s13, %s31_s13 }
  0x62   :  { %p8187_p1 = scmp.ne.s32.totalorder %s31_s13, %s8186_s9  ;;  %p8192_p3 = scmp.lt.s32.totalorder %s8186_s9, %s8186_s9 }
  0x64   :  { %p8193_p4 = por %p8192_p3, %p8191_p2 }
  0x66   :  { %p8194_p5 = pnand %p8193_p4, %p8187_p1 }
  0x68   :  { %8197 = shalt.err (!%p8194_p5)
}
  0x69   :  { %36 = dma.hbm_to_vmem [thread:$0]  %s10564_s0, 1024, %s31_s13, [#allocation3], %s8373_s22, %s8373_s22, %s8374_s29  }
  0x6a   :  { %s8198_s25 = scalar_lea.hbm %s10566_s2, 64 }
  0x6b   :  { %p8199_p6 = scmp.ne.s32.totalorder %s10566_s2, %s8198_s25  ;;  %p8202_p7 = scmp.lt.u32.totalorder %s8198_s25, %s10566_s2 }
  0x6d   :  { %p8204_p8 = pnand %p8202_p7, %p8199_p6 }
  0x6f   :  { %8207 = shalt.err (!%p8204_p8)
}
  0x70   :  { %s8208_s30 = scalar_lea.vmem %s56_s15, 64  ;;  %p8213_p10 = scmp.lt.s32.totalorder %s56_s15, %s56_s15 }
  0x71   :  { %p8209_p9 = scmp.ne.s32.totalorder %s56_s15, %s8208_s30  ;;  %p8214_p11 = scmp.lt.s32.totalorder %s8208_s30, %s8208_s30 }
  0x73   :  { %p8215_p12 = por %p8214_p11, %p8213_p10 }
  0x75   :  { %p8216_p13 = pnand %p8215_p12, %p8209_p9 }
  0x77   :  { %8219 = shalt.err (!%p8216_p13)
}
  0x78   :  { %58 = dma.hbm_to_vmem [thread:$0]  %s10566_s2, 64, %s56_s15, [#allocation6]  }
  0x79   :  { %s8379_s14 = smov [#allocation10]   ;;  %s8380_s17 = smov [#allocation13]  }
  0x7a   :  { %s77_s16 = sshll.u32 %s8379_s14, 4  ;;  %s99_s5 = sshll.u32 %s8380_s17, 4  ;;  %s78_s16 = int_to_ptr.vmem [resolvable:$true] %s77_s16  ;;  %s100_s5 = int_to_ptr.vmem [resolvable:$true] %s99_s5 }
  0x7b   :  { %s8220_s21 = scalar_lea.hbm %s10568_s4, 64 }
  0x7c   :  { %p8221_p0 = scmp.ne.s32.totalorder %s10568_s4, %s8220_s21  ;;  %p8224_p1 = scmp.lt.u32.totalorder %s8220_s21, %s10568_s4 }
  0x7e   :  { %p8226_p2 = pnand %p8224_p1, %p8221_p0 }
  0x80   :  { %8229 = shalt.err (!%p8226_p2)
}
  0x81   :  { %s8230_s2 = scalar_lea.vmem %s78_s16, 64  ;;  %p8235_p4 = scmp.lt.s32.totalorder %s78_s16, %s78_s16 }
  0x82   :  { %p8231_p3 = scmp.ne.s32.totalorder %s78_s16, %s8230_s2  ;;  %p8236_p5 = scmp.lt.s32.totalorder %s8230_s2, %s8230_s2 }
  0x84   :  { %p8237_p6 = por %p8236_p5, %p8235_p4 }
  0x86   :  { %p8238_p7 = pnand %p8237_p6, %p8231_p3 }
  0x88   :  { %8241 = shalt.err (!%p8238_p7)
}
  0x89   :  { %80 = dma.hbm_to_vmem [thread:$0]  %s10568_s4, 64, %s78_s16, [#allocation9]  }
  0x8a   :  { %s8242_s27 = scalar_lea.hbm %s10570_s6, 64 }
  0x8b   :  { %p8243_p8 = scmp.ne.s32.totalorder %s10570_s6, %s8242_s27  ;;  %p8246_p9 = scmp.lt.u32.totalorder %s8242_s27, %s10570_s6 }
  0x8d   :  { %p8248_p10 = pnand %p8246_p9, %p8243_p8 }
  0x8f   :  { %8251 = shalt.err (!%p8248_p10)
}
  0x90   :  { %s8252_s0 = scalar_lea.vmem %s100_s5, 64  ;;  %p8257_p12 = scmp.lt.s32.totalorder %s100_s5, %s100_s5 }
  0x91   :  { %p8253_p11 = scmp.ne.s32.totalorder %s100_s5, %s8252_s0  ;;  %p8258_p13 = scmp.lt.s32.totalorder %s8252_s0, %s8252_s0 }
  0x93   :  { %p8259_p0 = por %p8258_p13, %p8257_p12 }
  0x95   :  { %p8260_p1 = pnand %p8259_p0, %p8253_p11 }
  0x97   :  { %8263 = shalt.err (!%p8260_p1)
}
  0x98   :  { %102 = dma.hbm_to_vmem [thread:$0]  %s10570_s6, 64, %s100_s5, [#allocation12]  }
  0x99   :  { %s8381_s14 = smov [#allocation16]   ;;  %s8382_s17 = smov [#allocation19]  }
  0x9a   :  { %s120_s16 = sshll.u32 %s8381_s14, 4  ;;  %s143_s20 = sshll.u32 %s8382_s17, 4  ;;  %s121_s16 = int_to_ptr.vmem [resolvable:$true] %s120_s16  ;;  %s144_s20 = int_to_ptr.vmem [resolvable:$true] %s143_s20 }
  0x9b   :  { %s8264_s23 = scalar_lea.hbm %s10572_s8, 32768 }
  0x9c   :  { %p8265_p2 = scmp.ne.s32.totalorder %s10572_s8, %s8264_s23  ;;  %p8268_p3 = scmp.lt.u32.totalorder %s8264_s23, %s10572_s8 }
  0x9e   :  { %p8270_p4 = pnand %p8268_p3, %p8265_p2 }
  0xa0   :  { %8273 = shalt.err (!%p8270_p4)
}
  0xa1   :  { %s8274_s6 = scalar_lea.vmem %s121_s16, 32768  ;;  %p8279_p6 = scmp.lt.s32.totalorder %s121_s16, %s121_s16 }
  0xa2   :  { %p8275_p5 = scmp.ne.s32.totalorder %s121_s16, %s8274_s6  ;;  %p8280_p7 = scmp.lt.s32.totalorder %s8274_s6, %s8274_s6 }
  0xa4   :  { %p8281_p8 = por %p8280_p7, %p8279_p6 }
  0xa6   :  { %p8282_p9 = pnand %p8281_p8, %p8275_p5 }
  0xa8   :  { %8285 = shalt.err (!%p8282_p9)
}
  0xa9   :  { %126 = dma.hbm_to_vmem [thread:$0]  %s10572_s8, 32768, %s121_s16, [#allocation15], %s8373_s22, %s8373_s22, %s8374_s29  }
  0xaa   :  { %s8286_s25 = scalar_lea.hbm %s10574_s10, 64 }
  0xab   :  { %p8287_p10 = scmp.ne.s32.totalorder %s10574_s10, %s8286_s25  ;;  %p8290_p11 = scmp.lt.u32.totalorder %s8286_s25, %s10574_s10 }
  0xad   :  { %p8292_p12 = pnand %p8290_p11, %p8287_p10 }
  0xaf   :  { %8295 = shalt.err (!%p8292_p12)
}
  0xb0   :  { %s8296_s30 = scalar_lea.vmem %s144_s20, 64  ;;  %p8301_p0 = scmp.lt.s32.totalorder %s144_s20, %s144_s20 }
  0xb1   :  { %p8297_p13 = scmp.ne.s32.totalorder %s144_s20, %s8296_s30  ;;  %p8302_p1 = scmp.lt.s32.totalorder %s8296_s30, %s8296_s30 }
  0xb3   :  { %p8303_p2 = por %p8302_p1, %p8301_p0 }
  0xb5   :  { %p8304_p3 = pnand %p8303_p2, %p8297_p13 }
  0xb7   :  { %8307 = shalt.err (!%p8304_p3)
}
  0xb8   :  { %146 = dma.hbm_to_vmem [thread:$0]  %s10574_s10, 64, %s144_s20, [#allocation18]  }
  0xb9   :  { %s8383_s4 = smov [#allocation20]   ;;  %s8308_s17 = scalar_lea.hbm %s10575_s11, 64 }
  0xba   :  { %s153_s13 = sshll.u32 %s8383_s4, 4  ;;  %p8309_p4 = scmp.ne.s32.totalorder %s10575_s11, %s8308_s17  ;;  %s154_s13 = int_to_ptr.vmem [resolvable:$true] %s153_s13 }
  0xbb   :  { %p8312_p5 = scmp.lt.u32.totalorder %s8308_s17, %s10575_s11 }
  0xbd   :  { %p8314_p6 = pnand %p8312_p5, %p8309_p4 }
  0xbf   :  { %8317 = shalt.err (!%p8314_p6)
}
  0xc0   :  { %s8318_s28 = scalar_lea.vmem %s154_s13, 64  ;;  %p8323_p8 = scmp.lt.s32.totalorder %s154_s13, %s154_s13 }
  0xc1   :  { %p8319_p7 = scmp.ne.s32.totalorder %s154_s13, %s8318_s28  ;;  %p8324_p9 = scmp.lt.s32.totalorder %s8318_s28, %s8318_s28 }
  0xc3   :  { %p8325_p10 = por %p8324_p9, %p8323_p8 }
  0xc5   :  { %p8326_p11 = pnand %p8325_p10, %p8319_p7 }
  0xc7   :  { %8329 = shalt.err (!%p8326_p11)
}
  0xc8   :  { %156 = dma.hbm_to_vmem [thread:$0]  %s10575_s11, 64, %s154_s13, [#allocation21]  }
  0xc9   :  { %8352 = dma.done.wait [#allocation3], 1024  }
  0xca   :  { %8353 = vsyncadd [#allocation3], 4294966272 }
  0xcb   :  { %8354 = dma.done.wait [#allocation6], 65600  }
  0xcc   :  { %8355 = vsyncadd [#allocation6], 4294901696 }
  0xcd   :  { %8356 = dma.done.wait [#allocation9], 32832  }
  0xce   :  { %8357 = vsyncadd [#allocation9], 4294934464 }
  0xcf   :  { %8358 = dma.done.wait [#allocation12], 32832  }
  0xd0   :  { %8359 = vsyncadd [#allocation12], 4294934464 }
  0xd1   :  { %8360 = dma.done.wait [#allocation15], 65536  }
  0xd2   :  { %8361 = vsyncadd [#allocation15], 4294901760 }
  0xd3   :  { %8362 = dma.done.wait [#allocation18], 128  }
  0xd4   :  { %8363 = vsyncadd [#allocation18], 4294967168 }
  0xd5   :  { %8364 = dma.done.wait [#allocation21], 64  }
  0xd6   :  { %8365 = vsyncadd [#allocation21], 4294967232  ;;  %v202_v0 = vld [vmem:[#allocation5 + $0x8] sm:$0xff]  ;;  %v204_v2 = vld [vmem:[#allocation5 + $0x18] sm:$0xff]  ;;  %s8385_s11 = smov [#allocation22]  }
  0xd7   :  { %v210_v1 = vld [vmem:[#allocation5 + $0x48] sm:$0xff]  ;;  %v212_v4 = vld [vmem:[#allocation5 + $0x58] sm:$0xff]  ;;  %v201_v5 = vld [vmem:[#allocation5] sm:$0xff]  ;;  %s6178_s24 = sshll.u32 %s8385_s11, 4  ;;  %s6179_s24 = int_to_ptr.vmem [resolvable:$true] %s6178_s24 }
  0xd8   :  { %v6196_v3 = vpack.c.bf16 %v210_v1, %v202_v0  ;;  %v209_v6 = vld [vmem:[#allocation5 + $0x40] sm:$0xff]  ;;  %v6324_v7 = vpack.c.bf16 %v212_v4, %v204_v2  ;;  %v203_v9 = vld [vmem:[#allocation5 + $0x10] sm:$0xff]  ;;  %v218_v11 = vld [vmem:[#allocation5 + $0x88] sm:$0xff]  ;;  %s8330_s2 = scalar_lea.vmem %s6179_s24, 1024  ;;  %p8335_p13 = scmp.lt.s32.totalorder %s6179_s24, %s6179_s24 }
  0xd9   :  { %v6198_v8 = vpack.c.bf16 %v209_v6, %v201_v5  ;;  %v211_v10 = vld [vmem:[#allocation5 + $0x50] sm:$0xff]  ;;  %v226_v13 = vld [vmem:[#allocation5 + $0xc8] sm:$0xff]  ;;  %v220_v14 = vld [vmem:[#allocation5 + $0x98] sm:$0xff]  ;;  %p8331_p12 = scmp.ne.s32.totalorder %s6179_s24, %s8330_s2  ;;  %p8336_p0 = scmp.lt.s32.totalorder %s8330_s2, %s8330_s2 }
  0xda   :  { %6197 = vmatprep.subr.bf16.mxu0 %v6196_v3  ;;  %v6326_v12 = vpack.c.bf16 %v211_v10, %v203_v9  ;;  %v228_v15 = vld [vmem:[#allocation5 + $0xd8] sm:$0xff]  ;;  %6325 = vmatprep.subr.bf16.mxu1 %v6324_v7  ;;  %v6200_v16 = vpack.c.bf16 %v226_v13, %v218_v11  ;;  %v217_v18 = vld [vmem:[#allocation5 + $0x80] sm:$0xff]  ;;  %v219_v20 = vld [vmem:[#allocation5 + $0x90] sm:$0xff] }
  0xdb   :  { %6199 = vmatpush1.bf16.msra.mxu0 %v6198_v8  ;;  %v6328_v17 = vpack.c.bf16 %v228_v15, %v220_v14  ;;  %v225_v19 = vld [vmem:[#allocation5 + $0xc0] sm:$0xff]  ;;  %v227_v22 = vld [vmem:[#allocation5 + $0xd0] sm:$0xff]  ;;  %v234_v23 = vld [vmem:[#allocation5 + $0x108] sm:$0xff]  ;;  %p8337_p1 = por %p8336_p0, %p8335_p13 }
  0xdc   :  { %6327 = vmatpush1.bf16.msra.mxu1 %v6326_v12  ;;  %v6202_v21 = vpack.c.bf16 %v225_v19, %v217_v18  ;;  %v242_v24 = vld [vmem:[#allocation5 + $0x148] sm:$0xff]  ;;  %6201 = vmatprep.subr.bf16.mxu0 %v6200_v16  ;;  %v6330_v25 = vpack.c.bf16 %v227_v22, %v219_v20  ;;  %v236_v27 = vld [vmem:[#allocation5 + $0x118] sm:$0xff]  ;;  %v233_v29 = vld [vmem:[#allocation5 + $0x100] sm:$0xff] }
  0xdd   :  { %6329 = vmatprep.subr.bf16.mxu1 %v6328_v17  ;;  %v6204_v26 = vpack.c.bf16 %v242_v24, %v234_v23  ;;  %v244_v28 = vld [vmem:[#allocation5 + $0x158] sm:$0xff]  ;;  %v241_v31 = vld [vmem:[#allocation5 + $0x140] sm:$0xff]  ;;  %v235_v32 = vld [vmem:[#allocation5 + $0x110] sm:$0xff]  ;;  %p8338_p2 = pnand %p8337_p1, %p8331_p12 }
  0xde   :  { %v6332_v30 = vpack.c.bf16 %v244_v28, %v236_v27  ;;  %v243_v33 = vld [vmem:[#allocation5 + $0x150] sm:$0xff]  ;;  %v6206_v34 = vpack.c.bf16 %v241_v31, %v233_v29  ;;  %v250_v35 = vld [vmem:[#allocation5 + $0x188] sm:$0xff]  ;;  %v252_v37 = vld [vmem:[#allocation5 + $0x198] sm:$0xff] }
  0xdf   :  { %6203 = vmatpush1.bf16.msra.mxu0 %v6202_v21  ;;  %v258_v36 = vld [vmem:[#allocation5 + $0x1c8] sm:$0xff]  ;;  %v6334_v38 = vpack.c.bf16 %v243_v33, %v235_v32  ;;  %v260_v40 = vld [vmem:[#allocation5 + $0x1d8] sm:$0xff]  ;;  %v249_v41 = vld [vmem:[#allocation5 + $0x180] sm:$0xff] }
  0xe0   :  { %6331 = vmatpush1.bf16.msra.mxu1 %v6330_v25  ;;  %6205 = vmatprep.subr.bf16.mxu0 %v6204_v26  ;;  %v6208_v39 = vpack.c.bf16 %v258_v36, %v250_v35  ;;  %v257_v42 = vld [vmem:[#allocation5 + $0x1c0] sm:$0xff]  ;;  %v6336_v43 = vpack.c.bf16 %v260_v40, %v252_v37  ;;  %v251_v44 = vld [vmem:[#allocation5 + $0x190] sm:$0xff]  ;;  %v266_v46 = vld [vmem:[#allocation5 + $0x208] sm:$0xff] }
  0xe1   :  { %6333 = vmatprep.subr.bf16.mxu1 %v6332_v30  ;;  %v259_v45 = vld [vmem:[#allocation5 + $0x1d0] sm:$0xff]  ;;  %v274_v47 = vld [vmem:[#allocation5 + $0x248] sm:$0xff]  ;;  %v268_v48 = vld [vmem:[#allocation5 + $0x218] sm:$0xff]  ;;  %v6210_v50 = vpack.c.bf16 %v257_v42, %v249_v41 }
  0xe2   :  { %v276_v49 = vld [vmem:[#allocation5 + $0x258] sm:$0xff]  ;;  %v6338_v51 = vpack.c.bf16 %v259_v45, %v251_v44  ;;  %v6212_v52 = vpack.c.bf16 %v274_v47, %v266_v46  ;;  %v265_v53 = vld [vmem:[#allocation5 + $0x200] sm:$0xff]  ;;  %v267_v55 = vld [vmem:[#allocation5 + $0x210] sm:$0xff] }
  0xe3   :  { %6207 = vmatpush1.bf16.msra.mxu0 %v6206_v34  ;;  %v273_v54 = vld [vmem:[#allocation5 + $0x240] sm:$0xff]  ;;  %v6340_v56 = vpack.c.bf16 %v276_v49, %v268_v48  ;;  %v275_v57 = vld [vmem:[#allocation5 + $0x250] sm:$0xff]  ;;  %v282_v58 = vld [vmem:[#allocation5 + $0x288] sm:$0xff] }
  0xe4   :  { %6335 = vmatpush1.bf16.msra.mxu1 %v6334_v38  ;;  %6209 = vmatprep.subr.bf16.mxu0 %v6208_v39  ;;  %v290_v59 = vld [vmem:[#allocation5 + $0x2c8] sm:$0xff]  ;;  %v284_v60 = vld [vmem:[#allocation5 + $0x298] sm:$0xff]  ;;  %v6214_v62 = vpack.c.bf16 %v273_v54, %v265_v53  ;;  %v6342_v63 = vpack.c.bf16 %v275_v57, %v267_v55  ;;  %v281_v1 = vld [vmem:[#allocation5 + $0x280] sm:$0xff] }
  0xe5   :  { %6337 = vmatprep.subr.bf16.mxu1 %v6336_v43  ;;  %v292_v61 = vld [vmem:[#allocation5 + $0x2d8] sm:$0xff]  ;;  %v6216_v0 = vpack.c.bf16 %v290_v59, %v282_v58  ;;  %v289_v2 = vld [vmem:[#allocation5 + $0x2c0] sm:$0xff]  ;;  %v283_v3 = vld [vmem:[#allocation5 + $0x290] sm:$0xff] }
  0xe6   :  { %v6344_v4 = vpack.c.bf16 %v292_v61, %v284_v60  ;;  %v291_v5 = vld [vmem:[#allocation5 + $0x2d0] sm:$0xff]  ;;  %v298_v6 = vld [vmem:[#allocation5 + $0x308] sm:$0xff]  ;;  %v300_v8 = vld [vmem:[#allocation5 + $0x318] sm:$0xff]  ;;  %v6218_v10 = vpack.c.bf16 %v289_v2, %v281_v1 }
  0xe7   :  { %6211 = vmatpush1.bf16.msra.mxu0 %v6210_v50  ;;  %v306_v7 = vld [vmem:[#allocation5 + $0x348] sm:$0xff]  ;;  %v308_v9 = vld [vmem:[#allocation5 + $0x358] sm:$0xff]  ;;  %v6346_v11 = vpack.c.bf16 %v291_v5, %v283_v3  ;;  %v297_v13 = vld [vmem:[#allocation5 + $0x300] sm:$0xff] }
  0xe8   :  { %6339 = vmatpush1.bf16.msra.mxu1 %v6338_v51  ;;  %6213 = vmatprep.subr.bf16.mxu0 %v6212_v52  ;;  %v6220_v12 = vpack.c.bf16 %v306_v7, %v298_v6  ;;  %v305_v14 = vld [vmem:[#allocation5 + $0x340] sm:$0xff]  ;;  %v299_v15 = vld [vmem:[#allocation5 + $0x310] sm:$0xff]  ;;  %v6348_v16 = vpack.c.bf16 %v308_v9, %v300_v8  ;;  %v314_v18 = vld [vmem:[#allocation5 + $0x388] sm:$0xff] }
  0xe9   :  { %6341 = vmatprep.subr.bf16.mxu1 %v6340_v56  ;;  %v307_v17 = vld [vmem:[#allocation5 + $0x350] sm:$0xff]  ;;  %v322_v19 = vld [vmem:[#allocation5 + $0x3c8] sm:$0xff]  ;;  %v316_v20 = vld [vmem:[#allocation5 + $0x398] sm:$0xff]  ;;  %v6222_v22 = vpack.c.bf16 %v305_v14, %v297_v13 }
  0xea   :  { %v324_v21 = vld [vmem:[#allocation5 + $0x3d8] sm:$0xff]  ;;  %v6350_v23 = vpack.c.bf16 %v307_v17, %v299_v15  ;;  %v6224_v24 = vpack.c.bf16 %v322_v19, %v314_v18  ;;  %v313_v25 = vld [vmem:[#allocation5 + $0x380] sm:$0xff]  ;;  %v315_v27 = vld [vmem:[#allocation5 + $0x390] sm:$0xff] }
  0xeb   :  { %6215 = vmatpush1.bf16.msra.mxu0 %v6214_v62  ;;  %v321_v26 = vld [vmem:[#allocation5 + $0x3c0] sm:$0xff]  ;;  %v6352_v28 = vpack.c.bf16 %v324_v21, %v316_v20  ;;  %v323_v29 = vld [vmem:[#allocation5 + $0x3d0] sm:$0xff]  ;;  %v330_v30 = vld [vmem:[#allocation5 + $0x408] sm:$0xff] }
  0xec   :  { %6343 = vmatpush1.bf16.msra.mxu1 %v6342_v63  ;;  %6217 = vmatprep.subr.bf16.mxu0 %v6216_v0  ;;  %v338_v31 = vld [vmem:[#allocation5 + $0x448] sm:$0xff]  ;;  %v332_v32 = vld [vmem:[#allocation5 + $0x418] sm:$0xff]  ;;  %v6226_v34 = vpack.c.bf16 %v321_v26, %v313_v25  ;;  %v6354_v35 = vpack.c.bf16 %v323_v29, %v315_v27  ;;  %v329_v37 = vld [vmem:[#allocation5 + $0x400] sm:$0xff] }
  0xed   :  { %6345 = vmatprep.subr.bf16.mxu1 %v6344_v4  ;;  %v340_v33 = vld [vmem:[#allocation5 + $0x458] sm:$0xff]  ;;  %v6228_v36 = vpack.c.bf16 %v338_v31, %v330_v30  ;;  %v337_v38 = vld [vmem:[#allocation5 + $0x440] sm:$0xff]  ;;  %v331_v39 = vld [vmem:[#allocation5 + $0x410] sm:$0xff] }
  0xee   :  { %v6356_v40 = vpack.c.bf16 %v340_v33, %v332_v32  ;;  %v339_v41 = vld [vmem:[#allocation5 + $0x450] sm:$0xff]  ;;  %v346_v42 = vld [vmem:[#allocation5 + $0x488] sm:$0xff]  ;;  %v348_v44 = vld [vmem:[#allocation5 + $0x498] sm:$0xff]  ;;  %v6230_v46 = vpack.c.bf16 %v337_v38, %v329_v37 }
  0xef   :  { %6219 = vmatpush1.bf16.msra.mxu0 %v6218_v10  ;;  %v354_v43 = vld [vmem:[#allocation5 + $0x4c8] sm:$0xff]  ;;  %v356_v45 = vld [vmem:[#allocation5 + $0x4d8] sm:$0xff]  ;;  %v6358_v47 = vpack.c.bf16 %v339_v41, %v331_v39  ;;  %v345_v49 = vld [vmem:[#allocation5 + $0x480] sm:$0xff] }
  0xf0   :  { %6347 = vmatpush1.bf16.msra.mxu1 %v6346_v11  ;;  %6221 = vmatprep.subr.bf16.mxu0 %v6220_v12  ;;  %v6232_v48 = vpack.c.bf16 %v354_v43, %v346_v42  ;;  %v353_v50 = vld [vmem:[#allocation5 + $0x4c0] sm:$0xff]  ;;  %v347_v51 = vld [vmem:[#allocation5 + $0x490] sm:$0xff]  ;;  %v6360_v52 = vpack.c.bf16 %v356_v45, %v348_v44  ;;  %v362_v54 = vld [vmem:[#allocation5 + $0x508] sm:$0xff] }
  0xf1   :  { %6349 = vmatprep.subr.bf16.mxu1 %v6348_v16  ;;  %v355_v53 = vld [vmem:[#allocation5 + $0x4d0] sm:$0xff]  ;;  %v370_v55 = vld [vmem:[#allocation5 + $0x548] sm:$0xff]  ;;  %v364_v56 = vld [vmem:[#allocation5 + $0x518] sm:$0xff]  ;;  %v6234_v58 = vpack.c.bf16 %v353_v50, %v345_v49 }
  0xf2   :  { %v372_v57 = vld [vmem:[#allocation5 + $0x558] sm:$0xff]  ;;  %v6362_v59 = vpack.c.bf16 %v355_v53, %v347_v51  ;;  %v6236_v60 = vpack.c.bf16 %v370_v55, %v362_v54  ;;  %v361_v61 = vld [vmem:[#allocation5 + $0x500] sm:$0xff]  ;;  %v363_v63 = vld [vmem:[#allocation5 + $0x510] sm:$0xff] }
  0xf3   :  { %6223 = vmatpush1.bf16.msra.mxu0 %v6222_v22  ;;  %v369_v62 = vld [vmem:[#allocation5 + $0x540] sm:$0xff]  ;;  %v6364_v0 = vpack.c.bf16 %v372_v57, %v364_v56  ;;  %v371_v1 = vld [vmem:[#allocation5 + $0x550] sm:$0xff]  ;;  %v378_v2 = vld [vmem:[#allocation5 + $0x588] sm:$0xff] }
  0xf4   :  { %6351 = vmatpush1.bf16.msra.mxu1 %v6350_v23  ;;  %6225 = vmatprep.subr.bf16.mxu0 %v6224_v24  ;;  %v386_v3 = vld [vmem:[#allocation5 + $0x5c8] sm:$0xff]  ;;  %v380_v4 = vld [vmem:[#allocation5 + $0x598] sm:$0xff]  ;;  %v6238_v6 = vpack.c.bf16 %v369_v62, %v361_v61  ;;  %v377_v7 = vld [vmem:[#allocation5 + $0x580] sm:$0xff]  ;;  %v6366_v8 = vpack.c.bf16 %v371_v1, %v363_v63 }
  0xf5   :  { %6353 = vmatprep.subr.bf16.mxu1 %v6352_v28  ;;  %v388_v5 = vld [vmem:[#allocation5 + $0x5d8] sm:$0xff]  ;;  %v6240_v9 = vpack.c.bf16 %v386_v3, %v378_v2  ;;  %v385_v10 = vld [vmem:[#allocation5 + $0x5c0] sm:$0xff]  ;;  %v379_v11 = vld [vmem:[#allocation5 + $0x590] sm:$0xff] }
  0xf6   :  { %v387_v12 = vld [vmem:[#allocation5 + $0x5d0] sm:$0xff]  ;;  %v6368_v13 = vpack.c.bf16 %v388_v5, %v380_v4  ;;  %v394_v14 = vld [vmem:[#allocation5 + $0x608] sm:$0xff]  ;;  %v396_v17 = vld [vmem:[#allocation5 + $0x618] sm:$0xff]  ;;  %v6242_v19 = vpack.c.bf16 %v385_v10, %v377_v7 }
  0xf7   :  { %6227 = vmatpush1.bf16.msra.mxu0 %v6226_v34  ;;  %v402_v15 = vld [vmem:[#allocation5 + $0x648] sm:$0xff]  ;;  %v404_v18 = vld [vmem:[#allocation5 + $0x658] sm:$0xff]  ;;  %v6370_v20 = vpack.c.bf16 %v387_v12, %v379_v11  ;;  %v393_v22 = vld [vmem:[#allocation5 + $0x600] sm:$0xff] }
  0xf8   :  { %6355 = vmatpush1.bf16.msra.mxu1 %v6354_v35  ;;  %6229 = vmatprep.subr.bf16.mxu0 %v6228_v36  ;;  %v8610_v16 = vld [vmem:[#allocation2 + $0x8] sm:$0xff]  ;;  %v6244_v21 = vpack.c.bf16 %v402_v15, %v394_v14  ;;  %v401_v23 = vld [vmem:[#allocation5 + $0x640] sm:$0xff]  ;;  %v395_v24 = vld [vmem:[#allocation5 + $0x610] sm:$0xff]  ;;  %v6372_v25 = vpack.c.bf16 %v404_v18, %v396_v17 }
  0xf9   :  { %6357 = vmatprep.subr.bf16.mxu1 %v6356_v40  ;;  %777 = vmatprep.mubr.f32.mxu0 %v8610_v16  ;;  %v403_v26 = vld [vmem:[#allocation5 + $0x650] sm:$0xff]  ;;  %v410_v27 = vld [vmem:[#allocation5 + $0x688] sm:$0xff]  ;;  %v412_v29 = vld [vmem:[#allocation5 + $0x698] sm:$0xff]  ;;  %v6246_v31 = vpack.c.bf16 %v401_v23, %v393_v22 }
  0xfa   :  { %931 = vmatprep.mubr.f32.mxu1 %v8610_v16  ;;  %v418_v28 = vld [vmem:[#allocation5 + $0x6c8] sm:$0xff]  ;;  %v420_v30 = vld [vmem:[#allocation5 + $0x6d8] sm:$0xff]  ;;  %v6374_v32 = vpack.c.bf16 %v403_v26, %v395_v24  ;;  %v409_v34 = vld [vmem:[#allocation5 + $0x680] sm:$0xff] }
  0xfb   :  { %6231 = vmatpush1.bf16.msra.mxu0 %v6230_v46  ;;  %v6248_v33 = vpack.c.bf16 %v418_v28, %v410_v27  ;;  %v417_v35 = vld [vmem:[#allocation5 + $0x6c0] sm:$0xff]  ;;  %v411_v36 = vld [vmem:[#allocation5 + $0x690] sm:$0xff]  ;;  %v6376_v37 = vpack.c.bf16 %v420_v30, %v412_v29  ;;  %v426_v39 = vld [vmem:[#allocation5 + $0x708] sm:$0xff] }
  0xfc   :  { %6359 = vmatpush1.bf16.msra.mxu1 %v6358_v47  ;;  %6233 = vmatprep.subr.bf16.mxu0 %v6232_v48  ;;  %v419_v38 = vld [vmem:[#allocation5 + $0x6d0] sm:$0xff]  ;;  %v434_v40 = vld [vmem:[#allocation5 + $0x748] sm:$0xff]  ;;  %v428_v41 = vld [vmem:[#allocation5 + $0x718] sm:$0xff]  ;;  %v6250_v43 = vpack.c.bf16 %v417_v35, %v409_v34 }
  0xfd   :  { %6361 = vmatprep.subr.bf16.mxu1 %v6360_v52  ;;  %v436_v42 = vld [vmem:[#allocation5 + $0x758] sm:$0xff]  ;;  %v6378_v44 = vpack.c.bf16 %v419_v38, %v411_v36  ;;  %v6252_v45 = vpack.c.bf16 %v434_v40, %v426_v39  ;;  %v425_v46 = vld [vmem:[#allocation5 + $0x700] sm:$0xff]  ;;  %v427_v48 = vld [vmem:[#allocation5 + $0x710] sm:$0xff] }
  0xfe   :  { %v433_v47 = vld [vmem:[#allocation5 + $0x740] sm:$0xff]  ;;  %v6380_v49 = vpack.c.bf16 %v436_v42, %v428_v41  ;;  %v435_v50 = vld [vmem:[#allocation5 + $0x750] sm:$0xff]  ;;  %v442_v51 = vld [vmem:[#allocation5 + $0x788] sm:$0xff] }
  0xff   :  { %6235 = vmatpush1.bf16.msra.mxu0 %v6234_v58  ;;  %v450_v52 = vld [vmem:[#allocation5 + $0x7c8] sm:$0xff]  ;;  %v444_v53 = vld [vmem:[#allocation5 + $0x798] sm:$0xff]  ;;  %v6254_v55 = vpack.c.bf16 %v433_v47, %v425_v46  ;;  %v6382_v56 = vpack.c.bf16 %v435_v50, %v427_v48  ;;  %v441_v58 = vld [vmem:[#allocation5 + $0x780] sm:$0xff] }
 0x100   :  { %6363 = vmatpush1.bf16.msra.mxu1 %v6362_v59  ;;  %6237 = vmatprep.subr.bf16.mxu0 %v6236_v60  ;;  %v452_v54 = vld [vmem:[#allocation5 + $0x7d8] sm:$0xff]  ;;  %v6256_v57 = vpack.c.bf16 %v450_v52, %v442_v51  ;;  %v449_v59 = vld [vmem:[#allocation5 + $0x7c0] sm:$0xff]  ;;  %v443_v60 = vld [vmem:[#allocation5 + $0x790] sm:$0xff] }
 0x101   :  { %6365 = vmatprep.subr.bf16.mxu1 %v6364_v0  ;;  %v6384_v61 = vpack.c.bf16 %v452_v54, %v444_v53  ;;  %v451_v62 = vld [vmem:[#allocation5 + $0x7d0] sm:$0xff]  ;;  %v458_v63 = vld [vmem:[#allocation5 + $0x808] sm:$0xff]  ;;  %v460_v1 = vld [vmem:[#allocation5 + $0x818] sm:$0xff]  ;;  %v6258_v3 = vpack.c.bf16 %v449_v59, %v441_v58 }
 0x102   :  { %v466_v0 = vld [vmem:[#allocation5 + $0x848] sm:$0xff]  ;;  %v468_v2 = vld [vmem:[#allocation5 + $0x858] sm:$0xff]  ;;  %v6386_v4 = vpack.c.bf16 %v451_v62, %v443_v60  ;;  %v465_v7 = vld [vmem:[#allocation5 + $0x840] sm:$0xff] }
 0x103   :  { %6239 = vmatpush1.bf16.msra.mxu0 %v6238_v6  ;;  %v6260_v5 = vpack.c.bf16 %v466_v0, %v458_v63  ;;  %v457_v6 = vld [vmem:[#allocation5 + $0x800] sm:$0xff]  ;;  %v467_v10 = vld [vmem:[#allocation5 + $0x850] sm:$0xff]  ;;  %v474_v11 = vld [vmem:[#allocation5 + $0x888] sm:$0xff] }
 0x104   :  { %6367 = vmatpush1.bf16.msra.mxu1 %v6366_v8  ;;  %6241 = vmatprep.subr.bf16.mxu0 %v6240_v9  ;;  %v459_v8 = vld [vmem:[#allocation5 + $0x810] sm:$0xff]  ;;  %v6388_v9 = vpack.c.bf16 %v468_v2, %v460_v1  ;;  %v482_v12 = vld [vmem:[#allocation5 + $0x8c8] sm:$0xff]  ;;  %v484_v14 = vld [vmem:[#allocation5 + $0x8d8] sm:$0xff]  ;;  %v6262_v17 = vpack.c.bf16 %v465_v7, %v457_v6 }
 0x105   :  { %6369 = vmatprep.subr.bf16.mxu1 %v6368_v13  ;;  %v476_v13 = vld [vmem:[#allocation5 + $0x898] sm:$0xff]  ;;  %v193_v15 = vld [vmem:[#allocation2] sm:$0xff]  ;;  %v6390_v18 = vpack.c.bf16 %v467_v10, %v459_v8  ;;  %v475_v22 = vld [vmem:[#allocation5 + $0x890] sm:$0xff] }
 0x106   :  { %v6392_v23 = vpack.c.bf16 %v484_v14, %v476_v13  ;;  %v483_v24 = vld [vmem:[#allocation5 + $0x8d0] sm:$0xff]  ;;  %v498_v26 = vld [vmem:[#allocation5 + $0x948] sm:$0xff]  ;;  %v492_v27 = vld [vmem:[#allocation5 + $0x918] sm:$0xff] }
 0x107   :  { %6243 = vmatpush1.bf16.msra.mxu0 %v6242_v19  ;;  %v6264_v19 = vpack.c.bf16 %v482_v12, %v474_v11  ;;  %v500_v28 = vld [vmem:[#allocation5 + $0x958] sm:$0xff]  ;;  %v6394_v30 = vpack.c.bf16 %v483_v24, %v475_v22  ;;  %v491_v34 = vld [vmem:[#allocation5 + $0x910] sm:$0xff]  ;;  %v514_v38 = vld [vmem:[#allocation5 + $0x9c8] sm:$0xff] }
 0x108   :  { %6371 = vmatpush1.bf16.msra.mxu1 %v6370_v20  ;;  %6245 = vmatprep.subr.bf16.mxu0 %v6244_v21  ;;  %v473_v20 = vld [vmem:[#allocation5 + $0x880] sm:$0xff]  ;;  %v6396_v35 = vpack.c.bf16 %v500_v28, %v492_v27  ;;  %v499_v36 = vld [vmem:[#allocation5 + $0x950] sm:$0xff]  ;;  %v508_v39 = vld [vmem:[#allocation5 + $0x998] sm:$0xff] }
 0x109   :  { %6373 = vmatprep.subr.bf16.mxu1 %v6372_v25  ;;  %v481_v21 = vld [vmem:[#allocation5 + $0x8c0] sm:$0xff]  ;;  %v490_v25 = vld [vmem:[#allocation5 + $0x908] sm:$0xff]  ;;  %v516_v40 = vld [vmem:[#allocation5 + $0x9d8] sm:$0xff]  ;;  %v6398_v42 = vpack.c.bf16 %v499_v36, %v491_v34 }
 0x10a   :  { %v6266_v29 = vpack.c.bf16 %v481_v21, %v473_v20  ;;  %v507_v46 = vld [vmem:[#allocation5 + $0x990] sm:$0xff]  ;;  %v6400_v47 = vpack.c.bf16 %v516_v40, %v508_v39  ;;  %v530_v50 = vld [vmem:[#allocation5 + $0xa48] sm:$0xff]  ;;  %v524_v51 = vld [vmem:[#allocation5 + $0xa18] sm:$0xff] }
 0x10b   :  { %6247 = vmatpush1.bf16.msra.mxu0 %v6246_v31  ;;  %v6268_v31 = vpack.c.bf16 %v498_v26, %v490_v25  ;;  %v515_v48 = vld [vmem:[#allocation5 + $0x9d0] sm:$0xff]  ;;  %v532_v52 = vld [vmem:[#allocation5 + $0xa58] sm:$0xff]  ;;  %v546_v62 = vld [vmem:[#allocation5 + $0xac8] sm:$0xff] }
 0x10c   :  { %6375 = vmatpush1.bf16.msra.mxu1 %v6374_v32  ;;  %6249 = vmatprep.subr.bf16.mxu0 %v6248_v33  ;;  %v489_v32 = vld [vmem:[#allocation5 + $0x900] sm:$0xff]  ;;  %v6402_v54 = vpack.c.bf16 %v515_v48, %v507_v46  ;;  %v523_v58 = vld [vmem:[#allocation5 + $0xa10] sm:$0xff]  ;;  %v6404_v59 = vpack.c.bf16 %v532_v52, %v524_v51  ;;  %v540_v63 = vld [vmem:[#allocation5 + $0xa98] sm:$0xff] }
 0x10d   :  { %6377 = vmatprep.subr.bf16.mxu1 %v6376_v37  ;;  %v497_v33 = vld [vmem:[#allocation5 + $0x940] sm:$0xff]  ;;  %v506_v37 = vld [vmem:[#allocation5 + $0x988] sm:$0xff]  ;;  %v531_v60 = vld [vmem:[#allocation5 + $0xa50] sm:$0xff] }
 0x10e   :  { %v6270_v41 = vpack.c.bf16 %v497_v33, %v489_v32  ;;  %v548_v0 = vld [vmem:[#allocation5 + $0xad8] sm:$0xff]  ;;  %v6406_v2 = vpack.c.bf16 %v531_v60, %v523_v58  ;;  %v539_v6 = vld [vmem:[#allocation5 + $0xa90] sm:$0xff]  ;;  %v562_v10 = vld [vmem:[#allocation5 + $0xb48] sm:$0xff] }
 0x10f   :  { %6251 = vmatpush1.bf16.msra.mxu0 %v6250_v43  ;;  %v6272_v43 = vpack.c.bf16 %v514_v38, %v506_v37  ;;  %v6408_v7 = vpack.c.bf16 %v548_v0, %v540_v63  ;;  %v547_v8 = vld [vmem:[#allocation5 + $0xad0] sm:$0xff]  ;;  %v556_v11 = vld [vmem:[#allocation5 + $0xb18] sm:$0xff]  ;;  %v8614_v13 = vld [vmem:[#allocation2 + $0x28] sm:$0xff] }
 0x110   :  { %6379 = vmatpush1.bf16.msra.mxu1 %v6378_v44  ;;  %6253 = vmatprep.subr.bf16.mxu0 %v6252_v45  ;;  %v505_v44 = vld [vmem:[#allocation5 + $0x980] sm:$0xff]  ;;  %v564_v12 = vld [vmem:[#allocation5 + $0xb58] sm:$0xff]  ;;  %v555_v21 = vld [vmem:[#allocation5 + $0xb10] sm:$0xff] }
 0x111   :  { %6381 = vmatprep.subr.bf16.mxu1 %v6380_v49  ;;  %v513_v45 = vld [vmem:[#allocation5 + $0x9c0] sm:$0xff]  ;;  %v522_v49 = vld [vmem:[#allocation5 + $0xa08] sm:$0xff]  ;;  %v563_v22 = vld [vmem:[#allocation5 + $0xb50] sm:$0xff] }
 0x112   :  { %v6274_v53 = vpack.c.bf16 %v513_v45, %v505_v44  ;;  %v561_v20 = vld [vmem:[#allocation5 + $0xb40] sm:$0xff]  ;;  %v570_v24 = vld [vmem:[#allocation5 + $0xb88] sm:$0xff]  ;;  %v8620_v26 = vld [vmem:[#allocation2 + $0x18] sm:$0xff] }
 0x113   :  { %6255 = vmatpush1.bf16.msra.mxu0 %v6254_v55  ;;  %v6276_v55 = vpack.c.bf16 %v530_v50, %v522_v49  ;;  %v578_v25 = vld [vmem:[#allocation5 + $0xbc8] sm:$0xff]  ;;  %v572_v27 = vld [vmem:[#allocation5 + $0xb98] sm:$0xff]  ;;  %v569_v32 = vld [vmem:[#allocation5 + $0xb80] sm:$0xff] }
 0x114   :  { %6383 = vmatpush1.bf16.msra.mxu1 %v6382_v56  ;;  %6257 = vmatprep.subr.bf16.mxu0 %v6256_v57  ;;  %v521_v56 = vld [vmem:[#allocation5 + $0xa00] sm:$0xff]  ;;  %v580_v28 = vld [vmem:[#allocation5 + $0xbd8] sm:$0xff]  ;;  %v571_v34 = vld [vmem:[#allocation5 + $0xb90] sm:$0xff] }
 0x115   :  { %6385 = vmatprep.subr.bf16.mxu1 %v6384_v61  ;;  %v529_v57 = vld [vmem:[#allocation5 + $0xa40] sm:$0xff]  ;;  %v538_v61 = vld [vmem:[#allocation5 + $0xa88] sm:$0xff]  ;;  %v579_v36 = vld [vmem:[#allocation5 + $0xbd0] sm:$0xff] }
 0x116   :  { %v6278_v1 = vpack.c.bf16 %v529_v57, %v521_v56  ;;  %v577_v33 = vld [vmem:[#allocation5 + $0xbc0] sm:$0xff]  ;;  %v586_v37 = vld [vmem:[#allocation5 + $0xc08] sm:$0xff]  ;;  %v588_v39 = vld [vmem:[#allocation5 + $0xc18] sm:$0xff] }
 0x117   :  { %6259 = vmatpush1.bf16.msra.mxu0 %v6258_v3  ;;  %v6280_v3 = vpack.c.bf16 %v546_v62, %v538_v61  ;;  %v594_v38 = vld [vmem:[#allocation5 + $0xc48] sm:$0xff]  ;;  %v596_v40 = vld [vmem:[#allocation5 + $0xc58] sm:$0xff]  ;;  %v585_v44 = vld [vmem:[#allocation5 + $0xc00] sm:$0xff] }
 0x118   :  { %6387 = vmatpush1.bf16.msra.mxu1 %v6386_v4  ;;  %6261 = vmatprep.subr.bf16.mxu0 %v6260_v5  ;;  %v537_v4 = vld [vmem:[#allocation5 + $0xa80] sm:$0xff]  ;;  %v587_v46 = vld [vmem:[#allocation5 + $0xc10] sm:$0xff]  ;;  %v602_v49 = vld [vmem:[#allocation5 + $0xc88] sm:$0xff] }
 0x119   :  { %6389 = vmatprep.subr.bf16.mxu1 %v6388_v9  ;;  %v545_v5 = vld [vmem:[#allocation5 + $0xac0] sm:$0xff]  ;;  %v554_v9 = vld [vmem:[#allocation5 + $0xb08] sm:$0xff]  ;;  %v595_v48 = vld [vmem:[#allocation5 + $0xc50] sm:$0xff] }
 0x11a   :  { %778 = vmatmul.mubr.f32.vlgmr.msra.gmra.mrb[0].mxu0 %v193_v15  ;;  %v6282_v14 = vpack.c.bf16 %v545_v5, %v537_v4  ;;  %v593_v45 = vld [vmem:[#allocation5 + $0xc40] sm:$0xff]  ;;  %v610_v50 = vld [vmem:[#allocation5 + $0xcc8] sm:$0xff]  ;;  %v604_v51 = vld [vmem:[#allocation5 + $0xc98] sm:$0xff] }
 0x11b   :  { %6263 = vmatpush1.bf16.msra.mxu0 %v6262_v17  ;;  %932 = vmatmul.mubr.f32.vlgmr.msra.gmra.mrb[0].mxu1 %v193_v15  ;;  %v553_v15 = vld [vmem:[#allocation5 + $0xb00] sm:$0xff]  ;;  %v612_v52 = vld [vmem:[#allocation5 + $0xcd8] sm:$0xff]  ;;  %v603_v58 = vld [vmem:[#allocation5 + $0xc90] sm:$0xff] }
 0x11c   :  { %6391 = vmatpush1.bf16.msra.mxu1 %v6390_v18  ;;  %6265 = vmatprep.subr.bf16.mxu0 %v6264_v19  ;;  %v8617_v17 = vld [vmem:[#allocation2 + $0x20] sm:$0xff]  ;;  %v6410_v18 = vpack.c.bf16 %v547_v8, %v539_v6  ;;  %v6284_v19 = vpack.c.bf16 %v562_v10, %v554_v9  ;;  %v611_v60 = vld [vmem:[#allocation5 + $0xcd0] sm:$0xff]  ;;  %v618_v61 = vld [vmem:[#allocation5 + $0xd08] sm:$0xff] }
 0x11d   :  { %6393 = vmatprep.subr.bf16.mxu1 %v6392_v23  ;;  %783 = vmatprep.mubr.f32.mxu0 %v8614_v13  ;;  %v6412_v23 = vpack.c.bf16 %v564_v12, %v556_v11  ;;  %v601_v56 = vld [vmem:[#allocation5 + $0xc80] sm:$0xff]  ;;  %v626_v62 = vld [vmem:[#allocation5 + $0xd48] sm:$0xff]  ;;  %v620_v63 = vld [vmem:[#allocation5 + $0xd18] sm:$0xff] }
 0x11e   :  { %937 = vmatprep.mubr.f32.mxu1 %v8614_v13  ;;  %784 = vmatmul.mubr.f32.gmra.mrb[2].mxu0 %v8617_v17  ;;  %v609_v57 = vld [vmem:[#allocation5 + $0xcc0] sm:$0xff]  ;;  %v628_v0 = vld [vmem:[#allocation5 + $0xd58] sm:$0xff]  ;;  %v619_v6 = vld [vmem:[#allocation5 + $0xd10] sm:$0xff] }
 0x11f   :  { %6267 = vmatpush1.bf16.msra.mxu0 %v6266_v29  ;;  %938 = vmatmul.mubr.f32.gmra.mrb[2].mxu1 %v8617_v17  ;;  %v6286_v29 = vpack.c.bf16 %v561_v20, %v553_v15  ;;  %v617_v4 = vld [vmem:[#allocation5 + $0xd00] sm:$0xff]  ;;  %v627_v8 = vld [vmem:[#allocation5 + $0xd50] sm:$0xff]  ;;  %v634_v9 = vld [vmem:[#allocation5 + $0xd88] sm:$0xff] }
 0x120   :  { %6395 = vmatpush1.bf16.msra.mxu1 %v6394_v30  ;;  %6269 = vmatprep.subr.bf16.mxu0 %v6268_v31  ;;  %v6414_v30 = vpack.c.bf16 %v563_v22, %v555_v21  ;;  %v6288_v31 = vpack.c.bf16 %v578_v25, %v570_v24  ;;  %v625_v5 = vld [vmem:[#allocation5 + $0xd40] sm:$0xff]  ;;  %v642_v10 = vld [vmem:[#allocation5 + $0xdc8] sm:$0xff]  ;;  %v636_v11 = vld [vmem:[#allocation5 + $0xd98] sm:$0xff]  ;;  %v6430_v15 = vpack.c.bf16 %v627_v8, %v619_v6 }
 0x121   :  { %6397 = vmatprep.subr.bf16.mxu1 %v6396_v35  ;;  %854 = vmatprep.mubr.f32.mxu0 %v8620_v26  ;;  %v6416_v35 = vpack.c.bf16 %v580_v28, %v572_v27  ;;  %v644_v12 = vld [vmem:[#allocation5 + $0xdd8] sm:$0xff]  ;;  %v641_v20 = vld [vmem:[#allocation5 + $0xdc0] sm:$0xff]  ;;  %v635_v21 = vld [vmem:[#allocation5 + $0xd90] sm:$0xff] }
 0x122   :  { %1008 = vmatprep.mubr.f32.mxu1 %v8620_v26  ;;  %v6432_v22 = vpack.c.bf16 %v644_v12, %v636_v11  ;;  %v650_v24 = vld [vmem:[#allocation5 + $0xe08] sm:$0xff]  ;;  %v652_v27 = vld [vmem:[#allocation5 + $0xe18] sm:$0xff]  ;;  %v699_v6 = vld [vmem:[#allocation5 + $0xf90] sm:$0xff] }
 0x123   :  { %6271 = vmatpush1.bf16.msra.mxu0 %v6270_v41  ;;  %v6290_v41 = vpack.c.bf16 %v577_v33, %v569_v32  ;;  %v658_v25 = vld [vmem:[#allocation5 + $0xe48] sm:$0xff]  ;;  %v660_v28 = vld [vmem:[#allocation5 + $0xe58] sm:$0xff]  ;;  %v649_v32 = vld [vmem:[#allocation5 + $0xe00] sm:$0xff] }
 0x124   :  { %6399 = vmatpush1.bf16.msra.mxu1 %v6398_v42  ;;  %6273 = vmatprep.subr.bf16.mxu0 %v6272_v43  ;;  %v6418_v42 = vpack.c.bf16 %v579_v36, %v571_v34  ;;  %v6292_v43 = vpack.c.bf16 %v594_v38, %v586_v37  ;;  %v657_v33 = vld [vmem:[#allocation5 + $0xe40] sm:$0xff]  ;;  %v651_v34 = vld [vmem:[#allocation5 + $0xe10] sm:$0xff]  ;;  %v666_v37 = vld [vmem:[#allocation5 + $0xe88] sm:$0xff] }
 0x125   :  { %6401 = vmatprep.subr.bf16.mxu1 %v6400_v47  ;;  %v6420_v47 = vpack.c.bf16 %v596_v40, %v588_v39  ;;  %v659_v36 = vld [vmem:[#allocation5 + $0xe50] sm:$0xff]  ;;  %v674_v38 = vld [vmem:[#allocation5 + $0xec8] sm:$0xff]  ;;  %v668_v39 = vld [vmem:[#allocation5 + $0xe98] sm:$0xff] }
 0x126   :  { %v676_v40 = vld [vmem:[#allocation5 + $0xed8] sm:$0xff]  ;;  %v707_v8 = vld [vmem:[#allocation5 + $0xfd0] sm:$0xff] }
 0x127   :  { %6275 = vmatpush1.bf16.msra.mxu0 %v6274_v53  ;;  %v6294_v53 = vpack.c.bf16 %v593_v45, %v585_v44  ;;  %v665_v44 = vld [vmem:[#allocation5 + $0xe80] sm:$0xff]  ;;  %v208_v11 = vld [vmem:[#allocation5 + $0x38] sm:$0xff] }
 0x128   :  { %6403 = vmatpush1.bf16.msra.mxu1 %v6402_v54  ;;  %6277 = vmatprep.subr.bf16.mxu0 %v6276_v55  ;;  %v6422_v54 = vpack.c.bf16 %v595_v48, %v587_v46  ;;  %v6296_v55 = vpack.c.bf16 %v610_v50, %v602_v49  ;;  %v673_v45 = vld [vmem:[#allocation5 + $0xec0] sm:$0xff]  ;;  %v667_v46 = vld [vmem:[#allocation5 + $0xe90] sm:$0xff]  ;;  %v682_v49 = vld [vmem:[#allocation5 + $0xf08] sm:$0xff] }
 0x129   :  { %6405 = vmatprep.subr.bf16.mxu1 %v6404_v59  ;;  %v6424_v59 = vpack.c.bf16 %v612_v52, %v604_v51  ;;  %v675_v48 = vld [vmem:[#allocation5 + $0xed0] sm:$0xff]  ;;  %v690_v50 = vld [vmem:[#allocation5 + $0xf48] sm:$0xff]  ;;  %v684_v51 = vld [vmem:[#allocation5 + $0xf18] sm:$0xff] }
 0x12a   :  { %v692_v52 = vld [vmem:[#allocation5 + $0xf58] sm:$0xff] }
 0x12b   :  { %6279 = vmatpush1.bf16.msra.mxu0 %v6278_v1  ;;  %v6298_v1 = vpack.c.bf16 %v609_v57, %v601_v56  ;;  %v681_v56 = vld [vmem:[#allocation5 + $0xf00] sm:$0xff]  ;;  %v216_v12 = vld [vmem:[#allocation5 + $0x78] sm:$0xff] }
 0x12c   :  { %6407 = vmatpush1.bf16.msra.mxu1 %v6406_v2  ;;  %6281 = vmatprep.subr.bf16.mxu0 %v6280_v3  ;;  %v6426_v2 = vpack.c.bf16 %v611_v60, %v603_v58  ;;  %v6300_v3 = vpack.c.bf16 %v626_v62, %v618_v61  ;;  %v689_v57 = vld [vmem:[#allocation5 + $0xf40] sm:$0xff]  ;;  %v683_v58 = vld [vmem:[#allocation5 + $0xf10] sm:$0xff]  ;;  %v698_v61 = vld [vmem:[#allocation5 + $0xf88] sm:$0xff] }
 0x12d   :  { %6409 = vmatprep.subr.bf16.mxu1 %v6408_v7  ;;  %v6428_v7 = vpack.c.bf16 %v628_v0, %v620_v63  ;;  %v691_v60 = vld [vmem:[#allocation5 + $0xf50] sm:$0xff]  ;;  %v706_v62 = vld [vmem:[#allocation5 + $0xfc8] sm:$0xff]  ;;  %v700_v63 = vld [vmem:[#allocation5 + $0xf98] sm:$0xff] }
 0x12e   :  { %v708_v0 = vld [vmem:[#allocation5 + $0xfd8] sm:$0xff] }
 0x12f   :  { %6283 = vmatpush1.bf16.msra.mxu0 %v6282_v14  ;;  %v6302_v14 = vpack.c.bf16 %v625_v5, %v617_v4  ;;  %v697_v4 = vld [vmem:[#allocation5 + $0xf80] sm:$0xff] }
 0x130   :  { %6411 = vmatpush1.bf16.msra.mxu1 %v6410_v18  ;;  %6285 = vmatprep.subr.bf16.mxu0 %v6284_v19  ;;  %v6304_v18 = vpack.c.bf16 %v642_v10, %v634_v9  ;;  %v633_v19 = vld [vmem:[#allocation5 + $0xd80] sm:$0xff]  ;;  %v206_v9 = vld [vmem:[#allocation5 + $0x28] sm:$0xff] }
 0x131   :  { %6413 = vmatprep.subr.bf16.mxu1 %v6412_v23  ;;  %v643_v23 = vld [vmem:[#allocation5 + $0xdd0] sm:$0xff]  ;;  %v705_v5 = vld [vmem:[#allocation5 + $0xfc0] sm:$0xff]  ;;  %v214_v10 = vld [vmem:[#allocation5 + $0x68] sm:$0xff] }
 0x133   :  { %6287 = vmatpush1.bf16.msra.mxu0 %v6286_v29  ;;  %v6306_v29 = vpack.c.bf16 %v641_v20, %v633_v19  ;;  %v205_v19 = vld [vmem:[#allocation5 + $0x20] sm:$0xff] }
 0x134   :  { %6415 = vmatpush1.bf16.msra.mxu1 %v6414_v30  ;;  %6289 = vmatprep.subr.bf16.mxu0 %v6288_v31  ;;  %v6434_v30 = vpack.c.bf16 %v643_v23, %v635_v21  ;;  %v6308_v31 = vpack.c.bf16 %v658_v25, %v650_v24  ;;  %v213_v20 = vld [vmem:[#allocation5 + $0x60] sm:$0xff]  ;;  %v6580_v21 = vpack.c.bf16 %v216_v12, %v208_v11  ;;  %v215_v23 = vld [vmem:[#allocation5 + $0x70] sm:$0xff]  ;;  %v222_v25 = vld [vmem:[#allocation5 + $0xa8] sm:$0xff] }
 0x135   :  { %6417 = vmatprep.subr.bf16.mxu1 %v6416_v35  ;;  %v6436_v35 = vpack.c.bf16 %v660_v28, %v652_v27  ;;  %v195_v24 = vld [vmem:[#allocation2 + $0x10] sm:$0xff]  ;;  %v230_v27 = vld [vmem:[#allocation5 + $0xe8] sm:$0xff]  ;;  %v6454_v28 = vpack.c.bf16 %v213_v20, %v205_v19 }
 0x136   :  { %v279_v11 = vld [vmem:[#allocation5 + $0x270] sm:$0xff]  ;;  %v286_v12 = vld [vmem:[#allocation5 + $0x2a8] sm:$0xff] }
 0x137   :  { %6291 = vmatpush1.bf16.msra.mxu0 %v6290_v41  ;;  %v6310_v41 = vpack.c.bf16 %v657_v33, %v649_v32  ;;  %v221_v33 = vld [vmem:[#allocation5 + $0xa0] sm:$0xff] }
 0x138   :  { %6419 = vmatpush1.bf16.msra.mxu1 %v6418_v42  ;;  %6293 = vmatprep.subr.bf16.mxu0 %v6292_v43  ;;  %v6438_v42 = vpack.c.bf16 %v659_v36, %v651_v34  ;;  %v6312_v43 = vpack.c.bf16 %v674_v38, %v666_v37  ;;  %v229_v34 = vld [vmem:[#allocation5 + $0xe0] sm:$0xff]  ;;  %v6456_v36 = vpack.c.bf16 %v230_v27, %v222_v25  ;;  %v231_v37 = vld [vmem:[#allocation5 + $0xf0] sm:$0xff]  ;;  %v238_v38 = vld [vmem:[#allocation5 + $0x128] sm:$0xff] }
 0x139   :  { %6421 = vmatprep.subr.bf16.mxu1 %v6420_v47  ;;  %v6440_v47 = vpack.c.bf16 %v676_v40, %v668_v39  ;;  %v246_v39 = vld [vmem:[#allocation5 + $0x168] sm:$0xff]  ;;  %v295_v25 = vld [vmem:[#allocation5 + $0x2f0] sm:$0xff] }
 0x13a   :  { %v302_v27 = vld [vmem:[#allocation5 + $0x328] sm:$0xff] }
 0x13b   :  { %6295 = vmatpush1.bf16.msra.mxu0 %v6294_v53  ;;  %v6314_v53 = vpack.c.bf16 %v673_v45, %v665_v44  ;;  %v6458_v44 = vpack.c.bf16 %v229_v34, %v221_v33  ;;  %v301_v34 = vld [vmem:[#allocation5 + $0x320] sm:$0xff] }
 0x13c   :  { %6423 = vmatpush1.bf16.msra.mxu1 %v6422_v54  ;;  %6297 = vmatprep.subr.bf16.mxu0 %v6296_v55  ;;  %v6442_v54 = vpack.c.bf16 %v675_v48, %v667_v46  ;;  %v6316_v55 = vpack.c.bf16 %v690_v50, %v682_v49  ;;  %v6460_v46 = vpack.c.bf16 %v246_v39, %v238_v38  ;;  %v245_v48 = vld [vmem:[#allocation5 + $0x160] sm:$0xff]  ;;  %v239_v49 = vld [vmem:[#allocation5 + $0x130] sm:$0xff]  ;;  %v318_v39 = vld [vmem:[#allocation5 + $0x3a8] sm:$0xff] }
 0x13d   :  { %6425 = vmatprep.subr.bf16.mxu1 %v6424_v59  ;;  %v6444_v59 = vpack.c.bf16 %v692_v52, %v684_v51  ;;  %v247_v51 = vld [vmem:[#allocation5 + $0x170] sm:$0xff]  ;;  %v254_v52 = vld [vmem:[#allocation5 + $0x1a8] sm:$0xff] }
 0x13e   :  { %v311_v38 = vld [vmem:[#allocation5 + $0x370] sm:$0xff] }
 0x13f   :  { %6299 = vmatpush1.bf16.msra.mxu0 %v6298_v1  ;;  %v6318_v1 = vpack.c.bf16 %v689_v57, %v681_v56  ;;  %v6590_v57 = vpack.c.bf16 %v247_v51, %v239_v49  ;;  %v334_v51 = vld [vmem:[#allocation5 + $0x428] sm:$0xff] }
 0x140   :  { %6427 = vmatpush1.bf16.msra.mxu1 %v6426_v2  ;;  %6301 = vmatprep.subr.bf16.mxu0 %v6300_v3  ;;  %v6446_v2 = vpack.c.bf16 %v691_v60, %v683_v58  ;;  %v6320_v3 = vpack.c.bf16 %v706_v62, %v698_v61  ;;  %v261_v60 = vld [vmem:[#allocation5 + $0x1e0] sm:$0xff]  ;;  %v255_v61 = vld [vmem:[#allocation5 + $0x1b0] sm:$0xff] }
 0x141   :  { %6429 = vmatprep.subr.bf16.mxu1 %v6428_v7  ;;  %v6448_v7 = vpack.c.bf16 %v708_v0, %v700_v63  ;;  %v263_v63 = vld [vmem:[#allocation5 + $0x1f0] sm:$0xff]  ;;  %v270_v0 = vld [vmem:[#allocation5 + $0x228] sm:$0xff] }
 0x143   :  { %6303 = vmatpush1.bf16.msra.mxu0 %v6302_v14  ;;  %v6322_v14 = vpack.c.bf16 %v705_v5, %v697_v4  ;;  %v6594_v5 = vpack.c.bf16 %v263_v63, %v255_v61  ;;  %v350_v63 = vld [vmem:[#allocation5 + $0x4a8] sm:$0xff] }
 0x144   :  { %6431 = vmatpush1.bf16.msra.mxu1 %v6430_v15  ;;  %6305 = vmatprep.subr.bf16.mxu0 %v6304_v18  ;;  %v6450_v15 = vpack.c.bf16 %v707_v8, %v699_v6  ;;  %v6452_v18 = vpack.c.bf16 %v214_v10, %v206_v9  ;;  %v277_v8 = vld [vmem:[#allocation5 + $0x260] sm:$0xff]  ;;  %v271_v9 = vld [vmem:[#allocation5 + $0x230] sm:$0xff] }
 0x145   :  { %6433 = vmatprep.subr.bf16.mxu1 %v6432_v22  ;;  %v207_v22 = vld [vmem:[#allocation5 + $0x30] sm:$0xff] }
 0x146   :  { %v6582_v32 = vpack.c.bf16 %v215_v23, %v207_v22  ;;  %v293_v22 = vld [vmem:[#allocation5 + $0x2e0] sm:$0xff]  ;;  %v287_v23 = vld [vmem:[#allocation5 + $0x2b0] sm:$0xff] }
 0x147   :  { %6307 = vmatpush1.bf16.msra.mxu0 %v6306_v29  ;;  %v200_v29 = vld [vmem:[#allocation2 + $0x38] sm:$0xff] }
 0x148   :  { %6435 = vmatpush1.bf16.msra.mxu1 %v6434_v30  ;;  %6309 = vmatprep.subr.bf16.mxu0 %v6308_v31  ;;  %v224_v30 = vld [vmem:[#allocation5 + $0xb8] sm:$0xff] }
 0x149   :  { %6437 = vmatprep.subr.bf16.mxu1 %v6436_v35  ;;  %v232_v31 = vld [vmem:[#allocation5 + $0xf8] sm:$0xff]  ;;  %v223_v35 = vld [vmem:[#allocation5 + $0xb0] sm:$0xff] }
 0x14a   :  { %v6584_v40 = vpack.c.bf16 %v232_v31, %v224_v30  ;;  %v6586_v45 = vpack.c.bf16 %v231_v37, %v223_v35  ;;  %v312_v30 = vld [vmem:[#allocation5 + $0x378] sm:$0xff]  ;;  %v309_v35 = vld [vmem:[#allocation5 + $0x360] sm:$0xff] }
 0x14b   :  { %6311 = vmatpush1.bf16.msra.mxu0 %v6310_v41  ;;  %v240_v41 = vld [vmem:[#allocation5 + $0x138] sm:$0xff] }
 0x14c   :  { %6439 = vmatpush1.bf16.msra.mxu1 %v6438_v42  ;;  %6313 = vmatprep.subr.bf16.mxu0 %v6312_v43  ;;  %v248_v42 = vld [vmem:[#allocation5 + $0x178] sm:$0xff]  ;;  %v199_v43 = vld [vmem:[#allocation2 + $0x30] sm:$0xff] }
 0x14d   :  { %6441 = vmatprep.subr.bf16.mxu1 %v6440_v47  ;;  %v237_v47 = vld [vmem:[#allocation5 + $0x120] sm:$0xff]  ;;  %v6588_v50 = vpack.c.bf16 %v248_v42, %v240_v41  ;;  %v320_v41 = vld [vmem:[#allocation5 + $0x3b8] sm:$0xff] }
 0x14e   :  { %v6462_v56 = vpack.c.bf16 %v245_v48, %v237_v47  ;;  %v328_v42 = vld [vmem:[#allocation5 + $0x3f8] sm:$0xff]  ;;  %v325_v47 = vld [vmem:[#allocation5 + $0x3e0] sm:$0xff]  ;;  %v319_v48 = vld [vmem:[#allocation5 + $0x3b0] sm:$0xff] }
 0x14f   :  { %6315 = vmatpush1.bf16.msra.mxu0 %v6314_v53  ;;  %v262_v53 = vld [vmem:[#allocation5 + $0x1e8] sm:$0xff]  ;;  %v6608_v49 = vpack.c.bf16 %v328_v42, %v320_v41  ;;  %v408_v41 = vld [vmem:[#allocation5 + $0x678] sm:$0xff] }
 0x150   :  { %6443 = vmatpush1.bf16.msra.mxu1 %v6442_v54  ;;  %6317 = vmatprep.subr.bf16.mxu0 %v6316_v55  ;;  %v256_v54 = vld [vmem:[#allocation5 + $0x1b8] sm:$0xff]  ;;  %v6464_v58 = vpack.c.bf16 %v262_v53, %v254_v52  ;;  %v342_v52 = vld [vmem:[#allocation5 + $0x468] sm:$0xff] }
 0x151   :  { %6445 = vmatprep.subr.bf16.mxu1 %v6444_v59  ;;  %v264_v55 = vld [vmem:[#allocation5 + $0x1f8] sm:$0xff]  ;;  %v253_v59 = vld [vmem:[#allocation5 + $0x1a0] sm:$0xff] }
 0x152   :  { %v6592_v62 = vpack.c.bf16 %v264_v55, %v256_v54  ;;  %v6466_v4 = vpack.c.bf16 %v261_v60, %v253_v59  ;;  %v336_v53 = vld [vmem:[#allocation5 + $0x438] sm:$0xff]  ;;  %v341_v59 = vld [vmem:[#allocation5 + $0x460] sm:$0xff]  ;;  %v335_v60 = vld [vmem:[#allocation5 + $0x430] sm:$0xff] }
 0x153   :  { %6319 = vmatpush1.bf16.msra.mxu0 %v6318_v1  ;;  %v278_v1 = vld [vmem:[#allocation5 + $0x268] sm:$0xff]  ;;  %v344_v54 = vld [vmem:[#allocation5 + $0x478] sm:$0xff] }
 0x154   :  { %6447 = vmatpush1.bf16.msra.mxu1 %v6446_v2  ;;  %6321 = vmatprep.subr.bf16.mxu0 %v6320_v3  ;;  %v272_v2 = vld [vmem:[#allocation5 + $0x238] sm:$0xff]  ;;  %v6468_v6 = vpack.c.bf16 %v278_v1, %v270_v0  ;;  %v6612_v61 = vpack.c.bf16 %v344_v54, %v336_v53  ;;  %v358_v0 = vld [vmem:[#allocation5 + $0x4e8] sm:$0xff] }
 0x155   :  { %6449 = vmatprep.subr.bf16.mxu1 %v6448_v7  ;;  %v280_v3 = vld [vmem:[#allocation5 + $0x278] sm:$0xff]  ;;  %v269_v7 = vld [vmem:[#allocation5 + $0x220] sm:$0xff] }
 0x156   :  { %v6596_v10 = vpack.c.bf16 %v280_v3, %v272_v2  ;;  %v6470_v19 = vpack.c.bf16 %v277_v8, %v269_v7  ;;  %v352_v1 = vld [vmem:[#allocation5 + $0x4b8] sm:$0xff]  ;;  %v357_v7 = vld [vmem:[#allocation5 + $0x4e0] sm:$0xff]  ;;  %v351_v8 = vld [vmem:[#allocation5 + $0x4b0] sm:$0xff] }
 0x157   :  { %6323 = vmatpush1.bf16.msra.mxu0 %v6322_v14  ;;  %v294_v14 = vld [vmem:[#allocation5 + $0x2e8] sm:$0xff]  ;;  %v360_v2 = vld [vmem:[#allocation5 + $0x4f8] sm:$0xff] }
 0x158   :  { %6451 = vmatpush1.bf16.msra.mxu1 %v6450_v15  ;;  %6453 = vmatprep.subr.bf16.mxu0 %v6452_v18  ;;  %v288_v15 = vld [vmem:[#allocation5 + $0x2b8] sm:$0xff]  ;;  %v6472_v20 = vpack.c.bf16 %v294_v14, %v286_v12  ;;  %v374_v12 = vld [vmem:[#allocation5 + $0x568] sm:$0xff] }
 0x159   :  { %6581 = vmatprep.subr.bf16.mxu1 %v6580_v21  ;;  %v296_v18 = vld [vmem:[#allocation5 + $0x2f8] sm:$0xff]  ;;  %v285_v21 = vld [vmem:[#allocation5 + $0x2a0] sm:$0xff] }
 0x15a   :  { %855 = vmatmul.mubr.f32.vlgmr.msra.gmra.mrb[0].mxu0 %v195_v24  ;;  %v6474_v31 = vpack.c.bf16 %v293_v22, %v285_v21  ;;  %v368_v14 = vld [vmem:[#allocation5 + $0x538] sm:$0xff]  ;;  %v373_v21 = vld [vmem:[#allocation5 + $0x560] sm:$0xff]  ;;  %v367_v22 = vld [vmem:[#allocation5 + $0x530] sm:$0xff] }
 0x15b   :  { %1009 = vmatmul.mubr.f32.vlgmr.msra.gmra.mrb[0].mxu1 %v195_v24  ;;  %6455 = vmatpush1.bf16.msra.mxu0 %v6454_v28  ;;  %v6600_v24 = vpack.c.bf16 %v296_v18, %v288_v15  ;;  %v310_v28 = vld [vmem:[#allocation5 + $0x368] sm:$0xff]  ;;  %v376_v15 = vld [vmem:[#allocation5 + $0x578] sm:$0xff] }
 0x15c   :  { %6583 = vmatpush1.bf16.msra.mxu1 %v6582_v32  ;;  %860 = vmatprep.mubr.f32.mxu0 %v200_v29  ;;  %v6602_v32 = vpack.c.bf16 %v295_v25, %v287_v23  ;;  %v6476_v33 = vpack.c.bf16 %v310_v28, %v302_v27  ;;  %v6620_v23 = vpack.c.bf16 %v376_v15, %v368_v14  ;;  %v382_v25 = vld [vmem:[#allocation5 + $0x5a8] sm:$0xff]  ;;  %v384_v28 = vld [vmem:[#allocation5 + $0x5b8] sm:$0xff] }
 0x15d   :  { %1014 = vmatprep.mubr.f32.mxu1 %v200_v29  ;;  %6457 = vmatprep.subr.bf16.mxu0 %v6456_v36  ;;  %v304_v29 = vld [vmem:[#allocation5 + $0x338] sm:$0xff]  ;;  %v303_v36 = vld [vmem:[#allocation5 + $0x330] sm:$0xff]  ;;  %v390_v27 = vld [vmem:[#allocation5 + $0x5e8] sm:$0xff] }
 0x15e   :  { %861 = vmatmul.mubr.f32.gmra.mrb[2].mxu0 %v199_v43  ;;  %6585 = vmatprep.subr.bf16.mxu1 %v6584_v40  ;;  %v6604_v37 = vpack.c.bf16 %v312_v30, %v304_v29  ;;  %v326_v40 = vld [vmem:[#allocation5 + $0x3e8] sm:$0xff]  ;;  %v392_v29 = vld [vmem:[#allocation5 + $0x5f8] sm:$0xff] }
 0x15f   :  { %1015 = vmatmul.mubr.f32.gmra.mrb[2].mxu1 %v199_v43  ;;  %6459 = vmatpush1.bf16.msra.mxu0 %v6458_v44  ;;  %v6478_v43 = vpack.c.bf16 %v309_v35, %v301_v34  ;;  %v6606_v44 = vpack.c.bf16 %v311_v38, %v303_v36  ;;  %v389_v34 = vld [vmem:[#allocation5 + $0x5e0] sm:$0xff]  ;;  %v383_v35 = vld [vmem:[#allocation5 + $0x5b0] sm:$0xff]  ;;  %v6624_v36 = vpack.c.bf16 %v392_v29, %v384_v28  ;;  %v398_v38 = vld [vmem:[#allocation5 + $0x628] sm:$0xff] }
 0x160   :  { %6587 = vmatpush1.bf16.msra.mxu1 %v6586_v45  ;;  %6461 = vmatprep.subr.bf16.mxu0 %v6460_v46  ;;  %v6480_v45 = vpack.c.bf16 %v326_v40, %v318_v39  ;;  %v317_v46 = vld [vmem:[#allocation5 + $0x3a0] sm:$0xff]  ;;  %v406_v39 = vld [vmem:[#allocation5 + $0x668] sm:$0xff]  ;;  %v400_v40 = vld [vmem:[#allocation5 + $0x638] sm:$0xff] }
 0x161   :  { %6589 = vmatprep.subr.bf16.mxu1 %v6588_v50  ;;  %1085 = vmatprep.mubr.f32.mxu0 %v8610_v16  ;;  %v327_v50 = vld [vmem:[#allocation5 + $0x3f0] sm:$0xff]  ;;  %v6482_v55 = vpack.c.bf16 %v325_v47, %v317_v46  ;;  %v405_v46 = vld [vmem:[#allocation5 + $0x660] sm:$0xff]  ;;  %v424_v53 = vld [vmem:[#allocation5 + $0x6f8] sm:$0xff] }
 0x162   :  { %1239 = vmatprep.mubr.f32.mxu1 %v8610_v16  ;;  %v6598_v16 = vpack.c.bf16 %v279_v11, %v271_v9  ;;  %v6616_v9 = vpack.c.bf16 %v360_v2, %v352_v1  ;;  %v366_v11 = vld [vmem:[#allocation5 + $0x528] sm:$0xff]  ;;  %v399_v47 = vld [vmem:[#allocation5 + $0x630] sm:$0xff]  ;;  %v440_v1 = vld [vmem:[#allocation5 + $0x778] sm:$0xff] }
 0x163   :  { %6463 = vmatpush1.bf16.msra.mxu0 %v6462_v56  ;;  %v6610_v56 = vpack.c.bf16 %v327_v50, %v319_v48  ;;  %v6628_v48 = vpack.c.bf16 %v408_v41, %v400_v40  ;;  %v414_v50 = vld [vmem:[#allocation5 + $0x6a8] sm:$0xff]  ;;  %v456_v14 = vld [vmem:[#allocation5 + $0x7f8] sm:$0xff] }
 0x164   :  { %6591 = vmatpush1.bf16.msra.mxu1 %v6590_v57  ;;  %6465 = vmatprep.subr.bf16.mxu0 %v6464_v58  ;;  %v6484_v57 = vpack.c.bf16 %v342_v52, %v334_v51  ;;  %v333_v58 = vld [vmem:[#allocation5 + $0x420] sm:$0xff]  ;;  %v422_v51 = vld [vmem:[#allocation5 + $0x6e8] sm:$0xff]  ;;  %v416_v52 = vld [vmem:[#allocation5 + $0x6b8] sm:$0xff] }
 0x165   :  { %6593 = vmatprep.subr.bf16.mxu1 %v6592_v62  ;;  %v343_v62 = vld [vmem:[#allocation5 + $0x470] sm:$0xff]  ;;  %v6486_v3 = vpack.c.bf16 %v341_v59, %v333_v58  ;;  %v421_v58 = vld [vmem:[#allocation5 + $0x6e0] sm:$0xff]  ;;  %v472_v28 = vld [vmem:[#allocation5 + $0x878] sm:$0xff] }
 0x166   :  { %v415_v59 = vld [vmem:[#allocation5 + $0x6b0] sm:$0xff]  ;;  %v488_v40 = vld [vmem:[#allocation5 + $0x8f8] sm:$0xff] }
 0x167   :  { %6467 = vmatpush1.bf16.msra.mxu0 %v6466_v4  ;;  %v6614_v4 = vpack.c.bf16 %v343_v62, %v335_v60  ;;  %v6632_v60 = vpack.c.bf16 %v424_v53, %v416_v52  ;;  %v430_v62 = vld [vmem:[#allocation5 + $0x728] sm:$0xff]  ;;  %v496_v52 = vld [vmem:[#allocation5 + $0x938] sm:$0xff] }
 0x168   :  { %6595 = vmatpush1.bf16.msra.mxu1 %v6594_v5  ;;  %6469 = vmatprep.subr.bf16.mxu0 %v6468_v6  ;;  %v6488_v5 = vpack.c.bf16 %v358_v0, %v350_v63  ;;  %v349_v6 = vld [vmem:[#allocation5 + $0x4a0] sm:$0xff]  ;;  %v438_v63 = vld [vmem:[#allocation5 + $0x768] sm:$0xff]  ;;  %v432_v0 = vld [vmem:[#allocation5 + $0x738] sm:$0xff] }
 0x169   :  { %6597 = vmatprep.subr.bf16.mxu1 %v6596_v10  ;;  %v359_v10 = vld [vmem:[#allocation5 + $0x4f0] sm:$0xff]  ;;  %v6490_v18 = vpack.c.bf16 %v357_v7, %v349_v6  ;;  %v437_v6 = vld [vmem:[#allocation5 + $0x760] sm:$0xff]  ;;  %v504_v53 = vld [vmem:[#allocation5 + $0x978] sm:$0xff] }
 0x16a   :  { %v431_v7 = vld [vmem:[#allocation5 + $0x730] sm:$0xff] }
 0x16b   :  { %6471 = vmatpush1.bf16.msra.mxu0 %v6470_v19  ;;  %v6618_v19 = vpack.c.bf16 %v359_v10, %v351_v8  ;;  %v6636_v8 = vpack.c.bf16 %v440_v1, %v432_v0  ;;  %v446_v10 = vld [vmem:[#allocation5 + $0x7a8] sm:$0xff]  ;;  %v512_v0 = vld [vmem:[#allocation5 + $0x9b8] sm:$0xff] }
 0x16c   :  { %6599 = vmatpush1.bf16.msra.mxu1 %v6598_v16  ;;  %6473 = vmatprep.subr.bf16.mxu0 %v6472_v20  ;;  %v6492_v16 = vpack.c.bf16 %v374_v12, %v366_v11  ;;  %v365_v20 = vld [vmem:[#allocation5 + $0x520] sm:$0xff]  ;;  %v454_v11 = vld [vmem:[#allocation5 + $0x7e8] sm:$0xff]  ;;  %v448_v12 = vld [vmem:[#allocation5 + $0x7b8] sm:$0xff] }
 0x16d   :  { %6601 = vmatprep.subr.bf16.mxu1 %v6600_v24  ;;  %v375_v24 = vld [vmem:[#allocation5 + $0x570] sm:$0xff]  ;;  %v6494_v30 = vpack.c.bf16 %v373_v21, %v365_v20  ;;  %v453_v20 = vld [vmem:[#allocation5 + $0x7e0] sm:$0xff]  ;;  %v520_v1 = vld [vmem:[#allocation5 + $0x9f8] sm:$0xff] }
 0x16e   :  { %v447_v21 = vld [vmem:[#allocation5 + $0x7b0] sm:$0xff] }
 0x16f   :  { %6475 = vmatpush1.bf16.msra.mxu0 %v6474_v31  ;;  %v6622_v31 = vpack.c.bf16 %v375_v24, %v367_v22  ;;  %v6640_v22 = vpack.c.bf16 %v456_v14, %v448_v12  ;;  %v462_v24 = vld [vmem:[#allocation5 + $0x828] sm:$0xff]  ;;  %v536_v12 = vld [vmem:[#allocation5 + $0xa78] sm:$0xff] }
 0x170   :  { %6603 = vmatpush1.bf16.msra.mxu1 %v6602_v32  ;;  %6477 = vmatprep.subr.bf16.mxu0 %v6476_v33  ;;  %v6496_v32 = vpack.c.bf16 %v390_v27, %v382_v25  ;;  %v381_v33 = vld [vmem:[#allocation5 + $0x5a0] sm:$0xff]  ;;  %v470_v25 = vld [vmem:[#allocation5 + $0x868] sm:$0xff]  ;;  %v464_v27 = vld [vmem:[#allocation5 + $0x838] sm:$0xff] }
 0x171   :  { %6605 = vmatprep.subr.bf16.mxu1 %v6604_v37  ;;  %v391_v37 = vld [vmem:[#allocation5 + $0x5f0] sm:$0xff]  ;;  %v6498_v42 = vpack.c.bf16 %v389_v34, %v381_v33  ;;  %v469_v33 = vld [vmem:[#allocation5 + $0x860] sm:$0xff] }
 0x172   :  { %v463_v34 = vld [vmem:[#allocation5 + $0x830] sm:$0xff] }
 0x173   :  { %6479 = vmatpush1.bf16.msra.mxu0 %v6478_v43  ;;  %v6626_v43 = vpack.c.bf16 %v391_v37, %v383_v35  ;;  %v6644_v35 = vpack.c.bf16 %v472_v28, %v464_v27  ;;  %v478_v37 = vld [vmem:[#allocation5 + $0x8a8] sm:$0xff] }
 0x174   :  { %6607 = vmatpush1.bf16.msra.mxu1 %v6606_v44  ;;  %6481 = vmatprep.subr.bf16.mxu0 %v6480_v45  ;;  %v6500_v44 = vpack.c.bf16 %v406_v39, %v398_v38  ;;  %v397_v45 = vld [vmem:[#allocation5 + $0x620] sm:$0xff]  ;;  %v486_v38 = vld [vmem:[#allocation5 + $0x8e8] sm:$0xff]  ;;  %v480_v39 = vld [vmem:[#allocation5 + $0x8b8] sm:$0xff] }
 0x175   :  { %6609 = vmatprep.subr.bf16.mxu1 %v6608_v49  ;;  %v407_v49 = vld [vmem:[#allocation5 + $0x670] sm:$0xff]  ;;  %v6502_v54 = vpack.c.bf16 %v405_v46, %v397_v45  ;;  %v485_v45 = vld [vmem:[#allocation5 + $0x8e0] sm:$0xff] }
 0x176   :  { %v479_v46 = vld [vmem:[#allocation5 + $0x8b0] sm:$0xff] }
 0x177   :  { %6483 = vmatpush1.bf16.msra.mxu0 %v6482_v55  ;;  %v6630_v55 = vpack.c.bf16 %v407_v49, %v399_v47  ;;  %v6648_v47 = vpack.c.bf16 %v488_v40, %v480_v39  ;;  %v494_v49 = vld [vmem:[#allocation5 + $0x928] sm:$0xff] }
 0x178   :  { %6611 = vmatpush1.bf16.msra.mxu1 %v6610_v56  ;;  %6485 = vmatprep.subr.bf16.mxu0 %v6484_v57  ;;  %v6504_v56 = vpack.c.bf16 %v422_v51, %v414_v50  ;;  %v413_v57 = vld [vmem:[#allocation5 + $0x6a0] sm:$0xff]  ;;  %v502_v50 = vld [vmem:[#allocation5 + $0x968] sm:$0xff] }
 0x179   :  { %6613 = vmatprep.subr.bf16.mxu1 %v6612_v61  ;;  %v423_v61 = vld [vmem:[#allocation5 + $0x6f0] sm:$0xff]  ;;  %v6506_v2 = vpack.c.bf16 %v421_v58, %v413_v57  ;;  %v8054_v51 = vld [vmem:[#allocation2] sm:$0xff] }
 0x17a   :  { %v493_v57 = vld [vmem:[#allocation5 + $0x920] sm:$0xff] }
 0x17b   :  { %6487 = vmatpush1.bf16.msra.mxu0 %v6486_v3  ;;  %v6634_v3 = vpack.c.bf16 %v423_v61, %v415_v59  ;;  %v501_v58 = vld [vmem:[#allocation5 + $0x960] sm:$0xff]  ;;  %v495_v59 = vld [vmem:[#allocation5 + $0x930] sm:$0xff] }
 0x17c   :  { %6615 = vmatpush1.bf16.msra.mxu1 %v6614_v4  ;;  %6489 = vmatprep.subr.bf16.mxu0 %v6488_v5  ;;  %v6508_v4 = vpack.c.bf16 %v438_v63, %v430_v62  ;;  %v429_v5 = vld [vmem:[#allocation5 + $0x720] sm:$0xff]  ;;  %v503_v61 = vld [vmem:[#allocation5 + $0x970] sm:$0xff]  ;;  %v510_v62 = vld [vmem:[#allocation5 + $0x9a8] sm:$0xff] }
 0x17d   :  { %6617 = vmatprep.subr.bf16.mxu1 %v6616_v9  ;;  %v439_v9 = vld [vmem:[#allocation5 + $0x770] sm:$0xff]  ;;  %v6510_v15 = vpack.c.bf16 %v437_v6, %v429_v5  ;;  %v518_v63 = vld [vmem:[#allocation5 + $0x9e8] sm:$0xff]  ;;  %v509_v5 = vld [vmem:[#allocation5 + $0x9a0] sm:$0xff] }
 0x17e   :  { %v517_v6 = vld [vmem:[#allocation5 + $0x9e0] sm:$0xff] }
 0x17f   :  { %6491 = vmatpush1.bf16.msra.mxu0 %v6490_v18  ;;  %v6638_v18 = vpack.c.bf16 %v439_v9, %v431_v7  ;;  %v511_v7 = vld [vmem:[#allocation5 + $0x9b0] sm:$0xff] }
 0x180   :  { %6619 = vmatpush1.bf16.msra.mxu1 %v6618_v19  ;;  %6493 = vmatprep.subr.bf16.mxu0 %v6492_v16  ;;  %v6512_v19 = vpack.c.bf16 %v454_v11, %v446_v10  ;;  %v445_v16 = vld [vmem:[#allocation5 + $0x7a0] sm:$0xff]  ;;  %v519_v9 = vld [vmem:[#allocation5 + $0x9f0] sm:$0xff]  ;;  %v526_v10 = vld [vmem:[#allocation5 + $0xa28] sm:$0xff] }
 0x181   :  { %6621 = vmatprep.subr.bf16.mxu1 %v6620_v23  ;;  %v455_v23 = vld [vmem:[#allocation5 + $0x7f0] sm:$0xff]  ;;  %v6514_v29 = vpack.c.bf16 %v453_v20, %v445_v16  ;;  %v534_v11 = vld [vmem:[#allocation5 + $0xa68] sm:$0xff]  ;;  %v6658_v14 = vpack.c.bf16 %v519_v9, %v511_v7  ;;  %v616_v9 = vld [vmem:[#allocation5 + $0xcf8] sm:$0xff] }
 0x182   :  { %v527_v16 = vld [vmem:[#allocation5 + $0xa30] sm:$0xff]  ;;  %v614_v7 = vld [vmem:[#allocation5 + $0xce8] sm:$0xff] }
 0x183   :  { %6495 = vmatpush1.bf16.msra.mxu0 %v6494_v30  ;;  %v6642_v30 = vpack.c.bf16 %v455_v23, %v447_v21  ;;  %v535_v21 = vld [vmem:[#allocation5 + $0xa70] sm:$0xff]  ;;  %v550_v23 = vld [vmem:[#allocation5 + $0xae8] sm:$0xff] }
 0x184   :  { %6623 = vmatpush1.bf16.msra.mxu1 %v6622_v31  ;;  %6497 = vmatprep.subr.bf16.mxu0 %v6496_v32  ;;  %v6516_v31 = vpack.c.bf16 %v470_v25, %v462_v24  ;;  %v461_v32 = vld [vmem:[#allocation5 + $0x820] sm:$0xff]  ;;  %v544_v24 = vld [vmem:[#allocation5 + $0xab8] sm:$0xff] }
 0x185   :  { %6625 = vmatprep.subr.bf16.mxu1 %v6624_v36  ;;  %v471_v36 = vld [vmem:[#allocation5 + $0x870] sm:$0xff]  ;;  %v6518_v41 = vpack.c.bf16 %v469_v33, %v461_v32  ;;  %v552_v25 = vld [vmem:[#allocation5 + $0xaf8] sm:$0xff] }
 0x186   :  { %v6664_v32 = vpack.c.bf16 %v552_v25, %v544_v24  ;;  %v551_v33 = vld [vmem:[#allocation5 + $0xaf0] sm:$0xff]  ;;  %v621_v25 = vld [vmem:[#allocation5 + $0xd20] sm:$0xff] }
 0x187   :  { %6499 = vmatpush1.bf16.msra.mxu0 %v6498_v42  ;;  %v6646_v42 = vpack.c.bf16 %v471_v36, %v463_v34  ;;  %v558_v34 = vld [vmem:[#allocation5 + $0xb28] sm:$0xff]  ;;  %v560_v36 = vld [vmem:[#allocation5 + $0xb38] sm:$0xff] }
 0x188   :  { %6627 = vmatpush1.bf16.msra.mxu1 %v6626_v43  ;;  %6501 = vmatprep.subr.bf16.mxu0 %v6500_v44  ;;  %v6520_v43 = vpack.c.bf16 %v486_v38, %v478_v37  ;;  %v477_v44 = vld [vmem:[#allocation5 + $0x8a0] sm:$0xff]  ;;  %v568_v37 = vld [vmem:[#allocation5 + $0xb78] sm:$0xff] }
 0x189   :  { %6629 = vmatprep.subr.bf16.mxu1 %v6628_v48  ;;  %v487_v48 = vld [vmem:[#allocation5 + $0x8f0] sm:$0xff] }
 0x18b   :  { %6503 = vmatpush1.bf16.msra.mxu0 %v6502_v54  ;;  %v6522_v54 = vpack.c.bf16 %v485_v45, %v477_v44  ;;  %v6668_v44 = vpack.c.bf16 %v568_v37, %v560_v36  ;;  %v567_v45 = vld [vmem:[#allocation5 + $0xb70] sm:$0xff]  ;;  %v637_v37 = vld [vmem:[#allocation5 + $0xda0] sm:$0xff] }
 0x18c   :  { %6631 = vmatpush1.bf16.msra.mxu1 %v6630_v55  ;;  %6505 = vmatprep.subr.bf16.mxu0 %v6504_v56  ;;  %v6650_v55 = vpack.c.bf16 %v487_v48, %v479_v46  ;;  %v6524_v56 = vpack.c.bf16 %v502_v50, %v494_v49  ;;  %v574_v46 = vld [vmem:[#allocation5 + $0xba8] sm:$0xff]  ;;  %v576_v48 = vld [vmem:[#allocation5 + $0xbb8] sm:$0xff] }
 0x18d   :  { %6633 = vmatprep.subr.bf16.mxu1 %v6632_v60  ;;  %v6652_v60 = vpack.c.bf16 %v504_v53, %v496_v52  ;;  %v584_v49 = vld [vmem:[#allocation5 + $0xbf8] sm:$0xff]  ;;  %v573_v53 = vld [vmem:[#allocation5 + $0xba0] sm:$0xff] }
 0x18f   :  { %6507 = vmatpush1.bf16.msra.mxu0 %v6506_v2  ;;  %v6526_v2 = vpack.c.bf16 %v501_v58, %v493_v57  ;;  %v583_v57 = vld [vmem:[#allocation5 + $0xbf0] sm:$0xff]  ;;  %v590_v58 = vld [vmem:[#allocation5 + $0xc28] sm:$0xff] }
 0x190   :  { %6635 = vmatpush1.bf16.msra.mxu1 %v6634_v3  ;;  %6509 = vmatprep.subr.bf16.mxu0 %v6508_v4  ;;  %v6654_v3 = vpack.c.bf16 %v503_v61, %v495_v59  ;;  %v6528_v4 = vpack.c.bf16 %v518_v63, %v510_v62  ;;  %v598_v59 = vld [vmem:[#allocation5 + $0xc68] sm:$0xff]  ;;  %v600_v61 = vld [vmem:[#allocation5 + $0xc78] sm:$0xff] }
 0x191   :  { %6637 = vmatprep.subr.bf16.mxu1 %v6636_v8  ;;  %v6656_v8 = vpack.c.bf16 %v520_v1, %v512_v0  ;;  %v6548_v0 = vpack.c.bf16 %v598_v59, %v590_v58  ;;  %v589_v1 = vld [vmem:[#allocation5 + $0xc20] sm:$0xff] }
 0x193   :  { %6511 = vmatpush1.bf16.msra.mxu0 %v6510_v15  ;;  %v6532_v15 = vpack.c.bf16 %v534_v11, %v526_v10 }
 0x194   :  { %6639 = vmatpush1.bf16.msra.mxu1 %v6638_v18  ;;  %6513 = vmatprep.subr.bf16.mxu0 %v6512_v19  ;;  %v525_v18 = vld [vmem:[#allocation5 + $0xa20] sm:$0xff] }
 0x195   :  { %6641 = vmatprep.subr.bf16.mxu1 %v6640_v22  ;;  %v533_v19 = vld [vmem:[#allocation5 + $0xa60] sm:$0xff]  ;;  %v542_v22 = vld [vmem:[#allocation5 + $0xaa8] sm:$0xff] }
 0x196   :  { %v6534_v27 = vpack.c.bf16 %v533_v19, %v525_v18  ;;  %v6536_v28 = vpack.c.bf16 %v550_v23, %v542_v22  ;;  %v615_v18 = vld [vmem:[#allocation5 + $0xcf0] sm:$0xff]  ;;  %v622_v19 = vld [vmem:[#allocation5 + $0xd28] sm:$0xff] }
 0x197   :  { %6515 = vmatpush1.bf16.msra.mxu0 %v6514_v29  ;;  %v541_v29 = vld [vmem:[#allocation5 + $0xaa0] sm:$0xff] }
 0x198   :  { %6643 = vmatpush1.bf16.msra.mxu1 %v6642_v30  ;;  %6517 = vmatprep.subr.bf16.mxu0 %v6516_v31  ;;  %v549_v30 = vld [vmem:[#allocation5 + $0xae0] sm:$0xff]  ;;  %v543_v31 = vld [vmem:[#allocation5 + $0xab0] sm:$0xff] }
 0x199   :  { %6645 = vmatprep.subr.bf16.mxu1 %v6644_v35  ;;  %v566_v35 = vld [vmem:[#allocation5 + $0xb68] sm:$0xff]  ;;  %v6538_v38 = vpack.c.bf16 %v549_v30, %v541_v29  ;;  %v6666_v39 = vpack.c.bf16 %v551_v33, %v543_v31  ;;  %v631_v29 = vld [vmem:[#allocation5 + $0xd70] sm:$0xff]  ;;  %v648_v33 = vld [vmem:[#allocation5 + $0xdf8] sm:$0xff] }
 0x19a   :  { %1086 = vmatmul.mubr.f32.vlgmr.msra.gmra.mrb[4].mxu0 %v8054_v51  ;;  %v6540_v40 = vpack.c.bf16 %v566_v35, %v558_v34  ;;  %v638_v30 = vld [vmem:[#allocation5 + $0xda8] sm:$0xff] }
 0x19b   :  { %6519 = vmatpush1.bf16.msra.mxu0 %v6518_v41  ;;  %1240 = vmatmul.mubr.f32.vlgmr.msra.gmra.mrb[4].mxu1 %v8054_v51  ;;  %v557_v41 = vld [vmem:[#allocation5 + $0xb20] sm:$0xff]  ;;  %v646_v31 = vld [vmem:[#allocation5 + $0xde8] sm:$0xff] }
 0x19c   :  { %6647 = vmatpush1.bf16.msra.mxu1 %v6646_v42  ;;  %6521 = vmatprep.subr.bf16.mxu0 %v6520_v43  ;;  %v565_v42 = vld [vmem:[#allocation5 + $0xb60] sm:$0xff]  ;;  %v559_v43 = vld [vmem:[#allocation5 + $0xb30] sm:$0xff]  ;;  %v6560_v36 = vpack.c.bf16 %v646_v31, %v638_v30 }
 0x19d   :  { %6649 = vmatprep.subr.bf16.mxu1 %v6648_v47  ;;  %1091 = vmatprep.mubr.f32.mxu0 %v8614_v13  ;;  %v582_v47 = vld [vmem:[#allocation5 + $0xbe8] sm:$0xff]  ;;  %v6542_v50 = vpack.c.bf16 %v565_v42, %v557_v41  ;;  %v6670_v51 = vpack.c.bf16 %v567_v45, %v559_v43  ;;  %v647_v41 = vld [vmem:[#allocation5 + $0xdf0] sm:$0xff]  ;;  %v664_v45 = vld [vmem:[#allocation5 + $0xe78] sm:$0xff] }
 0x19e   :  { %1245 = vmatprep.mubr.f32.mxu1 %v8614_v13  ;;  %1092 = vmatmul.mubr.f32.gmra.mrb[6].mxu0 %v8617_v17  ;;  %v528_v13 = vld [vmem:[#allocation5 + $0xa38] sm:$0xff]  ;;  %v6544_v52 = vpack.c.bf16 %v582_v47, %v574_v46  ;;  %v654_v42 = vld [vmem:[#allocation5 + $0xe28] sm:$0xff] }
 0x19f   :  { %6523 = vmatpush1.bf16.msra.mxu0 %v6522_v54  ;;  %1246 = vmatmul.mubr.f32.gmra.mrb[6].mxu1 %v8617_v17  ;;  %v6530_v17 = vpack.c.bf16 %v517_v6, %v509_v5  ;;  %v6660_v20 = vpack.c.bf16 %v536_v12, %v528_v13  ;;  %v581_v54 = vld [vmem:[#allocation5 + $0xbe0] sm:$0xff]  ;;  %v599_v5 = vld [vmem:[#allocation5 + $0xc70] sm:$0xff]  ;;  %v606_v6 = vld [vmem:[#allocation5 + $0xca8] sm:$0xff] }
 0x1a0   :  { %6651 = vmatpush1.bf16.msra.mxu1 %v6650_v55  ;;  %6525 = vmatprep.subr.bf16.mxu0 %v6524_v56  ;;  %v575_v55 = vld [vmem:[#allocation5 + $0xbb0] sm:$0xff]  ;;  %v6672_v56 = vpack.c.bf16 %v584_v49, %v576_v48  ;;  %v6546_v62 = vpack.c.bf16 %v581_v54, %v573_v53  ;;  %v6552_v13 = vpack.c.bf16 %v614_v7, %v606_v6  ;;  %v605_v12 = vld [vmem:[#allocation5 + $0xca0] sm:$0xff]  ;;  %v662_v43 = vld [vmem:[#allocation5 + $0xe68] sm:$0xff] }
 0x1a1   :  { %6653 = vmatprep.subr.bf16.mxu1 %v6652_v60  ;;  %1162 = vmatprep.mubr.f32.mxu0 %v8620_v26  ;;  %v592_v60 = vld [vmem:[#allocation5 + $0xc38] sm:$0xff]  ;;  %v6674_v63 = vpack.c.bf16 %v583_v57, %v575_v55  ;;  %v6564_v48 = vpack.c.bf16 %v662_v43, %v654_v42  ;;  %v653_v49 = vld [vmem:[#allocation5 + $0xe20] sm:$0xff]  ;;  %v663_v53 = vld [vmem:[#allocation5 + $0xe70] sm:$0xff] }
 0x1a2   :  { %1316 = vmatprep.mubr.f32.mxu1 %v8620_v26  ;;  %v6662_v26 = vpack.c.bf16 %v535_v21, %v527_v16  ;;  %v630_v16 = vld [vmem:[#allocation5 + $0xd68] sm:$0xff]  ;;  %v632_v21 = vld [vmem:[#allocation5 + $0xd78] sm:$0xff] }
 0x1a3   :  { %6527 = vmatpush1.bf16.msra.mxu0 %v6526_v2  ;;  %v597_v2 = vld [vmem:[#allocation5 + $0xc60] sm:$0xff]  ;;  %v6556_v24 = vpack.c.bf16 %v630_v16, %v622_v19  ;;  %v670_v54 = vld [vmem:[#allocation5 + $0xea8] sm:$0xff]  ;;  %v680_v57 = vld [vmem:[#allocation5 + $0xef8] sm:$0xff] }
 0x1a4   :  { %6655 = vmatpush1.bf16.msra.mxu1 %v6654_v3  ;;  %6529 = vmatprep.subr.bf16.mxu0 %v6528_v4  ;;  %v591_v3 = vld [vmem:[#allocation5 + $0xc30] sm:$0xff]  ;;  %v6676_v4 = vpack.c.bf16 %v600_v61, %v592_v60  ;;  %v6550_v10 = vpack.c.bf16 %v597_v2, %v589_v1  ;;  %v678_v55 = vld [vmem:[#allocation5 + $0xee8] sm:$0xff]  ;;  %v669_v61 = vld [vmem:[#allocation5 + $0xea0] sm:$0xff] }
 0x1a5   :  { %6657 = vmatprep.subr.bf16.mxu1 %v6656_v8  ;;  %v608_v8 = vld [vmem:[#allocation5 + $0xcb8] sm:$0xff]  ;;  %v6678_v11 = vpack.c.bf16 %v599_v5, %v591_v3  ;;  %v6568_v60 = vpack.c.bf16 %v678_v55, %v670_v54  ;;  %v679_v1 = vld [vmem:[#allocation5 + $0xef0] sm:$0xff]  ;;  %v686_v2 = vld [vmem:[#allocation5 + $0xf28] sm:$0xff] }
 0x1a6   :  { %v694_v3 = vld [vmem:[#allocation5 + $0xf68] sm:$0xff]  ;;  %v696_v5 = vld [vmem:[#allocation5 + $0xf78] sm:$0xff] }
 0x1a7   :  { %6531 = vmatpush1.bf16.msra.mxu0 %v6530_v17  ;;  %v613_v17 = vld [vmem:[#allocation5 + $0xce0] sm:$0xff] }
 0x1a8   :  { %6659 = vmatpush1.bf16.msra.mxu1 %v6658_v14  ;;  %6533 = vmatprep.subr.bf16.mxu0 %v6532_v15  ;;  %v607_v14 = vld [vmem:[#allocation5 + $0xcb0] sm:$0xff]  ;;  %v6680_v15 = vpack.c.bf16 %v616_v9, %v608_v8  ;;  %v6554_v22 = vpack.c.bf16 %v613_v17, %v605_v12  ;;  %v6572_v8 = vpack.c.bf16 %v694_v3, %v686_v2  ;;  %v685_v9 = vld [vmem:[#allocation5 + $0xf20] sm:$0xff]  ;;  %v702_v17 = vld [vmem:[#allocation5 + $0xfa8] sm:$0xff] }
 0x1a9   :  { %6661 = vmatprep.subr.bf16.mxu1 %v6660_v20  ;;  %v624_v20 = vld [vmem:[#allocation5 + $0xd38] sm:$0xff]  ;;  %v6682_v23 = vpack.c.bf16 %v615_v18, %v607_v14  ;;  %v695_v12 = vld [vmem:[#allocation5 + $0xf70] sm:$0xff]  ;;  %v710_v14 = vld [vmem:[#allocation5 + $0xfe8] sm:$0xff] }
 0x1aa   :  { %v712_v18 = vld [vmem:[#allocation5 + $0xff8] sm:$0xff]  ;;  %v2108_v2 = vld [vmem:[#allocation8 + $0xe8] sm:$0xff] }
 0x1ab   :  { %6535 = vmatpush1.bf16.msra.mxu0 %v6534_v27  ;;  %v629_v27 = vld [vmem:[#allocation5 + $0xd60] sm:$0xff] }
 0x1ac   :  { %6663 = vmatpush1.bf16.msra.mxu1 %v6662_v26  ;;  %6537 = vmatprep.subr.bf16.mxu0 %v6536_v28  ;;  %v623_v26 = vld [vmem:[#allocation5 + $0xd30] sm:$0xff]  ;;  %v6684_v28 = vpack.c.bf16 %v632_v21, %v624_v20  ;;  %v6558_v34 = vpack.c.bf16 %v629_v27, %v621_v25  ;;  %v6576_v20 = vpack.c.bf16 %v710_v14, %v702_v17  ;;  %v701_v21 = vld [vmem:[#allocation5 + $0xfa0] sm:$0xff] }
 0x1ad   :  { %6665 = vmatprep.subr.bf16.mxu1 %v6664_v32  ;;  %v640_v32 = vld [vmem:[#allocation5 + $0xdb8] sm:$0xff]  ;;  %v6686_v35 = vpack.c.bf16 %v631_v29, %v623_v26  ;;  %v711_v25 = vld [vmem:[#allocation5 + $0xff0] sm:$0xff] }
 0x1ae   :  { %v2080_v27 = vld [vmem:[#allocation8 + $0x8] sm:$0xff]  ;;  %v2086_v29 = vld [vmem:[#allocation8 + $0x38] sm:$0xff] }
 0x1af   :  { %6539 = vmatpush1.bf16.msra.mxu0 %v6538_v38  ;;  %v645_v38 = vld [vmem:[#allocation5 + $0xde0] sm:$0xff]  ;;  %v2084_v26 = vld [vmem:[#allocation8 + $0x28] sm:$0xff] }
 0x1b0   :  { %6667 = vmatpush1.bf16.msra.mxu1 %v6666_v39  ;;  %6541 = vmatprep.subr.bf16.mxu0 %v6540_v40  ;;  %v639_v39 = vld [vmem:[#allocation5 + $0xdb0] sm:$0xff]  ;;  %v6688_v40 = vpack.c.bf16 %v648_v33, %v640_v32  ;;  %v6562_v46 = vpack.c.bf16 %v645_v38, %v637_v37  ;;  %v6708_v32 = vpack.c.bf16 %v2084_v26, %v2080_v27  ;;  %v2079_v33 = vld [vmem:[#allocation8] sm:$0xff]  ;;  %v2098_v54 = vld [vmem:[#allocation8 + $0x98] sm:$0xff] }
 0x1b1   :  { %6669 = vmatprep.subr.bf16.mxu1 %v6668_v44  ;;  %v656_v44 = vld [vmem:[#allocation5 + $0xe38] sm:$0xff]  ;;  %v6690_v47 = vpack.c.bf16 %v647_v41, %v639_v39  ;;  %v2088_v38 = vld [vmem:[#allocation8 + $0x48] sm:$0xff] }
 0x1b2   :  { %v2085_v37 = vld [vmem:[#allocation8 + $0x30] sm:$0xff]  ;;  %v2092_v39 = vld [vmem:[#allocation8 + $0x68] sm:$0xff]  ;;  %v2094_v41 = vld [vmem:[#allocation8 + $0x78] sm:$0xff] }
 0x1b3   :  { %6543 = vmatpush1.bf16.msra.mxu0 %v6542_v50  ;;  %v661_v50 = vld [vmem:[#allocation5 + $0xe60] sm:$0xff]  ;;  %v2116_v17 = vld [vmem:[#allocation8 + $0x128] sm:$0xff] }
 0x1b4   :  { %6671 = vmatpush1.bf16.msra.mxu1 %v6670_v51  ;;  %6545 = vmatprep.subr.bf16.mxu0 %v6544_v52  ;;  %v655_v51 = vld [vmem:[#allocation5 + $0xe30] sm:$0xff]  ;;  %v6692_v52 = vpack.c.bf16 %v664_v45, %v656_v44  ;;  %v6566_v58 = vpack.c.bf16 %v661_v50, %v653_v49  ;;  %v6712_v44 = vpack.c.bf16 %v2092_v39, %v2088_v38  ;;  %v2087_v45 = vld [vmem:[#allocation8 + $0x40] sm:$0xff]  ;;  %v2102_v55 = vld [vmem:[#allocation8 + $0xb8] sm:$0xff] }
 0x1b5   :  { %6673 = vmatprep.subr.bf16.mxu1 %v6672_v56  ;;  %v672_v56 = vld [vmem:[#allocation5 + $0xeb8] sm:$0xff]  ;;  %v6694_v59 = vpack.c.bf16 %v663_v53, %v655_v51  ;;  %v2096_v51 = vld [vmem:[#allocation8 + $0x88] sm:$0xff] }
 0x1b6   :  { %v2093_v50 = vld [vmem:[#allocation8 + $0x70] sm:$0xff]  ;;  %v2106_v3 = vld [vmem:[#allocation8 + $0xd8] sm:$0xff]  ;;  %v2124_v27 = vld [vmem:[#allocation8 + $0x168] sm:$0xff] }
 0x1b7   :  { %6547 = vmatpush1.bf16.msra.mxu0 %v6546_v62  ;;  %v677_v62 = vld [vmem:[#allocation5 + $0xee0] sm:$0xff]  ;;  %v8056_v53 = vld [vmem:[#allocation2 + $0x38] sm:$0xff]  ;;  %v2132_v38 = vld [vmem:[#allocation8 + $0x1a8] sm:$0xff] }
 0x1b8   :  { %6675 = vmatpush1.bf16.msra.mxu1 %v6674_v63  ;;  %6549 = vmatprep.subr.bf16.mxu0 %v6548_v0  ;;  %v671_v63 = vld [vmem:[#allocation5 + $0xeb0] sm:$0xff]  ;;  %v6696_v0 = vpack.c.bf16 %v680_v57, %v672_v56  ;;  %v6570_v6 = vpack.c.bf16 %v677_v62, %v669_v61  ;;  %v2114_v14 = vld [vmem:[#allocation8 + $0x118] sm:$0xff] }
 0x1b9   :  { %6677 = vmatprep.subr.bf16.mxu1 %v6676_v4  ;;  %v688_v4 = vld [vmem:[#allocation5 + $0xf38] sm:$0xff]  ;;  %v6698_v7 = vpack.c.bf16 %v679_v1, %v671_v63  ;;  %v8057_v62 = vld [vmem:[#allocation2 + $0x30] sm:$0xff]  ;;  %v6844_v63 = vpack.c.bf16 %v2102_v55, %v2098_v54 }
 0x1ba   :  { %v2097_v61 = vld [vmem:[#allocation8 + $0x90] sm:$0xff]  ;;  %v2104_v1 = vld [vmem:[#allocation8 + $0xc8] sm:$0xff]  ;;  %v2122_v26 = vld [vmem:[#allocation8 + $0x158] sm:$0xff] }
 0x1bb   :  { %6551 = vmatpush1.bf16.msra.mxu0 %v6550_v10  ;;  %v693_v10 = vld [vmem:[#allocation5 + $0xf60] sm:$0xff] }
 0x1bc   :  { %6679 = vmatpush1.bf16.msra.mxu1 %v6678_v11  ;;  %6553 = vmatprep.subr.bf16.mxu0 %v6552_v13  ;;  %v687_v11 = vld [vmem:[#allocation5 + $0xf30] sm:$0xff]  ;;  %v6700_v13 = vpack.c.bf16 %v696_v5, %v688_v4  ;;  %v6574_v19 = vpack.c.bf16 %v693_v10, %v685_v9  ;;  %v2110_v4 = vld [vmem:[#allocation8 + $0xf8] sm:$0xff]  ;;  %v2107_v9 = vld [vmem:[#allocation8 + $0xe0] sm:$0xff] }
 0x1bd   :  { %6681 = vmatprep.subr.bf16.mxu1 %v6680_v15  ;;  %v704_v15 = vld [vmem:[#allocation5 + $0xfb8] sm:$0xff]  ;;  %v6702_v16 = vpack.c.bf16 %v695_v12, %v687_v11  ;;  %v6848_v11 = vpack.c.bf16 %v2110_v4, %v2106_v3  ;;  %v2112_v12 = vld [vmem:[#allocation8 + $0x108] sm:$0xff]  ;;  %v2143_v4 = vld [vmem:[#allocation8 + $0x200] sm:$0xff] }
 0x1be   :  { %v2105_v10 = vld [vmem:[#allocation8 + $0xd0] sm:$0xff]  ;;  %v2130_v39 = vld [vmem:[#allocation8 + $0x198] sm:$0xff] }
 0x1bf   :  { %6555 = vmatpush1.bf16.msra.mxu0 %v6554_v22  ;;  %v709_v22 = vld [vmem:[#allocation5 + $0xfe0] sm:$0xff] }
 0x1c0   :  { %6683 = vmatpush1.bf16.msra.mxu1 %v6682_v23  ;;  %6557 = vmatprep.subr.bf16.mxu0 %v6556_v24  ;;  %v703_v23 = vld [vmem:[#allocation5 + $0xfb0] sm:$0xff]  ;;  %v6704_v24 = vpack.c.bf16 %v712_v18, %v704_v15  ;;  %v6578_v30 = vpack.c.bf16 %v709_v22, %v701_v21  ;;  %v2118_v15 = vld [vmem:[#allocation8 + $0x138] sm:$0xff]  ;;  %v2115_v21 = vld [vmem:[#allocation8 + $0x120] sm:$0xff] }
 0x1c1   :  { %6685 = vmatprep.subr.bf16.mxu1 %v6684_v28  ;;  %v2082_v28 = vld [vmem:[#allocation8 + $0x18] sm:$0xff]  ;;  %v6706_v31 = vpack.c.bf16 %v711_v25, %v703_v23  ;;  %v2113_v22 = vld [vmem:[#allocation8 + $0x110] sm:$0xff]  ;;  %v6852_v23 = vpack.c.bf16 %v2118_v15, %v2114_v14  ;;  %v2120_v25 = vld [vmem:[#allocation8 + $0x148] sm:$0xff] }
 0x1c2   :  { %v2151_v15 = vld [vmem:[#allocation8 + $0x240] sm:$0xff] }
 0x1c3   :  { %6559 = vmatpush1.bf16.msra.mxu0 %v6558_v34  ;;  %v2083_v34 = vld [vmem:[#allocation8 + $0x20] sm:$0xff] }
 0x1c4   :  { %6687 = vmatpush1.bf16.msra.mxu1 %v6686_v35  ;;  %6561 = vmatprep.subr.bf16.mxu0 %v6560_v36  ;;  %v6836_v35 = vpack.c.bf16 %v2086_v29, %v2082_v28  ;;  %v2081_v36 = vld [vmem:[#allocation8 + $0x10] sm:$0xff]  ;;  %v6710_v42 = vpack.c.bf16 %v2083_v34, %v2079_v33  ;;  %v2126_v28 = vld [vmem:[#allocation8 + $0x178] sm:$0xff]  ;;  %v2123_v33 = vld [vmem:[#allocation8 + $0x160] sm:$0xff] }
 0x1c5   :  { %6689 = vmatprep.subr.bf16.mxu1 %v6688_v40  ;;  %v2090_v40 = vld [vmem:[#allocation8 + $0x58] sm:$0xff]  ;;  %v6838_v43 = vpack.c.bf16 %v2085_v37, %v2081_v36  ;;  %v2121_v34 = vld [vmem:[#allocation8 + $0x150] sm:$0xff]  ;;  %v2128_v37 = vld [vmem:[#allocation8 + $0x188] sm:$0xff] }
 0x1c6   :  { %v6840_v49 = vpack.c.bf16 %v2094_v41, %v2090_v40  ;;  %v2125_v36 = vld [vmem:[#allocation8 + $0x170] sm:$0xff]  ;;  %v2134_v40 = vld [vmem:[#allocation8 + $0x1b8] sm:$0xff] }
 0x1c7   :  { %6563 = vmatpush1.bf16.msra.mxu0 %v6562_v46  ;;  %v2091_v46 = vld [vmem:[#allocation8 + $0x60] sm:$0xff] }
 0x1c8   :  { %6691 = vmatpush1.bf16.msra.mxu1 %v6690_v47  ;;  %6565 = vmatprep.subr.bf16.mxu0 %v6564_v48  ;;  %v2089_v47 = vld [vmem:[#allocation8 + $0x50] sm:$0xff]  ;;  %v6714_v56 = vpack.c.bf16 %v2091_v46, %v2087_v45  ;;  %v2131_v45 = vld [vmem:[#allocation8 + $0x1a0] sm:$0xff] }
 0x1c9   :  { %6693 = vmatprep.subr.bf16.mxu1 %v6692_v52  ;;  %v8055_v48 = vld [vmem:[#allocation2 + $0x10] sm:$0xff]  ;;  %v6842_v57 = vpack.c.bf16 %v2093_v50, %v2089_v47  ;;  %v6860_v47 = vpack.c.bf16 %v2134_v40, %v2130_v39  ;;  %v2167_v40 = vld [vmem:[#allocation8 + $0x2c0] sm:$0xff] }
 0x1ca   :  { %v2100_v52 = vld [vmem:[#allocation8 + $0xa8] sm:$0xff]  ;;  %v2129_v46 = vld [vmem:[#allocation8 + $0x190] sm:$0xff] }
 0x1cb   :  { %6567 = vmatpush1.bf16.msra.mxu0 %v6566_v58  ;;  %v6716_v58 = vpack.c.bf16 %v2100_v52, %v2096_v51  ;;  %v2140_v50 = vld [vmem:[#allocation8 + $0x1e8] sm:$0xff]  ;;  %v2138_v51 = vld [vmem:[#allocation8 + $0x1d8] sm:$0xff] }
 0x1cc   :  { %6695 = vmatpush1.bf16.msra.mxu1 %v6694_v59  ;;  %6569 = vmatprep.subr.bf16.mxu0 %v6568_v60  ;;  %v2095_v59 = vld [vmem:[#allocation8 + $0x80] sm:$0xff]  ;;  %v2142_v52 = vld [vmem:[#allocation8 + $0x1f8] sm:$0xff] }
 0x1cd   :  { %6697 = vmatprep.subr.bf16.mxu1 %v6696_v0  ;;  %v2099_v60 = vld [vmem:[#allocation8 + $0xa0] sm:$0xff]  ;;  %v2101_v0 = vld [vmem:[#allocation8 + $0xb0] sm:$0xff] }
 0x1ce   :  { %v6718_v5 = vpack.c.bf16 %v2099_v60, %v2095_v59  ;;  %v6864_v59 = vpack.c.bf16 %v2142_v52, %v2138_v51  ;;  %v2141_v60 = vld [vmem:[#allocation8 + $0x1f0] sm:$0xff]  ;;  %v2175_v52 = vld [vmem:[#allocation8 + $0x300] sm:$0xff] }
 0x1cf   :  { %6571 = vmatpush1.bf16.msra.mxu0 %v6570_v6  ;;  %v6846_v6 = vpack.c.bf16 %v2101_v0, %v2097_v61  ;;  %v2144_v61 = vld [vmem:[#allocation8 + $0x208] sm:$0xff]  ;;  %v2150_v0 = vld [vmem:[#allocation8 + $0x238] sm:$0xff] }
 0x1d0   :  { %6699 = vmatpush1.bf16.msra.mxu1 %v6698_v7  ;;  %6573 = vmatprep.subr.bf16.mxu0 %v6572_v8  ;;  %v6720_v7 = vpack.c.bf16 %v2108_v2, %v2104_v1  ;;  %v2103_v8 = vld [vmem:[#allocation8 + $0xc0] sm:$0xff] }
 0x1d1   :  { %6701 = vmatprep.subr.bf16.mxu1 %v6700_v13  ;;  %v2109_v13 = vld [vmem:[#allocation8 + $0xf0] sm:$0xff]  ;;  %v6722_v18 = vpack.c.bf16 %v2107_v9, %v2103_v8  ;;  %v2152_v9 = vld [vmem:[#allocation8 + $0x248] sm:$0xff] }
 0x1d2   :  { %v2149_v8 = vld [vmem:[#allocation8 + $0x230] sm:$0xff] }
 0x1d3   :  { %6575 = vmatpush1.bf16.msra.mxu0 %v6574_v19  ;;  %v6850_v19 = vpack.c.bf16 %v2109_v13, %v2105_v10  ;;  %v2156_v10 = vld [vmem:[#allocation8 + $0x268] sm:$0xff]  ;;  %v2158_v13 = vld [vmem:[#allocation8 + $0x278] sm:$0xff] }
 0x1d4   :  { %6703 = vmatpush1.bf16.msra.mxu1 %v6702_v16  ;;  %6577 = vmatprep.subr.bf16.mxu0 %v6576_v20  ;;  %v6724_v16 = vpack.c.bf16 %v2116_v17, %v2112_v12  ;;  %v2111_v20 = vld [vmem:[#allocation8 + $0x100] sm:$0xff]  ;;  %v6744_v14 = vpack.c.bf16 %v2156_v10, %v2152_v9  ;;  %v1331_v10 = vlaneseq }
 0x1d5   :  { %6705 = vmatprep.subr.bf16.mxu1 %v6704_v24  ;;  %v2117_v24 = vld [vmem:[#allocation8 + $0x130] sm:$0xff]  ;;  %v6726_v29 = vpack.c.bf16 %v2115_v21, %v2111_v20  ;;  %v2160_v21 = vld [vmem:[#allocation8 + $0x288] sm:$0xff] }
 0x1d6   :  { %v2157_v20 = vld [vmem:[#allocation8 + $0x270] sm:$0xff] }
 0x1d7   :  { %6579 = vmatpush1.bf16.msra.mxu0 %v6578_v30  ;;  %v6854_v30 = vpack.c.bf16 %v2117_v24, %v2113_v22  ;;  %v2164_v22 = vld [vmem:[#allocation8 + $0x2a8] sm:$0xff]  ;;  %v2166_v24 = vld [vmem:[#allocation8 + $0x2b8] sm:$0xff] }
 0x1d8   :  { %6707 = vmatpush1.bf16.msra.mxu1 %v6706_v31  ;;  %6709 = vmatprep.subr.bf16.mxu0 %v6708_v32  ;;  %v6728_v31 = vpack.c.bf16 %v2124_v27, %v2120_v25  ;;  %v2119_v32 = vld [vmem:[#allocation8 + $0x140] sm:$0xff] }
 0x1d9   :  { %6837 = vmatprep.subr.bf16.mxu1 %v6836_v35  ;;  %v6856_v35 = vpack.c.bf16 %v2126_v28, %v2122_v26  ;;  %v6730_v41 = vpack.c.bf16 %v2123_v33, %v2119_v32  ;;  %v6748_v26 = vpack.c.bf16 %v2164_v22, %v2160_v21  ;;  %v2159_v28 = vld [vmem:[#allocation8 + $0x280] sm:$0xff]  ;;  %v2165_v32 = vld [vmem:[#allocation8 + $0x2b0] sm:$0xff]  ;;  %v2168_v33 = vld [vmem:[#allocation8 + $0x2c8] sm:$0xff] }
 0x1da   :  { %1163 = vmatmul.mubr.f32.vlgmr.msra.gmra.mrb[4].mxu0 %v8055_v48 }
 0x1db   :  { %1317 = vmatmul.mubr.f32.vlgmr.msra.gmra.mrb[4].mxu1 %v8055_v48  ;;  %1168 = vmatprep.mubr.f32.mxu0 %v8056_v53  ;;  %v2133_v48 = vld [vmem:[#allocation8 + $0x1b0] sm:$0xff] }
 0x1dc   :  { %1322 = vmatprep.mubr.f32.mxu1 %v8056_v53  ;;  %6711 = vmatpush1.bf16.msra.mxu0 %v6710_v42  ;;  %v6858_v42 = vpack.c.bf16 %v2125_v36, %v2121_v34  ;;  %v6862_v54 = vpack.c.bf16 %v2133_v48, %v2129_v46  ;;  %v2172_v34 = vld [vmem:[#allocation8 + $0x2e8] sm:$0xff]  ;;  %v2174_v36 = vld [vmem:[#allocation8 + $0x2f8] sm:$0xff] }
 0x1dd   :  { %6839 = vmatpush1.bf16.msra.mxu1 %v6838_v43  ;;  %6713 = vmatprep.subr.bf16.mxu0 %v6712_v44  ;;  %v6732_v43 = vpack.c.bf16 %v2132_v38, %v2128_v37  ;;  %v2127_v44 = vld [vmem:[#allocation8 + $0x180] sm:$0xff]  ;;  %v6752_v39 = vpack.c.bf16 %v2172_v34, %v2168_v33  ;;  %v2180_v46 = vld [vmem:[#allocation8 + $0x328] sm:$0xff]  ;;  %v2182_v48 = vld [vmem:[#allocation8 + $0x338] sm:$0xff] }
 0x1de   :  { %1169 = vmatmul.mubr.f32.gmra.mrb[6].mxu0 %v8057_v62  ;;  %6841 = vmatprep.subr.bf16.mxu1 %v6840_v49  ;;  %v2136_v49 = vld [vmem:[#allocation8 + $0x1c8] sm:$0xff]  ;;  %v6734_v53 = vpack.c.bf16 %v2131_v45, %v2127_v44  ;;  %v2173_v44 = vld [vmem:[#allocation8 + $0x2f0] sm:$0xff] }
 0x1df   :  { %1323 = vmatmul.mubr.f32.gmra.mrb[6].mxu1 %v8057_v62  ;;  %v6736_v55 = vpack.c.bf16 %v2140_v50, %v2136_v49  ;;  %v2148_v62 = vld [vmem:[#allocation8 + $0x228] sm:$0xff] }
 0x1e0   :  { %6715 = vmatpush1.bf16.msra.mxu0 %v6714_v56  ;;  %v2135_v56 = vld [vmem:[#allocation8 + $0x1c0] sm:$0xff]  ;;  %v6740_v3 = vpack.c.bf16 %v2148_v62, %v2144_v61  ;;  %v2176_v45 = vld [vmem:[#allocation8 + $0x308] sm:$0xff] }
 0x1e1   :  { %6843 = vmatpush1.bf16.msra.mxu1 %v6842_v57  ;;  %6717 = vmatprep.subr.bf16.mxu0 %v6716_v58  ;;  %v2139_v57 = vld [vmem:[#allocation8 + $0x1e0] sm:$0xff]  ;;  %v2137_v58 = vld [vmem:[#allocation8 + $0x1d0] sm:$0xff]  ;;  %v6756_v51 = vpack.c.bf16 %v2180_v46, %v2176_v45  ;;  %v2202_v45 = vld [vmem:[#allocation8 + $0x3d8] sm:$0xff] }
 0x1e2   :  { %6845 = vmatprep.subr.bf16.mxu1 %v6844_v63  ;;  %v2146_v63 = vld [vmem:[#allocation8 + $0x218] sm:$0xff]  ;;  %v6738_v1 = vpack.c.bf16 %v2139_v57, %v2135_v56  ;;  %v6866_v2 = vpack.c.bf16 %v2141_v60, %v2137_v58  ;;  %v2181_v56 = vld [vmem:[#allocation8 + $0x330] sm:$0xff]  ;;  %v2184_v57 = vld [vmem:[#allocation8 + $0x348] sm:$0xff] }
 0x1e3   :  { %v2188_v58 = vld [vmem:[#allocation8 + $0x368] sm:$0xff]  ;;  %v2190_v60 = vld [vmem:[#allocation8 + $0x378] sm:$0xff] }
 0x1e4   :  { %6719 = vmatpush1.bf16.msra.mxu0 %v6718_v5  ;;  %v2147_v5 = vld [vmem:[#allocation8 + $0x220] sm:$0xff]  ;;  %v2206_v46 = vld [vmem:[#allocation8 + $0x3f8] sm:$0xff] }
 0x1e5   :  { %6847 = vmatpush1.bf16.msra.mxu1 %v6846_v6  ;;  %6721 = vmatprep.subr.bf16.mxu0 %v6720_v7  ;;  %v2145_v6 = vld [vmem:[#allocation8 + $0x210] sm:$0xff]  ;;  %v6868_v7 = vpack.c.bf16 %v2150_v0, %v2146_v63  ;;  %v6742_v12 = vpack.c.bf16 %v2147_v5, %v2143_v4  ;;  %v6760_v63 = vpack.c.bf16 %v2188_v58, %v2184_v57  ;;  %v2183_v0 = vld [vmem:[#allocation8 + $0x340] sm:$0xff]  ;;  %v2192_v5 = vld [vmem:[#allocation8 + $0x388] sm:$0xff] }
 0x1e6   :  { %6849 = vmatprep.subr.bf16.mxu1 %v6848_v11  ;;  %v2154_v11 = vld [vmem:[#allocation8 + $0x258] sm:$0xff]  ;;  %v6870_v17 = vpack.c.bf16 %v2149_v8, %v2145_v6  ;;  %v2189_v4 = vld [vmem:[#allocation8 + $0x370] sm:$0xff]  ;;  %v2196_v6 = vld [vmem:[#allocation8 + $0x3a8] sm:$0xff] }
 0x1e7   :  { %v6764_v9 = vpack.c.bf16 %v2196_v6, %v2192_v5  ;;  %v2208_v6 = vld [vmem:[#allocation8 + $0x408] sm:$0xff] }
 0x1e8   :  { %6723 = vmatpush1.bf16.msra.mxu0 %v6722_v18  ;;  %v2155_v18 = vld [vmem:[#allocation8 + $0x260] sm:$0xff] }
 0x1e9   :  { %6851 = vmatpush1.bf16.msra.mxu1 %v6850_v19  ;;  %6725 = vmatprep.subr.bf16.mxu0 %v6724_v16  ;;  %v2153_v19 = vld [vmem:[#allocation8 + $0x250] sm:$0xff]  ;;  %v6872_v16 = vpack.c.bf16 %v2158_v13, %v2154_v11  ;;  %v6746_v25 = vpack.c.bf16 %v2155_v18, %v2151_v15  ;;  %v1332_v11 = vshrl.u32 %v1331_v10, 7  ;;  %v8384_v15 = vmov 1966171168  }
 0x1ea   :  { %6853 = vmatprep.subr.bf16.mxu1 %v6852_v23  ;;  %v2162_v23 = vld [vmem:[#allocation8 + $0x298] sm:$0xff]  ;;  %v6874_v27 = vpack.c.bf16 %v2157_v20, %v2153_v19  ;;  %v1372_v18 = vunpack.c.l.s4 %v8384_v15 }
 0x1eb   :  { %v8634_v13 = vsub.s32 0, %v1332_v11  ;;  %v8640_v19 = vsub.s32 3, %v1332_v11 }
 0x1ec   :  { %6727 = vmatpush1.bf16.msra.mxu0 %v6726_v29  ;;  %v2163_v29 = vld [vmem:[#allocation8 + $0x2a0] sm:$0xff]  ;;  %v1373_v22 = vunpack.c.0.s8 %v1372_v18 }
 0x1ed   :  { %6855 = vmatpush1.bf16.msra.mxu1 %v6854_v30  ;;  %6729 = vmatprep.subr.bf16.mxu0 %v6728_v31  ;;  %v2161_v30 = vld [vmem:[#allocation8 + $0x290] sm:$0xff]  ;;  %v6876_v31 = vpack.c.bf16 %v2166_v24, %v2162_v23  ;;  %v6750_v37 = vpack.c.bf16 %v2163_v29, %v2159_v28  ;;  %10611 = vst [vmem:[#allocation31_spill] sm:$0xff] %v8634_v13  ;;  %10614 = vst [vmem:[#allocation34_spill] sm:$0xff] %v8640_v19  ;;  %v2194_v24 = vld [vmem:[#allocation8 + $0x398] sm:$0xff] }
 0x1ee   :  { %6857 = vmatprep.subr.bf16.mxu1 %v6856_v35  ;;  %v2170_v35 = vld [vmem:[#allocation8 + $0x2d8] sm:$0xff]  ;;  %v6878_v38 = vpack.c.bf16 %v2165_v32, %v2161_v30  ;;  %v2195_v28 = vld [vmem:[#allocation8 + $0x3a0] sm:$0xff]  ;;  %v2193_v30 = vld [vmem:[#allocation8 + $0x390] sm:$0xff] }
 0x1f0   :  { %6731 = vmatpush1.bf16.msra.mxu0 %v6730_v41  ;;  %v2171_v41 = vld [vmem:[#allocation8 + $0x2e0] sm:$0xff] }
 0x1f1   :  { %6859 = vmatpush1.bf16.msra.mxu1 %v6858_v42  ;;  %6733 = vmatprep.subr.bf16.mxu0 %v6732_v43  ;;  %v2169_v42 = vld [vmem:[#allocation8 + $0x2d0] sm:$0xff]  ;;  %v6880_v43 = vpack.c.bf16 %v2174_v36, %v2170_v35  ;;  %v6754_v49 = vpack.c.bf16 %v2171_v41, %v2167_v40  ;;  %v2200_v41 = vld [vmem:[#allocation8 + $0x3c8] sm:$0xff] }
 0x1f2   :  { %6861 = vmatprep.subr.bf16.mxu1 %v6860_v47  ;;  %v2178_v47 = vld [vmem:[#allocation8 + $0x318] sm:$0xff]  ;;  %v6882_v50 = vpack.c.bf16 %v2173_v44, %v2169_v42  ;;  %v2197_v35 = vld [vmem:[#allocation8 + $0x3b0] sm:$0xff]  ;;  %v2204_v42 = vld [vmem:[#allocation8 + $0x3e8] sm:$0xff] }
 0x1f3   :  { %v6894_v40 = vpack.c.bf16 %v2197_v35, %v2193_v30  ;;  %v6768_v44 = vpack.c.bf16 %v2204_v42, %v2200_v41  ;;  %v8663_v35 = vld [vmem:[#allocation8 + $0x410] sm:$0xff]  ;;  %v8674_v41 = vld [vmem:[#allocation8 + $0x440] sm:$0xff] }
 0x1f4   :  { %6735 = vmatpush1.bf16.msra.mxu0 %v6734_v53  ;;  %v2179_v53 = vld [vmem:[#allocation8 + $0x320] sm:$0xff] }
 0x1f5   :  { %6863 = vmatpush1.bf16.msra.mxu1 %v6862_v54  ;;  %6737 = vmatprep.subr.bf16.mxu0 %v6736_v55  ;;  %v2177_v54 = vld [vmem:[#allocation8 + $0x310] sm:$0xff]  ;;  %v6884_v55 = vpack.c.bf16 %v2182_v48, %v2178_v47  ;;  %v6758_v61 = vpack.c.bf16 %v2179_v53, %v2175_v52  ;;  %v6896_v52 = vpack.c.bf16 %v2206_v46, %v2202_v45  ;;  %v8676_v42 = vld [vmem:[#allocation8 + $0x460] sm:$0xff]  ;;  %v8683_v45 = vld [vmem:[#allocation8 + $0x478] sm:$0xff] }
 0x1f6   :  { %6865 = vmatprep.subr.bf16.mxu1 %v6864_v59  ;;  %v2186_v59 = vld [vmem:[#allocation8 + $0x358] sm:$0xff]  ;;  %v6886_v62 = vpack.c.bf16 %v2181_v56, %v2177_v54  ;;  %v2201_v53 = vld [vmem:[#allocation8 + $0x3d0] sm:$0xff] }
 0x1f7   :  { %v8685_v46 = vld [vmem:[#allocation8 + $0x450] sm:$0xff] }
 0x1f8   :  { %6739 = vmatpush1.bf16.msra.mxu0 %v6738_v1  ;;  %v2187_v1 = vld [vmem:[#allocation8 + $0x360] sm:$0xff] }
 0x1f9   :  { %6867 = vmatpush1.bf16.msra.mxu1 %v6866_v2  ;;  %6741 = vmatprep.subr.bf16.mxu0 %v6740_v3  ;;  %v2185_v2 = vld [vmem:[#allocation8 + $0x350] sm:$0xff]  ;;  %v6888_v3 = vpack.c.bf16 %v2190_v60, %v2186_v59 }
 0x1fa   :  { %6869 = vmatprep.subr.bf16.mxu1 %v6868_v7  ;;  %v6762_v7 = vpack.c.bf16 %v2187_v1, %v2183_v0  ;;  %v6890_v8 = vpack.c.bf16 %v2189_v4, %v2185_v2  ;;  %v2205_v60 = vld [vmem:[#allocation8 + $0x3f0] sm:$0xff] }
 0x1fb   :  { %v6898_v5 = vpack.c.bf16 %v2205_v60, %v2201_v53  ;;  %v8700_v53 = vld [vmem:[#allocation8 + $0x4a8] sm:$0xff]  ;;  %v8716_v60 = vld [vmem:[#allocation8 + $0x498] sm:$0xff] }
 0x1fc   :  { %6743 = vmatpush1.bf16.msra.mxu0 %v6742_v12  ;;  %v1329_v12 = vld [vmem:[#allocation7] sm:$0xf] }
 0x1fd   :  { %6871 = vmatpush1.bf16.msra.mxu1 %v6870_v17  ;;  %6745 = vmatprep.subr.bf16.mxu0 %v6744_v14  ;;  %v8636_v17 = vsub.s32 2, %v1332_v11  ;;  %v8638_v14 = vsub.s32 1, %v1332_v11  ;;  %v1346_v23 = vrot.slane %v1329_v12, %v8640_v19 }
 0x1fe   :  { %6873 = vmatprep.subr.bf16.mxu1 %v6872_v16  ;;  %v1334_v16 = vrot.slane %v1329_v12, %v8634_v13 }
 0x1ff   :  { %10612 = vst [vmem:[#allocation32_spill] sm:$0xff] %v8636_v17  ;;  %10613 = vst [vmem:[#allocation33_spill] sm:$0xff] %v8638_v14  ;;  %v1342_v20 = vrot.slane %v1329_v12, %v8636_v17  ;;  %v1338_v21 = vrot.slane %v1329_v12, %v8638_v14 }
 0x200   :  { %6747 = vmatpush1.bf16.msra.mxu0 %v6746_v25  ;;  %v2198_v25 = vld [vmem:[#allocation8 + $0x3b8] sm:$0xff] }
 0x201   :  { %6875 = vmatpush1.bf16.msra.mxu1 %v6874_v27  ;;  %6749 = vmatprep.subr.bf16.mxu0 %v6748_v26  ;;  %v2191_v26 = vld [vmem:[#allocation8 + $0x380] sm:$0xff]  ;;  %v6892_v29 = vpack.c.bf16 %v2198_v25, %v2194_v24 }
 0x202   :  { %6877 = vmatprep.subr.bf16.mxu1 %v6876_v31  ;;  %v6766_v34 = vpack.c.bf16 %v2195_v28, %v2191_v26 }
 0x204   :  { %6751 = vmatpush1.bf16.msra.mxu0 %v6750_v37 }
 0x205   :  { %6879 = vmatpush1.bf16.msra.mxu1 %v6878_v38  ;;  %6753 = vmatprep.subr.bf16.mxu0 %v6752_v39  ;;  %v8646_v38 = vsub.s32 %v1373_v22, %v1332_v11 }
 0x206   :  { %6881 = vmatprep.subr.bf16.mxu1 %v6880_v43 }
 0x208   :  { %6755 = vmatpush1.bf16.msra.mxu0 %v6754_v49 }
 0x209   :  { %6883 = vmatpush1.bf16.msra.mxu1 %v6882_v50  ;;  %6757 = vmatprep.subr.bf16.mxu0 %v6756_v51  ;;  %v2199_v50 = vld [vmem:[#allocation8 + $0x3c0] sm:$0xff] }
 0x20a   :  { %6885 = vmatprep.subr.bf16.mxu1 %v6884_v55  ;;  %v2203_v51 = vld [vmem:[#allocation8 + $0x3e0] sm:$0xff] }
 0x20b   :  { %v6770_v59 = vpack.c.bf16 %v2203_v51, %v2199_v50  ;;  %v8818_v51 = vld [vmem:[#allocation8 + $0x518] sm:$0xff] }
 0x20c   :  { %6759 = vmatpush1.bf16.msra.mxu0 %v6758_v61  ;;  %10626 = vst [vmem:[#allocation46_spill] sm:$0xff] %v8818_v51 }
 0x20d   :  { %6887 = vmatpush1.bf16.msra.mxu1 %v6886_v62  ;;  %6761 = vmatprep.subr.bf16.mxu0 %v6760_v63 }
 0x20e   :  { %6889 = vmatprep.subr.bf16.mxu1 %v6888_v3 }
 0x210   :  { %6763 = vmatpush1.bf16.msra.mxu0 %v6762_v7  ;;  %v2212_v7 = vld [vmem:[#allocation8 + $0x428] sm:$0xff] }
 0x211   :  { %6891 = vmatpush1.bf16.msra.mxu1 %v6890_v8  ;;  %6765 = vmatprep.subr.bf16.mxu0 %v6764_v9  ;;  %v6772_v10 = vpack.c.bf16 %v2212_v7, %v2208_v6  ;;  %v8742_v6 = vld [vmem:[#allocation8 + $0x490] sm:$0xff] }
 0x212   :  { %6893 = vmatprep.subr.bf16.mxu1 %v6892_v29  ;;  %v8744_v7 = vld [vmem:[#allocation8 + $0x4b0] sm:$0xff] }
 0x214   :  { %6767 = vmatpush1.bf16.msra.mxu0 %v6766_v34  ;;  %v8661_v34 = vld [vmem:[#allocation8 + $0x420] sm:$0xff] }
 0x215   :  { %6895 = vmatpush1.bf16.msra.mxu1 %v6894_v40  ;;  %6769 = vmatprep.subr.bf16.mxu0 %v6768_v44  ;;  %v8672_v40 = vld [vmem:[#allocation8 + $0x468] sm:$0xff] }
 0x216   :  { %6897 = vmatprep.subr.bf16.mxu1 %v6896_v52  ;;  %v8698_v52 = vld [vmem:[#allocation8 + $0x488] sm:$0xff] }
 0x218   :  { %6771 = vmatpush1.bf16.msra.mxu0 %v6770_v59  ;;  %v8714_v59 = vld [vmem:[#allocation8 + $0x4a0] sm:$0xff] }
 0x219   :  { %6899 = vmatpush1.bf16.msra.mxu1 %v6898_v5  ;;  %6773 = vmatprep.subr.bf16.mxu0 %v6772_v10 }
 0x22d   :  { %v856_v27 = vpop.f32.mrb[0].mxu0 }
 0x22e   :  { %v1351_v31 = vadd.f32 %v1334_v16, %v856_v27  ;;  %v1010_v32 = vpop.f32.mrb[0].mxu1  ;;  %v858_v33 = vpop.f32.mrb[1].mxu0 }
 0x22f   :  { %v1353_v36 = vadd.f32 %v1342_v20, %v1010_v32  ;;  %v1352_v37 = vadd.f32 %v1338_v21, %v858_v33  ;;  %v1012_v39 = vpop.f32.mrb[1].mxu1  ;;  %v8659_v33 = vld [vmem:[#allocation8 + $0x400] sm:$0xff] }
 0x230   :  { %v1354_v43 = vadd.f32 %v1346_v23, %v1012_v39  ;;  %v8670_v39 = vld [vmem:[#allocation8 + $0x448] sm:$0xff] }
 0x231   :  { %v1367_v47 = vcombine.low %v1351_v31, %v1352_v37  ;;  %v1368_v48 = vcombine.high %v1351_v31, %v1352_v37  ;;  %v862_v49 = vpop.f32.mrb[2].mxu0  ;;  %v8668_v37 = vld [vmem:[#allocation8 + $0x430] sm:$0xff] }
 0x232   :  { %v1369_v54 = vcombine.low %v1353_v36, %v1354_v43  ;;  %v1370_v55 = vcombine.high %v1353_v36, %v1354_v43  ;;  %v1355_v56 = vadd.f32 %v1334_v16, %v862_v49  ;;  %v1016_v57 = vpop.f32.mrb[2].mxu1  ;;  %v864_v58 = vpop.f32.mrb[3].mxu0  ;;  %v2210_v16 = vld [vmem:[#allocation8 + $0x418] sm:$0xff]  ;;  %v8852_v49 = vld [vmem:[#allocation8 + $0x530] sm:$0xff] }
 0x233   :  { %v1377_v61 = vrot.slane %v1367_v47, %v8646_v38  ;;  %v1384_v62 = vrot.slane %v1368_v48, %v8646_v38  ;;  %v1357_v63 = vadd.f32 %v1342_v20, %v1016_v57  ;;  %v1356_v0 = vadd.f32 %v1338_v21, %v864_v58  ;;  %v1018_v1 = vpop.f32.mrb[3].mxu1  ;;  %v2214_v20 = vld [vmem:[#allocation8 + $0x438] sm:$0xff]  ;;  %v8687_v47 = vld [vmem:[#allocation8 + $0x470] sm:$0xff]  ;;  %v8806_v57 = vld [vmem:[#allocation8 + $0x500] sm:$0xff]  ;;  %10630 = vst [vmem:[#allocation50_spill] sm:$0xff] %v8852_v49 }
 0x234   :  { %v1391_v2 = vrot.slane %v1369_v54, %v8646_v38  ;;  %v1398_v3 = vrot.slane %v1370_v55, %v8646_v38  ;;  %v1358_v4 = vadd.f32 %v1346_v23, %v1018_v1  ;;  %v6900_v26 = vpack.c.bf16 %v2214_v20, %v2210_v16  ;;  %v8678_v43 = vld [vmem:[#allocation8 + $0x458] sm:$0xff]  ;;  %v8702_v54 = vld [vmem:[#allocation8 + $0x480] sm:$0xff]  ;;  %10623 = vst [vmem:[#allocation43_spill] sm:$0xff] %v8806_v57 }
 0x235   :  { %v1435_v8 = vcombine.low %v1355_v56, %v1356_v0  ;;  %v1436_v9 = vcombine.high %v1355_v56, %v1356_v0  ;;  %v8764_v20 = vld [vmem:[#allocation8 + $0x4e0] sm:$0xff]  ;;  %v8820_v0 = vld [vmem:[#allocation8 + $0x538] sm:$0xff] }
 0x236   :  { %v1399_v11 = vcombine.low %v1377_v61, %v1391_v2  ;;  %v1400_v12 = vcombine.high %v1377_v61, %v1391_v2  ;;  %v1401_v15 = vcombine.low %v1384_v62, %v1398_v3  ;;  %v1402_v18 = vcombine.high %v1384_v62, %v1398_v3  ;;  %6901 = vmatprep.subr.bf16.mxu1 %v6900_v26  ;;  %v8718_v61 = vld [vmem:[#allocation8 + $0x4b8] sm:$0xff]  ;;  %v8778_v26 = vld [vmem:[#allocation8 + $0x4f0] sm:$0xff]  ;;  %v8808_v56 = vld [vmem:[#allocation8 + $0x520] sm:$0xff] }
 0x237   :  { %v1445_v21 = vrot.slane %v1435_v8, %v8646_v38  ;;  %v1452_v22 = vrot.slane %v1436_v9, %v8646_v38  ;;  %v1437_v24 = vcombine.low %v1357_v63, %v1358_v4  ;;  %v1438_v23 = vcombine.high %v1357_v63, %v1358_v4  ;;  %10618 = vst [vmem:[#allocation38_spill] sm:$0xff] %v8764_v20  ;;  %v8798_v9 = vld [vmem:[#allocation8 + $0x528] sm:$0xff]  ;;  %v8850_v63 = vld [vmem:[#allocation8 + $0x510] sm:$0xff] }
 0x238   :  { %v8657_v32 = vrot.slane %v1399_v11, %v8646_v38  ;;  %v8666_v36 = vrot.slane %v1400_v12, %v8646_v38  ;;  %v8681_v44 = vrot.slane %v1401_v15, %v8646_v38  ;;  %v8690_v48 = vrot.slane %v1402_v18, %v8646_v38  ;;  %v8754_v11 = vld [vmem:[#allocation8 + $0x4c8] sm:$0xff]  ;;  %v8758_v15 = vld [vmem:[#allocation8 + $0x4c0] sm:$0xff]  ;;  %10620 = vst [vmem:[#allocation40_spill] sm:$0xff] %v8778_v26 }
 0x239   :  { %v1459_v25 = vrot.slane %v1437_v24, %v8646_v38  ;;  %v1466_v27 = vrot.slane %v1438_v23, %v8646_v38  ;;  %v8756_v12 = vld [vmem:[#allocation8 + $0x4e8] sm:$0xff]  ;;  %10617 = vst [vmem:[#allocation37_spill] sm:$0xff] %v8758_v15  ;;  %10622 = vst [vmem:[#allocation42_spill] sm:$0xff] %v8798_v9 }
 0x23a   :  { %v8712_v58 = vcombine.high %v8657_v32, %v8657_v32  ;;  %v8740_v5 = vcombine.high %v8666_v36, %v8666_v36  ;;  %10624 = vst [vmem:[#allocation44_spill] sm:$0xff] %v8808_v56  ;;  %10627 = vst [vmem:[#allocation47_spill] sm:$0xff] %v8820_v0  ;;  %v10632_v8 = vrot.slane %v8657_v32, %v8634_v13  ;;  %v8896_v26 = vld [vmem:[#allocation8 + $0x568] sm:$0xff] }
 0x23b   :  { %v1467_v28 = vcombine.low %v1445_v21, %v1459_v25  ;;  %v1468_v29 = vcombine.high %v1445_v21, %v1459_v25  ;;  %v1469_v30 = vcombine.low %v1452_v22, %v1466_v27  ;;  %v1470_v31 = vcombine.high %v1452_v22, %v1466_v27  ;;  %v8766_v21 = vld [vmem:[#allocation8 + $0x4d8] sm:$0xff]  ;;  %v8776_v27 = vld [vmem:[#allocation8 + $0x4d0] sm:$0xff]  ;;  %10629 = vst [vmem:[#allocation49_spill] sm:$0xff] %v8850_v63 }
 0x23c   :  { %v1542_v18 = vrot.slane %v8712_v58, %v8638_v14  ;;  %v1538_v16 = vrot.slane %v8712_v58, %v8634_v13  ;;  %v8768_v22 = vld [vmem:[#allocation8 + $0x4f8] sm:$0xff]  ;;  %10619 = vst [vmem:[#allocation39_spill] sm:$0xff] %v8776_v27  ;;  %v1554_v10 = vrot.slane %v8740_v5, %v8634_v13  ;;  %v10633_v51 = vrot.slane %v8666_v36, %v8634_v13 }
 0x23d   :  { %v8721_v62 = vrot.slane %v1467_v28, %v8646_v38  ;;  %v8730_v2 = vrot.slane %v1469_v30, %v8646_v38  ;;  %v8733_v3 = vrot.slane %v1468_v29, %v8646_v38  ;;  %v8736_v4 = vrot.slane %v1470_v31, %v8646_v38  ;;  %v8796_v38 = vld [vmem:[#allocation8 + $0x508] sm:$0xff]  ;;  %10638 = vst [vmem:[#allocation54_spill] sm:$0xff] %v8896_v26 }
 0x23e   :  { %v8784_v29 = vcombine.high %v8681_v44, %v8681_v44  ;;  %v8788_v30 = vcombine.high %v8690_v48, %v8690_v48  ;;  %v1558_v31 = vrot.slane %v8740_v5, %v8638_v14  ;;  %10621 = vst [vmem:[#allocation41_spill] sm:$0xff] %v8796_v38 }
 0x23f   :  { %10615 = vst [vmem:[#allocation35_spill] sm:$0xff] %v8730_v2  ;;  %10616 = vst [vmem:[#allocation36_spill] sm:$0xff] %v8733_v3  ;;  %v8814_v28 = vcombine.high %v8721_v62, %v8721_v62  ;;  %v8842_v25 = vcombine.high %v8733_v3, %v8733_v3  ;;  %v8914_v15 = vcombine.high %v8730_v2, %v8730_v2 }
 0x241   :  { %10625 = vst [vmem:[#allocation45_spill] sm:$0xff] %v8814_v28  ;;  %10628 = vst [vmem:[#allocation48_spill] sm:$0xff] %v8842_v25  ;;  %v8926_v25 = vcombine.high %v8736_v4, %v8736_v4 }
 0x2ad   :  { %v8846_v55 = vpop.f32.mrb[4].mxu0 }
 0x2ae   :  { %v8860_v57 = vpop.f32.mrb[4].mxu1  ;;  %v8862_v24 = vpop.f32.mrb[5].mxu0  ;;  %v1823_v56 = vadd.f32 %v10632_v8, %v8846_v55  ;;  %v1827_v1 = vadd.f32 %v10633_v51, %v8846_v55  ;;  %v8873_v0 = vadd.f32 %v1538_v16, %v8846_v55  ;;  %v8876_v23 = vadd.f32 %v1554_v10, %v8846_v55 }
 0x2af   :  { %10631 = vst [vmem:[#allocation51_spill] sm:$0xff] %v8860_v57  ;;  %v8878_v50 = vpop.f32.mrb[5].mxu1  ;;  %v10635_v57 = vrot.slane %v8657_v32, %v8638_v14  ;;  %v10636_v8 = vrot.slane %v8666_v36, %v8638_v14  ;;  %v1832_v51 = vadd.f32 %v1542_v18, %v8862_v24  ;;  %v8890_v16 = vadd.f32 %v1558_v31, %v8862_v24  ;;  %v8920_v31 = vld [vmem:[#allocation8 + $0x540] sm:$0xff] }
 0x2b0   :  { %10634 = vst [vmem:[#allocation52_spill] sm:$0xff] %v8878_v50  ;;  %v1951_v27 = vmul.f32 0.2, %v1823_v56  ;;  %v8894_v50 = vld [vmem:[#allocation8 + $0x548] sm:$0xff]  ;;  %vm1887_vm1 = vcmp.gt.f32.partialorder %v1823_v56, 0.0  ;;  %vm1891_vm3 = vcmp.gt.f32.partialorder %v1827_v1, 0.0 }
 0x2b1   :  { %v1824_v38 = vadd.f32 %v10635_v57, %v8862_v24  ;;  %v1828_v9 = vadd.f32 %v10636_v8, %v8862_v24  ;;  %10637 = vst [vmem:[#allocation53_spill] sm:$0xff] %v8894_v50  ;;  %v8902_v8 = vpop.f32.mrb[6].mxu0  ;;  %v10641_v50 = vrot.slane %v8681_v44, %v8638_v14  ;;  %vm1896_vm4 = vcmp.gt.f32.partialorder %v1832_v51, 0.0 }
 0x2b2   :  { %v8906_v20 = vpop.f32.mrb[6].mxu1  ;;  %v8908_v10 = vpop.f32.mrb[7].mxu0  ;;  %v2015_v2 = vsel %vm1887_vm1, %v1823_v56, %v1951_v27  ;;  %v10642_v56 = vrot.slane %v8681_v44, %v8634_v13  ;;  %vm1895_vm5 = vcmp.gt.f32.partialorder %v8873_v0, 0.0  ;;  %vm1900_vm6 = vcmp.gt.f32.partialorder %v8890_v16, 0.0 }
 0x2b3   :  { %vm1888_vm0 = vcmp.gt.f32.partialorder %v1824_v38, 0.0  ;;  %v1952_v18 = vmul.f32 0.2, %v1824_v38  ;;  %10639 = vst [vmem:[#allocation55_spill] sm:$0xff] %v8906_v20  ;;  %vm1892_vm2 = vcmp.gt.f32.partialorder %v1828_v9, 0.0  ;;  %v8916_v49 = vpop.f32.mrb[7].mxu1  ;;  %v8938_v26 = vadd.f32 %v10641_v50, %v8862_v24 }
 0x2b4   :  { %v1956_v63 = vmul.f32 0.2, %v1828_v9  ;;  %10640 = vst [vmem:[#allocation56_spill] sm:$0xff] %v8916_v49  ;;  %v8922_v20 = vld [vmem:[#allocation8 + $0x560] sm:$0xff]  ;;  %v1960_v49 = vmul.f32 0.2, %v1832_v51  ;;  %v8944_v27 = vadd.f32 %v10642_v56, %v8846_v55  ;;  %v10644_v50 = vrot.slane %v8690_v48, %v8638_v14 }
 0x2b5   :  { %v2016_v28 = vsel %vm1888_vm0, %v1824_v38, %v1952_v18  ;;  %v1955_v38 = vmul.f32 0.2, %v1827_v1  ;;  %v8948_v18 = vld [vmem:[#allocation8 + $0x578] sm:$0xff]  ;;  %vm1899_vm7 = vcmp.gt.f32.partialorder %v8876_v23, 0.0  ;;  %vm1904_vm8 = vcmp.gt.f32.partialorder %v8938_v26, 0.0 }
 0x2b6   :  { %2421 = vmatprep.mubr.f32.mxu0 %v2016_v28  ;;  %2743 = vmatprep.mubr.f32.mxu1 %v2016_v28  ;;  %v2020_v3 = vsel %vm1892_vm2, %v1828_v9, %v1956_v63  ;;  %v8946_v28 = vld [vmem:[#allocation8 + $0x558] sm:$0xff]  ;;  %v10643_v63 = vpack.c.bf16 %v8661_v34, %v8659_v33  ;;  %v10645_v9 = vrot.slane %v8690_v48, %v8634_v13  ;;  %vm1903_vm9 = vcmp.gt.f32.partialorder %v8944_v27, 0.0 }
 0x2b7   :  { %2422 = vmatmul.mubr.f32.vlgmr.msra.gmra.mrb[8].mxu0 %v2015_v2  ;;  %2744 = vmatmul.mubr.f32.vlgmr.msra.gmra.mrb[8].mxu1 %v2015_v2  ;;  %v8957_v2 = vadd.f32 %v10644_v50, %v8862_v24  ;;  %v10646_v33 = vpack.c.bf16 %v8668_v37, %v8663_v35  ;;  %v1734_v34 = vrot.slane %v8914_v15, %v8638_v14  ;;  %v1959_v35 = vmul.f32 0.2, %v8873_v0  ;;  %v8989_v50 = vld [vmem:[#allocation8 + $0x570] sm:$0xff] }
 0x2b8   :  { %6775 = vmatpush1.bf16.msra.mxu0 %v10643_v63  ;;  %2427 = vmatprep.mubr.f32.mxu0 %v2020_v3  ;;  %v8963_v56 = vadd.f32 %v10645_v9, %v8846_v55  ;;  %v10647_v9 = vpack.c.bf16 %v8672_v40, %v8670_v39  ;;  %v2019_v57 = vsel %vm1891_vm3, %v1827_v1, %v1955_v38  ;;  %v1964_v40 = vmul.f32 0.2, %v8890_v16 }
 0x2b9   :  { %2749 = vmatprep.mubr.f32.mxu1 %v2020_v3  ;;  %6903 = vmatpush1.bf16.msra.mxu1 %v10646_v33  ;;  %v10648_v3 = vpack.c.bf16 %v8683_v45, %v8678_v43  ;;  %v6920_v37 = vpack.c.bf16 %v8948_v18, %v8946_v28  ;;  %v8987_v33 = vld [vmem:[#allocation8 + $0x550] sm:$0xff]  ;;  %v2024_v39 = vsel %vm1896_vm4, %v1832_v51, %v1960_v49  ;;  %vm1908_vm10 = vcmp.gt.f32.partialorder %v8957_v2, 0.0  ;;  %v2266_v18 = vld [vmem:[#allocation8 + $0x5d8] sm:$0xff] }
 0x2ba   :  { %6777 = vmatprep.subr.bf16.mxu0 %v10647_v9  ;;  %v10649_v43 = vrot.slane %v8784_v29, %v8638_v14  ;;  %v10650_v1 = vrot.slane %v8784_v29, %v8634_v13  ;;  %v10651_v9 = vpack.c.bf16 %v8676_v42, %v8674_v41  ;;  %v10652_v49 = vrot.slane %v8788_v30, %v8638_v14  ;;  %v2270_v28 = vld [vmem:[#allocation8 + $0x5f8] sm:$0xff] }
 0x2bb   :  { %6905 = vmatprep.subr.bf16.mxu1 %v10648_v3  ;;  %2428 = vmatmul.mubr.f32.gmra.mrb[10].mxu0 %v2019_v57  ;;  %v10653_v41 = vpack.c.bf16 %v8687_v47, %v8685_v46  ;;  %v2023_v46 = vsel %vm1895_vm5, %v8873_v0, %v1959_v35  ;;  %v10655_v47 = vpack.c.bf16 %v8718_v61, %v8716_v60  ;;  %vm1907_vm11 = vcmp.gt.f32.partialorder %v8963_v56, 0.0 }
 0x2bc   :  { %2750 = vmatmul.mubr.f32.gmra.mrb[10].mxu1 %v2019_v57  ;;  %v8997_v45 = vadd.f32 %v10649_v43, %v8862_v24  ;;  %v9003_v38 = vadd.f32 %v10650_v1, %v8846_v55  ;;  %6779 = vmatpush1.bf16.msra.mxu0 %v10651_v9  ;;  %v9013_v51 = vadd.f32 %v10652_v49, %v8862_v24  ;;  %v9024_v43 = vld [vmem:[#allocation8 + $0x588] sm:$0xff]  ;;  %v1963_v49 = vmul.f32 0.2, %v8876_v23 }
 0x2bd   :  { %2433 = vmatprep.mubr.f32.mxu0 %v2024_v39  ;;  %2755 = vmatprep.mubr.f32.mxu1 %v2024_v39  ;;  %v9026_v1 = vld [vmem:[#allocation8 + $0x5a8] sm:$0xff]  ;;  %v10654_v39 = vpack.c.bf16 %v8700_v53, %v8698_v52  ;;  %v2028_v52 = vsel %vm1900_vm6, %v8890_v16, %v1964_v40  ;;  %v1968_v53 = vmul.f32 0.2, %v8938_v26  ;;  %v10657_v60 = vrot.slane %v8721_v62, %v8638_v14  ;;  %v9164_v16 = vld [vmem:[#allocation8 + $0x590] sm:$0xff] }
 0x2be   :  { %6907 = vmatpush1.bf16.msra.mxu1 %v10653_v41  ;;  %v10656_v41 = vrot.slane %v8788_v30, %v8634_v13  ;;  %v10658_v0 = vrot.slane %v8721_v62, %v8634_v13  ;;  %v10659_v35 = vpack.c.bf16 %v8714_v59, %v8702_v54  ;;  %v9080_v54 = vld [vmem:[#allocation8 + $0x5a0] sm:$0xff]  ;;  %v1971_v57 = vmul.f32 0.2, %v8963_v56  ;;  %v9166_v59 = vld [vmem:[#allocation8 + $0x5b0] sm:$0xff] }
 0x2bf   :  { %6781 = vmatprep.subr.bf16.mxu0 %v10654_v39  ;;  %6909 = vmatprep.subr.bf16.mxu1 %v10655_v47  ;;  %v9057_v61 = vadd.f32 %v10657_v60, %v8908_v10  ;;  %v9078_v47 = vld [vmem:[#allocation8 + $0x580] sm:$0xff]  ;;  %vm1912_vm12 = vcmp.gt.f32.partialorder %v8997_v45, 0.0  ;;  %vm1911_vm13 = vcmp.gt.f32.partialorder %v9003_v38, 0.0  ;;  %vm1916_vm14 = vcmp.gt.f32.partialorder %v9013_v51, 0.0 }
 0x2c0   :  { %v9047_v9 = vadd.f32 %v10656_v41, %v8846_v55  ;;  %2434 = vmatmul.mubr.f32.gmra.mrb[12].mxu0 %v2023_v46  ;;  %2756 = vmatmul.mubr.f32.gmra.mrb[12].mxu1 %v2023_v46  ;;  %v9063_v55 = vadd.f32 %v10658_v0, %v8902_v8  ;;  %v10660_v46 = vpack.c.bf16 %v8744_v7, %v8742_v6  ;;  %v1967_v0 = vmul.f32 0.2, %v8944_v27  ;;  %v10671_v39 = vld [vmem:[#allocation40_spill] sm:$0xff] }
 0x2c1   :  { %6783 = vmatpush1.bf16.msra.mxu0 %v10659_v35  ;;  %2439 = vmatprep.mubr.f32.mxu0 %v2028_v52  ;;  %v2027_v6 = vsel %vm1899_vm7, %v8876_v23, %v1963_v49  ;;  %v10662_v7 = vpack.c.bf16 %v8768_v22, %v8766_v21  ;;  %v10663_v35 = vld [vmem:[#allocation36_spill] sm:$0xff]  ;;  %v2032_v21 = vsel %vm1904_vm8, %v8938_v26, %v1968_v53  ;;  %v1972_v22 = vmul.f32 0.2, %v8957_v2  ;;  %v10678_v53 = vld [vmem:[#allocation41_spill] sm:$0xff] }
 0x2c2   :  { %2761 = vmatprep.mubr.f32.mxu1 %v2028_v52  ;;  %6911 = vmatpush1.bf16.msra.mxu1 %v10660_v46  ;;  %v10661_v52 = vpack.c.bf16 %v8756_v12, %v8754_v11  ;;  %v10664_v46 = vrot.slane %v10663_v35, %v8638_v14  ;;  %v10665_v11 = vrot.slane %v10663_v35, %v8634_v13  ;;  %v9115_v23 = vld [vmem:[#allocation8 + $0x598] sm:$0xff]  ;;  %vm1915_vm15 = vcmp.gt.f32.partialorder %v9047_v9, 0.0 }
 0x2c3   :  { %6913 = vmatprep.subr.bf16.mxu1 %v10662_v7  ;;  %v9117_v49 = vld [vmem:[#allocation8 + $0x5b8] sm:$0xff]  ;;  %vm1920_vm0 = vcmp.gt.f32.partialorder %v9057_v61, 0.0  ;;  %vm1919_vm1 = vcmp.gt.f32.partialorder %v9063_v55, 0.0 }
 0x2c4   :  { %6785 = vmatprep.subr.bf16.mxu0 %v10661_v52  ;;  %v9102_v41 = vadd.f32 %v10664_v46, %v8908_v10  ;;  %v9108_v12 = vadd.f32 %v10665_v11, %v8902_v8  ;;  %2440 = vmatmul.mubr.f32.gmra.mrb[14].mxu0 %v2027_v6  ;;  %v10666_v52 = vld [vmem:[#allocation45_spill] sm:$0xff]  ;;  %v10668_v11 = vld [vmem:[#allocation38_spill] sm:$0xff] }
 0x2c5   :  { %2762 = vmatmul.mubr.f32.gmra.mrb[14].mxu1 %v2027_v6  ;;  %v10667_v7 = vrot.slane %v10666_v52, %v8638_v14  ;;  %v10669_v6 = vld [vmem:[#allocation37_spill] sm:$0xff]  ;;  %2445 = vmatprep.mubr.f32.mxu0 %v2032_v21 }
 0x2c6   :  { %v10670_v60 = vpack.c.bf16 %v10668_v11, %v10669_v6  ;;  %2767 = vmatprep.mubr.f32.mxu1 %v2032_v21  ;;  %v10675_v6 = vld [vmem:[#allocation48_spill] sm:$0xff]  ;;  %v10677_v21 = vld [vmem:[#allocation42_spill] sm:$0xff]  ;;  %vm1924_vm2 = vcmp.gt.f32.partialorder %v9102_v41, 0.0  ;;  %vm1923_vm3 = vcmp.gt.f32.partialorder %v9108_v12, 0.0 }
 0x2c7   :  { %v9123_v46 = vadd.f32 %v10667_v7, %v8908_v10  ;;  %v10672_v7 = vld [vmem:[#allocation39_spill] sm:$0xff]  ;;  %v10676_v24 = vrot.slane %v10675_v6, %v8638_v14  ;;  %v10679_v3 = vpack.c.bf16 %v10677_v21, %v10678_v53 }
 0x2c8   :  { %6787 = vmatpush1.bf16.msra.mxu0 %v10670_v60  ;;  %v10673_v40 = vpack.c.bf16 %v10671_v39, %v10672_v7  ;;  %v10674_v60 = vrot.slane %v10666_v52, %v8634_v13  ;;  %v10680_v39 = vld [vmem:[#allocation47_spill] sm:$0xff]  ;;  %v10681_v7 = vld [vmem:[#allocation46_spill] sm:$0xff] }
 0x2c9   :  { %v9148_v26 = vadd.f32 %v10676_v24, %v8908_v10  ;;  %6789 = vmatprep.subr.bf16.mxu0 %v10679_v3  ;;  %v6924_v24 = vpack.c.bf16 %v9117_v49, %v9115_v23  ;;  %v10683_v3 = vrot.slane %v10675_v6, %v8634_v13  ;;  %v10684_v49 = vld [vmem:[#allocation44_spill] sm:$0xff]  ;;  %v10685_v21 = vld [vmem:[#allocation43_spill] sm:$0xff]  ;;  %v10690_v23 = vld [vmem:[#allocation49_spill] sm:$0xff]  ;;  %vm1928_vm4 = vcmp.gt.f32.partialorder %v9123_v46, 0.0 }
 0x2ca   :  { %6915 = vmatpush1.bf16.msra.mxu1 %v10673_v40  ;;  %v9142_v11 = vadd.f32 %v10674_v60, %v8902_v8  ;;  %v2031_v40 = vsel %vm1903_vm9, %v8944_v27, %v1967_v0  ;;  %v10682_v60 = vpack.c.bf16 %v10680_v39, %v10681_v7  ;;  %v2036_v27 = vsel %vm1908_vm10, %v8957_v2, %v1972_v22  ;;  %v10695_v22 = vld [vmem:[#allocation53_spill] sm:$0xff] }
 0x2cb   :  { %v9172_v53 = vadd.f32 %v10683_v3, %v8902_v8  ;;  %2446 = vmatmul.mubr.f32.gmra.mrb[16].mxu0 %v2031_v40  ;;  %2768 = vmatmul.mubr.f32.gmra.mrb[16].mxu1 %v2031_v40  ;;  %v1976_v0 = vmul.f32 0.2, %v8997_v45  ;;  %v10686_v39 = vpack.c.bf16 %v10684_v49, %v10685_v21  ;;  %v10687_v40 = vld [vmem:[#allocation35_spill] sm:$0xff]  ;;  %v10689_v3 = vld [vmem:[#allocation50_spill] sm:$0xff]  ;;  %v6926_v21 = vpack.c.bf16 %v9166_v59, %v9164_v16 }
 0x2cc   :  { %6917 = vmatprep.subr.bf16.mxu1 %v10682_v60  ;;  %2451 = vmatprep.mubr.f32.mxu0 %v2036_v27  ;;  %v10688_v7 = vrot.slane %v10687_v40, %v8638_v14  ;;  %v10691_v49 = vpack.c.bf16 %v10689_v3, %v10690_v23  ;;  %v10693_v2 = vrot.slane %v8736_v4, %v8638_v14  ;;  %v1975_v16 = vmul.f32 0.2, %v9003_v38  ;;  %v2264_v3 = vld [vmem:[#allocation8 + $0x5c8] sm:$0xff] }
 0x2cd   :  { %6791 = vmatpush1.bf16.msra.mxu0 %v10686_v39  ;;  %2773 = vmatprep.mubr.f32.mxu1 %v2036_v27  ;;  %v10692_v39 = vrot.slane %v10687_v40, %v8634_v13  ;;  %v10694_v27 = vld [vmem:[#allocation54_spill] sm:$0xff]  ;;  %v2035_v23 = vsel %vm1907_vm11, %v8963_v56, %v1971_v57  ;;  %v1980_v59 = vmul.f32 0.2, %v9013_v51  ;;  %v2263_v57 = vld [vmem:[#allocation8 + $0x5c0] sm:$0xff]  ;;  %vm1927_vm5 = vcmp.gt.f32.partialorder %v9142_v11, 0.0 }
 0x2ce   :  { %v9189_v60 = vadd.f32 %v10688_v7, %v8908_v10  ;;  %6919 = vmatpush1.bf16.msra.mxu1 %v10691_v49  ;;  %v9210_v63 = vadd.f32 %v10693_v2, %v8908_v10  ;;  %v10696_v42 = vpack.c.bf16 %v10694_v27, %v10695_v22  ;;  %v2268_v49 = vld [vmem:[#allocation8 + $0x5e8] sm:$0xff]  ;;  %v2267_v22 = vld [vmem:[#allocation8 + $0x5e0] sm:$0xff]  ;;  %v2278_v27 = vld [vmem:[#allocation8 + $0x638] sm:$0xff]  ;;  %vm1932_vm6 = vcmp.gt.f32.partialorder %v9148_v26, 0.0 }
 0x2cf   :  { %v9204_v7 = vadd.f32 %v10692_v39, %v8902_v8  ;;  %6921 = vmatprep.subr.bf16.mxu1 %v6920_v37  ;;  %2452 = vmatmul.mubr.f32.gmra.mrb[18].mxu0 %v2035_v23  ;;  %v10697_v37 = vpack.c.bf16 %v8922_v20, %v8920_v31  ;;  %v9243_v39 = vadd.f32 %v1734_v34, %v8908_v10  ;;  %v9250_v56 = vld [vmem:[#allocation8 + $0x608] sm:$0xff]  ;;  %v2285_v34 = vld [vmem:[#allocation8 + $0x670] sm:$0xff]  ;;  %vm1931_vm7 = vcmp.gt.f32.partialorder %v9172_v53, 0.0 }
 0x2d0   :  { %6793 = vmatprep.subr.bf16.mxu0 %v10696_v42  ;;  %2774 = vmatmul.mubr.f32.gmra.mrb[18].mxu1 %v2035_v23  ;;  %v2040_v42 = vsel %vm1912_vm12, %v8997_v45, %v1976_v0  ;;  %v10698_v45 = vrot.slane %v8736_v4, %v8634_v13  ;;  %v10699_v20 = vpack.c.bf16 %v8989_v50, %v8987_v33  ;;  %v2265_v23 = vld [vmem:[#allocation8 + $0x5d0] sm:$0xff]  ;;  %vm1936_vm8 = vcmp.gt.f32.partialorder %v9189_v60, 0.0 }
 0x2d1   :  { %6795 = vmatpush1.bf16.msra.mxu0 %v10697_v37  ;;  %2457 = vmatprep.mubr.f32.mxu0 %v2040_v42  ;;  %v6800_v31 = vpack.c.bf16 %v2268_v49, %v2264_v3  ;;  %v2269_v37 = vld [vmem:[#allocation8 + $0x5f0] sm:$0xff]  ;;  %v2039_v50 = vsel %vm1911_vm13, %v9003_v38, %v1975_v16  ;;  %v2044_v33 = vsel %vm1916_vm14, %v9013_v51, %v1980_v59  ;;  %v1979_v3 = vmul.f32 0.2, %v9047_v9 }
 0x2d2   :  { %v9237_v0 = vadd.f32 %v10698_v45, %v8902_v8  ;;  %2779 = vmatprep.mubr.f32.mxu1 %v2040_v42  ;;  %6923 = vmatpush1.bf16.msra.mxu1 %v10699_v20  ;;  %v10700_v45 = vrot.slane %v8914_v15, %v8634_v13  ;;  %v10701_v42 = vpack.c.bf16 %v9026_v1, %v9024_v43  ;;  %v2276_v20 = vld [vmem:[#allocation8 + $0x628] sm:$0xff]  ;;  %v1984_v43 = vmul.f32 0.2, %v9057_v61 }
 0x2d3   :  { %6925 = vmatprep.subr.bf16.mxu1 %v6924_v24  ;;  %v6928_v49 = vpack.c.bf16 %v2270_v28, %v2266_v18  ;;  %2458 = vmatmul.mubr.f32.gmra.mrb[20].mxu0 %v2039_v50  ;;  %v10702_v38 = vrot.slane %v8926_v25, %v8638_v14  ;;  %v10703_v51 = vrot.slane %v8926_v25, %v8634_v13  ;;  %v2271_v18 = vld [vmem:[#allocation8 + $0x600] sm:$0xff]  ;;  %vm1935_vm9 = vcmp.gt.f32.partialorder %v9204_v7, 0.0 }
 0x2d4   :  { %v9256_v2 = vadd.f32 %v10700_v45, %v8902_v8  ;;  %6797 = vmatprep.subr.bf16.mxu0 %v10701_v42  ;;  %v2274_v45 = vld [vmem:[#allocation8 + $0x618] sm:$0xff]  ;;  %2780 = vmatmul.mubr.f32.gmra.mrb[20].mxu1 %v2039_v50  ;;  %v10704_v16 = vpack.c.bf16 %v9080_v54, %v9078_v47  ;;  %v6802_v59 = vpack.c.bf16 %v2267_v22, %v2263_v57  ;;  %v2275_v28 = vld [vmem:[#allocation8 + $0x620] sm:$0xff]  ;;  %v2273_v57 = vld [vmem:[#allocation8 + $0x610] sm:$0xff]  ;;  %vm1940_vm10 = vcmp.gt.f32.partialorder %v9210_v63, 0.0 }
 0x2d5   :  { %v9276_v1 = vadd.f32 %v10702_v38, %v8908_v10  ;;  %v9282_v24 = vadd.f32 %v10703_v51, %v8902_v8  ;;  %2463 = vmatprep.mubr.f32.mxu0 %v2044_v33  ;;  %v10705_v42 = vld [vmem:[#allocation52_spill] sm:$0xff]  ;;  %v10706_v10 = vrot.slane %v8657_v32, %v8640_v19  ;;  %2785 = vmatprep.mubr.f32.mxu1 %v2044_v33  ;;  %v2277_v22 = vld [vmem:[#allocation8 + $0x630] sm:$0xff]  ;;  %v2280_v51 = vld [vmem:[#allocation8 + $0x648] sm:$0xff]  ;;  %vm1939_vm11 = vcmp.gt.f32.partialorder %v9237_v0, 0.0 }
 0x2d6   :  { %6799 = vmatpush1.bf16.msra.mxu0 %v10704_v16  ;;  %6927 = vmatpush1.bf16.msra.mxu1 %v6926_v21  ;;  %v6930_v38 = vpack.c.bf16 %v2269_v37, %v2265_v23  ;;  %v6804_v47 = vpack.c.bf16 %v2276_v20, %v9250_v56  ;;  %v6932_v54 = vpack.c.bf16 %v2278_v27, %v2274_v45  ;;  %v2284_v8 = vld [vmem:[#allocation8 + $0x668] sm:$0xff]  ;;  %v2282_v33 = vld [vmem:[#allocation8 + $0x658] sm:$0xff]  ;;  %vm1944_vm12 = vcmp.gt.f32.partialorder %v9243_v39, 0.0 }
 0x2d7   :  { %v9292_v50 = vadd.f32 %v10706_v10, %v10705_v42  ;;  %6801 = vmatprep.subr.bf16.mxu0 %v6800_v31  ;;  %v2043_v16 = vsel %vm1915_vm15, %v9047_v9, %v1979_v3  ;;  %6929 = vmatprep.subr.bf16.mxu1 %v6928_v49  ;;  %v1983_v10 = vmul.f32 0.2, %v9063_v55  ;;  %v2286_v21 = vld [vmem:[#allocation8 + $0x678] sm:$0xff]  ;;  %v10708_v56 = vrot.slane %v8657_v32, %v8636_v17  ;;  %v2292_v45 = vld [vmem:[#allocation8 + $0x6a8] sm:$0xff] }
 0x2d8   :  { %v10707_v23 = vld [vmem:[#allocation51_spill] sm:$0xff]  ;;  %2464 = vmatmul.mubr.f32.gmra.mrb[22].mxu0 %v2043_v16  ;;  %2786 = vmatmul.mubr.f32.gmra.mrb[22].mxu1 %v2043_v16  ;;  %v2048_v9 = vsel %vm1920_vm0, %v9057_v61, %v1984_v43  ;;  %v1988_v31 = vmul.f32 0.2, %v9102_v41  ;;  %v10709_v37 = vrot.slane %v8666_v36, %v8640_v19  ;;  %v10710_v32 = vrot.slane %v8666_v36, %v8636_v17  ;;  %v2279_v61 = vld [vmem:[#allocation8 + $0x640] sm:$0xff] }
 0x2d9   :  { %v9306_v27 = vadd.f32 %v10708_v56, %v10707_v23  ;;  %2469 = vmatprep.mubr.f32.mxu0 %v2048_v9  ;;  %v6806_v20 = vpack.c.bf16 %v2275_v28, %v2271_v18  ;;  %2791 = vmatprep.mubr.f32.mxu1 %v2048_v9  ;;  %v6934_v16 = vpack.c.bf16 %v2277_v22, %v2273_v57  ;;  %v1987_v18 = vmul.f32 0.2, %v9108_v12  ;;  %v2288_v28 = vld [vmem:[#allocation8 + $0x688] sm:$0xff]  ;;  %v2290_v22 = vld [vmem:[#allocation8 + $0x698] sm:$0xff] }
 0x2da   :  { %v9316_v3 = vadd.f32 %v10709_v37, %v10705_v42  ;;  %v9322_v49 = vadd.f32 %v10710_v32, %v10707_v23  ;;  %6803 = vmatpush1.bf16.msra.mxu0 %v6802_v59  ;;  %6931 = vmatpush1.bf16.msra.mxu1 %v6930_v38  ;;  %v6808_v56 = vpack.c.bf16 %v2284_v8, %v2280_v51  ;;  %v2283_v37 = vld [vmem:[#allocation8 + $0x660] sm:$0xff]  ;;  %v2281_v32 = vld [vmem:[#allocation8 + $0x650] sm:$0xff]  ;;  %v2294_v51 = vld [vmem:[#allocation8 + $0x6b8] sm:$0xff]  ;;  %v2000_v43 = vmul.f32 0.2, %v9189_v60 }
 0x2db   :  { %v6936_v36 = vpack.c.bf16 %v2286_v21, %v2282_v33  ;;  %6805 = vmatprep.subr.bf16.mxu0 %v6804_v47  ;;  %v2047_v59 = vsel %vm1919_vm1, %v9063_v55, %v1983_v10  ;;  %6933 = vmatprep.subr.bf16.mxu1 %v6932_v54  ;;  %v10711_v38 = vrot.slane %v8712_v58, %v8640_v19  ;;  %v1992_v54 = vmul.f32 0.2, %v9123_v46 }
 0x2dc   :  { %v10712_v8 = vrot.slane %v8712_v58, %v8636_v17  ;;  %2470 = vmatmul.mubr.f32.gmra.mrb[24].mxu0 %v2047_v59  ;;  %2792 = vmatmul.mubr.f32.gmra.mrb[24].mxu1 %v2047_v59  ;;  %v2052_v55 = vsel %vm1924_vm2, %v9102_v41, %v1988_v31  ;;  %v10713_v10 = vrot.slane %v8740_v5, %v8640_v19  ;;  %v2287_v31 = vld [vmem:[#allocation8 + $0x680] sm:$0xff]  ;;  %vm1943_vm13 = vcmp.gt.f32.partialorder %v9256_v2, 0.0 }
 0x2dd   :  { %v9337_v57 = vadd.f32 %v10711_v38, %v10705_v42  ;;  %2475 = vmatprep.mubr.f32.mxu0 %v2052_v55  ;;  %v6810_v58 = vpack.c.bf16 %v2283_v37, %v2279_v61  ;;  %v6938_v21 = vpack.c.bf16 %v2285_v34, %v2281_v32  ;;  %2797 = vmatprep.mubr.f32.mxu1 %v2052_v55  ;;  %v2291_v59 = vld [vmem:[#allocation8 + $0x6a0] sm:$0xff]  ;;  %v2289_v37 = vld [vmem:[#allocation8 + $0x690] sm:$0xff]  ;;  %vm1948_vm14 = vcmp.gt.f32.partialorder %v9276_v1, 0.0 }
 0x2de   :  { %v9343_v47 = vadd.f32 %v10712_v8, %v10707_v23  ;;  %v9354_v33 = vadd.f32 %v10713_v10, %v10705_v42  ;;  %6807 = vmatpush1.bf16.msra.mxu0 %v6806_v20  ;;  %6935 = vmatpush1.bf16.msra.mxu1 %v6934_v16  ;;  %v6812_v9 = vpack.c.bf16 %v2292_v45, %v2288_v28  ;;  %v1991_v45 = vmul.f32 0.2, %v9142_v11  ;;  %v2293_v32 = vld [vmem:[#allocation8 + $0x6b0] sm:$0xff]  ;;  %v2295_v10 = vld [vmem:[#allocation8 + $0x6c0] sm:$0xff] }
 0x2df   :  { %v10714_v38 = vrot.slane %v8740_v5, %v8636_v17  ;;  %v10715_v20 = vrot.slane %v8681_v44, %v8640_v19  ;;  %6809 = vmatprep.subr.bf16.mxu0 %v6808_v56  ;;  %v2051_v34 = vsel %vm1923_vm3, %v9108_v12, %v1987_v18  ;;  %6937 = vmatprep.subr.bf16.mxu1 %v6936_v36  ;;  %v2296_v5 = vld [vmem:[#allocation8 + $0x6c8] sm:$0xff]  ;;  %v1996_v12 = vmul.f32 0.2, %v9148_v26  ;;  %v2298_v18 = vld [vmem:[#allocation8 + $0x6d8] sm:$0xff] }
 0x2e0   :  { %v6940_v16 = vpack.c.bf16 %v2294_v51, %v2290_v22  ;;  %v10716_v28 = vrot.slane %v8681_v44, %v8636_v17  ;;  %2476 = vmatmul.mubr.f32.gmra.mrb[26].mxu0 %v2051_v34  ;;  %2798 = vmatmul.mubr.f32.gmra.mrb[26].mxu1 %v2051_v34  ;;  %v2056_v56 = vsel %vm1928_vm4, %v9123_v46, %v1992_v54  ;;  %v2300_v36 = vld [vmem:[#allocation8 + $0x6e8] sm:$0xff]  ;;  %v2302_v22 = vld [vmem:[#allocation8 + $0x6f8] sm:$0xff]  ;;  %vm1947_vm15 = vcmp.gt.f32.partialorder %v9282_v24, 0.0 }
 0x2e1   :  { %v9363_v8 = vadd.f32 %v10714_v38, %v10707_v23  ;;  %v9369_v61 = vadd.f32 %v10715_v20, %v10705_v42  ;;  %2481 = vmatprep.mubr.f32.mxu0 %v2056_v56  ;;  %v6814_v44 = vpack.c.bf16 %v2291_v59, %v2287_v31  ;;  %v2299_v38 = vld [vmem:[#allocation8 + $0x6e0] sm:$0xff]  ;;  %v10717_v46 = vrot.slane %v8690_v48, %v8640_v19  ;;  %v9397_v51 = vld [vmem:[#allocation8 + $0x708] sm:$0xff] }
 0x2e2   :  { %v9379_v55 = vadd.f32 %v10716_v28, %v10707_v23  ;;  %6811 = vmatpush1.bf16.msra.mxu0 %v6810_v58  ;;  %2803 = vmatprep.mubr.f32.mxu1 %v2056_v56  ;;  %v6942_v34 = vpack.c.bf16 %v2293_v32, %v2289_v37  ;;  %v2297_v28 = vld [vmem:[#allocation8 + $0x6d0] sm:$0xff]  ;;  %v10718_v31 = vrot.slane %v8690_v48, %v8636_v17  ;;  %v1995_v32 = vmul.f32 0.2, %v9172_v53  ;;  %v2308_v20 = vld [vmem:[#allocation8 + $0x728] sm:$0xff]  ;;  %v2306_v48 = vld [vmem:[#allocation8 + $0x718] sm:$0xff] }
 0x2e3   :  { %v9393_v54 = vadd.f32 %v10717_v46, %v10705_v42  ;;  %6939 = vmatpush1.bf16.msra.mxu1 %v6938_v21  ;;  %v2301_v58 = vld [vmem:[#allocation8 + $0x6f0] sm:$0xff]  ;;  %v10719_v46 = vrot.slane %v8784_v29, %v8640_v19  ;;  %6813 = vmatprep.subr.bf16.mxu0 %v6812_v9  ;;  %v2055_v21 = vsel %vm1927_vm5, %v9142_v11, %v1991_v45  ;;  %v2303_v11 = vld [vmem:[#allocation8 + $0x700] sm:$0xff]  ;;  %vm1890_vm0 = vcmp.gt.f32.partialorder %v9292_v50, 0.0 }
 0x2e4   :  { %v9403_v59 = vadd.f32 %v10718_v31, %v10707_v23  ;;  %6941 = vmatprep.subr.bf16.mxu1 %v6940_v16  ;;  %v6816_v37 = vpack.c.bf16 %v2300_v36, %v2296_v5  ;;  %v6944_v56 = vpack.c.bf16 %v2302_v22, %v2298_v18  ;;  %v2310_v31 = vld [vmem:[#allocation8 + $0x738] sm:$0xff]  ;;  %2482 = vmatmul.mubr.f32.gmra.mrb[28].mxu0 %v2055_v21  ;;  %v2307_v16 = vld [vmem:[#allocation8 + $0x720] sm:$0xff]  ;;  %v9421_v5 = vld [vmem:[#allocation8 + $0x710] sm:$0xff]  ;;  %vm1889_vm1 = vcmp.gt.f32.partialorder %v9306_v27, 0.0 }
 0x2e5   :  { %v9409_v41 = vadd.f32 %v10719_v46, %v10705_v42  ;;  %2804 = vmatmul.mubr.f32.gmra.mrb[28].mxu1 %v2055_v21  ;;  %v2060_v46 = vsel %vm1932_vm6, %v9148_v26, %v1996_v12  ;;  %v6818_v9 = vpack.c.bf16 %v2299_v38, %v2295_v10  ;;  %v6946_v45 = vpack.c.bf16 %v2301_v58, %v2297_v28  ;;  %v2309_v36 = vld [vmem:[#allocation8 + $0x730] sm:$0xff]  ;;  %v2312_v38 = vld [vmem:[#allocation8 + $0x748] sm:$0xff]  ;;  %v9436_v58 = vld [vmem:[#allocation8 + $0x758] sm:$0xff] }
 0x2e6   :  { %6815 = vmatpush1.bf16.msra.mxu0 %v6814_v44  ;;  %2487 = vmatprep.mubr.f32.mxu0 %v2060_v46  ;;  %v10720_v18 = vrot.slane %v8784_v29, %v8636_v17  ;;  %v10721_v12 = vrot.slane %v8788_v30, %v8640_v19  ;;  %v6820_v44 = vpack.c.bf16 %v2308_v20, %v9397_v51  ;;  %v2316_v28 = vld [vmem:[#allocation8 + $0x768] sm:$0xff]  ;;  %v1999_v51 = vmul.f32 0.2, %v9204_v7 }
 0x2e7   :  { %2809 = vmatprep.mubr.f32.mxu1 %v2060_v46  ;;  %6943 = vmatpush1.bf16.msra.mxu1 %v6942_v34  ;;  %v6948_v10 = vpack.c.bf16 %v2310_v31, %v2306_v48  ;;  %v10722_v29 = vrot.slane %v8788_v30, %v8636_v17  ;;  %v2004_v20 = vmul.f32 0.2, %v9210_v63  ;;  %v2318_v34 = vld [vmem:[#allocation8 + $0x778] sm:$0xff]  ;;  %v2064_v30 = vsel %vm1936_vm8, %v9189_v60, %v2000_v43  ;;  %v2311_v46 = vld [vmem:[#allocation8 + $0x740] sm:$0xff] }
 0x2e8   :  { %v9427_v26 = vadd.f32 %v10720_v18, %v10707_v23  ;;  %v9433_v22 = vadd.f32 %v10721_v12, %v10705_v42  ;;  %6817 = vmatprep.subr.bf16.mxu0 %v6816_v37  ;;  %v2059_v42 = vsel %vm1931_vm7, %v9172_v53, %v1995_v32  ;;  %6945 = vmatprep.subr.bf16.mxu1 %v6944_v56  ;;  %v10725_v32 = vld [vmem:[#allocation55_spill] sm:$0xff]  ;;  %v2315_v18 = vld [vmem:[#allocation8 + $0x760] sm:$0xff]  ;;  %v2332_v12 = vld [vmem:[#allocation8 + $0x7e8] sm:$0xff]  ;;  %vm1894_vm2 = vcmp.gt.f32.partialorder %v9316_v3, 0.0 }
 0x2e9   :  { %v9442_v21 = vadd.f32 %v10722_v29, %v10707_v23  ;;  %2488 = vmatmul.mubr.f32.gmra.mrb[30].mxu0 %v2059_v42  ;;  %2810 = vmatmul.mubr.f32.gmra.mrb[30].mxu1 %v2059_v42  ;;  %v10723_v23 = vld [vmem:[#allocation56_spill] sm:$0xff]  ;;  %v10724_v53 = vrot.slane %v8721_v62, %v8640_v19  ;;  %v10726_v56 = vrot.slane %v8721_v62, %v8636_v17  ;;  %v2313_v42 = vld [vmem:[#allocation8 + $0x750] sm:$0xff]  ;;  %vm1893_vm3 = vcmp.gt.f32.partialorder %v9322_v49, 0.0 }
 0x2ea   :  { %6819 = vmatpush1.bf16.msra.mxu0 %v6818_v9  ;;  %2493 = vmatprep.mubr.f32.mxu0 %v2064_v30  ;;  %v6822_v31 = vpack.c.bf16 %v2307_v16, %v2303_v11  ;;  %v10727_v60 = vrot.slane %v10663_v35, %v8640_v19  ;;  %v6950_v62 = vpack.c.bf16 %v2309_v36, %v9421_v5  ;;  %v2317_v11 = vld [vmem:[#allocation8 + $0x770] sm:$0xff]  ;;  %v2320_v16 = vld [vmem:[#allocation8 + $0x788] sm:$0xff]  ;;  %v2322_v5 = vld [vmem:[#allocation8 + $0x798] sm:$0xff]  ;;  %vm1898_vm4 = vcmp.gt.f32.partialorder %v9337_v57, 0.0 }
 0x2eb   :  { %v9458_v37 = vadd.f32 %v10724_v53, %v10723_v23  ;;  %v9464_v48 = vadd.f32 %v10726_v56, %v10725_v32  ;;  %2815 = vmatprep.mubr.f32.mxu1 %v2064_v30  ;;  %6947 = vmatpush1.bf16.msra.mxu1 %v6946_v45  ;;  %v6824_v29 = vpack.c.bf16 %v2316_v28, %v2312_v38  ;;  %v2003_v45 = vmul.f32 0.2, %v9237_v0  ;;  %v2324_v30 = vld [vmem:[#allocation8 + $0x7a8] sm:$0xff]  ;;  %v2326_v36 = vld [vmem:[#allocation8 + $0x7b8] sm:$0xff] }
 0x2ec   :  { %v9470_v43 = vadd.f32 %v10727_v60, %v10723_v23  ;;  %v6952_v9 = vpack.c.bf16 %v2318_v34, %v9436_v58  ;;  %6821 = vmatprep.subr.bf16.mxu0 %v6820_v44  ;;  %v2063_v53 = vsel %vm1935_vm9, %v9204_v7, %v1999_v51  ;;  %6949 = vmatprep.subr.bf16.mxu1 %v6948_v10  ;;  %v2008_v7 = vmul.f32 0.2, %v9243_v39  ;;  %v2319_v51 = vld [vmem:[#allocation8 + $0x780] sm:$0xff] }
 0x2ed   :  { %v2068_v56 = vsel %vm1940_vm10, %v9210_v63, %v2004_v20  ;;  %v10728_v38 = vrot.slane %v10663_v35, %v8636_v17  ;;  %2494 = vmatmul.mubr.f32.gmra.mrb[32].mxu0 %v2063_v53  ;;  %2816 = vmatmul.mubr.f32.gmra.mrb[32].mxu1 %v2063_v53  ;;  %v10729_v63 = vrot.slane %v10666_v52, %v8640_v19  ;;  %vm1897_vm5 = vcmp.gt.f32.partialorder %v9343_v47, 0.0 }
 0x2ee   :  { %v10730_v10 = vrot.slane %v10666_v52, %v8636_v17  ;;  %6823 = vmatpush1.bf16.msra.mxu0 %v6822_v31  ;;  %2499 = vmatprep.mubr.f32.mxu0 %v2068_v56  ;;  %v6826_v35 = vpack.c.bf16 %v2315_v18, %v2311_v46  ;;  %v1722_v20 = vrot.slane %v8736_v4, %v8636_v17  ;;  %v2007_v46 = vmul.f32 0.2, %v9256_v2  ;;  %v2328_v18 = vld [vmem:[#allocation8 + $0x7c8] sm:$0xff] }
 0x2ef   :  { %v9487_v28 = vadd.f32 %v10728_v38, %v10725_v32  ;;  %v9495_v44 = vadd.f32 %v10729_v63, %v10723_v23  ;;  %v1742_v34 = vrot.slane %v8914_v15, %v8640_v19  ;;  %2821 = vmatprep.mubr.f32.mxu1 %v2068_v56  ;;  %6951 = vmatpush1.bf16.msra.mxu1 %v6950_v62  ;;  %v2323_v38 = vld [vmem:[#allocation8 + $0x7a0] sm:$0xff]  ;;  %v2321_v63 = vld [vmem:[#allocation8 + $0x790] sm:$0xff]  ;;  %v2334_v56 = vld [vmem:[#allocation8 + $0x7f8] sm:$0xff]  ;;  %vm1902_vm6 = vcmp.gt.f32.partialorder %v9354_v33, 0.0 }
 0x2f0   :  { %v9501_v58 = vadd.f32 %v10730_v10, %v10725_v32  ;;  %v6954_v60 = vpack.c.bf16 %v2317_v11, %v2313_v42  ;;  %v6828_v53 = vpack.c.bf16 %v2324_v30, %v2320_v16  ;;  %v6956_v52 = vpack.c.bf16 %v2326_v36, %v2322_v5  ;;  %v2325_v10 = vld [vmem:[#allocation8 + $0x7b0] sm:$0xff]  ;;  %6825 = vmatprep.subr.bf16.mxu0 %v6824_v29  ;;  %v2330_v16 = vld [vmem:[#allocation8 + $0x7d8] sm:$0xff] }
 0x2f1   :  { %v2067_v31 = vsel %vm1939_vm11, %v9237_v0, %v2003_v45  ;;  %6953 = vmatprep.subr.bf16.mxu1 %v6952_v9  ;;  %v10731_v62 = vrot.slane %v10675_v6, %v8640_v19  ;;  %v10732_v11 = vrot.slane %v10675_v6, %v8636_v17  ;;  %v2072_v0 = vsel %vm1944_vm12, %v9243_v39, %v2008_v7  ;;  %v2327_v7 = vld [vmem:[#allocation8 + $0x7c0] sm:$0xff] }
 0x2f2   :  { %2500 = vmatmul.mubr.f32.gmra.mrb[34].mxu0 %v2067_v31  ;;  %2822 = vmatmul.mubr.f32.gmra.mrb[34].mxu1 %v2067_v31  ;;  %v2012_v9 = vmul.f32 0.2, %v9276_v1  ;;  %v10733_v45 = vrot.slane %v10687_v40, %v8640_v19  ;;  %v6830_v6 = vpack.c.bf16 %v2323_v38, %v2319_v51  ;;  %v6958_v5 = vpack.c.bf16 %v2325_v10, %v2321_v63  ;;  %v2331_v31 = vld [vmem:[#allocation8 + $0x7e0] sm:$0xff]  ;;  %v2329_v38 = vld [vmem:[#allocation8 + $0x7d0] sm:$0xff] }
 0x2f3   :  { %v9516_v42 = vadd.f32 %v10731_v62, %v10723_v23  ;;  %v9522_v29 = vadd.f32 %v10732_v11, %v10725_v32  ;;  %6827 = vmatpush1.bf16.msra.mxu0 %v6826_v35  ;;  %2505 = vmatprep.mubr.f32.mxu0 %v2072_v0  ;;  %v1738_v39 = vrot.slane %v8914_v15, %v8636_v17  ;;  %v2333_v63 = vld [vmem:[#allocation8 + $0x7f0] sm:$0xff]  ;;  %vm1901_vm7 = vcmp.gt.f32.partialorder %v9363_v8, 0.0 }
 0x2f4   :  { %v9533_v30 = vadd.f32 %v10733_v45, %v10723_v23  ;;  %2827 = vmatprep.mubr.f32.mxu1 %v2072_v0  ;;  %6955 = vmatpush1.bf16.msra.mxu1 %v6954_v60  ;;  %v6832_v36 = vpack.c.bf16 %v2332_v12, %v2328_v18  ;;  %v10734_v62 = vrot.slane %v10687_v40, %v8636_v17  ;;  %v2011_v12 = vmul.f32 0.2, %v9282_v24  ;;  %v3194_v18 = vld [vmem:[#allocation11 + $0x8] sm:$0xff]  ;;  %v3197_v45 = vld [vmem:[#allocation11 + $0x20] sm:$0xff] }
 0x2f5   :  { %v10735_v35 = vrot.slane %v8736_v4, %v8640_v19  ;;  %6829 = vmatprep.subr.bf16.mxu0 %v6828_v53  ;;  %v2071_v15 = vsel %vm1943_vm13, %v9256_v2, %v2007_v46  ;;  %6957 = vmatprep.subr.bf16.mxu1 %v6956_v52  ;;  %v6960_v60 = vpack.c.bf16 %v2334_v56, %v2330_v16  ;;  %v1954_v53 = vmul.f32 0.2, %v9292_v50  ;;  %v3198_v0 = vld [vmem:[#allocation11 + $0x28] sm:$0xff]  ;;  %v3193_v56 = vld [vmem:[#allocation11] sm:$0xff] }
 0x2f6   :  { %v9542_v11 = vadd.f32 %v10734_v62, %v10725_v32  ;;  %v9555_v40 = vadd.f32 %v1722_v20, %v10725_v32  ;;  %2506 = vmatmul.mubr.f32.gmra.mrb[36].mxu0 %v2071_v15  ;;  %2828 = vmatmul.mubr.f32.gmra.mrb[36].mxu1 %v2071_v15  ;;  %v2076_v4 = vsel %vm1948_vm14, %v9276_v1, %v2012_v9  ;;  %v3206_v62 = vld [vmem:[#allocation11 + $0x68] sm:$0xff]  ;;  %v1957_v15 = vmul.f32 0.2, %v9322_v49 }
 0x2f7   :  { %v9548_v51 = vadd.f32 %v10735_v35, %v10723_v23  ;;  %v1758_v2 = vrot.slane %v8926_v25, %v8640_v19  ;;  %6831 = vmatpush1.bf16.msra.mxu0 %v6830_v6  ;;  %2511 = vmatprep.mubr.f32.mxu0 %v2076_v4  ;;  %v6834_v52 = vpack.c.bf16 %v2331_v31, %v2327_v7  ;;  %v1958_v6 = vmul.f32 0.2, %v9316_v3  ;;  %v3199_v7 = vld [vmem:[#allocation11 + $0x30] sm:$0xff]  ;;  %v3202_v31 = vld [vmem:[#allocation11 + $0x48] sm:$0xff] }
 0x2f8   :  { %v9566_v20 = vadd.f32 %v1742_v34, %v10723_v23  ;;  %2833 = vmatprep.mubr.f32.mxu1 %v2076_v4  ;;  %6959 = vmatpush1.bf16.msra.mxu1 %v6958_v5  ;;  %v6962_v10 = vpack.c.bf16 %v2333_v63, %v2329_v38  ;;  %v9569_v1 = vadd.f32 %v1738_v39, %v10725_v32  ;;  %v1953_v34 = vmul.f32 0.2, %v9306_v27  ;;  %v3196_v5 = vld [vmem:[#allocation11 + $0x18] sm:$0xff]  ;;  %v3195_v39 = vld [vmem:[#allocation11 + $0x10] sm:$0xff] }
 0x2f9   :  { %v9572_v46 = vadd.f32 %v1758_v2, %v10723_v23  ;;  %6833 = vmatprep.subr.bf16.mxu0 %v6832_v36  ;;  %v2075_v9 = vsel %vm1947_vm15, %v9282_v24, %v2011_v12  ;;  %6961 = vmatprep.subr.bf16.mxu1 %v6960_v60  ;;  %v1754_v16 = vrot.slane %v8926_v25, %v8636_v17  ;;  %v3200_v24 = vld [vmem:[#allocation11 + $0x38] sm:$0xff]  ;;  %v3201_v60 = vld [vmem:[#allocation11 + $0x40] sm:$0xff]  ;;  %v1962_v4 = vmul.f32 0.2, %v9337_v57 }
 0x2fa   :  { %2512 = vmatmul.mubr.f32.gmra.mrb[38].mxu0 %v2075_v9  ;;  %2834 = vmatmul.mubr.f32.gmra.mrb[38].mxu1 %v2075_v9  ;;  %v2018_v23 = vsel %vm1890_vm0, %v9292_v50, %v1954_v53  ;;  %v6964_v36 = vpack.c.bf16 %v3198_v0, %v3194_v18  ;;  %v6966_v50 = vpack.c.bf16 %v3197_v45, %v3193_v56  ;;  %v3204_v38 = vld [vmem:[#allocation11 + $0x58] sm:$0xff]  ;;  %v3203_v18 = vld [vmem:[#allocation11 + $0x50] sm:$0xff]  ;;  %v3209_v45 = vld [vmem:[#allocation11 + $0x80] sm:$0xff]  ;;  %vm1906_vm8 = vcmp.gt.f32.partialorder %v9369_v61, 0.0 }
 0x2fb   :  { %6835 = vmatpush1.bf16.msra.mxu0 %v6834_v52  ;;  %2582 = vmatprep.mubr.f32.mxu0 %v2018_v23  ;;  %v9587_v25 = vadd.f32 %v1754_v16, %v10725_v32  ;;  %v2017_v35 = vsel %vm1889_vm1, %v9306_v27, %v1953_v34  ;;  %v7092_v12 = vpack.c.bf16 %v3200_v24, %v3196_v5  ;;  %v3205_v32 = vld [vmem:[#allocation11 + $0x60] sm:$0xff]  ;;  %v3208_v52 = vld [vmem:[#allocation11 + $0x78] sm:$0xff]  ;;  %v3210_v27 = vld [vmem:[#allocation11 + $0x88] sm:$0xff]  ;;  %v1961_v34 = vmul.f32 0.2, %v9343_v47 }
 0x2fc   :  { %6963 = vmatpush1.bf16.msra.mxu1 %v6962_v10  ;;  %2904 = vmatprep.mubr.f32.mxu1 %v2018_v23  ;;  %v2022_v63 = vsel %vm1894_vm2, %v9316_v3, %v1958_v6  ;;  %v7094_v53 = vpack.c.bf16 %v3199_v7, %v3195_v39  ;;  %v6968_v2 = vpack.c.bf16 %v3206_v62, %v3202_v31  ;;  %v3214_v10 = vld [vmem:[#allocation11 + $0xa8] sm:$0xff]  ;;  %v3207_v0 = vld [vmem:[#allocation11 + $0x70] sm:$0xff]  ;;  %v3213_v23 = vld [vmem:[#allocation11 + $0xa0] sm:$0xff]  ;;  %v1966_v24 = vmul.f32 0.2, %v9354_v33 }
 0x2fd   :  { %6965 = vmatprep.subr.bf16.mxu0 %v6964_v36  ;;  %v6970_v9 = vpack.c.bf16 %v3205_v32, %v3201_v60  ;;  %v2021_v3 = vsel %vm1893_vm3, %v9322_v49, %v1957_v15  ;;  %7093 = vmatprep.subr.bf16.mxu1 %v7092_v12  ;;  %v7096_v16 = vpack.c.bf16 %v3208_v52, %v3204_v38  ;;  %v3212_v6 = vld [vmem:[#allocation11 + $0x98] sm:$0xff]  ;;  %v3218_v36 = vld [vmem:[#allocation11 + $0xc8] sm:$0xff]  ;;  %v3211_v31 = vld [vmem:[#allocation11 + $0x90] sm:$0xff]  ;;  %vm1905_vm9 = vcmp.gt.f32.partialorder %v9379_v55, 0.0 }
 0x2fe   :  { %2583 = vmatmul.mubr.f32.vlgmr.msra.gmra.mrb[8].mxu0 %v2017_v35  ;;  %v6972_v56 = vpack.c.bf16 %v3214_v10, %v3210_v27  ;;  %v2026_v5 = vsel %vm1898_vm4, %v9337_v57, %v1962_v4  ;;  %v7098_v49 = vpack.c.bf16 %v3207_v0, %v3203_v18  ;;  %v3216_v39 = vld [vmem:[#allocation11 + $0xb8] sm:$0xff]  ;;  %v3222_v7 = vld [vmem:[#allocation11 + $0xe8] sm:$0xff]  ;;  %v3215_v62 = vld [vmem:[#allocation11 + $0xb0] sm:$0xff]  ;;  %v2025_v57 = vsel %vm1897_vm5, %v9343_v47, %v1961_v34 }
 0x2ff   :  { %2905 = vmatmul.mubr.f32.vlgmr.msra.gmra.mrb[8].mxu1 %v2017_v35  ;;  %2588 = vmatprep.mubr.f32.mxu0 %v2022_v63  ;;  %v1965_v35 = vmul.f32 0.2, %v9363_v8  ;;  %v7100_v15 = vpack.c.bf16 %v3216_v39, %v3212_v6  ;;  %v6976_v12 = vpack.c.bf16 %v3222_v7, %v3218_v36  ;;  %v3217_v60 = vld [vmem:[#allocation11 + $0xc0] sm:$0xff]  ;;  %v3220_v38 = vld [vmem:[#allocation11 + $0xd8] sm:$0xff]  ;;  %v1970_v4 = vmul.f32 0.2, %v9369_v61 }
 0x300   :  { %2910 = vmatprep.mubr.f32.mxu1 %v2022_v63  ;;  %6967 = vmatpush1.bf16.msra.mxu0 %v6966_v50  ;;  %v6974_v50 = vpack.c.bf16 %v3213_v23, %v3209_v45  ;;  %v3221_v32 = vld [vmem:[#allocation11 + $0xe0] sm:$0xff]  ;;  %v2030_v63 = vsel %vm1902_vm6, %v9354_v33, %v1966_v24  ;;  %v7102_v47 = vpack.c.bf16 %v3215_v62, %v3211_v31  ;;  %v3230_v52 = vld [vmem:[#allocation11 + $0x128] sm:$0xff]  ;;  %v3219_v27 = vld [vmem:[#allocation11 + $0xd0] sm:$0xff]  ;;  %v1969_v0 = vmul.f32 0.2, %v9379_v55 }
 0x301   :  { %6969 = vmatprep.subr.bf16.mxu0 %v6968_v2  ;;  %7095 = vmatpush1.bf16.msra.mxu1 %v7094_v53  ;;  %v3224_v53 = vld [vmem:[#allocation11 + $0xf8] sm:$0xff]  ;;  %v3226_v2 = vld [vmem:[#allocation11 + $0x108] sm:$0xff]  ;;  %v3223_v10 = vld [vmem:[#allocation11 + $0xf0] sm:$0xff]  ;;  %v6978_v18 = vpack.c.bf16 %v3221_v32, %v3217_v60  ;;  %v2029_v33 = vsel %vm1901_vm7, %v9363_v8, %v1965_v35  ;;  %v2034_v45 = vsel %vm1906_vm8, %v9369_v61, %v1970_v4  ;;  %v1974_v23 = vmul.f32 0.2, %v9393_v54 }
 0x302   :  { %2589 = vmatmul.mubr.f32.gmra.mrb[10].mxu0 %v2021_v3  ;;  %7097 = vmatprep.subr.bf16.mxu1 %v7096_v16  ;;  %v3225_v34 = vld [vmem:[#allocation11 + $0x100] sm:$0xff]  ;;  %v7106_v8 = vpack.c.bf16 %v3223_v10, %v3219_v27  ;;  %v3232_v6 = vld [vmem:[#allocation11 + $0x138] sm:$0xff]  ;;  %v3238_v24 = vld [vmem:[#allocation11 + $0x168] sm:$0xff]  ;;  %vm1910_vm10 = vcmp.gt.f32.partialorder %v9393_v54, 0.0  ;;  %v2033_v61 = vsel %vm1905_vm9, %v9379_v55, %v1969_v0  ;;  %v1973_v7 = vmul.f32 0.2, %v9403_v59 }
 0x303   :  { %2911 = vmatmul.mubr.f32.gmra.mrb[10].mxu1 %v2021_v3  ;;  %2594 = vmatprep.mubr.f32.mxu0 %v2026_v5  ;;  %v6980_v3 = vpack.c.bf16 %v3230_v52, %v3226_v2  ;;  %v3229_v16 = vld [vmem:[#allocation11 + $0x120] sm:$0xff]  ;;  %v3231_v39 = vld [vmem:[#allocation11 + $0x130] sm:$0xff]  ;;  %v3236_v35 = vld [vmem:[#allocation11 + $0x158] sm:$0xff]  ;;  %vm1909_vm11 = vcmp.gt.f32.partialorder %v9403_v59, 0.0  ;;  %vm1914_vm12 = vcmp.gt.f32.partialorder %v9409_v41, 0.0  ;;  %vm1913_vm13 = vcmp.gt.f32.partialorder %v9427_v26, 0.0 }
 0x304   :  { %2916 = vmatprep.mubr.f32.mxu1 %v2026_v5  ;;  %6971 = vmatpush1.bf16.msra.mxu0 %v6970_v9  ;;  %v7104_v9 = vpack.c.bf16 %v3224_v53, %v3220_v38  ;;  %v3234_v5 = vld [vmem:[#allocation11 + $0x148] sm:$0xff]  ;;  %v6982_v36 = vpack.c.bf16 %v3229_v16, %v3225_v34  ;;  %v3240_v60 = vld [vmem:[#allocation11 + $0x178] sm:$0xff]  ;;  %v3239_v4 = vld [vmem:[#allocation11 + $0x170] sm:$0xff]  ;;  %v1977_v53 = vmul.f32 0.2, %v9427_v26  ;;  %vm1918_vm14 = vcmp.gt.f32.partialorder %v9433_v22, 0.0 }
 0x305   :  { %6973 = vmatprep.subr.bf16.mxu0 %v6972_v56  ;;  %7099 = vmatpush1.bf16.msra.mxu1 %v7098_v49  ;;  %v3228_v56 = vld [vmem:[#allocation11 + $0x118] sm:$0xff]  ;;  %v3227_v49 = vld [vmem:[#allocation11 + $0x110] sm:$0xff]  ;;  %v6984_v62 = vpack.c.bf16 %v3238_v24, %v3234_v5  ;;  %v3242_v32 = vld [vmem:[#allocation11 + $0x188] sm:$0xff]  ;;  %v7112_v2 = vpack.c.bf16 %v3240_v60, %v3236_v35  ;;  %v1982_v0 = vmul.f32 0.2, %v9433_v22  ;;  %vm1917_vm15 = vcmp.gt.f32.partialorder %v9442_v21, 0.0 }
 0x306   :  { %2595 = vmatmul.mubr.f32.gmra.mrb[12].mxu0 %v2025_v57  ;;  %7101 = vmatprep.subr.bf16.mxu1 %v7100_v15  ;;  %v7108_v31 = vpack.c.bf16 %v3232_v6, %v3228_v56  ;;  %v2038_v15 = vsel %vm1910_vm10, %v9393_v54, %v1974_v23  ;;  %v7110_v55 = vpack.c.bf16 %v3231_v39, %v3227_v49  ;;  %v3246_v38 = vld [vmem:[#allocation11 + $0x1a8] sm:$0xff]  ;;  %v3241_v27 = vld [vmem:[#allocation11 + $0x180] sm:$0xff]  ;;  %v3243_v16 = vld [vmem:[#allocation11 + $0x190] sm:$0xff]  ;;  %v1981_v23 = vmul.f32 0.2, %v9442_v21 }
 0x307   :  { %2917 = vmatmul.mubr.f32.gmra.mrb[12].mxu1 %v2025_v57  ;;  %2600 = vmatprep.mubr.f32.mxu0 %v2030_v63  ;;  %v3237_v57 = vld [vmem:[#allocation11 + $0x160] sm:$0xff]  ;;  %v2037_v54 = vsel %vm1909_vm11, %v9403_v59, %v1973_v7  ;;  %v6988_v52 = vpack.c.bf16 %v3246_v38, %v3242_v32  ;;  %v3254_v34 = vld [vmem:[#allocation11 + $0x1e8] sm:$0xff]  ;;  %v3247_v56 = vld [vmem:[#allocation11 + $0x1b0] sm:$0xff]  ;;  %v2046_v39 = vsel %vm1918_vm14, %v9433_v22, %v1982_v0  ;;  %vm1922_vm0 = vcmp.gt.f32.partialorder %v9458_v37, 0.0 }
 0x308   :  { %2922 = vmatprep.mubr.f32.mxu1 %v2030_v63  ;;  %6975 = vmatpush1.bf16.msra.mxu0 %v6974_v50  ;;  %v3233_v50 = vld [vmem:[#allocation11 + $0x140] sm:$0xff]  ;;  %v3235_v63 = vld [vmem:[#allocation11 + $0x150] sm:$0xff]  ;;  %v3252_v49 = vld [vmem:[#allocation11 + $0x1d8] sm:$0xff]  ;;  %v2045_v22 = vsel %vm1917_vm15, %v9442_v21, %v1981_v23  ;;  %v1985_v35 = vmul.f32 0.2, %v9464_v48  ;;  %vm1921_vm1 = vcmp.gt.f32.partialorder %v9464_v48, 0.0 }
 0x309   :  { %6977 = vmatprep.subr.bf16.mxu0 %v6976_v12  ;;  %7103 = vmatpush1.bf16.msra.mxu1 %v7102_v47  ;;  %v1978_v12 = vmul.f32 0.2, %v9409_v41  ;;  %v6986_v47 = vpack.c.bf16 %v3237_v57, %v3233_v50  ;;  %v3245_v10 = vld [vmem:[#allocation11 + $0x1a0] sm:$0xff]  ;;  %v7114_v59 = vpack.c.bf16 %v3239_v4, %v3235_v63  ;;  %v3258_v7 = vld [vmem:[#allocation11 + $0x208] sm:$0xff]  ;;  %v3255_v50 = vld [vmem:[#allocation11 + $0x1f0] sm:$0xff]  ;;  %vm1926_vm2 = vcmp.gt.f32.partialorder %v9470_v43, 0.0 }
 0x30a   :  { %2601 = vmatmul.mubr.f32.gmra.mrb[14].mxu0 %v2029_v33  ;;  %7105 = vmatprep.subr.bf16.mxu1 %v7104_v9  ;;  %v3248_v9 = vld [vmem:[#allocation11 + $0x1b8] sm:$0xff]  ;;  %v3249_v5 = vld [vmem:[#allocation11 + $0x1c0] sm:$0xff]  ;;  %v1990_v63 = vmul.f32 0.2, %v9470_v43  ;;  %vm1925_vm3 = vcmp.gt.f32.partialorder %v9487_v28, 0.0  ;;  %vm1930_vm4 = vcmp.gt.f32.partialorder %v9495_v44, 0.0 }
 0x30b   :  { %2923 = vmatmul.mubr.f32.gmra.mrb[14].mxu1 %v2029_v33  ;;  %2606 = vmatprep.mubr.f32.mxu0 %v2034_v45  ;;  %v2042_v33 = vsel %vm1914_vm12, %v9409_v41, %v1978_v12  ;;  %v2041_v41 = vsel %vm1913_vm13, %v9427_v26, %v1977_v53  ;;  %v3253_v24 = vld [vmem:[#allocation11 + $0x1e0] sm:$0xff]  ;;  %v7118_v26 = vpack.c.bf16 %v3247_v56, %v3243_v16  ;;  %v3260_v32 = vld [vmem:[#allocation11 + $0x218] sm:$0xff]  ;;  %v3259_v53 = vld [vmem:[#allocation11 + $0x210] sm:$0xff]  ;;  %vm1929_vm5 = vcmp.gt.f32.partialorder %v9501_v58, 0.0 }
 0x30c   :  { %2928 = vmatprep.mubr.f32.mxu1 %v2034_v45  ;;  %6979 = vmatpush1.bf16.msra.mxu0 %v6978_v18  ;;  %v3244_v18 = vld [vmem:[#allocation11 + $0x198] sm:$0xff]  ;;  %v6990_v45 = vpack.c.bf16 %v3245_v10, %v3241_v27  ;;  %v6994_v57 = vpack.c.bf16 %v3253_v24, %v3249_v5  ;;  %v3261_v60 = vld [vmem:[#allocation11 + $0x220] sm:$0xff]  ;;  %v1989_v27 = vmul.f32 0.2, %v9487_v28  ;;  %v3274_v16 = vld [vmem:[#allocation11 + $0x288] sm:$0xff]  ;;  %vm1934_vm6 = vcmp.gt.f32.partialorder %v9516_v42, 0.0 }
 0x30d   :  { %6981 = vmatprep.subr.bf16.mxu0 %v6980_v3  ;;  %7107 = vmatpush1.bf16.msra.mxu1 %v7106_v8  ;;  %v3250_v3 = vld [vmem:[#allocation11 + $0x1c8] sm:$0xff]  ;;  %v7116_v8 = vpack.c.bf16 %v3248_v9, %v3244_v18  ;;  %v3264_v4 = vld [vmem:[#allocation11 + $0x238] sm:$0xff]  ;;  %v3269_v0 = vld [vmem:[#allocation11 + $0x260] sm:$0xff]  ;;  %v2054_v9 = vsel %vm1926_vm2, %v9470_v43, %v1990_v63  ;;  %vm1933_vm7 = vcmp.gt.f32.partialorder %v9522_v29, 0.0  ;;  %vm1938_vm8 = vcmp.gt.f32.partialorder %v9533_v30, 0.0 }
 0x30e   :  { %2607 = vmatmul.mubr.f32.gmra.mrb[16].mxu0 %v2033_v61  ;;  %7109 = vmatprep.subr.bf16.mxu1 %v7108_v31  ;;  %v6992_v6 = vpack.c.bf16 %v3254_v34, %v3250_v3  ;;  %v3262_v31 = vld [vmem:[#allocation11 + $0x228] sm:$0xff]  ;;  %v7124_v10 = vpack.c.bf16 %v3264_v4, %v3260_v32  ;;  %v1994_v3 = vmul.f32 0.2, %v9495_v44  ;;  %v3272_v34 = vld [vmem:[#allocation11 + $0x278] sm:$0xff]  ;;  %v2053_v43 = vsel %vm1925_vm3, %v9487_v28, %v1989_v27  ;;  %v3273_v24 = vld [vmem:[#allocation11 + $0x280] sm:$0xff] }
 0x30f   :  { %2929 = vmatmul.mubr.f32.gmra.mrb[16].mxu1 %v2033_v61  ;;  %2612 = vmatprep.mubr.f32.mxu0 %v2038_v15  ;;  %v3256_v61 = vld [vmem:[#allocation11 + $0x1f8] sm:$0xff]  ;;  %v6996_v12 = vpack.c.bf16 %v3262_v31, %v3258_v7  ;;  %v3278_v56 = vld [vmem:[#allocation11 + $0x2a8] sm:$0xff]  ;;  %v3289_v27 = vld [vmem:[#allocation11 + $0x300] sm:$0xff]  ;;  %vm1937_vm9 = vcmp.gt.f32.partialorder %v9542_v11, 0.0  ;;  %vm1942_vm10 = vcmp.gt.f32.partialorder %v9548_v51, 0.0  ;;  %vm1941_vm11 = vcmp.gt.f32.partialorder %v9555_v40, 0.0 }
 0x310   :  { %2934 = vmatprep.mubr.f32.mxu1 %v2038_v15  ;;  %6983 = vmatpush1.bf16.msra.mxu0 %v6982_v36  ;;  %v1986_v36 = vmul.f32 0.2, %v9458_v37  ;;  %v7120_v15 = vpack.c.bf16 %v3256_v61, %v3252_v49  ;;  %v7004_v5 = vpack.c.bf16 %v3278_v56, %v3274_v16  ;;  %v3277_v49 = vld [vmem:[#allocation11 + $0x2a0] sm:$0xff]  ;;  %v3280_v61 = vld [vmem:[#allocation11 + $0x2b8] sm:$0xff]  ;;  %v3282_v7 = vld [vmem:[#allocation11 + $0x2c8] sm:$0xff]  ;;  %vm1946_vm12 = vcmp.gt.f32.partialorder %v9566_v20, 0.0 }
 0x311   :  { %6985 = vmatprep.subr.bf16.mxu0 %v6984_v62  ;;  %7111 = vmatpush1.bf16.msra.mxu1 %v7110_v55  ;;  %v3251_v62 = vld [vmem:[#allocation11 + $0x1d0] sm:$0xff]  ;;  %v3257_v55 = vld [vmem:[#allocation11 + $0x200] sm:$0xff]  ;;  %v3286_v31 = vld [vmem:[#allocation11 + $0x2e8] sm:$0xff]  ;;  %v2005_v56 = vmul.f32 0.2, %v9555_v40  ;;  %vm1945_vm13 = vcmp.gt.f32.partialorder %v9569_v1, 0.0 }
 0x312   :  { %2613 = vmatmul.mubr.f32.gmra.mrb[18].mxu0 %v2037_v54  ;;  %7113 = vmatprep.subr.bf16.mxu1 %v7112_v2  ;;  %v2050_v38 = vsel %vm1922_vm0, %v9458_v37, %v1986_v36  ;;  %v7122_v21 = vpack.c.bf16 %v3255_v50, %v3251_v62  ;;  %v3263_v2 = vld [vmem:[#allocation11 + $0x230] sm:$0xff]  ;;  %v2049_v37 = vsel %vm1921_vm1, %v9464_v48, %v1985_v35  ;;  %v3288_v63 = vld [vmem:[#allocation11 + $0x2f8] sm:$0xff]  ;;  %v3294_v4 = vld [vmem:[#allocation11 + $0x328] sm:$0xff]  ;;  %vm1950_vm14 = vcmp.gt.f32.partialorder %v9572_v46, 0.0 }
 0x313   :  { %2935 = vmatmul.mubr.f32.gmra.mrb[18].mxu1 %v2037_v54  ;;  %2618 = vmatprep.mubr.f32.mxu0 %v2042_v33  ;;  %v3270_v54 = vld [vmem:[#allocation11 + $0x268] sm:$0xff]  ;;  %v7126_v48 = vpack.c.bf16 %v3263_v2, %v3259_v53  ;;  %v2058_v36 = vsel %vm1930_vm4, %v9495_v44, %v1994_v3  ;;  %v3275_v62 = vld [vmem:[#allocation11 + $0x290] sm:$0xff]  ;;  %v2001_v2 = vmul.f32 0.2, %v9542_v11  ;;  %vm1949_vm15 = vcmp.gt.f32.partialorder %v9587_v25, 0.0 }
 0x314   :  { %2940 = vmatprep.mubr.f32.mxu1 %v2042_v33  ;;  %6987 = vmatpush1.bf16.msra.mxu0 %v6986_v47  ;;  %v3266_v47 = vld [vmem:[#allocation11 + $0x248] sm:$0xff]  ;;  %v3265_v33 = vld [vmem:[#allocation11 + $0x240] sm:$0xff]  ;;  %v3279_v50 = vld [vmem:[#allocation11 + $0x2b0] sm:$0xff] }
 0x315   :  { %6989 = vmatprep.subr.bf16.mxu0 %v6988_v52  ;;  %7115 = vmatpush1.bf16.msra.mxu1 %v7114_v59  ;;  %v6998_v52 = vpack.c.bf16 %v3261_v60, %v3257_v55  ;;  %v7000_v18 = vpack.c.bf16 %v3270_v54, %v3266_v47  ;;  %v3268_v59 = vld [vmem:[#allocation11 + $0x258] sm:$0xff]  ;;  %v7002_v23 = vpack.c.bf16 %v3269_v0, %v3265_v33  ;;  %v3285_v55 = vld [vmem:[#allocation11 + $0x2e0] sm:$0xff]  ;;  %v3283_v47 = vld [vmem:[#allocation11 + $0x2d0] sm:$0xff]  ;;  %v2006_v0 = vmul.f32 0.2, %v9548_v51 }
 0x316   :  { %2619 = vmatmul.mubr.f32.gmra.mrb[20].mxu0 %v2041_v41  ;;  %7117 = vmatprep.subr.bf16.mxu1 %v7116_v8  ;;  %v1993_v8 = vmul.f32 0.2, %v9501_v58  ;;  %v3284_v60 = vld [vmem:[#allocation11 + $0x2d8] sm:$0xff]  ;;  %v3287_v54 = vld [vmem:[#allocation11 + $0x2f0] sm:$0xff]  ;;  %v3302_v3 = vld [vmem:[#allocation11 + $0x368] sm:$0xff] }
 0x317   :  { %2941 = vmatmul.mubr.f32.gmra.mrb[20].mxu1 %v2041_v41  ;;  %2624 = vmatprep.mubr.f32.mxu0 %v2046_v39  ;;  %v3271_v41 = vld [vmem:[#allocation11 + $0x270] sm:$0xff] }
 0x318   :  { %2946 = vmatprep.mubr.f32.mxu1 %v2046_v39  ;;  %6991 = vmatpush1.bf16.msra.mxu0 %v6990_v45  ;;  %v3267_v45 = vld [vmem:[#allocation11 + $0x250] sm:$0xff]  ;;  %v3276_v39 = vld [vmem:[#allocation11 + $0x298] sm:$0xff]  ;;  %v2057_v44 = vsel %vm1929_vm5, %v9501_v58, %v1993_v8  ;;  %v7134_v58 = vpack.c.bf16 %v3279_v50, %v3275_v62  ;;  %v2014_v50 = vmul.f32 0.2, %v9572_v46 }
 0x319   :  { %6993 = vmatprep.subr.bf16.mxu0 %v6992_v6  ;;  %7119 = vmatpush1.bf16.msra.mxu1 %v7118_v26  ;;  %v7128_v6 = vpack.c.bf16 %v3272_v34, %v3268_v59  ;;  %v1998_v26 = vmul.f32 0.2, %v9516_v42  ;;  %v7130_v28 = vpack.c.bf16 %v3271_v41, %v3267_v45  ;;  %v7132_v35 = vpack.c.bf16 %v3280_v61, %v3276_v39  ;;  %v3296_v59 = vld [vmem:[#allocation11 + $0x338] sm:$0xff]  ;;  %v3295_v34 = vld [vmem:[#allocation11 + $0x330] sm:$0xff]  ;;  %v3310_v39 = vld [vmem:[#allocation11 + $0x3a8] sm:$0xff] }
 0x31a   :  { %2625 = vmatmul.mubr.f32.gmra.mrb[22].mxu0 %v2045_v22  ;;  %7121 = vmatprep.subr.bf16.mxu1 %v7120_v15  ;;  %v7008_v15 = vpack.c.bf16 %v3286_v31, %v3282_v7  ;;  %v3300_v8 = vld [vmem:[#allocation11 + $0x358] sm:$0xff]  ;;  %v2009_v61 = vmul.f32 0.2, %v9569_v1 }
 0x31b   :  { %2947 = vmatmul.mubr.f32.gmra.mrb[22].mxu1 %v2045_v22  ;;  %2630 = vmatprep.mubr.f32.mxu0 %v2050_v38  ;;  %v1997_v22 = vmul.f32 0.2, %v9522_v29  ;;  %v2062_v32 = vsel %vm1934_vm6, %v9516_v42, %v1998_v26  ;;  %v3303_v26 = vld [vmem:[#allocation11 + $0x370] sm:$0xff] }
 0x31c   :  { %2952 = vmatprep.mubr.f32.mxu1 %v2050_v38  ;;  %6995 = vmatpush1.bf16.msra.mxu0 %v6994_v57  ;;  %v7006_v57 = vpack.c.bf16 %v3277_v49, %v3273_v24  ;;  %v2002_v38 = vmul.f32 0.2, %v9533_v30  ;;  %v3304_v24 = vld [vmem:[#allocation11 + $0x378] sm:$0xff]  ;;  %v3306_v49 = vld [vmem:[#allocation11 + $0x388] sm:$0xff] }
 0x31d   :  { %6997 = vmatprep.subr.bf16.mxu0 %v6996_v12  ;;  %7123 = vmatpush1.bf16.msra.mxu1 %v7122_v21  ;;  %v3281_v12 = vld [vmem:[#allocation11 + $0x2c0] sm:$0xff]  ;;  %v3290_v21 = vld [vmem:[#allocation11 + $0x308] sm:$0xff]  ;;  %v2061_v42 = vsel %vm1933_vm7, %v9522_v29, %v1997_v22  ;;  %v7138_v29 = vpack.c.bf16 %v3287_v54, %v3283_v47  ;;  %v7144_v7 = vpack.c.bf16 %v3304_v24, %v3300_v8  ;;  %v3316_v54 = vld [vmem:[#allocation11 + $0x3d8] sm:$0xff] }
 0x31e   :  { %2631 = vmatmul.mubr.f32.gmra.mrb[24].mxu0 %v2049_v37  ;;  %7125 = vmatprep.subr.bf16.mxu1 %v7124_v10  ;;  %v7010_v53 = vpack.c.bf16 %v3285_v55, %v3281_v12  ;;  %v3293_v10 = vld [vmem:[#allocation11 + $0x320] sm:$0xff]  ;;  %v2066_v33 = vsel %vm1938_vm8, %v9533_v30, %v2002_v38  ;;  %v2065_v30 = vsel %vm1937_vm9, %v9542_v11, %v2001_v2  ;;  %v3312_v55 = vld [vmem:[#allocation11 + $0x3b8] sm:$0xff]  ;;  %v3315_v2 = vld [vmem:[#allocation11 + $0x3d0] sm:$0xff] }
 0x31f   :  { %2953 = vmatmul.mubr.f32.gmra.mrb[24].mxu1 %v2049_v37  ;;  %2636 = vmatprep.mubr.f32.mxu0 %v2054_v9  ;;  %v7012_v37 = vpack.c.bf16 %v3294_v4, %v3290_v21  ;;  %v7014_v16 = vpack.c.bf16 %v3293_v10, %v3289_v27  ;;  %v7020_v31 = vpack.c.bf16 %v3310_v39, %v3306_v49  ;;  %v3313_v21 = vld [vmem:[#allocation11 + $0x3c0] sm:$0xff]  ;;  %v3326_v10 = vld [vmem:[#allocation11 + $0x428] sm:$0xff]  ;;  %v3327_v8 = vld [vmem:[#allocation11 + $0x430] sm:$0xff] }
 0x320   :  { %2958 = vmatprep.mubr.f32.mxu1 %v2054_v9  ;;  %6999 = vmatpush1.bf16.msra.mxu0 %v6998_v52  ;;  %v7136_v52 = vpack.c.bf16 %v3288_v63, %v3284_v60  ;;  %v3298_v9 = vld [vmem:[#allocation11 + $0x348] sm:$0xff]  ;;  %v3307_v60 = vld [vmem:[#allocation11 + $0x390] sm:$0xff]  ;;  %v3317_v47 = vld [vmem:[#allocation11 + $0x3e0] sm:$0xff] }
 0x321   :  { %7001 = vmatprep.subr.bf16.mxu0 %v7000_v18  ;;  %7127 = vmatpush1.bf16.msra.mxu1 %v7126_v48  ;;  %v3292_v18 = vld [vmem:[#allocation11 + $0x318] sm:$0xff]  ;;  %v3291_v48 = vld [vmem:[#allocation11 + $0x310] sm:$0xff]  ;;  %v7016_v41 = vpack.c.bf16 %v3302_v3, %v3298_v9  ;;  %v3318_v63 = vld [vmem:[#allocation11 + $0x3e8] sm:$0xff] }
 0x322   :  { %2637 = vmatmul.mubr.f32.gmra.mrb[26].mxu0 %v2053_v43  ;;  %7129 = vmatprep.subr.bf16.mxu1 %v7128_v6  ;;  %v7140_v45 = vpack.c.bf16 %v3296_v59, %v3292_v18  ;;  %v2070_v6 = vsel %vm1942_vm10, %v9548_v51, %v2006_v0  ;;  %v7142_v11 = vpack.c.bf16 %v3295_v34, %v3291_v48  ;;  %v3328_v0 = vld [vmem:[#allocation11 + $0x438] sm:$0xff] }
 0x323   :  { %2959 = vmatmul.mubr.f32.gmra.mrb[26].mxu1 %v2053_v43  ;;  %2642 = vmatprep.mubr.f32.mxu0 %v2058_v36  ;;  %v3301_v43 = vld [vmem:[#allocation11 + $0x360] sm:$0xff]  ;;  %v2069_v51 = vsel %vm1941_vm11, %v9555_v40, %v2005_v56  ;;  %v2073_v40 = vsel %vm1945_vm13, %v9569_v1, %v2009_v61  ;;  %v3308_v1 = vld [vmem:[#allocation11 + $0x398] sm:$0xff] }
 0x324   :  { %2964 = vmatprep.mubr.f32.mxu1 %v2058_v36  ;;  %7003 = vmatpush1.bf16.msra.mxu0 %v7002_v23  ;;  %v3297_v23 = vld [vmem:[#allocation11 + $0x340] sm:$0xff]  ;;  %v3299_v36 = vld [vmem:[#allocation11 + $0x350] sm:$0xff]  ;;  %v7148_v38 = vpack.c.bf16 %v3312_v55, %v3308_v1  ;;  %v9708_v59 = vld [vmem:[#allocation10] sm:$0xf] }
 0x325   :  { %7005 = vmatprep.subr.bf16.mxu0 %v7004_v5  ;;  %7131 = vmatpush1.bf16.msra.mxu1 %v7130_v28  ;;  %v2010_v5 = vmul.f32 0.2, %v9566_v20  ;;  %v7018_v28 = vpack.c.bf16 %v3301_v43, %v3297_v23  ;;  %v9712_v9 = vrot.slane %v9708_v59, %v8634_v13  ;;  %v9716_v3 = vrot.slane %v9708_v59, %v8638_v14  ;;  %v3321_v56 = vld [vmem:[#allocation11 + $0x400] sm:$0xff]  ;;  %v3323_v43 = vld [vmem:[#allocation11 + $0x410] sm:$0xff]  ;;  %v3332_v24 = vld [vmem:[#allocation11 + $0x458] sm:$0xff] }
 0x326   :  { %2643 = vmatmul.mubr.f32.gmra.mrb[28].mxu0 %v2057_v44  ;;  %7133 = vmatprep.subr.bf16.mxu1 %v7132_v35  ;;  %v3305_v35 = vld [vmem:[#allocation11 + $0x380] sm:$0xff]  ;;  %v3336_v49 = vld [vmem:[#allocation11 + $0x478] sm:$0xff]  ;;  %v3342_v1 = vld [vmem:[#allocation11 + $0x4a8] sm:$0xff] }
 0x327   :  { %2965 = vmatmul.mubr.f32.gmra.mrb[28].mxu1 %v2057_v44  ;;  %2648 = vmatprep.mubr.f32.mxu0 %v2062_v32  ;;  %v2074_v62 = vsel %vm1946_vm12, %v9566_v20, %v2010_v5  ;;  %v2013_v44 = vmul.f32 0.2, %v9587_v25  ;;  %v2078_v20 = vsel %vm1950_vm14, %v9572_v46, %v2014_v50  ;;  %v3314_v46 = vld [vmem:[#allocation11 + $0x3c8] sm:$0xff]  ;;  %v3331_v50 = vld [vmem:[#allocation11 + $0x450] sm:$0xff]  ;;  %v3448_v14 = vld [vmem:[#allocation11 + $0x7f8] sm:$0xff] }
 0x328   :  { %2970 = vmatprep.mubr.f32.mxu1 %v2062_v32  ;;  %7007 = vmatpush1.bf16.msra.mxu0 %v7006_v57  ;;  %v7146_v57 = vpack.c.bf16 %v3303_v26, %v3299_v36  ;;  %v3311_v32 = vld [vmem:[#allocation11 + $0x3b0] sm:$0xff]  ;;  %v7024_v4 = vpack.c.bf16 %v3318_v63, %v3314_v46 }
 0x329   :  { %7009 = vmatprep.subr.bf16.mxu0 %v7008_v15  ;;  %7135 = vmatpush1.bf16.msra.mxu1 %v7134_v58  ;;  %v2077_v22 = vsel %vm1949_vm15, %v9587_v25, %v2013_v44  ;;  %v3309_v15 = vld [vmem:[#allocation11 + $0x3a0] sm:$0xff]  ;;  %v7150_v58 = vpack.c.bf16 %v3311_v32, %v3307_v60  ;;  %v7026_v25 = vpack.c.bf16 %v3317_v47, %v3313_v21  ;;  %v3340_v60 = vld [vmem:[#allocation11 + $0x498] sm:$0xff] }
 0x32a   :  { %2649 = vmatmul.mubr.f32.gmra.mrb[30].mxu0 %v2061_v42  ;;  %7137 = vmatprep.subr.bf16.mxu1 %v7136_v52  ;;  %v7022_v12 = vpack.c.bf16 %v3309_v15, %v3305_v35  ;;  %v3319_v52 = vld [vmem:[#allocation11 + $0x3f0] sm:$0xff]  ;;  %v3338_v15 = vld [vmem:[#allocation11 + $0x488] sm:$0xff]  ;;  %v3344_v32 = vld [vmem:[#allocation11 + $0x4b8] sm:$0xff] }
 0x32b   :  { %2971 = vmatmul.mubr.f32.gmra.mrb[30].mxu1 %v2061_v42  ;;  %2654 = vmatprep.mubr.f32.mxu0 %v2066_v33  ;;  %v7154_v27 = vpack.c.bf16 %v3319_v52, %v3315_v2  ;;  %v3335_v35 = vld [vmem:[#allocation11 + $0x470] sm:$0xff] }
 0x32c   :  { %2976 = vmatprep.mubr.f32.mxu1 %v2066_v33  ;;  %7011 = vmatpush1.bf16.msra.mxu0 %v7010_v53  ;;  %v3320_v53 = vld [vmem:[#allocation11 + $0x3f8] sm:$0xff]  ;;  %v7162_v47 = vpack.c.bf16 %v3335_v35, %v3331_v50 }
 0x32d   :  { %7013 = vmatprep.subr.bf16.mxu0 %v7012_v37  ;;  %7139 = vmatpush1.bf16.msra.mxu1 %v7138_v29  ;;  %v7152_v42 = vpack.c.bf16 %v3320_v53, %v3316_v54  ;;  %v3322_v37 = vld [vmem:[#allocation11 + $0x408] sm:$0xff]  ;;  %v3324_v33 = vld [vmem:[#allocation11 + $0x418] sm:$0xff]  ;;  %v7036_v54 = vpack.c.bf16 %v3342_v1, %v3338_v15  ;;  %v3337_v53 = vld [vmem:[#allocation11 + $0x480] sm:$0xff] }
 0x32e   :  { %2655 = vmatmul.mubr.f32.gmra.mrb[32].mxu0 %v2065_v30  ;;  %7141 = vmatprep.subr.bf16.mxu1 %v7140_v45  ;;  %v7028_v18 = vpack.c.bf16 %v3326_v10, %v3322_v37  ;;  %v7156_v29 = vpack.c.bf16 %v3328_v0, %v3324_v33  ;;  %v3325_v45 = vld [vmem:[#allocation11 + $0x420] sm:$0xff]  ;;  %v3343_v10 = vld [vmem:[#allocation11 + $0x4b0] sm:$0xff]  ;;  %v3350_v33 = vld [vmem:[#allocation11 + $0x4e8] sm:$0xff] }
 0x32f   :  { %2977 = vmatmul.mubr.f32.gmra.mrb[32].mxu1 %v2065_v30  ;;  %2660 = vmatprep.mubr.f32.mxu0 %v2070_v6  ;;  %v7030_v61 = vpack.c.bf16 %v3325_v45, %v3321_v56 }
 0x330   :  { %2982 = vmatprep.mubr.f32.mxu1 %v2070_v6  ;;  %7015 = vmatpush1.bf16.msra.mxu0 %v7014_v16  ;;  %v3330_v6 = vld [vmem:[#allocation11 + $0x448] sm:$0xff] }
 0x331   :  { %7017 = vmatprep.subr.bf16.mxu0 %v7016_v41  ;;  %7143 = vmatpush1.bf16.msra.mxu1 %v7142_v11  ;;  %v3334_v11 = vld [vmem:[#allocation11 + $0x468] sm:$0xff] }
 0x332   :  { %2661 = vmatmul.mubr.f32.gmra.mrb[34].mxu0 %v2069_v51  ;;  %7145 = vmatprep.subr.bf16.mxu1 %v7144_v7  ;;  %v7158_v7 = vpack.c.bf16 %v3327_v8, %v3323_v43 }
 0x333   :  { %2983 = vmatmul.mubr.f32.gmra.mrb[34].mxu1 %v2069_v51  ;;  %2666 = vmatprep.mubr.f32.mxu0 %v2074_v62 }
 0x334   :  { %2988 = vmatprep.mubr.f32.mxu1 %v2074_v62  ;;  %7019 = vmatpush1.bf16.msra.mxu0 %v7018_v28  ;;  %v3333_v62 = vld [vmem:[#allocation11 + $0x460] sm:$0xff] }
 0x335   :  { %7021 = vmatprep.subr.bf16.mxu0 %v7020_v31  ;;  %7147 = vmatpush1.bf16.msra.mxu1 %v7146_v57  ;;  %v3329_v31 = vld [vmem:[#allocation11 + $0x440] sm:$0xff] }
 0x336   :  { %2667 = vmatmul.mubr.f32.gmra.mrb[36].mxu0 %v2073_v40  ;;  %7149 = vmatprep.subr.bf16.mxu1 %v7148_v38  ;;  %v7034_v46 = vpack.c.bf16 %v3333_v62, %v3329_v31  ;;  %v3358_v31 = vld [vmem:[#allocation11 + $0x528] sm:$0xff] }
 0x337   :  { %2989 = vmatmul.mubr.f32.gmra.mrb[36].mxu1 %v2073_v40  ;;  %2672 = vmatprep.mubr.f32.mxu0 %v2078_v20 }
 0x338   :  { %2994 = vmatprep.mubr.f32.mxu1 %v2078_v20  ;;  %7023 = vmatpush1.bf16.msra.mxu0 %v7022_v12  ;;  %v7032_v20 = vpack.c.bf16 %v3334_v11, %v3330_v6  ;;  %v3345_v11 = vld [vmem:[#allocation11 + $0x4c0] sm:$0xff] }
 0x339   :  { %7151 = vmatpush1.bf16.msra.mxu1 %v7150_v58  ;;  %7025 = vmatprep.subr.bf16.mxu0 %v7024_v4 }
 0x33a   :  { %2673 = vmatmul.mubr.f32.gmra.mrb[38].mxu0 %v2077_v22  ;;  %7153 = vmatprep.subr.bf16.mxu1 %v7152_v42  ;;  %v3339_v42 = vld [vmem:[#allocation11 + $0x490] sm:$0xff] }
 0x33b   :  { %2995 = vmatmul.mubr.f32.gmra.mrb[38].mxu1 %v2077_v22  ;;  %v7160_v22 = vpack.c.bf16 %v3336_v49, %v3332_v24  ;;  %v7166_v6 = vpack.c.bf16 %v3343_v10, %v3339_v42  ;;  %v3349_v24 = vld [vmem:[#allocation11 + $0x4e0] sm:$0xff]  ;;  %v3347_v49 = vld [vmem:[#allocation11 + $0x4d0] sm:$0xff] }
 0x33c   :  { %7027 = vmatpush1.bf16.msra.mxu0 %v7026_v25  ;;  %v3341_v25 = vld [vmem:[#allocation11 + $0x4a0] sm:$0xff]  ;;  %v7042_v35 = vpack.c.bf16 %v3349_v24, %v3345_v11  ;;  %v3367_v24 = vld [vmem:[#allocation11 + $0x570] sm:$0xff] }
 0x33d   :  { %7029 = vmatprep.subr.bf16.mxu0 %v7028_v18  ;;  %7155 = vmatpush1.bf16.msra.mxu1 %v7154_v27  ;;  %v7164_v27 = vpack.c.bf16 %v3344_v32, %v3340_v60  ;;  %v3346_v18 = vld [vmem:[#allocation11 + $0x4c8] sm:$0xff]  ;;  %v7038_v45 = vpack.c.bf16 %v3341_v25, %v3337_v53  ;;  %v3353_v32 = vld [vmem:[#allocation11 + $0x500] sm:$0xff] }
 0x33e   :  { %7157 = vmatprep.subr.bf16.mxu1 %v7156_v29  ;;  %v3362_v53 = vld [vmem:[#allocation11 + $0x548] sm:$0xff] }
 0x33f   :  { %v3366_v25 = vld [vmem:[#allocation11 + $0x568] sm:$0xff] }
 0x3d1   :  { %v2584_v48 = vpop.f32.mrb[8].mxu0 }
 0x3d2   :  { %v7732_v34 = vadd.f32 %v2584_v48, %v9712_v9  ;;  %v9719_v16 = vpop.f32.mrb[8].mxu1  ;;  %v2586_v30 = vpop.f32.mrb[9].mxu0  ;;  %v3348_v48 = vld [vmem:[#allocation11 + $0x4d8] sm:$0xff] }
 0x3d3   :  { %v7733_v41 = vadd.f32 %v2586_v30, %v9716_v3  ;;  %v9722_v23 = vpop.f32.mrb[9].mxu1 }
 0x3d4   :  { %v3065_v5 = vmul.f32 0.2, %v7732_v34  ;;  %vm3001_vm0 = vcmp.gt.f32.partialorder %v7732_v34, 0.0 }
 0x3d5   :  { %v3066_v39 = vmul.f32 0.2, %v7733_v41  ;;  %v2590_v36 = vpop.f32.mrb[10].mxu0  ;;  %vm3002_vm1 = vcmp.gt.f32.partialorder %v7733_v41, 0.0 }
 0x3d6   :  { %v7734_v26 = vadd.f32 %v2590_v36, %v9712_v9  ;;  %v9725_v28 = vpop.f32.mrb[10].mxu1  ;;  %v2592_v51 = vpop.f32.mrb[11].mxu0  ;;  %v3129_v12 = vsel %vm3001_vm0, %v7732_v34, %v3065_v5  ;;  %v3352_v34 = vld [vmem:[#allocation11 + $0x4f8] sm:$0xff]  ;;  %v7040_v5 = vpack.c.bf16 %v3350_v33, %v3346_v18 }
 0x3d7   :  { %v7735_v57 = vadd.f32 %v2592_v51, %v9716_v3  ;;  %v9728_v40 = vpop.f32.mrb[11].mxu1  ;;  %v3130_v44 = vsel %vm3002_vm1, %v7733_v41, %v3066_v39  ;;  %v7168_v51 = vpack.c.bf16 %v3352_v34, %v3348_v48 }
 0x3d8   :  { %v3069_v55 = vmul.f32 0.2, %v7734_v26  ;;  %3535 = vmatprep.mubr.f32.mxu0 %v3130_v44  ;;  %3857 = vmatprep.mubr.f32.mxu1 %v3130_v44  ;;  %vm3005_vm3 = vcmp.gt.f32.partialorder %v7734_v26, 0.0  ;;  %v3360_v44 = vld [vmem:[#allocation11 + $0x538] sm:$0xff] }
 0x3d9   :  { %v3070_v38 = vmul.f32 0.2, %v7735_v57  ;;  %v2596_v58 = vpop.f32.mrb[12].mxu0  ;;  %3536 = vmatmul.mubr.f32.vlgmr.msra.gmra.mrb[40].mxu0 %v3129_v12  ;;  %3858 = vmatmul.mubr.f32.vlgmr.msra.gmra.mrb[40].mxu1 %v3129_v12  ;;  %vm3006_vm2 = vcmp.gt.f32.partialorder %v7735_v57, 0.0 }
 0x3da   :  { %v7736_v63 = vadd.f32 %v2596_v58, %v9712_v9  ;;  %v9732_v21 = vpop.f32.mrb[12].mxu1  ;;  %7031 = vmatpush1.bf16.msra.mxu0 %v7030_v61  ;;  %v2598_v4 = vpop.f32.mrb[13].mxu0  ;;  %7159 = vmatpush1.bf16.msra.mxu1 %v7158_v7  ;;  %v3133_v29 = vsel %vm3005_vm3, %v7734_v26, %v3069_v55  ;;  %v3351_v61 = vld [vmem:[#allocation11 + $0x4f0] sm:$0xff]  ;;  %v3354_v7 = vld [vmem:[#allocation11 + $0x508] sm:$0xff] }
 0x3db   :  { %v7737_v2 = vadd.f32 %v2598_v4, %v9716_v3  ;;  %v9735_v52 = vpop.f32.mrb[13].mxu1  ;;  %v3134_v37 = vsel %vm3006_vm2, %v7735_v57, %v3070_v38  ;;  %7033 = vmatprep.subr.bf16.mxu0 %v7032_v20  ;;  %7161 = vmatprep.subr.bf16.mxu1 %v7160_v22  ;;  %v3356_v57 = vld [vmem:[#allocation11 + $0x518] sm:$0xff]  ;;  %v7170_v55 = vpack.c.bf16 %v3351_v61, %v3347_v49  ;;  %v3357_v38 = vld [vmem:[#allocation11 + $0x520] sm:$0xff]  ;;  %v3355_v58 = vld [vmem:[#allocation11 + $0x510] sm:$0xff] }
 0x3dc   :  { %v3073_v0 = vmul.f32 0.2, %v7736_v63  ;;  %3541 = vmatprep.mubr.f32.mxu0 %v3134_v37  ;;  %3863 = vmatprep.mubr.f32.mxu1 %v3134_v37  ;;  %vm3009_vm5 = vcmp.gt.f32.partialorder %v7736_v63, 0.0  ;;  %v7044_v60 = vpack.c.bf16 %v3358_v31, %v3354_v7  ;;  %v3364_v37 = vld [vmem:[#allocation11 + $0x558] sm:$0xff]  ;;  %v7046_v33 = vpack.c.bf16 %v3357_v38, %v3353_v32  ;;  %v3370_v49 = vld [vmem:[#allocation11 + $0x588] sm:$0xff] }
 0x3dd   :  { %v3074_v30 = vmul.f32 0.2, %v7737_v2  ;;  %v2602_v56 = vpop.f32.mrb[14].mxu0  ;;  %3542 = vmatmul.mubr.f32.gmra.mrb[42].mxu0 %v3133_v29  ;;  %3864 = vmatmul.mubr.f32.gmra.mrb[42].mxu1 %v3133_v29  ;;  %vm3010_vm4 = vcmp.gt.f32.partialorder %v7737_v2, 0.0  ;;  %v3372_v61 = vld [vmem:[#allocation11 + $0x598] sm:$0xff] }
 0x3de   :  { %v7738_v41 = vadd.f32 %v2602_v56, %v9712_v9  ;;  %v9739_v43 = vpop.f32.mrb[14].mxu1  ;;  %7035 = vmatpush1.bf16.msra.mxu0 %v7034_v46  ;;  %v2604_v8 = vpop.f32.mrb[15].mxu0  ;;  %7163 = vmatpush1.bf16.msra.mxu1 %v7162_v47  ;;  %v3137_v50 = vsel %vm3009_vm5, %v7736_v63, %v3073_v0  ;;  %v7172_v47 = vpack.c.bf16 %v3360_v44, %v3356_v57  ;;  %v3361_v56 = vld [vmem:[#allocation11 + $0x540] sm:$0xff]  ;;  %v3376_v7 = vld [vmem:[#allocation11 + $0x5b8] sm:$0xff] }
 0x3df   :  { %v7739_v39 = vadd.f32 %v2604_v8, %v9716_v3  ;;  %v9742_v36 = vpop.f32.mrb[15].mxu1  ;;  %v3138_v26 = vsel %vm3010_vm4, %v7737_v2, %v3074_v30  ;;  %7037 = vmatprep.subr.bf16.mxu0 %v7036_v54  ;;  %7165 = vmatprep.subr.bf16.mxu1 %v7164_v27  ;;  %v3359_v54 = vld [vmem:[#allocation11 + $0x530] sm:$0xff]  ;;  %v3368_v27 = vld [vmem:[#allocation11 + $0x578] sm:$0xff]  ;;  %v7048_v30 = vpack.c.bf16 %v3366_v25, %v3362_v53 }
 0x3e0   :  { %v3077_v62 = vmul.f32 0.2, %v7738_v41  ;;  %3547 = vmatprep.mubr.f32.mxu0 %v3138_v26  ;;  %3869 = vmatprep.mubr.f32.mxu1 %v3138_v26  ;;  %vm3013_vm7 = vcmp.gt.f32.partialorder %v7738_v41, 0.0  ;;  %v7174_v34 = vpack.c.bf16 %v3359_v54, %v3355_v58  ;;  %v7176_v11 = vpack.c.bf16 %v3368_v27, %v3364_v37  ;;  %v3380_v25 = vld [vmem:[#allocation11 + $0x5d8] sm:$0xff] }
 0x3e1   :  { %v3078_v20 = vmul.f32 0.2, %v7739_v39  ;;  %v2608_v22 = vpop.f32.mrb[16].mxu0  ;;  %3548 = vmatmul.mubr.f32.gmra.mrb[44].mxu0 %v3137_v50  ;;  %3870 = vmatmul.mubr.f32.gmra.mrb[44].mxu1 %v3137_v50  ;;  %vm3014_vm6 = vcmp.gt.f32.partialorder %v7739_v39, 0.0  ;;  %v7180_v58 = vpack.c.bf16 %v3376_v7, %v3372_v61  ;;  %v3392_v61 = vld [vmem:[#allocation11 + $0x638] sm:$0xff] }
 0x3e2   :  { %v7740_v15 = vadd.f32 %v2608_v22, %v9712_v9  ;;  %v9746_v1 = vpop.f32.mrb[16].mxu1  ;;  %7039 = vmatpush1.bf16.msra.mxu0 %v7038_v45  ;;  %v2610_v12 = vpop.f32.mrb[17].mxu0  ;;  %7167 = vmatpush1.bf16.msra.mxu1 %v7166_v6  ;;  %v3141_v2 = vsel %vm3013_vm7, %v7738_v41, %v3077_v62  ;;  %v3365_v45 = vld [vmem:[#allocation11 + $0x560] sm:$0xff]  ;;  %v3363_v41 = vld [vmem:[#allocation11 + $0x550] sm:$0xff] }
 0x3e3   :  { %v7741_v46 = vadd.f32 %v2610_v12, %v9716_v3  ;;  %v9749_v63 = vpop.f32.mrb[17].mxu1  ;;  %v3142_v4 = vsel %vm3014_vm6, %v7739_v39, %v3078_v20  ;;  %7041 = vmatprep.subr.bf16.mxu0 %v7040_v5  ;;  %7169 = vmatprep.subr.bf16.mxu1 %v7168_v51  ;;  %v3374_v39 = vld [vmem:[#allocation11 + $0x5a8] sm:$0xff]  ;;  %v7050_v50 = vpack.c.bf16 %v3365_v45, %v3361_v56  ;;  %v3369_v12 = vld [vmem:[#allocation11 + $0x580] sm:$0xff]  ;;  %v3379_v56 = vld [vmem:[#allocation11 + $0x5d0] sm:$0xff] }
 0x3e4   :  { %v3081_v42 = vmul.f32 0.2, %v7740_v15  ;;  %3553 = vmatprep.mubr.f32.mxu0 %v3142_v4  ;;  %3875 = vmatprep.mubr.f32.mxu1 %v3142_v4  ;;  %vm3017_vm9 = vcmp.gt.f32.partialorder %v7740_v15, 0.0  ;;  %v7178_v22 = vpack.c.bf16 %v3367_v24, %v3363_v41  ;;  %v3378_v4 = vld [vmem:[#allocation11 + $0x5c8] sm:$0xff] }
 0x3e5   :  { %v3082_v10 = vmul.f32 0.2, %v7741_v46  ;;  %v2614_v18 = vpop.f32.mrb[18].mxu0  ;;  %3554 = vmatmul.mubr.f32.gmra.mrb[46].mxu0 %v3141_v2  ;;  %3876 = vmatmul.mubr.f32.gmra.mrb[46].mxu1 %v3141_v2  ;;  %vm3018_vm8 = vcmp.gt.f32.partialorder %v7741_v46, 0.0  ;;  %v3386_v24 = vld [vmem:[#allocation11 + $0x608] sm:$0xff] }
 0x3e6   :  { %v7742_v0 = vadd.f32 %v2614_v18, %v9712_v9  ;;  %v9753_v29 = vpop.f32.mrb[18].mxu1  ;;  %7043 = vmatpush1.bf16.msra.mxu0 %v7042_v35  ;;  %v2616_v48 = vpop.f32.mrb[19].mxu0  ;;  %7171 = vmatpush1.bf16.msra.mxu1 %v7170_v55  ;;  %v3145_v51 = vsel %vm3017_vm9, %v7740_v15, %v3081_v42  ;;  %v7052_v35 = vpack.c.bf16 %v3374_v39, %v3370_v49  ;;  %v3373_v15 = vld [vmem:[#allocation11 + $0x5a0] sm:$0xff]  ;;  %v3371_v55 = vld [vmem:[#allocation11 + $0x590] sm:$0xff]  ;;  %v3384_v42 = vld [vmem:[#allocation11 + $0x5f8] sm:$0xff] }
 0x3e7   :  { %v7743_v8 = vadd.f32 %v2616_v48, %v9716_v3  ;;  %v9756_v6 = vpop.f32.mrb[19].mxu1  ;;  %v3146_v5 = vsel %vm3018_vm8, %v7741_v46, %v3082_v10  ;;  %7045 = vmatprep.subr.bf16.mxu0 %v7044_v60  ;;  %7173 = vmatprep.subr.bf16.mxu1 %v7172_v47  ;;  %v3375_v46 = vld [vmem:[#allocation11 + $0x5b0] sm:$0xff]  ;;  %v3382_v47 = vld [vmem:[#allocation11 + $0x5e8] sm:$0xff]  ;;  %v7054_v27 = vpack.c.bf16 %v3373_v15, %v3369_v12  ;;  %v3385_v15 = vld [vmem:[#allocation11 + $0x600] sm:$0xff] }
 0x3e8   :  { %v3085_v26 = vmul.f32 0.2, %v7742_v0  ;;  %3559 = vmatprep.mubr.f32.mxu0 %v3146_v5  ;;  %3881 = vmatprep.mubr.f32.mxu1 %v3146_v5  ;;  %vm3021_vm11 = vcmp.gt.f32.partialorder %v7742_v0, 0.0  ;;  %v7182_v48 = vpack.c.bf16 %v3375_v46, %v3371_v55  ;;  %v7184_v5 = vpack.c.bf16 %v3384_v42, %v3380_v25  ;;  %v3390_v49 = vld [vmem:[#allocation11 + $0x628] sm:$0xff]  ;;  %v3387_v55 = vld [vmem:[#allocation11 + $0x610] sm:$0xff]  ;;  %v3396_v42 = vld [vmem:[#allocation11 + $0x658] sm:$0xff] }
 0x3e9   :  { %v3086_v31 = vmul.f32 0.2, %v7743_v8  ;;  %v2620_v62 = vpop.f32.mrb[20].mxu0  ;;  %3560 = vmatmul.mubr.f32.gmra.mrb[48].mxu0 %v3145_v51  ;;  %3882 = vmatmul.mubr.f32.gmra.mrb[48].mxu1 %v3145_v51  ;;  %vm3022_vm10 = vcmp.gt.f32.partialorder %v7743_v8, 0.0  ;;  %v3388_v51 = vld [vmem:[#allocation11 + $0x618] sm:$0xff]  ;;  %v7060_v12 = vpack.c.bf16 %v3390_v49, %v3386_v24 }
 0x3ea   :  { %v7744_v57 = vadd.f32 %v2620_v62, %v9712_v9  ;;  %v9760_v44 = vpop.f32.mrb[20].mxu1  ;;  %7047 = vmatpush1.bf16.msra.mxu0 %v7046_v33  ;;  %v2622_v20 = vpop.f32.mrb[21].mxu0  ;;  %7175 = vmatpush1.bf16.msra.mxu1 %v7174_v34  ;;  %v3149_v53 = vsel %vm3021_vm11, %v7742_v0, %v3085_v26  ;;  %v7056_v34 = vpack.c.bf16 %v3382_v47, %v3378_v4  ;;  %v3381_v0 = vld [vmem:[#allocation11 + $0x5e0] sm:$0xff]  ;;  %v3391_v4 = vld [vmem:[#allocation11 + $0x630] sm:$0xff]  ;;  %v3394_v47 = vld [vmem:[#allocation11 + $0x648] sm:$0xff] }
 0x3eb   :  { %v7745_v60 = vadd.f32 %v2622_v20, %v9716_v3  ;;  %v9763_v32 = vpop.f32.mrb[21].mxu1  ;;  %v3150_v38 = vsel %vm3022_vm10, %v7743_v8, %v3086_v31  ;;  %7049 = vmatprep.subr.bf16.mxu0 %v7048_v30  ;;  %7177 = vmatprep.subr.bf16.mxu1 %v7176_v11  ;;  %v3377_v30 = vld [vmem:[#allocation11 + $0x5c0] sm:$0xff]  ;;  %v3383_v11 = vld [vmem:[#allocation11 + $0x5f0] sm:$0xff]  ;;  %v7188_v46 = vpack.c.bf16 %v3392_v61, %v3388_v51  ;;  %v3406_v51 = vld [vmem:[#allocation11 + $0x6a8] sm:$0xff] }
 0x3ec   :  { %v3089_v54 = vmul.f32 0.2, %v7744_v57  ;;  %3565 = vmatprep.mubr.f32.mxu0 %v3150_v38  ;;  %3887 = vmatprep.mubr.f32.mxu1 %v3150_v38  ;;  %vm3025_vm13 = vcmp.gt.f32.partialorder %v7744_v57, 0.0  ;;  %v7058_v62 = vpack.c.bf16 %v3381_v0, %v3377_v30  ;;  %v7190_v0 = vpack.c.bf16 %v3391_v4, %v3387_v55  ;;  %v3403_v4 = vld [vmem:[#allocation11 + $0x690] sm:$0xff] }
 0x3ed   :  { %v3090_v2 = vmul.f32 0.2, %v7745_v60  ;;  %v2626_v37 = vpop.f32.mrb[22].mxu0  ;;  %3566 = vmatmul.mubr.f32.gmra.mrb[50].mxu0 %v3149_v53  ;;  %3888 = vmatmul.mubr.f32.gmra.mrb[50].mxu1 %v3149_v53  ;;  %vm3026_vm12 = vcmp.gt.f32.partialorder %v7745_v60, 0.0 }
 0x3ee   :  { %v7746_v10 = vadd.f32 %v2626_v37, %v9712_v9  ;;  %v9767_v18 = vpop.f32.mrb[22].mxu1  ;;  %7051 = vmatpush1.bf16.msra.mxu0 %v7050_v50  ;;  %v2628_v33 = vpop.f32.mrb[23].mxu0  ;;  %7179 = vmatpush1.bf16.msra.mxu1 %v7178_v22  ;;  %v3153_v26 = vsel %vm3025_vm13, %v7744_v57, %v3089_v54  ;;  %v3389_v57 = vld [vmem:[#allocation11 + $0x620] sm:$0xff]  ;;  %v3398_v54 = vld [vmem:[#allocation11 + $0x668] sm:$0xff] }
 0x3ef   :  { %v7747_v45 = vadd.f32 %v2628_v33, %v9716_v3  ;;  %v9770_v41 = vpop.f32.mrb[23].mxu1  ;;  %v3154_v8 = vsel %vm3026_vm12, %v7745_v60, %v3090_v2  ;;  %7053 = vmatprep.subr.bf16.mxu0 %v7052_v35  ;;  %7181 = vmatprep.subr.bf16.mxu1 %v7180_v58  ;;  %v7186_v35 = vpack.c.bf16 %v3383_v11, %v3379_v56  ;;  %v3400_v2 = vld [vmem:[#allocation11 + $0x678] sm:$0xff] }
 0x3f0   :  { %v3093_v39 = vmul.f32 0.2, %v7746_v10  ;;  %3571 = vmatprep.mubr.f32.mxu0 %v3154_v8  ;;  %3893 = vmatprep.mubr.f32.mxu1 %v3154_v8  ;;  %vm3029_vm15 = vcmp.gt.f32.partialorder %v7746_v10, 0.0  ;;  %v7062_v33 = vpack.c.bf16 %v3389_v57, %v3385_v15  ;;  %v7064_v56 = vpack.c.bf16 %v3398_v54, %v3394_v47  ;;  %v3395_v8 = vld [vmem:[#allocation11 + $0x650] sm:$0xff] }
 0x3f1   :  { %v3094_v7 = vmul.f32 0.2, %v7747_v45  ;;  %v2632_v31 = vpop.f32.mrb[24].mxu0  ;;  %3572 = vmatmul.mubr.f32.gmra.mrb[52].mxu0 %v3153_v26  ;;  %3894 = vmatmul.mubr.f32.gmra.mrb[52].mxu1 %v3153_v26  ;;  %vm3030_vm14 = vcmp.gt.f32.partialorder %v7747_v45, 0.0  ;;  %v7192_v49 = vpack.c.bf16 %v3400_v2, %v3396_v42  ;;  %v3402_v26 = vld [vmem:[#allocation11 + $0x688] sm:$0xff]  ;;  %v3407_v42 = vld [vmem:[#allocation11 + $0x6b0] sm:$0xff] }
 0x3f2   :  { %v7748_v50 = vadd.f32 %v2632_v31, %v9712_v9  ;;  %v9774_v20 = vpop.f32.mrb[24].mxu1  ;;  %7055 = vmatpush1.bf16.msra.mxu0 %v7054_v27  ;;  %v2634_v22 = vpop.f32.mrb[25].mxu0  ;;  %7183 = vmatpush1.bf16.msra.mxu1 %v7182_v48  ;;  %v3157_v25 = vsel %vm3029_vm15, %v7746_v10, %v3093_v39  ;;  %v3397_v10 = vld [vmem:[#allocation11 + $0x660] sm:$0xff]  ;;  %v3399_v39 = vld [vmem:[#allocation11 + $0x670] sm:$0xff]  ;;  %v3404_v31 = vld [vmem:[#allocation11 + $0x698] sm:$0xff] }
 0x3f3   :  { %v7749_v60 = vadd.f32 %v2634_v22, %v9716_v3  ;;  %v9777_v38 = vpop.f32.mrb[25].mxu1  ;;  %v3158_v58 = vsel %vm3030_vm14, %v7747_v45, %v3094_v7  ;;  %7057 = vmatprep.subr.bf16.mxu0 %v7056_v34  ;;  %7185 = vmatprep.subr.bf16.mxu1 %v7184_v5  ;;  %v3393_v45 = vld [vmem:[#allocation11 + $0x640] sm:$0xff]  ;;  %v3410_v2 = vld [vmem:[#allocation11 + $0x6c8] sm:$0xff] }
 0x3f4   :  { %v3097_v53 = vmul.f32 0.2, %v7748_v50  ;;  %3577 = vmatprep.mubr.f32.mxu0 %v3158_v58  ;;  %3899 = vmatprep.mubr.f32.mxu1 %v3158_v58  ;;  %vm3033_vm1 = vcmp.gt.f32.partialorder %v7748_v50, 0.0  ;;  %v7066_v15 = vpack.c.bf16 %v3397_v10, %v3393_v45  ;;  %v7068_v58 = vpack.c.bf16 %v3406_v51, %v3402_v26  ;;  %v3409_v26 = vld [vmem:[#allocation11 + $0x6c0] sm:$0xff]  ;;  %v3411_v51 = vld [vmem:[#allocation11 + $0x6d0] sm:$0xff] }
 0x3f5   :  { %v3098_v37 = vmul.f32 0.2, %v7749_v60  ;;  %v2638_v27 = vpop.f32.mrb[26].mxu0  ;;  %3578 = vmatmul.mubr.f32.gmra.mrb[54].mxu0 %v3157_v25  ;;  %3900 = vmatmul.mubr.f32.gmra.mrb[54].mxu1 %v3157_v25  ;;  %vm3034_vm0 = vcmp.gt.f32.partialorder %v7749_v60, 0.0 }
 0x3f6   :  { %v7750_v48 = vadd.f32 %v2638_v27, %v9712_v9  ;;  %v9781_v34 = vpop.f32.mrb[26].mxu1  ;;  %7059 = vmatpush1.bf16.msra.mxu0 %v7058_v62  ;;  %v2640_v30 = vpop.f32.mrb[27].mxu0  ;;  %7187 = vmatpush1.bf16.msra.mxu1 %v7186_v35  ;;  %v3161_v7 = vsel %vm3033_vm1, %v7748_v50, %v3097_v53  ;;  %v3408_v62 = vld [vmem:[#allocation11 + $0x6b8] sm:$0xff]  ;;  %v3405_v50 = vld [vmem:[#allocation11 + $0x6a0] sm:$0xff] }
 0x3f7   :  { %v7751_v5 = vadd.f32 %v2640_v30, %v9716_v3  ;;  %v9784_v11 = vpop.f32.mrb[27].mxu1  ;;  %v3162_v24 = vsel %vm3034_vm0, %v7749_v60, %v3098_v37  ;;  %7061 = vmatprep.subr.bf16.mxu0 %v7060_v12  ;;  %7189 = vmatprep.subr.bf16.mxu1 %v7188_v46  ;;  %v7194_v60 = vpack.c.bf16 %v3399_v39, %v3395_v8  ;;  %v3401_v46 = vld [vmem:[#allocation11 + $0x680] sm:$0xff]  ;;  %v3414_v37 = vld [vmem:[#allocation11 + $0x6e8] sm:$0xff]  ;;  %v3412_v30 = vld [vmem:[#allocation11 + $0x6d8] sm:$0xff] }
 0x3f8   :  { %v3101_v61 = vmul.f32 0.2, %v7750_v48  ;;  %3583 = vmatprep.mubr.f32.mxu0 %v3162_v24  ;;  %3905 = vmatprep.mubr.f32.mxu1 %v3162_v24  ;;  %vm3037_vm3 = vcmp.gt.f32.partialorder %v7750_v48, 0.0  ;;  %v7196_v25 = vpack.c.bf16 %v3408_v62, %v3404_v31  ;;  %v7070_v8 = vpack.c.bf16 %v3405_v50, %v3401_v46  ;;  %v3424_v50 = vld [vmem:[#allocation11 + $0x738] sm:$0xff] }
 0x3f9   :  { %v3102_v22 = vmul.f32 0.2, %v7751_v5  ;;  %v2644_v35 = vpop.f32.mrb[28].mxu0  ;;  %3584 = vmatmul.mubr.f32.gmra.mrb[56].mxu0 %v3161_v7  ;;  %3906 = vmatmul.mubr.f32.gmra.mrb[56].mxu1 %v3161_v7  ;;  %vm3038_vm2 = vcmp.gt.f32.partialorder %v7751_v5, 0.0  ;;  %v7072_v39 = vpack.c.bf16 %v3414_v37, %v3410_v2 }
 0x3fa   :  { %v7752_v12 = vadd.f32 %v2644_v35, %v9712_v9  ;;  %v9788_v57 = vpop.f32.mrb[28].mxu1  ;;  %7063 = vmatpush1.bf16.msra.mxu0 %v7062_v33  ;;  %v2646_v55 = vpop.f32.mrb[29].mxu0  ;;  %7191 = vmatpush1.bf16.msra.mxu1 %v7190_v0  ;;  %v3165_v33 = vsel %vm3037_vm3, %v7750_v48, %v3101_v61  ;;  %v3416_v0 = vld [vmem:[#allocation11 + $0x6f8] sm:$0xff]  ;;  %v3413_v48 = vld [vmem:[#allocation11 + $0x6e0] sm:$0xff]  ;;  %v3418_v35 = vld [vmem:[#allocation11 + $0x708] sm:$0xff] }
 0x3fb   :  { %v7753_v47 = vadd.f32 %v2646_v55, %v9716_v3  ;;  %v9791_v54 = vpop.f32.mrb[29].mxu1  ;;  %v3166_v53 = vsel %vm3038_vm2, %v7751_v5, %v3102_v22  ;;  %7065 = vmatprep.subr.bf16.mxu0 %v7064_v56  ;;  %7193 = vmatprep.subr.bf16.mxu1 %v7192_v49  ;;  %v7198_v49 = vpack.c.bf16 %v3407_v42, %v3403_v4  ;;  %v3415_v22 = vld [vmem:[#allocation11 + $0x6f0] sm:$0xff]  ;;  %v3422_v55 = vld [vmem:[#allocation11 + $0x728] sm:$0xff] }
 0x3fc   :  { %v3105_v27 = vmul.f32 0.2, %v7752_v12  ;;  %3589 = vmatprep.mubr.f32.mxu0 %v3166_v53  ;;  %3911 = vmatprep.mubr.f32.mxu1 %v3166_v53  ;;  %vm3041_vm5 = vcmp.gt.f32.partialorder %v7752_v12, 0.0  ;;  %v7200_v62 = vpack.c.bf16 %v3416_v0, %v3412_v30  ;;  %v7202_v2 = vpack.c.bf16 %v3415_v22, %v3411_v51  ;;  %v3428_v51 = vld [vmem:[#allocation11 + $0x758] sm:$0xff] }
 0x3fd   :  { %v3106_v45 = vmul.f32 0.2, %v7753_v47  ;;  %v2650_v10 = vpop.f32.mrb[30].mxu0  ;;  %3590 = vmatmul.mubr.f32.gmra.mrb[58].mxu0 %v3165_v33  ;;  %3912 = vmatmul.mubr.f32.gmra.mrb[58].mxu1 %v3165_v33  ;;  %vm3042_vm4 = vcmp.gt.f32.partialorder %v7753_v47, 0.0  ;;  %v7076_v37 = vpack.c.bf16 %v3422_v55, %v3418_v35  ;;  %v9804_v33 = vld [vmem:[#allocation11 + $0x700] sm:$0xff] }
 0x3fe   :  { %v7754_v56 = vadd.f32 %v2650_v10, %v9712_v9  ;;  %v9795_v5 = vpop.f32.mrb[30].mxu1  ;;  %7067 = vmatpush1.bf16.msra.mxu0 %v7066_v15  ;;  %v2652_v24 = vpop.f32.mrb[31].mxu0  ;;  %7195 = vmatpush1.bf16.msra.mxu1 %v7194_v60  ;;  %v3169_v15 = vsel %vm3041_vm5, %v7752_v12, %v3105_v27  ;;  %v3420_v60 = vld [vmem:[#allocation11 + $0x718] sm:$0xff]  ;;  %v3421_v12 = vld [vmem:[#allocation11 + $0x720] sm:$0xff]  ;;  %v9806_v27 = vld [vmem:[#allocation11 + $0x710] sm:$0xff] }
 0x3ff   :  { %v7755_v61 = vadd.f32 %v2652_v24, %v9716_v3  ;;  %v9798_v7 = vpop.f32.mrb[31].mxu1  ;;  %v3170_v31 = vsel %vm3042_vm4, %v7753_v47, %v3106_v45  ;;  %7069 = vmatprep.subr.bf16.mxu0 %v7068_v58  ;;  %7197 = vmatprep.subr.bf16.mxu1 %v7196_v25  ;;  %v7074_v47 = vpack.c.bf16 %v3413_v48, %v3409_v26  ;;  %v3423_v24 = vld [vmem:[#allocation11 + $0x730] sm:$0xff]  ;;  %v9811_v26 = vld [vmem:[#allocation11 + $0x748] sm:$0xff] }
 0x400   :  { %v3109_v46 = vmul.f32 0.2, %v7754_v56  ;;  %3595 = vmatprep.mubr.f32.mxu0 %v3170_v31  ;;  %3917 = vmatprep.mubr.f32.mxu1 %v3170_v31  ;;  %vm3045_vm7 = vcmp.gt.f32.partialorder %v7754_v56, 0.0  ;;  %v7204_v10 = vpack.c.bf16 %v3424_v50, %v3420_v60  ;;  %v3432_v31 = vld [vmem:[#allocation11 + $0x778] sm:$0xff]  ;;  %v3429_v60 = vld [vmem:[#allocation11 + $0x760] sm:$0xff]  ;;  %v9825_v50 = vld [vmem:[#allocation11 + $0x750] sm:$0xff] }
 0x401   :  { %v3110_v4 = vmul.f32 0.2, %v7755_v61  ;;  %v2656_v53 = vpop.f32.mrb[32].mxu0  ;;  %3596 = vmatmul.mubr.f32.gmra.mrb[60].mxu0 %v3169_v15  ;;  %3918 = vmatmul.mubr.f32.gmra.mrb[60].mxu1 %v3169_v15  ;;  %vm3046_vm6 = vcmp.gt.f32.partialorder %v7755_v61, 0.0  ;;  %v7206_v15 = vpack.c.bf16 %v3423_v24, %v9806_v27  ;;  %v9836_v27 = vrot.slane %v9708_v59, %v8636_v17 }
 0x402   :  { %v7756_v58 = vadd.f32 %v2656_v53, %v9712_v9  ;;  %v9802_v25 = vpop.f32.mrb[32].mxu1  ;;  %7071 = vmatpush1.bf16.msra.mxu0 %v7070_v8  ;;  %v2658_v42 = vpop.f32.mrb[33].mxu0  ;;  %7199 = vmatpush1.bf16.msra.mxu1 %v7198_v49  ;;  %v9813_v8 = vld [vmem:[#allocation11 + $0x768] sm:$0xff]  ;;  %v3173_v48 = vsel %vm3045_vm7, %v7754_v56, %v3109_v46  ;;  %v9823_v46 = vld [vmem:[#allocation11 + $0x740] sm:$0xff] }
 0x403   :  { %v7757_v30 = vadd.f32 %v2658_v42, %v9716_v3  ;;  %v9809_v0 = vpop.f32.mrb[33].mxu1  ;;  %v3174_v45 = vsel %vm3046_vm6, %v7755_v61, %v3110_v4  ;;  %7073 = vmatprep.subr.bf16.mxu0 %v7072_v39  ;;  %7201 = vmatprep.subr.bf16.mxu1 %v7200_v62  ;;  %v7078_v39 = vpack.c.bf16 %v3421_v12, %v9804_v33  ;;  %v3431_v33 = vld [vmem:[#allocation11 + $0x770] sm:$0xff]  ;;  %v9832_v12 = vld [vmem:[#allocation11 + $0x7a8] sm:$0xff] }
 0x404   :  { %v3113_v49 = vmul.f32 0.2, %v7756_v58  ;;  %3601 = vmatprep.mubr.f32.mxu0 %v3174_v45  ;;  %3923 = vmatprep.mubr.f32.mxu1 %v3174_v45  ;;  %vm3049_vm9 = vcmp.gt.f32.partialorder %v7756_v58, 0.0  ;;  %v7080_v56 = vpack.c.bf16 %v9813_v8, %v9811_v26  ;;  %v9840_v45 = vrot.slane %v9708_v59, %v8640_v19  ;;  %v3440_v26 = vld [vmem:[#allocation11 + $0x7b8] sm:$0xff]  ;;  %v3446_v19 = vld [vmem:[#allocation11 + $0x7e8] sm:$0xff] }
 0x405   :  { %v3114_v22 = vmul.f32 0.2, %v7757_v30  ;;  %v2662_v35 = vpop.f32.mrb[34].mxu0  ;;  %3602 = vmatmul.mubr.f32.gmra.mrb[62].mxu0 %v3173_v48  ;;  %3924 = vmatmul.mubr.f32.gmra.mrb[62].mxu1 %v3173_v48  ;;  %vm3050_vm8 = vcmp.gt.f32.partialorder %v7757_v30, 0.0 }
 0x406   :  { %v7758_v61 = vadd.f32 %v2662_v35, %v9712_v9  ;;  %v9818_v62 = vpop.f32.mrb[34].mxu1  ;;  %7075 = vmatpush1.bf16.msra.mxu0 %v7074_v47  ;;  %v2664_v55 = vpop.f32.mrb[35].mxu0  ;;  %7203 = vmatpush1.bf16.msra.mxu1 %v7202_v2  ;;  %v7208_v47 = vpack.c.bf16 %v3432_v31, %v3428_v51  ;;  %v9830_v2 = vld [vmem:[#allocation11 + $0x788] sm:$0xff]  ;;  %v7082_v51 = vpack.c.bf16 %v3429_v60, %v9823_v46  ;;  %v9846_v31 = vld [vmem:[#allocation11 + $0x7a0] sm:$0xff] }
 0x407   :  { %v7759_v4 = vadd.f32 %v2664_v55, %v9716_v3  ;;  %v9828_v53 = vpop.f32.mrb[35].mxu1  ;;  %v3178_v42 = vsel %vm3050_vm8, %v7757_v30, %v3114_v22  ;;  %7077 = vmatprep.subr.bf16.mxu0 %v7076_v37  ;;  %7205 = vmatprep.subr.bf16.mxu1 %v7204_v10  ;;  %v3177_v37 = vsel %vm3049_vm9, %v7756_v58, %v3113_v49  ;;  %v9843_v30 = vld [vmem:[#allocation11 + $0x780] sm:$0xff]  ;;  %v3436_v10 = vld [vmem:[#allocation11 + $0x798] sm:$0xff]  ;;  %v3435_v55 = vld [vmem:[#allocation11 + $0x790] sm:$0xff] }
 0x408   :  { %v3117_v24 = vmul.f32 0.2, %v7758_v61  ;;  %3607 = vmatprep.mubr.f32.mxu0 %v3178_v42  ;;  %3929 = vmatprep.mubr.f32.mxu1 %v3178_v42  ;;  %vm3053_vm11 = vcmp.gt.f32.partialorder %v7758_v61, 0.0  ;;  %v7210_v49 = vpack.c.bf16 %v3431_v33, %v9825_v50  ;;  %v7084_v35 = vpack.c.bf16 %v9832_v12, %v9830_v2  ;;  %v3439_v42 = vld [vmem:[#allocation11 + $0x7b0] sm:$0xff] }
 0x409   :  { %v3118_v8 = vmul.f32 0.2, %v7759_v4  ;;  %v2668_v48 = vpop.f32.mrb[36].mxu0  ;;  %3608 = vmatmul.mubr.f32.gmra.mrb[64].mxu0 %v3177_v37  ;;  %3930 = vmatmul.mubr.f32.gmra.mrb[64].mxu1 %v3177_v37  ;;  %vm3054_vm10 = vcmp.gt.f32.partialorder %v7759_v4, 0.0  ;;  %v9854_v37 = vld [vmem:[#allocation11 + $0x7c8] sm:$0xff]  ;;  %v9862_v50 = vadd.f32 %v9722_v23, %v9840_v45  ;;  %v7086_v12 = vpack.c.bf16 %v9846_v31, %v9843_v30 }
 0x40a   :  { %v7760_v59 = vadd.f32 %v2668_v48, %v9712_v9  ;;  %v9849_v22 = vpop.f32.mrb[36].mxu1  ;;  %7079 = vmatpush1.bf16.msra.mxu0 %v7078_v39  ;;  %v2670_v58 = vpop.f32.mrb[37].mxu0  ;;  %7207 = vmatpush1.bf16.msra.mxu1 %v7206_v15  ;;  %v7212_v39 = vpack.c.bf16 %v3440_v26, %v3436_v10  ;;  %v3444_v15 = vld [vmem:[#allocation11 + $0x7d8] sm:$0xff]  ;;  %v3181_v2 = vsel %vm3053_vm11, %v7758_v61, %v3117_v24  ;;  %v3441_v61 = vld [vmem:[#allocation11 + $0x7c0] sm:$0xff] }
 0x40b   :  { %v7761_v46 = vadd.f32 %v2670_v58, %v9716_v3  ;;  %v9857_v60 = vpop.f32.mrb[37].mxu1  ;;  %v3182_v48 = vsel %vm3054_vm10, %v7759_v4, %v3118_v8  ;;  %7081 = vmatprep.subr.bf16.mxu0 %v7080_v56  ;;  %7209 = vmatprep.subr.bf16.mxu1 %v7208_v47  ;;  %v7214_v56 = vpack.c.bf16 %v3439_v42, %v3435_v55  ;;  %v3443_v55 = vld [vmem:[#allocation11 + $0x7d0] sm:$0xff]  ;;  %vm3004_vm0 = vcmp.gt.f32.partialorder %v9862_v50, 0.0 }
 0x40c   :  { %v3121_v33 = vmul.f32 0.2, %v7760_v59  ;;  %3613 = vmatprep.mubr.f32.mxu0 %v3182_v48  ;;  %3935 = vmatprep.mubr.f32.mxu1 %v3182_v48  ;;  %vm3057_vm13 = vcmp.gt.f32.partialorder %v7760_v59, 0.0  ;;  %v7088_v26 = vpack.c.bf16 %v3446_v19, %v9854_v37  ;;  %v7216_v24 = vpack.c.bf16 %v3448_v14, %v3444_v15  ;;  %v3447_v42 = vld [vmem:[#allocation11 + $0x7f0] sm:$0xff] }
 0x40d   :  { %v3122_v58 = vmul.f32 0.2, %v7761_v46  ;;  %v2674_v4 = vpop.f32.mrb[38].mxu0  ;;  %3614 = vmatmul.mubr.f32.gmra.mrb[66].mxu0 %v3181_v2  ;;  %3936 = vmatmul.mubr.f32.gmra.mrb[66].mxu1 %v3181_v2  ;;  %vm3058_vm12 = vcmp.gt.f32.partialorder %v7761_v46, 0.0  ;;  %v7764_v30 = vadd.f32 %v9719_v16, %v9836_v27  ;;  %v4948_v19 = vld [vmem:[#allocation16 + $0x8] sm:$0xff] }
 0x40e   :  { %v7762_v47 = vadd.f32 %v2674_v4, %v9712_v9  ;;  %v9868_v10 = vpop.f32.mrb[38].mxu1  ;;  %7083 = vmatpush1.bf16.msra.mxu0 %v7082_v51  ;;  %v2676_v23 = vpop.f32.mrb[39].mxu0  ;;  %7211 = vmatpush1.bf16.msra.mxu1 %v7210_v49  ;;  %v3445_v9 = vld [vmem:[#allocation11 + $0x7e0] sm:$0xff]  ;;  %v3068_v51 = vmul.f32 0.2, %v9862_v50  ;;  %v3185_v14 = vsel %vm3057_vm13, %v7760_v59, %v3121_v33  ;;  %v4952_v37 = vld [vmem:[#allocation16 + $0x28] sm:$0xff]  ;;  %v7766_v59 = vadd.f32 %v9725_v28, %v9836_v27 }
 0x40f   :  { %v7763_v8 = vadd.f32 %v2676_v23, %v9716_v3  ;;  %v9874_v31 = vpop.f32.mrb[39].mxu1  ;;  %v3186_v48 = vsel %vm3058_vm12, %v7761_v46, %v3122_v58  ;;  %7085 = vmatprep.subr.bf16.mxu0 %v7084_v35  ;;  %7213 = vmatprep.subr.bf16.mxu1 %v7212_v39  ;;  %v7767_v3 = vadd.f32 %v9728_v40, %v9840_v45  ;;  %v4950_v35 = vld [vmem:[#allocation16 + $0x18] sm:$0xff]  ;;  %v3067_v15 = vmul.f32 0.2, %v7764_v30  ;;  %v4949_v23 = vld [vmem:[#allocation16 + $0x10] sm:$0xff] }
 0x410   :  { %v3125_v49 = vmul.f32 0.2, %v7762_v47  ;;  %3619 = vmatprep.mubr.f32.mxu0 %v3186_v48  ;;  %3941 = vmatprep.mubr.f32.mxu1 %v3186_v48  ;;  %vm3061_vm15 = vcmp.gt.f32.partialorder %v7762_v47, 0.0  ;;  %v4954_v46 = vld [vmem:[#allocation16 + $0x38] sm:$0xff]  ;;  %v7090_v39 = vpack.c.bf16 %v3445_v9, %v3441_v61  ;;  %v7218_v40 = vpack.c.bf16 %v3447_v42, %v3443_v55 }
 0x411   :  { %v3126_v16 = vmul.f32 0.2, %v7763_v8  ;;  %3620 = vmatmul.mubr.f32.gmra.mrb[68].mxu0 %v3185_v14  ;;  %3942 = vmatmul.mubr.f32.gmra.mrb[68].mxu1 %v3185_v14  ;;  %vm3062_vm14 = vcmp.gt.f32.partialorder %v7763_v8, 0.0  ;;  %vm3003_vm1 = vcmp.gt.f32.partialorder %v7764_v30, 0.0  ;;  %v7220_v58 = vpack.c.bf16 %v4952_v37, %v4948_v19  ;;  %v4962_v9 = vld [vmem:[#allocation16 + $0x78] sm:$0xff]  ;;  %v4955_v14 = vld [vmem:[#allocation16 + $0x40] sm:$0xff] }
 0x412   :  { %7087 = vmatpush1.bf16.msra.mxu0 %v7086_v12  ;;  %7215 = vmatpush1.bf16.msra.mxu1 %v7214_v56  ;;  %v3189_v2 = vsel %vm3061_vm15, %v7762_v47, %v3125_v49  ;;  %v7348_v4 = vpack.c.bf16 %v4954_v46, %v4950_v35  ;;  %v4947_v12 = vld [vmem:[#allocation16] sm:$0xff]  ;;  %v3072_v61 = vmul.f32 0.2, %v7767_v3  ;;  %v7769_v48 = vadd.f32 %v9735_v52, %v9840_v45  ;;  %v4958_v47 = vld [vmem:[#allocation16 + $0x58] sm:$0xff]  ;;  %v4957_v37 = vld [vmem:[#allocation16 + $0x50] sm:$0xff] }
 0x413   :  { %v3190_v33 = vsel %vm3062_vm14, %v7763_v8, %v3126_v16  ;;  %7089 = vmatprep.subr.bf16.mxu0 %v7088_v26  ;;  %7217 = vmatprep.subr.bf16.mxu1 %v7216_v24  ;;  %v4951_v56 = vld [vmem:[#allocation16 + $0x20] sm:$0xff]  ;;  %v3132_v28 = vsel %vm3004_vm0, %v9862_v50, %v3068_v51  ;;  %v4953_v26 = vld [vmem:[#allocation16 + $0x30] sm:$0xff]  ;;  %v4956_v24 = vld [vmem:[#allocation16 + $0x48] sm:$0xff]  ;;  %vm3008_vm2 = vcmp.gt.f32.partialorder %v7767_v3, 0.0  ;;  %v3131_v55 = vsel %vm3003_vm1, %v7764_v30, %v3067_v15 }
 0x414   :  { %3625 = vmatprep.mubr.f32.mxu0 %v3190_v33  ;;  %3947 = vmatprep.mubr.f32.mxu1 %v3190_v33  ;;  %v4960_v8 = vld [vmem:[#allocation16 + $0x68] sm:$0xff]  ;;  %v7768_v42 = vadd.f32 %v9732_v21, %v9836_v27  ;;  %v7222_v52 = vpack.c.bf16 %v4951_v56, %v4947_v12  ;;  %v3071_v49 = vmul.f32 0.2, %v7766_v59  ;;  %vm3007_vm3 = vcmp.gt.f32.partialorder %v7766_v59, 0.0  ;;  %v4959_v19 = vld [vmem:[#allocation16 + $0x60] sm:$0xff]  ;;  %v4961_v46 = vld [vmem:[#allocation16 + $0x70] sm:$0xff] }
 0x415   :  { %3626 = vmatmul.mubr.f32.gmra.mrb[70].mxu0 %v3189_v2  ;;  %3948 = vmatmul.mubr.f32.gmra.mrb[70].mxu1 %v3189_v2  ;;  %v7350_v50 = vpack.c.bf16 %v4953_v26, %v4949_v23  ;;  %v7224_v51 = vpack.c.bf16 %v4960_v8, %v4956_v24  ;;  %v3076_v16 = vmul.f32 0.2, %v7769_v48  ;;  %v7771_v35 = vadd.f32 %v9742_v36, %v9840_v45  ;;  %v4968_v15 = vld [vmem:[#allocation16 + $0xa8] sm:$0xff]  ;;  %v4966_v33 = vld [vmem:[#allocation16 + $0x98] sm:$0xff]  ;;  %v4963_v56 = vld [vmem:[#allocation16 + $0x80] sm:$0xff] }
 0x416   :  { %7091 = vmatpush1.bf16.msra.mxu0 %v7090_v39  ;;  %3696 = vmatprep.mubr.f32.mxu0 %v3132_v28  ;;  %v3136_v30 = vsel %vm3008_vm2, %v7767_v3, %v3072_v61  ;;  %v7352_v21 = vpack.c.bf16 %v4962_v9, %v4958_v47  ;;  %v4964_v39 = vld [vmem:[#allocation16 + $0x88] sm:$0xff]  ;;  %vm3012_vm4 = vcmp.gt.f32.partialorder %v7769_v48, 0.0  ;;  %v3075_v2 = vmul.f32 0.2, %v7768_v42  ;;  %v4967_v23 = vld [vmem:[#allocation16 + $0xa0] sm:$0xff]  ;;  %v4965_v61 = vld [vmem:[#allocation16 + $0x90] sm:$0xff] }
 0x417   :  { %7219 = vmatpush1.bf16.msra.mxu1 %v7218_v40  ;;  %4018 = vmatprep.mubr.f32.mxu1 %v3132_v28  ;;  %v4970_v40 = vld [vmem:[#allocation16 + $0xb8] sm:$0xff]  ;;  %v3135_v36 = vsel %vm3007_vm3, %v7766_v59, %v3071_v49  ;;  %vm3011_vm5 = vcmp.gt.f32.partialorder %v7768_v42, 0.0  ;;  %v7354_v3 = vpack.c.bf16 %v4961_v46, %v4957_v37  ;;  %v7228_v12 = vpack.c.bf16 %v4968_v15, %v4964_v39  ;;  %v4969_v8 = vld [vmem:[#allocation16 + $0xb0] sm:$0xff]  ;;  %v4972_v47 = vld [vmem:[#allocation16 + $0xc8] sm:$0xff] }
 0x418   :  { %7221 = vmatprep.subr.bf16.mxu0 %v7220_v58  ;;  %7349 = vmatprep.subr.bf16.mxu1 %v7348_v4  ;;  %v7770_v58 = vadd.f32 %v9739_v43, %v9836_v27  ;;  %v7226_v4 = vpack.c.bf16 %v4959_v19, %v4955_v14  ;;  %v3080_v28 = vmul.f32 0.2, %v7771_v35  ;;  %v7773_v26 = vadd.f32 %v9749_v63, %v9840_v45  ;;  %v4976_v59 = vld [vmem:[#allocation16 + $0xe8] sm:$0xff]  ;;  %v4974_v9 = vld [vmem:[#allocation16 + $0xd8] sm:$0xff]  ;;  %v4971_v14 = vld [vmem:[#allocation16 + $0xc0] sm:$0xff] }
 0x419   :  { %3697 = vmatmul.mubr.f32.vlgmr.msra.gmra.mrb[40].mxu0 %v3131_v55  ;;  %v3140_v43 = vsel %vm3012_vm4, %v7769_v48, %v3076_v16  ;;  %v7356_v24 = vpack.c.bf16 %v4970_v40, %v4966_v33  ;;  %vm3016_vm6 = vcmp.gt.f32.partialorder %v7771_v35, 0.0  ;;  %v3139_v49 = vsel %vm3011_vm5, %v7768_v42, %v3075_v2  ;;  %v4975_v19 = vld [vmem:[#allocation16 + $0xe0] sm:$0xff]  ;;  %v4977_v46 = vld [vmem:[#allocation16 + $0xf0] sm:$0xff] }
 0x41a   :  { %4019 = vmatmul.mubr.f32.vlgmr.msra.gmra.mrb[40].mxu1 %v3131_v55  ;;  %3702 = vmatprep.mubr.f32.mxu0 %v3136_v30  ;;  %v4978_v55 = vld [vmem:[#allocation16 + $0xf8] sm:$0xff]  ;;  %v7772_v63 = vadd.f32 %v9746_v1, %v9836_v27  ;;  %vm3015_vm7 = vcmp.gt.f32.partialorder %v7770_v58, 0.0  ;;  %v7358_v48 = vpack.c.bf16 %v4969_v8, %v4965_v61  ;;  %v3084_v37 = vmul.f32 0.2, %v7773_v26 }
 0x41b   :  { %4024 = vmatprep.mubr.f32.mxu1 %v3136_v30  ;;  %7223 = vmatpush1.bf16.msra.mxu0 %v7222_v52  ;;  %v3079_v52 = vmul.f32 0.2, %v7770_v58  ;;  %v7775_v16 = vadd.f32 %v9756_v6, %v9840_v45  ;;  %v3144_v30 = vsel %vm3016_vm6, %v7771_v35, %v3080_v28  ;;  %v7360_v42 = vpack.c.bf16 %v4978_v55, %v4974_v9 }
 0x41c   :  { %7351 = vmatpush1.bf16.msra.mxu1 %v7350_v50  ;;  %7225 = vmatprep.subr.bf16.mxu0 %v7224_v51  ;;  %v7230_v50 = vpack.c.bf16 %v4967_v23, %v4963_v56  ;;  %v7232_v51 = vpack.c.bf16 %v4976_v59, %v4972_v47  ;;  %vm3020_vm8 = vcmp.gt.f32.partialorder %v7773_v26, 0.0  ;;  %v7234_v1 = vpack.c.bf16 %v4975_v19, %v4971_v14 }
 0x41d   :  { %3703 = vmatmul.mubr.f32.gmra.mrb[42].mxu0 %v3135_v36  ;;  %7353 = vmatprep.subr.bf16.mxu1 %v7352_v21  ;;  %v4973_v21 = vld [vmem:[#allocation16 + $0xd0] sm:$0xff]  ;;  %v3083_v39 = vmul.f32 0.2, %v7772_v63  ;;  %v7774_v15 = vadd.f32 %v9753_v29, %v9836_v27  ;;  %v3143_v33 = vsel %vm3015_vm7, %v7770_v58, %v3079_v52  ;;  %v3088_v35 = vmul.f32 0.2, %v7775_v16 }
 0x41e   :  { %4025 = vmatmul.mubr.f32.gmra.mrb[42].mxu1 %v3135_v36  ;;  %3708 = vmatprep.mubr.f32.mxu0 %v3140_v43  ;;  %v7362_v6 = vpack.c.bf16 %v4977_v46, %v4973_v21  ;;  %v7777_v40 = vadd.f32 %v9763_v32, %v9840_v45  ;;  %v3148_v2 = vsel %vm3020_vm8, %v7773_v26, %v3084_v37  ;;  %vm3019_vm9 = vcmp.gt.f32.partialorder %v7772_v63, 0.0 }
 0x41f   :  { %4030 = vmatprep.mubr.f32.mxu1 %v3140_v43  ;;  %7227 = vmatpush1.bf16.msra.mxu0 %v7226_v4  ;;  %vm3024_vm10 = vcmp.gt.f32.partialorder %v7775_v16, 0.0  ;;  %v3087_v4 = vmul.f32 0.2, %v7774_v15  ;;  %v7776_v29 = vadd.f32 %v9760_v44, %v9836_v27  ;;  %v3147_v58 = vsel %vm3019_vm9, %v7772_v63, %v3083_v39 }
 0x420   :  { %7355 = vmatpush1.bf16.msra.mxu1 %v7354_v3  ;;  %7229 = vmatprep.subr.bf16.mxu0 %v7228_v12  ;;  %v3092_v36 = vmul.f32 0.2, %v7777_v40  ;;  %v7779_v3 = vadd.f32 %v9770_v41, %v9840_v45  ;;  %v3152_v32 = vsel %vm3024_vm10, %v7775_v16, %v3088_v35  ;;  %vm3023_vm11 = vcmp.gt.f32.partialorder %v7774_v15, 0.0 }
 0x421   :  { %3709 = vmatmul.mubr.f32.gmra.mrb[44].mxu0 %v3139_v49  ;;  %7357 = vmatprep.subr.bf16.mxu1 %v7356_v24  ;;  %vm3028_vm12 = vcmp.gt.f32.partialorder %v7777_v40, 0.0  ;;  %v3091_v12 = vmul.f32 0.2, %v7776_v29  ;;  %v7778_v56 = vadd.f32 %v9767_v18, %v9836_v27  ;;  %v3151_v23 = vsel %vm3023_vm11, %v7774_v15, %v3087_v4 }
 0x422   :  { %4031 = vmatmul.mubr.f32.gmra.mrb[44].mxu1 %v3139_v49  ;;  %3714 = vmatprep.mubr.f32.mxu0 %v3144_v30  ;;  %v3096_v61 = vmul.f32 0.2, %v7779_v3  ;;  %v7781_v44 = vadd.f32 %v9777_v38, %v9840_v45  ;;  %v3156_v28 = vsel %vm3028_vm12, %v7777_v40, %v3092_v36  ;;  %vm3027_vm13 = vcmp.gt.f32.partialorder %v7776_v29, 0.0  ;;  %v4982_v36 = vld [vmem:[#allocation16 + $0x118] sm:$0xff] }
 0x423   :  { %4036 = vmatprep.mubr.f32.mxu1 %v3144_v30  ;;  %7231 = vmatpush1.bf16.msra.mxu0 %v7230_v50  ;;  %vm3032_vm14 = vcmp.gt.f32.partialorder %v7779_v3, 0.0  ;;  %v3095_v41 = vmul.f32 0.2, %v7778_v56  ;;  %v7780_v26 = vadd.f32 %v9774_v20, %v9836_v27  ;;  %v3155_v43 = vsel %vm3027_vm13, %v7776_v29, %v3091_v12  ;;  %v4979_v12 = vld [vmem:[#allocation16 + $0x100] sm:$0xff] }
 0x424   :  { %7359 = vmatpush1.bf16.msra.mxu1 %v7358_v48  ;;  %7233 = vmatprep.subr.bf16.mxu0 %v7232_v51  ;;  %v3100_v24 = vmul.f32 0.2, %v7781_v44  ;;  %v7783_v18 = vadd.f32 %v9784_v11, %v9840_v45  ;;  %v3160_v8 = vsel %vm3032_vm14, %v7779_v3, %v3096_v61  ;;  %vm3031_vm15 = vcmp.gt.f32.partialorder %v7778_v56, 0.0 }
 0x425   :  { %3715 = vmatmul.mubr.f32.gmra.mrb[46].mxu0 %v3143_v33  ;;  %7361 = vmatprep.subr.bf16.mxu1 %v7360_v42  ;;  %vm3036_vm0 = vcmp.gt.f32.partialorder %v7781_v44, 0.0  ;;  %v3099_v38 = vmul.f32 0.2, %v7780_v26  ;;  %v7782_v47 = vadd.f32 %v9781_v34, %v9836_v27  ;;  %v3159_v59 = vsel %vm3031_vm15, %v7778_v56, %v3095_v41  ;;  %v4983_v56 = vld [vmem:[#allocation16 + $0x120] sm:$0xff] }
 0x426   :  { %4037 = vmatmul.mubr.f32.gmra.mrb[46].mxu1 %v3143_v33  ;;  %3720 = vmatprep.mubr.f32.mxu0 %v3148_v2  ;;  %v3104_v9 = vmul.f32 0.2, %v7783_v18  ;;  %v7785_v20 = vadd.f32 %v9791_v54, %v9840_v45  ;;  %v3164_v55 = vsel %vm3036_vm0, %v7781_v44, %v3100_v24  ;;  %vm3035_vm1 = vcmp.gt.f32.partialorder %v7780_v26, 0.0  ;;  %v4981_v44 = vld [vmem:[#allocation16 + $0x110] sm:$0xff]  ;;  %v4990_v24 = vld [vmem:[#allocation16 + $0x158] sm:$0xff] }
 0x427   :  { %4042 = vmatprep.mubr.f32.mxu1 %v3148_v2  ;;  %7235 = vmatpush1.bf16.msra.mxu0 %v7234_v1  ;;  %vm3040_vm2 = vcmp.gt.f32.partialorder %v7783_v18, 0.0  ;;  %v3103_v11 = vmul.f32 0.2, %v7782_v47  ;;  %v7784_v52 = vadd.f32 %v9788_v57, %v9836_v27  ;;  %v3163_v49 = vsel %vm3035_vm1, %v7780_v26, %v3099_v38  ;;  %v4988_v26 = vld [vmem:[#allocation16 + $0x148] sm:$0xff] }
 0x428   :  { %7363 = vmatpush1.bf16.msra.mxu1 %v7362_v6  ;;  %v3108_v50 = vmul.f32 0.2, %v7785_v20  ;;  %v7787_v34 = vadd.f32 %v9798_v7, %v9840_v45  ;;  %v3168_v63 = vsel %vm3040_vm2, %v7783_v18, %v3104_v9  ;;  %vm3039_vm3 = vcmp.gt.f32.partialorder %v7782_v47, 0.0  ;;  %v4989_v9 = vld [vmem:[#allocation16 + $0x150] sm:$0xff] }
 0x429   :  { %3721 = vmatmul.mubr.f32.gmra.mrb[48].mxu0 %v3147_v58  ;;  %vm3044_vm4 = vcmp.gt.f32.partialorder %v7785_v20, 0.0  ;;  %v3107_v54 = vmul.f32 0.2, %v7784_v52  ;;  %v7786_v48 = vadd.f32 %v9795_v5, %v9836_v27  ;;  %v3167_v51 = vsel %vm3039_vm3, %v7782_v47, %v3103_v11  ;;  %v4987_v47 = vld [vmem:[#allocation16 + $0x140] sm:$0xff] }
 0x42a   :  { %4043 = vmatmul.mubr.f32.gmra.mrb[48].mxu1 %v3147_v58  ;;  %3726 = vmatprep.mubr.f32.mxu0 %v3152_v32  ;;  %v3112_v14 = vmul.f32 0.2, %v7787_v34  ;;  %v7789_v57 = vadd.f32 %v9809_v0, %v9840_v45  ;;  %v3172_v19 = vsel %vm3044_vm4, %v7785_v20, %v3108_v50  ;;  %vm3043_vm5 = vcmp.gt.f32.partialorder %v7784_v52, 0.0  ;;  %v4998_v50 = vld [vmem:[#allocation16 + $0x198] sm:$0xff] }
 0x42b   :  { %4048 = vmatprep.mubr.f32.mxu1 %v3152_v32  ;;  %vm3048_vm6 = vcmp.gt.f32.partialorder %v7787_v34, 0.0  ;;  %v3111_v7 = vmul.f32 0.2, %v7786_v48  ;;  %v7788_v37 = vadd.f32 %v9802_v25, %v9836_v27  ;;  %v3171_v16 = vsel %vm3043_vm5, %v7784_v52, %v3107_v54  ;;  %v4986_v32 = vld [vmem:[#allocation16 + $0x138] sm:$0xff]  ;;  %v4996_v52 = vld [vmem:[#allocation16 + $0x188] sm:$0xff] }
 0x42c   :  { %v3116_v30 = vmul.f32 0.2, %v7789_v57  ;;  %v7791_v5 = vadd.f32 %v9828_v53, %v9840_v45  ;;  %v3176_v42 = vsel %vm3048_vm6, %v7787_v34, %v3112_v14  ;;  %vm3047_vm7 = vcmp.gt.f32.partialorder %v7786_v48, 0.0  ;;  %v4997_v14 = vld [vmem:[#allocation16 + $0x190] sm:$0xff] }
 0x42d   :  { %3727 = vmatmul.mubr.f32.gmra.mrb[50].mxu0 %v3151_v23  ;;  %vm3052_vm8 = vcmp.gt.f32.partialorder %v7789_v57, 0.0  ;;  %v3115_v0 = vmul.f32 0.2, %v7788_v37  ;;  %v7790_v21 = vadd.f32 %v9818_v62, %v9836_v27  ;;  %v3175_v46 = vsel %vm3047_vm7, %v7786_v48, %v3111_v7  ;;  %v4995_v48 = vld [vmem:[#allocation16 + $0x180] sm:$0xff] }
 0x42e   :  { %4049 = vmatmul.mubr.f32.gmra.mrb[50].mxu1 %v3151_v23  ;;  %3732 = vmatprep.mubr.f32.mxu0 %v3156_v28  ;;  %v3120_v1 = vmul.f32 0.2, %v7791_v5  ;;  %v7793_v25 = vadd.f32 %v9857_v60, %v9840_v45  ;;  %v3180_v39 = vsel %vm3052_vm8, %v7789_v57, %v3116_v30  ;;  %vm3051_vm9 = vcmp.gt.f32.partialorder %v7788_v37, 0.0  ;;  %v5006_v30 = vld [vmem:[#allocation16 + $0x1d8] sm:$0xff] }
 0x42f   :  { %4054 = vmatprep.mubr.f32.mxu1 %v3156_v28  ;;  %vm3056_vm10 = vcmp.gt.f32.partialorder %v7791_v5, 0.0  ;;  %v3119_v53 = vmul.f32 0.2, %v7790_v21  ;;  %v7792_v15 = vadd.f32 %v9849_v22, %v9836_v27  ;;  %v3179_v33 = vsel %vm3051_vm9, %v7788_v37, %v3115_v0  ;;  %v4985_v28 = vld [vmem:[#allocation16 + $0x130] sm:$0xff]  ;;  %v5004_v37 = vld [vmem:[#allocation16 + $0x1c8] sm:$0xff] }
 0x430   :  { %v3124_v6 = vmul.f32 0.2, %v7793_v25  ;;  %v7795_v62 = vadd.f32 %v9874_v31, %v9840_v45  ;;  %v3184_v35 = vsel %vm3056_vm10, %v7791_v5, %v3120_v1  ;;  %vm3055_vm11 = vcmp.gt.f32.partialorder %v7790_v21, 0.0  ;;  %v5005_v1 = vld [vmem:[#allocation16 + $0x1d0] sm:$0xff] }
 0x431   :  { %3733 = vmatmul.mubr.f32.gmra.mrb[52].mxu0 %v3155_v43  ;;  %vm3060_vm12 = vcmp.gt.f32.partialorder %v7793_v25, 0.0  ;;  %v3123_v60 = vmul.f32 0.2, %v7792_v15  ;;  %v7794_v40 = vadd.f32 %v9868_v10, %v9836_v27  ;;  %v3183_v2 = vsel %vm3055_vm11, %v7790_v21, %v3119_v53  ;;  %v4980_v27 = vld [vmem:[#allocation16 + $0x108] sm:$0xff]  ;;  %v5003_v21 = vld [vmem:[#allocation16 + $0x1c0] sm:$0xff] }
 0x432   :  { %4055 = vmatmul.mubr.f32.gmra.mrb[52].mxu1 %v3155_v43  ;;  %3738 = vmatprep.mubr.f32.mxu0 %v3160_v8  ;;  %v3128_v4 = vmul.f32 0.2, %v7795_v62  ;;  %v3188_v22 = vsel %vm3060_vm12, %v7793_v25, %v3124_v6  ;;  %vm3059_vm13 = vcmp.gt.f32.partialorder %v7792_v15, 0.0  ;;  %vm3064_vm14 = vcmp.gt.f32.partialorder %v7795_v62, 0.0  ;;  %v4984_v10 = vld [vmem:[#allocation16 + $0x128] sm:$0xff]  ;;  %v5014_v6 = vld [vmem:[#allocation16 + $0x218] sm:$0xff] }
 0x433   :  { %4060 = vmatprep.mubr.f32.mxu1 %v3160_v8  ;;  %v3127_v45 = vmul.f32 0.2, %v7794_v40  ;;  %v3187_v31 = vsel %vm3059_vm13, %v7792_v15, %v3123_v60  ;;  %vm3063_vm15 = vcmp.gt.f32.partialorder %v7794_v40, 0.0  ;;  %v7236_v3 = vpack.c.bf16 %v4984_v10, %v4980_v27  ;;  %v4992_v43 = vld [vmem:[#allocation16 + $0x168] sm:$0xff]  ;;  %v4994_v8 = vld [vmem:[#allocation16 + $0x178] sm:$0xff] }
 0x434   :  { %v3192_v29 = vsel %vm3064_vm14, %v7795_v62, %v3128_v4  ;;  %v7364_v23 = vpack.c.bf16 %v4986_v32, %v4982_v36  ;;  %v7238_v61 = vpack.c.bf16 %v4983_v56, %v4979_v12  ;;  %v7366_v41 = vpack.c.bf16 %v4985_v28, %v4981_v44  ;;  %v5012_v15 = vld [vmem:[#allocation16 + $0x208] sm:$0xff]  ;;  %v5013_v4 = vld [vmem:[#allocation16 + $0x210] sm:$0xff]  ;;  %v5022_v27 = vld [vmem:[#allocation16 + $0x258] sm:$0xff] }
 0x435   :  { %3739 = vmatmul.mubr.f32.gmra.mrb[54].mxu0 %v3159_v59  ;;  %v3191_v58 = vsel %vm3063_vm15, %v7794_v40, %v3127_v45  ;;  %7237 = vmatprep.subr.bf16.mxu0 %v7236_v3  ;;  %v7240_v18 = vpack.c.bf16 %v4992_v43, %v4988_v26  ;;  %v7368_v38 = vpack.c.bf16 %v4994_v8, %v4990_v24  ;;  %v5011_v40 = vld [vmem:[#allocation16 + $0x200] sm:$0xff]  ;;  %v5017_v45 = vld [vmem:[#allocation16 + $0x230] sm:$0xff]  ;;  %v5026_v36 = vld [vmem:[#allocation16 + $0x278] sm:$0xff]  ;;  %vm5267_vm7 = vcmask 1041409  }
 0x436   :  { %4061 = vmatmul.mubr.f32.gmra.mrb[54].mxu1 %v3159_v59  ;;  %3744 = vmatprep.mubr.f32.mxu0 %v3164_v55  ;;  %v4991_v59 = vld [vmem:[#allocation16 + $0x160] sm:$0xff]  ;;  %v7384_v3 = vpack.c.bf16 %v5026_v36, %v5022_v27  ;;  %v5021_v56 = vld [vmem:[#allocation16 + $0x250] sm:$0xff]  ;;  %v5028_v28 = vld [vmem:[#allocation16 + $0x288] sm:$0xff]  ;;  %vm5269_vm13 = vcmask 1042434  }
 0x437   :  { %4066 = vmatprep.mubr.f32.mxu1 %v3164_v55  ;;  %7365 = vmatprep.subr.bf16.mxu1 %v7364_v23  ;;  %v7242_v20 = vpack.c.bf16 %v4991_v59, %v4987_v47  ;;  %v4993_v55 = vld [vmem:[#allocation16 + $0x170] sm:$0xff]  ;;  %v5019_v32 = vld [vmem:[#allocation16 + $0x240] sm:$0xff]  ;;  %v5030_v26 = vld [vmem:[#allocation16 + $0x298] sm:$0xff] }
 0x438   :  { %7239 = vmatpush1.bf16.msra.mxu0 %v7238_v61  ;;  %7367 = vmatpush1.bf16.msra.mxu1 %v7366_v41  ;;  %v7370_v11 = vpack.c.bf16 %v4993_v55, %v4989_v9  ;;  %v5023_v12 = vld [vmem:[#allocation16 + $0x260] sm:$0xff]  ;;  %v5025_v61 = vld [vmem:[#allocation16 + $0x270] sm:$0xff]  ;;  %v5032_v41 = vld [vmem:[#allocation16 + $0x2a8] sm:$0xff] }
 0x439   :  { %3745 = vmatmul.mubr.f32.gmra.mrb[56].mxu0 %v3163_v49  ;;  %7241 = vmatprep.subr.bf16.mxu0 %v7240_v18  ;;  %v7258_v23 = vpack.c.bf16 %v5023_v12, %v5019_v32  ;;  %v7386_v44 = vpack.c.bf16 %v5025_v61, %v5021_v56  ;;  %v7260_v43 = vpack.c.bf16 %v5032_v41, %v5028_v28  ;;  %v5034_v24 = vld [vmem:[#allocation16 + $0x2b8] sm:$0xff]  ;;  %v5027_v8 = vld [vmem:[#allocation16 + $0x280] sm:$0xff]  ;;  %v5029_v47 = vld [vmem:[#allocation16 + $0x290] sm:$0xff] }
 0x43a   :  { %4067 = vmatmul.mubr.f32.gmra.mrb[56].mxu1 %v3163_v49  ;;  %3750 = vmatprep.mubr.f32.mxu0 %v3168_v63  ;;  %v5000_v49 = vld [vmem:[#allocation16 + $0x1a8] sm:$0xff]  ;;  %v7388_v18 = vpack.c.bf16 %v5034_v24, %v5030_v26  ;;  %v5033_v9 = vld [vmem:[#allocation16 + $0x2b0] sm:$0xff]  ;;  %v5066_v27 = vld [vmem:[#allocation16 + $0x3b8] sm:$0xff] }
 0x43b   :  { %4072 = vmatprep.mubr.f32.mxu1 %v3168_v63  ;;  %7369 = vmatprep.subr.bf16.mxu1 %v7368_v38  ;;  %v7244_v34 = vpack.c.bf16 %v5000_v49, %v4996_v52  ;;  %v5002_v63 = vld [vmem:[#allocation16 + $0x1b8] sm:$0xff]  ;;  %v5031_v38 = vld [vmem:[#allocation16 + $0x2a0] sm:$0xff]  ;;  %v5036_v55 = vld [vmem:[#allocation16 + $0x2c8] sm:$0xff] }
 0x43c   :  { %7243 = vmatpush1.bf16.msra.mxu0 %v7242_v20  ;;  %7371 = vmatpush1.bf16.msra.mxu1 %v7370_v11  ;;  %v7372_v54 = vpack.c.bf16 %v5002_v63, %v4998_v50  ;;  %v7262_v59 = vpack.c.bf16 %v5031_v38, %v5027_v8  ;;  %v7390_v20 = vpack.c.bf16 %v5033_v9, %v5029_v47  ;;  %v5040_v11 = vld [vmem:[#allocation16 + $0x2e8] sm:$0xff]  ;;  %v5038_v52 = vld [vmem:[#allocation16 + $0x2d8] sm:$0xff]  ;;  %v5035_v63 = vld [vmem:[#allocation16 + $0x2c0] sm:$0xff] }
 0x43d   :  { %3751 = vmatmul.mubr.f32.gmra.mrb[58].mxu0 %v3167_v51  ;;  %7245 = vmatprep.subr.bf16.mxu0 %v7244_v34  ;;  %v7264_v49 = vpack.c.bf16 %v5040_v11, %v5036_v55  ;;  %v5042_v50 = vld [vmem:[#allocation16 + $0x2f8] sm:$0xff]  ;;  %v5063_v36 = vld [vmem:[#allocation16 + $0x3a0] sm:$0xff]  ;;  %v5061_v12 = vld [vmem:[#allocation16 + $0x390] sm:$0xff] }
 0x43e   :  { %4073 = vmatmul.mubr.f32.gmra.mrb[58].mxu1 %v3167_v51  ;;  %3756 = vmatprep.mubr.f32.mxu0 %v3172_v19  ;;  %v4999_v51 = vld [vmem:[#allocation16 + $0x1a0] sm:$0xff]  ;;  %v7392_v34 = vpack.c.bf16 %v5042_v50, %v5038_v52  ;;  %v5065_v56 = vld [vmem:[#allocation16 + $0x3b0] sm:$0xff]  ;;  %v5068_v61 = vld [vmem:[#allocation16 + $0x3c8] sm:$0xff] }
 0x43f   :  { %4078 = vmatprep.mubr.f32.mxu1 %v3172_v19  ;;  %v7246_v57 = vpack.c.bf16 %v4999_v51, %v4995_v48  ;;  %v5001_v19 = vld [vmem:[#allocation16 + $0x1b0] sm:$0xff]  ;;  %7373 = vmatprep.subr.bf16.mxu1 %v7372_v54  ;;  %v5039_v54 = vld [vmem:[#allocation16 + $0x2e0] sm:$0xff]  ;;  %v5070_v28 = vld [vmem:[#allocation16 + $0x3d8] sm:$0xff] }
 0x440   :  { %v7374_v7 = vpack.c.bf16 %v5001_v19, %v4997_v14  ;;  %v5037_v48 = vld [vmem:[#allocation16 + $0x2d0] sm:$0xff]  ;;  %v7266_v51 = vpack.c.bf16 %v5039_v54, %v5035_v63  ;;  %v5044_v19 = vld [vmem:[#allocation16 + $0x308] sm:$0xff]  ;;  %v5074_v26 = vld [vmem:[#allocation16 + $0x3f8] sm:$0xff] }
 0x441   :  { %3757 = vmatmul.mubr.f32.gmra.mrb[60].mxu0 %v3171_v16  ;;  %v5041_v14 = vld [vmem:[#allocation16 + $0x2f0] sm:$0xff]  ;;  %v5067_v24 = vld [vmem:[#allocation16 + $0x3c0] sm:$0xff]  ;;  %v3449_v9 = vld [vmem:[#allocation13] sm:$0xf] }
 0x442   :  { %4079 = vmatmul.mubr.f32.gmra.mrb[60].mxu1 %v3171_v16  ;;  %3762 = vmatprep.mubr.f32.mxu0 %v3176_v42  ;;  %v5008_v16 = vld [vmem:[#allocation16 + $0x1e8] sm:$0xff]  ;;  %v5069_v8 = vld [vmem:[#allocation16 + $0x3d0] sm:$0xff]  ;;  %v9954_v55 = vrot.slane %v3449_v9, %v8636_v17  ;;  %v10736_v11 = vld [vmem:[#allocation33_spill] sm:$0xff] }
 0x443   :  { %4084 = vmatprep.mubr.f32.mxu1 %v3176_v42  ;;  %7247 = vmatpush1.bf16.msra.mxu0 %v7246_v57  ;;  %v7248_v5 = vpack.c.bf16 %v5008_v16, %v5004_v37  ;;  %v5010_v42 = vld [vmem:[#allocation16 + $0x1f8] sm:$0xff]  ;;  %v7394_v57 = vpack.c.bf16 %v5041_v14, %v5037_v48  ;;  %v5073_v47 = vld [vmem:[#allocation16 + $0x3f0] sm:$0xff]  ;;  %v9957_v52 = vrot.slane %v3449_v9, %v10736_v11 }
 0x444   :  { %7375 = vmatpush1.bf16.msra.mxu1 %v7374_v7  ;;  %v7376_v0 = vpack.c.bf16 %v5010_v42, %v5006_v30  ;;  %v5048_v7 = vld [vmem:[#allocation16 + $0x328] sm:$0xff]  ;;  %v5046_v37 = vld [vmem:[#allocation16 + $0x318] sm:$0xff]  ;;  %v5047_v42 = vld [vmem:[#allocation16 + $0x320] sm:$0xff] }
 0x445   :  { %3763 = vmatmul.mubr.f32.gmra.mrb[62].mxu0 %v3175_v46  ;;  %7249 = vmatprep.subr.bf16.mxu0 %v7248_v5  ;;  %v7268_v16 = vpack.c.bf16 %v5048_v7, %v5044_v19  ;;  %v5050_v30 = vld [vmem:[#allocation16 + $0x338] sm:$0xff]  ;;  %v5043_v5 = vld [vmem:[#allocation16 + $0x300] sm:$0xff] }
 0x446   :  { %4085 = vmatmul.mubr.f32.gmra.mrb[62].mxu1 %v3175_v46  ;;  %3768 = vmatprep.mubr.f32.mxu0 %v3180_v39  ;;  %v5007_v46 = vld [vmem:[#allocation16 + $0x1e0] sm:$0xff] }
 0x447   :  { %4090 = vmatprep.mubr.f32.mxu1 %v3180_v39  ;;  %7377 = vmatprep.subr.bf16.mxu1 %v7376_v0  ;;  %v7250_v25 = vpack.c.bf16 %v5007_v46, %v5003_v21  ;;  %v5009_v39 = vld [vmem:[#allocation16 + $0x1f0] sm:$0xff]  ;;  %v7396_v0 = vpack.c.bf16 %v5050_v30, %v5046_v37  ;;  %v7270_v21 = vpack.c.bf16 %v5047_v42, %v5043_v5 }
 0x448   :  { %v7378_v53 = vpack.c.bf16 %v5009_v39, %v5005_v1  ;;  %v5045_v46 = vld [vmem:[#allocation16 + $0x310] sm:$0xff]  ;;  %v5052_v39 = vld [vmem:[#allocation16 + $0x348] sm:$0xff] }
 0x449   :  { %3769 = vmatmul.mubr.f32.gmra.mrb[64].mxu0 %v3179_v33  ;;  %v5049_v1 = vld [vmem:[#allocation16 + $0x330] sm:$0xff] }
 0x44a   :  { %4091 = vmatmul.mubr.f32.gmra.mrb[64].mxu1 %v3179_v33  ;;  %3774 = vmatprep.mubr.f32.mxu0 %v3184_v35  ;;  %v5016_v33 = vld [vmem:[#allocation16 + $0x228] sm:$0xff] }
 0x44b   :  { %4096 = vmatprep.mubr.f32.mxu1 %v3184_v35  ;;  %7251 = vmatpush1.bf16.msra.mxu0 %v7250_v25  ;;  %v7252_v62 = vpack.c.bf16 %v5016_v33, %v5012_v15  ;;  %v5018_v35 = vld [vmem:[#allocation16 + $0x238] sm:$0xff]  ;;  %v7398_v25 = vpack.c.bf16 %v5049_v1, %v5045_v46 }
 0x44c   :  { %7379 = vmatpush1.bf16.msra.mxu1 %v7378_v53  ;;  %v7380_v60 = vpack.c.bf16 %v5018_v35, %v5014_v6  ;;  %v5056_v53 = vld [vmem:[#allocation16 + $0x368] sm:$0xff]  ;;  %v5054_v15 = vld [vmem:[#allocation16 + $0x358] sm:$0xff]  ;;  %v5055_v35 = vld [vmem:[#allocation16 + $0x360] sm:$0xff] }
 0x44d   :  { %3775 = vmatmul.mubr.f32.gmra.mrb[66].mxu0 %v3183_v2  ;;  %7253 = vmatprep.subr.bf16.mxu0 %v7252_v62  ;;  %v7272_v33 = vpack.c.bf16 %v5056_v53, %v5052_v39  ;;  %v5058_v6 = vld [vmem:[#allocation16 + $0x378] sm:$0xff]  ;;  %v5051_v62 = vld [vmem:[#allocation16 + $0x340] sm:$0xff] }
 0x44e   :  { %4097 = vmatmul.mubr.f32.gmra.mrb[66].mxu1 %v3183_v2  ;;  %3780 = vmatprep.mubr.f32.mxu0 %v3188_v22  ;;  %v5015_v2 = vld [vmem:[#allocation16 + $0x220] sm:$0xff] }
 0x44f   :  { %4102 = vmatprep.mubr.f32.mxu1 %v3188_v22  ;;  %7381 = vmatprep.subr.bf16.mxu1 %v7380_v60  ;;  %v7254_v22 = vpack.c.bf16 %v5015_v2, %v5011_v40  ;;  %v7400_v60 = vpack.c.bf16 %v5058_v6, %v5054_v15  ;;  %v7274_v40 = vpack.c.bf16 %v5055_v35, %v5051_v62  ;;  %v5053_v2 = vld [vmem:[#allocation16 + $0x350] sm:$0xff] }
 0x451   :  { %3781 = vmatmul.mubr.f32.gmra.mrb[68].mxu0 %v3187_v31 }
 0x452   :  { %4103 = vmatmul.mubr.f32.gmra.mrb[68].mxu1 %v3187_v31  ;;  %3786 = vmatprep.mubr.f32.mxu0 %v3192_v29  ;;  %v7382_v31 = vpack.c.bf16 %v5017_v45, %v5013_v4  ;;  %v5057_v4 = vld [vmem:[#allocation16 + $0x370] sm:$0xff]  ;;  %v5060_v45 = vld [vmem:[#allocation16 + $0x388] sm:$0xff] }
 0x453   :  { %4108 = vmatprep.mubr.f32.mxu1 %v3192_v29  ;;  %7255 = vmatpush1.bf16.msra.mxu0 %v7254_v22  ;;  %v5020_v29 = vld [vmem:[#allocation16 + $0x248] sm:$0xff]  ;;  %v7402_v22 = vpack.c.bf16 %v5057_v4, %v5053_v2 }
 0x454   :  { %7383 = vmatpush1.bf16.msra.mxu1 %v7382_v31  ;;  %v5064_v31 = vld [vmem:[#allocation16 + $0x3a8] sm:$0xff] }
 0x455   :  { %3787 = vmatmul.mubr.f32.gmra.mrb[70].mxu0 %v3191_v58  ;;  %7385 = vmatprep.subr.bf16.mxu1 %v7384_v3 }
 0x456   :  { %4109 = vmatmul.mubr.f32.gmra.mrb[70].mxu1 %v3191_v58  ;;  %v5024_v58 = vld [vmem:[#allocation16 + $0x268] sm:$0xff] }
 0x457   :  { %v7256_v10 = vpack.c.bf16 %v5024_v58, %v5020_v29  ;;  %v5062_v29 = vld [vmem:[#allocation16 + $0x398] sm:$0xff]  ;;  %v7276_v58 = vpack.c.bf16 %v5064_v31, %v5060_v45 }
 0x458   :  { %7387 = vmatpush1.bf16.msra.mxu1 %v7386_v44  ;;  %v7404_v3 = vpack.c.bf16 %v5066_v27, %v5062_v29  ;;  %v5072_v44 = vld [vmem:[#allocation16 + $0x3e8] sm:$0xff] }
 0x459   :  { %7257 = vmatprep.subr.bf16.mxu0 %v7256_v10  ;;  %7389 = vmatprep.subr.bf16.mxu1 %v7388_v18  ;;  %v5059_v10 = vld [vmem:[#allocation16 + $0x380] sm:$0xff]  ;;  %v7280_v41 = vpack.c.bf16 %v5072_v44, %v5068_v61 }
 0x45a   :  { %7259 = vmatpush1.bf16.msra.mxu0 %v7258_v23  ;;  %v7278_v32 = vpack.c.bf16 %v5063_v36, %v5059_v10  ;;  %v7406_v23 = vpack.c.bf16 %v5065_v56, %v5061_v12  ;;  %v5071_v18 = vld [vmem:[#allocation16 + $0x3e0] sm:$0xff] }
 0x45b   :  { %7261 = vmatprep.subr.bf16.mxu0 %v7260_v43  ;;  %v7408_v43 = vpack.c.bf16 %v5074_v26, %v5070_v28  ;;  %v7282_v38 = vpack.c.bf16 %v5071_v18, %v5067_v24 }
 0x45c   :  { %7391 = vmatpush1.bf16.msra.mxu1 %v7390_v20  ;;  %v9951_v20 = vrot.slane %v3449_v9, %v8634_v13 }
 0x45d   :  { %7393 = vmatprep.subr.bf16.mxu1 %v7392_v34 }
 0x45e   :  { %7263 = vmatpush1.bf16.msra.mxu0 %v7262_v59  ;;  %v7410_v59 = vpack.c.bf16 %v5073_v47, %v5069_v8 }
 0x45f   :  { %7265 = vmatprep.subr.bf16.mxu0 %v7264_v49  ;;  %v10737_v49 = vld [vmem:[#allocation34_spill] sm:$0xff] }
 0x460   :  { %7395 = vmatpush1.bf16.msra.mxu1 %v7394_v57  ;;  %v9960_v50 = vrot.slane %v3449_v9, %v10737_v49 }
 0x461   :  { %7397 = vmatprep.subr.bf16.mxu1 %v7396_v0 }
 0x462   :  { %7267 = vmatpush1.bf16.msra.mxu0 %v7266_v51 }
 0x463   :  { %7269 = vmatprep.subr.bf16.mxu0 %v7268_v16 }
 0x464   :  { %7399 = vmatpush1.bf16.msra.mxu1 %v7398_v25 }
 0x465   :  { %7401 = vmatprep.subr.bf16.mxu1 %v7400_v60 }
 0x466   :  { %7271 = vmatpush1.bf16.msra.mxu0 %v7270_v21 }
 0x467   :  { %7273 = vmatprep.subr.bf16.mxu0 %v7272_v33 }
 0x468   :  { %7403 = vmatpush1.bf16.msra.mxu1 %v7402_v22 }
 0x469   :  { %7405 = vmatprep.subr.bf16.mxu1 %v7404_v3 }
 0x46a   :  { %7275 = vmatpush1.bf16.msra.mxu0 %v7274_v40 }
 0x46b   :  { %7277 = vmatprep.subr.bf16.mxu0 %v7276_v58 }
 0x46c   :  { %7407 = vmatpush1.bf16.msra.mxu1 %v7406_v23 }
 0x46d   :  { %7409 = vmatprep.subr.bf16.mxu1 %v7408_v43 }
 0x46e   :  { %7279 = vmatpush1.bf16.msra.mxu0 %v7278_v32 }
 0x46f   :  { %7281 = vmatprep.subr.bf16.mxu0 %v7280_v41 }
 0x470   :  { %7411 = vmatpush1.bf16.msra.mxu1 %v7410_v59 }
 0x472   :  { %7283 = vmatpush1.bf16.msra.mxu0 %v7282_v38 }
 0x4ec   :  { %v3698_v34 = vpop.f32.mrb[40].mxu0 }
 0x4ed   :  { %v7796_v63 = vadd.f32 %v3698_v34, %v9951_v20  ;;  %v4020_v54 = vpop.f32.mrb[40].mxu1  ;;  %v3700_v48 = vpop.f32.mrb[41].mxu0 }
 0x4ee   :  { %v7828_v51 = vadd.f32 %v4020_v54, %v9954_v55  ;;  %v7797_v14 = vadd.f32 %v3700_v48, %v9957_v52  ;;  %v4022_v57 = vpop.f32.mrb[41].mxu1 }
 0x4ef   :  { %vm4115_vm0 = vcmp.gt.f32.partialorder %v7796_v63, 0.0  ;;  %v4179_v19 = vmul.f32 0.2, %v7796_v63  ;;  %v7829_v7 = vadd.f32 %v4022_v57, %v9960_v50 }
 0x4f0   :  { %vm4117_vm1 = vcmp.gt.f32.partialorder %v7828_v51, 0.0  ;;  %v4181_v37 = vmul.f32 0.2, %v7828_v51  ;;  %vm4116_vm2 = vcmp.gt.f32.partialorder %v7797_v14, 0.0  ;;  %v4180_v16 = vmul.f32 0.2, %v7797_v14 }
 0x4f1   :  { %v4243_v30 = vsel %vm4115_vm0, %v7796_v63, %v4179_v19  ;;  %vm4118_vm3 = vcmp.gt.f32.partialorder %v7829_v7, 0.0  ;;  %v4182_v5 = vmul.f32 0.2, %v7829_v7  ;;  %v3704_v42 = vpop.f32.mrb[42].mxu0  ;;  %v4026_v0 = vpop.f32.mrb[42].mxu1 }
 0x4f2   :  { %v4307_v21 = vrot.slane %v4243_v30, 4  ;;  %v4245_v46 = vsel %vm4117_vm1, %v7828_v51, %v4181_v37  ;;  %v4244_v1 = vsel %vm4116_vm2, %v7797_v14, %v4180_v16  ;;  %v7798_v25 = vadd.f32 %v3704_v42, %v9951_v20  ;;  %v3706_v39 = vpop.f32.mrb[43].mxu0  ;;  %v4028_v53 = vpop.f32.mrb[43].mxu1 }
 0x4f3   :  { %v4319_v15 = vrot.slane %v4245_v46, 4  ;;  %v4313_v33 = vrot.slane %v4244_v1, 4  ;;  %v4246_v6 = vsel %vm4118_vm3, %v7829_v7, %v4182_v5  ;;  %v7830_v62 = vadd.f32 %v4026_v0, %v9954_v55 }
 0x4f4   :  { %v4308_v35 = vadd.f32 %v4307_v21, %v4243_v30  ;;  %v4325_v60 = vrot.slane %v4246_v6, 4  ;;  %vm4119_vm4 = vcmp.gt.f32.partialorder %v7798_v25, 0.0  ;;  %v4183_v40 = vmul.f32 0.2, %v7798_v25  ;;  %v3710_v2 = vpop.f32.mrb[44].mxu0 }
 0x4f5   :  { %v4320_v4 = vadd.f32 %v4319_v15, %v4245_v46  ;;  %v4314_v22 = vadd.f32 %v4313_v33, %v4244_v1  ;;  %vm4121_vm5 = vcmp.gt.f32.partialorder %v7830_v62, 0.0  ;;  %v4185_v45 = vmul.f32 0.2, %v7830_v62  ;;  %v4032_v31 = vpop.f32.mrb[44].mxu1  ;;  %v9968_v29 = vpop.f32.mrb[45].mxu0 }
 0x4f6   :  { %v4309_v58 = vrot.slane %v4308_v35, 2  ;;  %v4326_v27 = vadd.f32 %v4325_v60, %v4246_v6  ;;  %v4247_v10 = vsel %vm4119_vm4, %v7798_v25, %v4183_v40  ;;  %v7799_v36 = vadd.f32 %v3706_v39, %v9957_v52  ;;  %v9971_v3 = vpop.f32.mrb[45].mxu1 }
 0x4f7   :  { %v4321_v32 = vrot.slane %v4320_v4, 2  ;;  %v4315_v12 = vrot.slane %v4314_v22, 2  ;;  %v4331_v56 = vrot.slane %v4247_v10, 4  ;;  %v4249_v23 = vsel %vm4121_vm5, %v7830_v62, %v4185_v45 }
 0x4f8   :  { %v4310_v61 = vadd.f32 %v4309_v58, %v4308_v35  ;;  %v4343_v44 = vrot.slane %v4249_v23, 4  ;;  %vm4120_vm6 = vcmp.gt.f32.partialorder %v7799_v36, 0.0  ;;  %v9973_v28 = vpop.f32.mrb[46].mxu0  ;;  %v4327_v26 = vrot.slane %v4326_v27, 2 }
 0x4f9   :  { %v4322_v41 = vadd.f32 %v4321_v32, %v4320_v4  ;;  %v4332_v43 = vadd.f32 %v4331_v56, %v4247_v10  ;;  %v4184_v24 = vmul.f32 0.2, %v7799_v36  ;;  %v9975_v18 = vpop.f32.mrb[46].mxu1  ;;  %v9977_v8 = vpop.f32.mrb[47].mxu0  ;;  %v4316_v38 = vadd.f32 %v4315_v12, %v4314_v22 }
 0x4fa   :  { %v4344_v47 = vadd.f32 %v4343_v44, %v4249_v23  ;;  %v7831_v59 = vadd.f32 %v4028_v53, %v9960_v50  ;;  %v9980_v9 = vpop.f32.mrb[47].mxu1  ;;  %v4311_v34 = vrot.slane %v4310_v61, 1  ;;  %v4328_v19 = vadd.f32 %v4327_v26, %v4326_v27 }
 0x4fb   :  { %v4333_v63 = vrot.slane %v4332_v43, 2  ;;  %v4248_v54 = vsel %vm4120_vm6, %v7799_v36, %v4184_v24  ;;  %v4323_v48 = vrot.slane %v4322_v41, 1  ;;  %v4317_v30 = vrot.slane %v4316_v38, 1 }
 0x4fc   :  { %v4345_v51 = vrot.slane %v4344_v47, 2  ;;  %v4337_v14 = vrot.slane %v4248_v54, 4  ;;  %v9982_v57 = vpop.f32.mrb[48].mxu0  ;;  %vm4122_vm8 = vcmp.gt.f32.partialorder %v7831_v59, 0.0  ;;  %v4186_v0 = vmul.f32 0.2, %v7831_v59 }
 0x4fd   :  { %v4334_v7 = vadd.f32 %v4333_v63, %v4332_v43  ;;  %v9984_v37 = vpop.f32.mrb[48].mxu1  ;;  %v9986_v16 = vpop.f32.mrb[49].mxu0  ;;  %v4312_v46 = vadd.f32 %v4311_v34, %v4310_v61  ;;  %v7800_v25 = vadd.f32 %v3710_v2, %v9951_v20  ;;  %v7832_v39 = vadd.f32 %v4032_v31, %v9954_v55 }
 0x4fe   :  { %v4346_v5 = vadd.f32 %v4345_v51, %v4344_v47  ;;  %v4338_v42 = vadd.f32 %v4337_v14, %v4248_v54  ;;  %v9988_v21 = vpop.f32.mrb[49].mxu1  ;;  %v4324_v53 = vadd.f32 %v4323_v48, %v4322_v41  ;;  %v4250_v6 = vsel %vm4122_vm8, %v7831_v59, %v4186_v0 }
 0x4ff   :  { %v4335_v1 = vrot.slane %v4334_v7, 1  ;;  %v4349_v60 = vrot.slane %v4250_v6, 4  ;;  %vm4123_vm9 = vcmp.gt.f32.partialorder %v7800_v25, 0.0  ;;  %v4187_v40 = vmul.f32 0.2, %v7800_v25 }
 0x500   :  { %v4347_v15 = vrot.slane %v4346_v5, 1  ;;  %v4339_v33 = vrot.slane %v4338_v42, 2  ;;  %v9992_v62 = vpop.f32.mrb[50].mxu0  ;;  %vm4125_vm10 = vcmp.gt.f32.partialorder %v7832_v39, 0.0  ;;  %v4189_v2 = vmul.f32 0.2, %v7832_v39 }
 0x501   :  { %v4336_v35 = vadd.f32 %v4335_v1, %v4334_v7  ;;  %v9994_v4 = vpop.f32.mrb[50].mxu1  ;;  %v9996_v22 = vpop.f32.mrb[51].mxu0  ;;  %v4350_v10 = vadd.f32 %v4349_v60, %v4250_v6  ;;  %v4251_v36 = vsel %vm4123_vm9, %v7800_v25, %v4187_v40  ;;  %v4318_v44 = vadd.f32 %v4317_v30, %v4316_v38 }
 0x502   :  { %v4348_v45 = vadd.f32 %v4347_v15, %v4346_v5  ;;  %v4340_v58 = vadd.f32 %v4339_v33, %v4338_v42  ;;  %v9998_v27 = vpop.f32.mrb[51].mxu1  ;;  %v4355_v56 = vrot.slane %v4251_v36, 4  ;;  %v4253_v23 = vsel %vm4125_vm10, %v7832_v39, %v4189_v2 }
 0x503   :  { %v5268_v31 = vsel %vm5267_vm7, %v4336_v35, %v4312_v46  ;;  %v4329_v41 = vrot.slane %v4328_v19, 1  ;;  %v4351_v26 = vrot.slane %v4350_v10, 2  ;;  %v4367_v43 = vrot.slane %v4253_v23, 4 }
 0x504   :  { %v5288_v32 = vsel %vm5267_vm7, %v4348_v45, %v4324_v53  ;;  %v4341_v12 = vrot.slane %v4340_v58, 1  ;;  %v10002_v61 = vpop.f32.mrb[52].mxu0  ;;  %v4356_v59 = vadd.f32 %v4355_v56, %v4251_v36  ;;  %v7801_v34 = vadd.f32 %v9968_v29, %v9957_v52 }
 0x505   :  { %v10004_v24 = vpop.f32.mrb[52].mxu1  ;;  %v7802_v63 = vadd.f32 %v9973_v28, %v9951_v20  ;;  %v10010_v54 = vpop.f32.mrb[53].mxu0  ;;  %v4352_v51 = vadd.f32 %v4351_v26, %v4350_v10  ;;  %v4368_v14 = vadd.f32 %v4367_v43, %v4253_v23  ;;  %v7834_v38 = vadd.f32 %v9975_v18, %v9954_v55 }
 0x506   :  { %v4342_v47 = vadd.f32 %v4341_v12, %v4340_v58  ;;  %v10012_v48 = vpop.f32.mrb[53].mxu1  ;;  %v4357_v30 = vrot.slane %v4356_v59, 2  ;;  %v4330_v42 = vadd.f32 %v4329_v41, %v4328_v19  ;;  %v4188_v25 = vmul.f32 0.2, %v7801_v34 }
 0x507   :  { %v4353_v29 = vrot.slane %v4352_v51, 1  ;;  %v4369_v0 = vrot.slane %v4368_v14, 2  ;;  %vm4127_vm11 = vcmp.gt.f32.partialorder %v7802_v63, 0.0  ;;  %v7833_v39 = vadd.f32 %v9971_v3, %v9960_v50 }
 0x508   :  { %v10017_v7 = vsel %vm5267_vm7, %v4342_v47, %v4318_v44  ;;  %v10019_v5 = vpop.f32.mrb[54].mxu0  ;;  %v4358_v1 = vadd.f32 %v4357_v30, %v4356_v59  ;;  %v4191_v18 = vmul.f32 0.2, %v7802_v63  ;;  %vm4129_vm12 = vcmp.gt.f32.partialorder %v7834_v38, 0.0 }
 0x509   :  { %10738 = vst [vmem:[#allocation36_spill] sm:$0xff] %v10017_v7  ;;  %v10021_v28 = vpop.f32.mrb[54].mxu1  ;;  %v10023_v46 = vpop.f32.mrb[55].mxu0  ;;  %v4354_v15 = vadd.f32 %v4353_v29, %v4352_v51  ;;  %v4370_v33 = vadd.f32 %v4369_v0, %v4368_v14  ;;  %v4193_v6 = vmul.f32 0.2, %v7834_v38  ;;  %vm4124_vm14 = vcmp.gt.f32.partialorder %v7801_v34, 0.0 }
 0x50a   :  { %v10027_v53 = vpop.f32.mrb[55].mxu1  ;;  %v4359_v19 = vrot.slane %v4358_v1, 1  ;;  %v4255_v35 = vsel %vm4127_vm11, %v7802_v63, %v4191_v18  ;;  %v7803_v3 = vadd.f32 %v9977_v8, %v9957_v52  ;;  %v4190_v12 = vmul.f32 0.2, %v7833_v39 }
 0x50b   :  { %v10032_v40 = vsel %vm5267_vm7, %v4354_v15, %v4330_v42  ;;  %v4371_v45 = vrot.slane %v4370_v33, 1  ;;  %v4379_v58 = vrot.slane %v4255_v35, 4  ;;  %v4257_v56 = vsel %vm4129_vm12, %v7834_v38, %v4193_v6 }
 0x50c   :  { %v10029_v60 = vpop.f32.mrb[56].mxu0  ;;  %10739 = vst [vmem:[#allocation45_spill] sm:$0xff] %v10032_v40  ;;  %v4360_v36 = vadd.f32 %v4359_v19, %v4358_v1  ;;  %v4252_v41 = vsel %vm4124_vm14, %v7801_v34, %v4188_v25  ;;  %v4391_v43 = vrot.slane %v4257_v56, 4  ;;  %vm4126_vm15 = vcmp.gt.f32.partialorder %v7833_v39, 0.0 }
 0x50d   :  { %v10036_v2 = vpop.f32.mrb[56].mxu1  ;;  %v10038_v10 = vpop.f32.mrb[57].mxu0  ;;  %v4372_v44 = vadd.f32 %v4371_v45, %v4370_v33  ;;  %v4380_v26 = vadd.f32 %v4379_v58, %v4255_v35  ;;  %v4192_v14 = vmul.f32 0.2, %v7803_v3  ;;  %v4361_v38 = vrot.slane %v4252_v41, 4 }
 0x50e   :  { %v10040_v23 = vpop.f32.mrb[57].mxu1  ;;  %v5270_v47 = vsel %vm5269_vm13, %v4360_v36, %v5268_v31  ;;  %v4392_v51 = vadd.f32 %v4391_v43, %v4257_v56  ;;  %vm4128_vm0 = vcmp.gt.f32.partialorder %v7803_v3, 0.0  ;;  %v4254_v34 = vsel %vm4126_vm15, %v7833_v39, %v4190_v12 }
 0x50f   :  { %v5289_v8 = vsel %vm5269_vm13, %v4372_v44, %v5288_v32  ;;  %v4381_v63 = vrot.slane %v4380_v26, 2  ;;  %v7835_v31 = vadd.f32 %v9980_v9, %v9960_v50  ;;  %v7804_v32 = vadd.f32 %v9982_v57, %v9951_v20 }
 0x510   :  { %v10043_v59 = vpop.f32.mrb[58].mxu0  ;;  %v4393_v1 = vrot.slane %v4392_v51, 2  ;;  %v4256_v33 = vsel %vm4128_vm0, %v7803_v3, %v4192_v14  ;;  %v7836_v6 = vadd.f32 %v9984_v37, %v9954_v55  ;;  %v4373_v39 = vrot.slane %v4254_v34, 4 }
 0x511   :  { %v10046_v30 = vpop.f32.mrb[58].mxu1  ;;  %v10048_v42 = vpop.f32.mrb[59].mxu0  ;;  %v4382_v0 = vadd.f32 %v4381_v63, %v4380_v26  ;;  %vm5271_vm1 = vcmask 1043459   ;;  %v7805_v9 = vadd.f32 %v9986_v16, %v9957_v52  ;;  %v4362_v45 = vadd.f32 %v4361_v38, %v4252_v41 }
 0x512   :  { %v10050_v29 = vpop.f32.mrb[59].mxu1  ;;  %v4394_v15 = vadd.f32 %v4393_v1, %v4392_v51  ;;  %vm4130_vm2 = vcmp.gt.f32.partialorder %v7835_v31, 0.0  ;;  %v4385_v12 = vrot.slane %v4256_v33, 4  ;;  %v4194_v3 = vmul.f32 0.2, %v7835_v31 }
 0x513   :  { %v4383_v18 = vrot.slane %v4382_v0, 1  ;;  %v4195_v56 = vmul.f32 0.2, %v7804_v32  ;;  %vm4131_vm3 = vcmp.gt.f32.partialorder %v7804_v32, 0.0  ;;  %v4197_v43 = vmul.f32 0.2, %v7836_v6 }
 0x514   :  { %v10056_v25 = vpop.f32.mrb[60].mxu0  ;;  %v4395_v57 = vrot.slane %v4394_v15, 1  ;;  %v4374_v41 = vadd.f32 %v4373_v39, %v4254_v34  ;;  %vm4133_vm4 = vcmp.gt.f32.partialorder %v7836_v6, 0.0  ;;  %v4196_v51 = vmul.f32 0.2, %v7805_v9 }
 0x515   :  { %v10060_v19 = vpop.f32.mrb[60].mxu1  ;;  %v10062_v35 = vpop.f32.mrb[61].mxu0  ;;  %v4384_v58 = vadd.f32 %v4383_v18, %v4382_v0  ;;  %v7837_v14 = vadd.f32 %v9988_v21, %v9960_v50  ;;  %v4363_v0 = vrot.slane %v4362_v45, 2  ;;  %vm4132_vm5 = vcmp.gt.f32.partialorder %v7805_v9, 0.0 }
 0x516   :  { %v10066_v36 = vpop.f32.mrb[61].mxu1  ;;  %v4396_v26 = vadd.f32 %v4395_v57, %v4394_v15  ;;  %v4258_v18 = vsel %vm4130_vm2, %v7835_v31, %v4194_v3  ;;  %v4259_v15 = vsel %vm4131_vm3, %v7804_v32, %v4195_v56  ;;  %v4261_v57 = vsel %vm4133_vm4, %v7836_v6, %v4197_v43 }
 0x517   :  { %v10071_v37 = vsel %vm5271_vm1, %v4384_v58, %v5270_v47  ;;  %v4386_v47 = vadd.f32 %v4385_v12, %v4256_v33  ;;  %v4198_v34 = vmul.f32 0.2, %v7837_v14  ;;  %v7806_v39 = vadd.f32 %v9992_v62, %v9951_v20 }
 0x518   :  { %v10068_v44 = vpop.f32.mrb[62].mxu0  ;;  %10740 = vst [vmem:[#allocation38_spill] sm:$0xff] %v10071_v37  ;;  %v10082_v1 = vsel %vm5271_vm1, %v4396_v26, %v5289_v8  ;;  %v4375_v17 = vrot.slane %v4374_v41, 2  ;;  %v4260_v11 = vsel %vm4132_vm5, %v7805_v9, %v4196_v51  ;;  %vm4134_vm6 = vcmp.gt.f32.partialorder %v7837_v14, 0.0 }
 0x519   :  { %v10073_v63 = vpop.f32.mrb[62].mxu1  ;;  %v10075_v16 = vpop.f32.mrb[63].mxu0  ;;  %10744 = vst [vmem:[#allocation48_spill] sm:$0xff] %v10082_v1  ;;  %v7838_v8 = vadd.f32 %v9994_v4, %v9954_v55  ;;  %v10097_v31 = vadd.f32 %v4363_v0, %v4362_v45  ;;  %v4397_v32 = vrot.slane %v4258_v18, 4  ;;  %v4403_v6 = vrot.slane %v4259_v15, 4 }
 0x51a   :  { %10741 = vst [vmem:[#allocation37_spill] sm:$0xff] %v10073_v63  ;;  %10742 = vst [vmem:[#allocation40_spill] sm:$0xff] %v10075_v16  ;;  %v10079_v38 = vpop.f32.mrb[63].mxu1  ;;  %vm4135_vm8 = vcmp.gt.f32.partialorder %v7806_v39, 0.0  ;;  %v4387_v12 = vrot.slane %v4386_v47, 2  ;;  %v4415_v3 = vrot.slane %v4261_v57, 4  ;;  %v4262_v43 = vsel %vm4134_vm6, %v7837_v14, %v4198_v34 }
 0x51b   :  { %10743 = vst [vmem:[#allocation39_spill] sm:$0xff] %v10079_v38  ;;  %v4199_v62 = vmul.f32 0.2, %v7806_v39  ;;  %vm4137_vm9 = vcmp.gt.f32.partialorder %v7838_v8, 0.0  ;;  %v4409_v26 = vrot.slane %v4260_v11, 4  ;;  %v7807_v51 = vadd.f32 %v9996_v22, %v9957_v52 }
 0x51c   :  { %v10085_v58 = vpop.f32.mrb[64].mxu0  ;;  %v4201_v9 = vmul.f32 0.2, %v7838_v8  ;;  %v7839_v0 = vadd.f32 %v9998_v27, %v9960_v50  ;;  %v4376_v40 = vadd.f32 %v4375_v17, %v4374_v41  ;;  %v4398_v37 = vadd.f32 %v4397_v32, %v4258_v18 }
 0x51d   :  { %10745 = vst [vmem:[#allocation42_spill] sm:$0xff] %v10085_v58  ;;  %v10089_v49 = vpop.f32.mrb[64].mxu1  ;;  %v10091_v21 = vpop.f32.mrb[65].mxu0  ;;  %v4263_v45 = vsel %vm4135_vm8, %v7806_v39, %v4199_v62  ;;  %v4365_v14 = vrot.slane %v10097_v31, 1  ;;  %v4416_v34 = vadd.f32 %v4415_v3, %v4261_v57  ;;  %vm4136_vm10 = vcmp.gt.f32.partialorder %v7807_v51, 0.0 }
 0x51e   :  { %10746 = vst [vmem:[#allocation41_spill] sm:$0xff] %v10089_v49  ;;  %10747 = vst [vmem:[#allocation47_spill] sm:$0xff] %v10091_v21  ;;  %v10095_v33 = vpop.f32.mrb[65].mxu1  ;;  %v4421_v21 = vrot.slane %v4262_v43, 4  ;;  %v4410_v7 = vadd.f32 %v4409_v26, %v4260_v11  ;;  %v4200_v39 = vmul.f32 0.2, %v7807_v51  ;;  %v7808_v41 = vadd.f32 %v10002_v61, %v9951_v20 }
 0x51f   :  { %10748 = vst [vmem:[#allocation46_spill] sm:$0xff] %v10095_v33  ;;  %v4404_v33 = vadd.f32 %v4403_v6, %v4259_v15  ;;  %vm4138_vm11 = vcmp.gt.f32.partialorder %v7839_v0, 0.0  ;;  %v4202_v17 = vmul.f32 0.2, %v7839_v0  ;;  %v4399_v15 = vrot.slane %v4398_v37, 2 }
 0x520   :  { %v10099_v56 = vpop.f32.mrb[66].mxu0  ;;  %v7840_v11 = vadd.f32 %v10004_v24, %v9954_v55  ;;  %v4422_v32 = vadd.f32 %v4421_v21, %v4262_v43  ;;  %vm4139_vm12 = vcmp.gt.f32.partialorder %v7808_v41, 0.0 }
 0x521   :  { %10749 = vst [vmem:[#allocation44_spill] sm:$0xff] %v10099_v56  ;;  %v10103_v4 = vpop.f32.mrb[66].mxu1  ;;  %v10105_v13 = vpop.f32.mrb[67].mxu0  ;;  %v4265_v56 = vsel %vm4137_vm9, %v7838_v8, %v4201_v9  ;;  %v4405_v57 = vrot.slane %v4404_v33, 2  ;;  %v4264_v8 = vsel %vm4136_vm10, %v7807_v51, %v4200_v39  ;;  %v4400_v24 = vadd.f32 %v4399_v15, %v4398_v37 }
 0x522   :  { %10750 = vst [vmem:[#allocation43_spill] sm:$0xff] %v10103_v4  ;;  %10751 = vst [vmem:[#allocation35_spill] sm:$0xff] %v10105_v13  ;;  %v10109_v1 = vpop.f32.mrb[67].mxu1  ;;  %v4388_v4 = vadd.f32 %v4387_v12, %v4386_v47  ;;  %v4427_v13 = vrot.slane %v4263_v45, 4  ;;  %v4417_v47 = vrot.slane %v4416_v34, 2  ;;  %v4433_v6 = vrot.slane %v4264_v8, 4 }
 0x523   :  { %10752 = vst [vmem:[#allocation50_spill] sm:$0xff] %v10109_v1  ;;  %v4439_v1 = vrot.slane %v4265_v56, 4  ;;  %v4266_v12 = vsel %vm4138_vm11, %v7839_v0, %v4202_v17  ;;  %vm4141_vm14 = vcmp.gt.f32.partialorder %v7840_v11, 0.0  ;;  %v4205_v51 = vmul.f32 0.2, %v7840_v11 }
 0x524   :  { %v10112_v22 = vpop.f32.mrb[68].mxu0  ;;  %v4428_v26 = vadd.f32 %v4427_v13, %v4263_v45  ;;  %v4445_v9 = vrot.slane %v4266_v12, 4  ;;  %v4406_v21 = vadd.f32 %v4405_v57, %v4404_v33  ;;  %v4434_v43 = vadd.f32 %v4433_v6, %v4264_v8 }
 0x525   :  { %10753 = vst [vmem:[#allocation49_spill] sm:$0xff] %v10112_v22  ;;  %v10114_v62 = vpop.f32.mrb[68].mxu1  ;;  %v10116_v27 = vpop.f32.mrb[69].mxu0  ;;  %v4440_v22 = vadd.f32 %v4439_v1, %v4265_v56  ;;  %v4377_v0 = vrot.slane %v4376_v40, 1  ;;  %v4423_v17 = vrot.slane %v4422_v32, 2  ;;  %v4389_v45 = vrot.slane %v4388_v4, 1 }
 0x526   :  { %10754 = vst [vmem:[#allocation54_spill] sm:$0xff] %v10114_v62  ;;  %10755 = vst [vmem:[#allocation53_spill] sm:$0xff] %v10116_v27  ;;  %v10120_v18 = vpop.f32.mrb[69].mxu1  ;;  %v4203_v27 = vmul.f32 0.2, %v7808_v41  ;;  %v4418_v49 = vadd.f32 %v4417_v47, %v4416_v34  ;;  %v4429_v58 = vrot.slane %v4428_v26, 2  ;;  %v4269_v38 = vsel %vm4141_vm14, %v7840_v11, %v4205_v51 }
 0x527   :  { %10756 = vst [vmem:[#allocation52_spill] sm:$0xff] %v10120_v18  ;;  %v4411_v18 = vrot.slane %v4410_v7, 2  ;;  %v4441_v1 = vrot.slane %v4440_v22, 2  ;;  %v4401_v56 = vrot.slane %v4400_v24, 1  ;;  %v4407_v16 = vrot.slane %v4406_v21, 1 }
 0x528   :  { %v10124_v3 = vpop.f32.mrb[70].mxu0  ;;  %v4267_v13 = vsel %vm4139_vm12, %v7808_v41, %v4203_v27  ;;  %v4435_v63 = vrot.slane %v4434_v43, 2  ;;  %v4424_v37 = vadd.f32 %v4423_v17, %v4422_v32  ;;  %v4463_v15 = vrot.slane %v4269_v38, 4 }
 0x529   :  { %10757 = vst [vmem:[#allocation51_spill] sm:$0xff] %v10124_v3  ;;  %v10126_v62 = vpop.f32.mrb[70].mxu1  ;;  %v10128_v61 = vpop.f32.mrb[71].mxu0  ;;  %v4446_v3 = vadd.f32 %v4445_v9, %v4266_v12  ;;  %v7809_v57 = vadd.f32 %v10010_v54, %v9957_v52  ;;  %v10137_v27 = vadd.f32 %v4377_v0, %v4376_v40  ;;  %v10139_v34 = vadd.f32 %v4389_v45, %v4388_v4 }
 0x52a   :  { %10758 = vst [vmem:[#allocation56_spill] sm:$0xff] %v10126_v62  ;;  %10759 = vst [vmem:[#allocation55_spill] sm:$0xff] %v10128_v61  ;;  %v10130_v39 = vpop.f32.mrb[71].mxu1  ;;  %v10133_v62 = vadd.f32 %v4365_v14, %v10097_v31  ;;  %v4412_v61 = vadd.f32 %v4411_v18, %v4410_v7  ;;  %v4419_v41 = vrot.slane %v4418_v49, 1  ;;  %v4430_v8 = vadd.f32 %v4429_v58, %v4428_v26 }
 0x52b   :  { %10760 = vst [vmem:[#allocation57_spill] sm:$0xff] %v10130_v39  ;;  %v4451_v39 = vrot.slane %v4267_v13, 4  ;;  %v4447_v33 = vrot.slane %v4446_v3, 2  ;;  %v4442_v14 = vadd.f32 %v4441_v1, %v4440_v22  ;;  %v7810_v7 = vadd.f32 %v10019_v5, %v9951_v20 }
 0x52c   :  { %v4413_v31 = vrot.slane %v4412_v61, 1  ;;  %v7842_v18 = vadd.f32 %v10021_v28, %v9954_v55  ;;  %v10145_v11 = vadd.f32 %v4401_v56, %v4400_v24  ;;  %v10147_v47 = vadd.f32 %v4407_v16, %v4406_v21 }
 0x52d   :  { %v4436_v32 = vadd.f32 %v4435_v63, %v4434_v43  ;;  %v4452_v54 = vadd.f32 %v4451_v39, %v4267_v13  ;;  %v4425_v40 = vrot.slane %v4424_v37, 1  ;;  %v4448_v6 = vadd.f32 %v4447_v33, %v4446_v3 }
 0x52e   :  { %v4464_v4 = vadd.f32 %v4463_v15, %v4269_v38  ;;  %v4204_v12 = vmul.f32 0.2, %v7809_v57  ;;  %v10149_v9 = vadd.f32 %v4419_v41, %v4418_v49  ;;  %v4431_v58 = vrot.slane %v4430_v8, 1 }
 0x52f   :  { %vm4140_vm15 = vcmp.gt.f32.partialorder %v7809_v57, 0.0  ;;  %v7841_v5 = vadd.f32 %v10012_v48, %v9960_v50  ;;  %v10153_v22 = vadd.f32 %v4413_v31, %v4412_v61  ;;  %v4443_v28 = vrot.slane %v4442_v14, 1 }
 0x530   :  { %10761 = vst [vmem:[#allocation58_spill] sm:$0xff] %v10149_v9  ;;  %v4207_v26 = vmul.f32 0.2, %v7810_v7  ;;  %v4209_v51 = vmul.f32 0.2, %v7842_v18  ;;  %v4437_v16 = vrot.slane %v4436_v32, 1  ;;  %v10155_v63 = vadd.f32 %v4425_v40, %v4424_v37 }
 0x531   :  { %v4453_v24 = vrot.slane %v4452_v54, 2  ;;  %vm4143_vm0 = vcmp.gt.f32.partialorder %v7810_v7, 0.0  ;;  %vm4145_vm2 = vcmp.gt.f32.partialorder %v7842_v18, 0.0  ;;  %v4449_v38 = vrot.slane %v4448_v6, 1 }
 0x532   :  { %v4465_v3 = vrot.slane %v4464_v4, 2  ;;  %v4268_v49 = vsel %vm4140_vm15, %v7809_v57, %v4204_v12  ;;  %v10157_v39 = vadd.f32 %v4431_v58, %v4430_v8  ;;  %v4206_v21 = vmul.f32 0.2, %v7841_v5 }
 0x533   :  { %v7811_v48 = vadd.f32 %v10023_v46, %v9957_v52  ;;  %v7812_v61 = vadd.f32 %v10029_v60, %v9951_v20  ;;  %v10163_v43 = vadd.f32 %v4443_v28, %v4442_v14  ;;  %vm4142_vm3 = vcmp.gt.f32.partialorder %v7841_v5, 0.0 }
 0x534   :  { %v4271_v0 = vsel %vm4143_vm0, %v7810_v7, %v4207_v26  ;;  %v4273_v17 = vsel %vm4145_vm2, %v7842_v18, %v4209_v51  ;;  %v10165_v13 = vadd.f32 %v4437_v16, %v4436_v32  ;;  %v10167_v45 = vadd.f32 %v4453_v24, %v4452_v54 }
 0x535   :  { %10762 = vst [vmem:[#allocation59_spill] sm:$0xff] %v10163_v43  ;;  %v4457_v1 = vrot.slane %v4268_v49, 4  ;;  %vm4147_vm4 = vcmp.gt.f32.partialorder %v7812_v61, 0.0  ;;  %v10169_v56 = vadd.f32 %v4449_v38, %v4448_v6  ;;  %v10171_v37 = vadd.f32 %v4465_v3, %v4464_v4 }
 0x536   :  { %v4211_v33 = vmul.f32 0.2, %v7812_v61  ;;  %v7844_v46 = vadd.f32 %v10036_v2, %v9954_v55  ;;  %v10175_v60 = vsel %vm4142_vm3, %v7841_v5, %v4206_v21  ;;  %v4475_v15 = vrot.slane %v4271_v0, 4 }
 0x537   :  { %v4487_v57 = vrot.slane %v4273_v17, 4  ;;  %v4208_v41 = vmul.f32 0.2, %v7811_v48  ;;  %vm4144_vm5 = vcmp.gt.f32.partialorder %v7811_v48, 0.0  ;;  %v4455_v14 = vrot.slane %v10167_v45, 1 }
 0x538   :  { %v4275_v8 = vsel %vm4147_vm4, %v7812_v61, %v4211_v33  ;;  %vm4149_vm6 = vcmp.gt.f32.partialorder %v7844_v46, 0.0  ;;  %v4213_v31 = vmul.f32 0.2, %v7844_v46  ;;  %v10178_v7 = vadd.f32 %v4457_v1, %v4268_v49 }
 0x539   :  { %v7843_v18 = vadd.f32 %v10027_v53, %v9960_v50  ;;  %v4499_v32 = vrot.slane %v4275_v8, 4  ;;  %v4469_v54 = vrot.slane %v10175_v60, 4  ;;  %v7813_v40 = vadd.f32 %v10038_v10, %v9957_v52 }
 0x53a   :  { %v4277_v2 = vsel %vm4149_vm6, %v7844_v46, %v4213_v31  ;;  %v7845_v6 = vadd.f32 %v10040_v23, %v9960_v50  ;;  %v10187_v4 = vadd.f32 %v4475_v15, %v4271_v0  ;;  %v10189_v12 = vadd.f32 %v4487_v57, %v4273_v17 }
 0x53b   :  { %v10191_v58 = vsel %vm4144_vm5, %v7811_v48, %v4208_v41  ;;  %v4500_v5 = vadd.f32 %v4499_v32, %v4275_v8  ;;  %v4511_v28 = vrot.slane %v4277_v2, 4  ;;  %vm4148_vm8 = vcmp.gt.f32.partialorder %v7813_v40, 0.0 }
 0x53c   :  { %v4212_v53 = vmul.f32 0.2, %v7813_v40  ;;  %vm4150_vm9 = vcmp.gt.f32.partialorder %v7845_v6, 0.0  ;;  %vm4146_vm10 = vcmp.gt.f32.partialorder %v7843_v18, 0.0  ;;  %v4214_v51 = vmul.f32 0.2, %v7845_v6 }
 0x53d   :  { %v4501_v26 = vrot.slane %v4500_v5, 2  ;;  %v7814_v10 = vadd.f32 %v10043_v59, %v9951_v20  ;;  %v4512_v16 = vadd.f32 %v4511_v28, %v4277_v2  ;;  %v7846_v23 = vadd.f32 %v10046_v30, %v9954_v55 }
 0x53e   :  { %v4276_v24 = vsel %vm4148_vm8, %v7813_v40, %v4212_v53  ;;  %v7815_v38 = vadd.f32 %v10048_v42, %v9957_v52  ;;  %v4278_v21 = vsel %vm4150_vm9, %v7845_v6, %v4214_v51  ;;  %v4210_v17 = vmul.f32 0.2, %v7843_v18 }
 0x53f   :  { %v4502_v3 = vadd.f32 %v4501_v26, %v4500_v5  ;;  %v4505_v49 = vrot.slane %v4276_v24, 4  ;;  %vm4151_vm11 = vcmp.gt.f32.partialorder %v7814_v10, 0.0  ;;  %v4513_v48 = vrot.slane %v4512_v16, 2 }
 0x540   :  { %v4517_v61 = vrot.slane %v4278_v21, 4  ;;  %v4215_v0 = vmul.f32 0.2, %v7814_v10  ;;  %vm4153_vm12 = vcmp.gt.f32.partialorder %v7846_v23, 0.0  ;;  %v4217_v33 = vmul.f32 0.2, %v7846_v23 }
 0x541   :  { %v4506_v1 = vadd.f32 %v4505_v49, %v4276_v24  ;;  %vm4152_vm14 = vcmp.gt.f32.partialorder %v7815_v38, 0.0  ;;  %v4514_v59 = vadd.f32 %v4513_v48, %v4512_v16  ;;  %v4216_v57 = vmul.f32 0.2, %v7815_v38 }
 0x542   :  { %v4518_v46 = vadd.f32 %v4517_v61, %v4278_v21  ;;  %v4279_v15 = vsel %vm4151_vm11, %v7814_v10, %v4215_v0  ;;  %v4503_v30 = vrot.slane %v4502_v3, 1  ;;  %v4281_v42 = vsel %vm4153_vm12, %v7846_v23, %v4217_v33 }
 0x543   :  { %v4507_v41 = vrot.slane %v4506_v1, 2  ;;  %v4523_v8 = vrot.slane %v4279_v15, 4  ;;  %v4515_v31 = vrot.slane %v4514_v59, 1  ;;  %v4535_v2 = vrot.slane %v4281_v42, 4 }
 0x544   :  { %v4519_v32 = vrot.slane %v4518_v46, 2  ;;  %v4280_v40 = vsel %vm4152_vm14, %v7815_v38, %v4216_v57  ;;  %v7847_v53 = vadd.f32 %v10050_v29, %v9960_v50  ;;  %v10202_v26 = vsel %vm4146_vm10, %v7843_v18, %v4210_v17 }
 0x545   :  { %v4508_v6 = vadd.f32 %v4507_v41, %v4506_v1  ;;  %v4524_v5 = vadd.f32 %v4523_v8, %v4279_v15  ;;  %v4529_v28 = vrot.slane %v4280_v40, 4  ;;  %v4536_v10 = vadd.f32 %v4535_v2, %v4281_v42 }
 0x546   :  { %v4520_v51 = vadd.f32 %v4519_v32, %v4518_v46  ;;  %v7816_v16 = vadd.f32 %v10056_v25, %v9951_v20  ;;  %v4504_v24 = vadd.f32 %v4503_v30, %v4502_v3  ;;  %vm4154_vm15 = vcmp.gt.f32.partialorder %v7847_v53, 0.0 }
 0x547   :  { %v4525_v23 = vrot.slane %v4524_v5, 2  ;;  %v4530_v49 = vadd.f32 %v4529_v28, %v4280_v40  ;;  %v4516_v21 = vadd.f32 %v4515_v31, %v4514_v59  ;;  %v4537_v38 = vrot.slane %v4536_v10, 2 }
 0x548   :  { %v4218_v48 = vmul.f32 0.2, %v7847_v53  ;;  %vm4155_vm0 = vcmp.gt.f32.partialorder %v7816_v16, 0.0  ;;  %v4509_v61 = vrot.slane %v4508_v6, 1  ;;  %v4219_v29 = vmul.f32 0.2, %v7816_v16 }
 0x549   :  { %v4526_v0 = vadd.f32 %v4525_v23, %v4524_v5  ;;  %v4531_v1 = vrot.slane %v4530_v49, 2  ;;  %v4521_v33 = vrot.slane %v4520_v51, 1  ;;  %v4538_v18 = vadd.f32 %v4537_v38, %v4536_v10 }
 0x54a   :  { %v4282_v17 = vsel %vm4154_vm15, %v7847_v53, %v4218_v48  ;;  %v7848_v46 = vadd.f32 %v10060_v19, %v9954_v55  ;;  %v4283_v57 = vsel %vm4155_vm0, %v7816_v16, %v4219_v29  ;;  %v7817_v32 = vadd.f32 %v10062_v35, %v9957_v52 }
 0x54b   :  { %v4527_v15 = vrot.slane %v4526_v0, 1  ;;  %v4532_v25 = vadd.f32 %v4531_v1, %v4530_v49  ;;  %v4541_v3 = vrot.slane %v4282_v17, 4  ;;  %v4539_v30 = vrot.slane %v4538_v18, 1 }
 0x54c   :  { %v4547_v41 = vrot.slane %v4283_v57, 4  ;;  %vm4157_vm2 = vcmp.gt.f32.partialorder %v7848_v46, 0.0  ;;  %v4221_v59 = vmul.f32 0.2, %v7848_v46  ;;  %v4510_v2 = vadd.f32 %v4509_v61, %v4508_v6 }
 0x54d   :  { %v4528_v8 = vadd.f32 %v4527_v15, %v4526_v0  ;;  %v4533_v42 = vrot.slane %v4532_v25, 1  ;;  %v4542_v31 = vadd.f32 %v4541_v3, %v4282_v17  ;;  %v4540_v40 = vadd.f32 %v4539_v30, %v4538_v18 }
 0x54e   :  { %v4285_v5 = vsel %vm4157_vm2, %v7848_v46, %v4221_v59  ;;  %v7849_v19 = vadd.f32 %v10066_v36, %v9960_v50  ;;  %v4548_v49 = vadd.f32 %v4547_v41, %v4283_v57  ;;  %vm4156_vm3 = vcmp.gt.f32.partialorder %v7817_v32, 0.0 }
 0x54f   :  { %v10213_v28 = vsel %vm5267_vm7, %v4528_v8, %v4504_v24  ;;  %v4534_v53 = vadd.f32 %v4533_v42, %v4532_v25  ;;  %v4543_v10 = vrot.slane %v4542_v31, 2  ;;  %v4559_v16 = vrot.slane %v4285_v5, 4  ;;  %v10764_v25 = vld [vmem:[#allocation37_spill] sm:$0xff] }
 0x550   :  { %v10216_v23 = vsel %vm5267_vm7, %v4540_v40, %v4516_v21  ;;  %v4220_v38 = vmul.f32 0.2, %v7817_v32  ;;  %vm4158_vm4 = vcmp.gt.f32.partialorder %v7849_v19, 0.0  ;;  %v4481_v36 = vrot.slane %v10191_v58, 4 }
 0x551   :  { %10763 = vst [vmem:[#allocation60_spill] sm:$0xff] %v10216_v23  ;;  %v10219_v35 = vsel %vm5267_vm7, %v4534_v53, %v4510_v2  ;;  %v4544_v6 = vadd.f32 %v4543_v10, %v4542_v31  ;;  %v4560_v48 = vadd.f32 %v4559_v16, %v4285_v5  ;;  %v4222_v24 = vmul.f32 0.2, %v7849_v19  ;;  %v5116_v23 = vld [vmem:[#allocation16 + $0x548] sm:$0xff] }
 0x552   :  { %v4284_v61 = vsel %vm4156_vm3, %v7817_v32, %v4220_v38  ;;  %v7818_v0 = vadd.f32 %v10068_v44, %v9951_v20  ;;  %v4470_v21 = vadd.f32 %v4469_v54, %v10175_v60  ;;  %v4477_v1 = vrot.slane %v10187_v4, 2 }
 0x553   :  { %v4545_v29 = vrot.slane %v4544_v6, 1  ;;  %v4553_v18 = vrot.slane %v4284_v61, 4  ;;  %v4489_v17 = vrot.slane %v10189_v12, 2  ;;  %v4493_v46 = vrot.slane %v10202_v26, 4 }
 0x554   :  { %v4286_v15 = vsel %vm4158_vm4, %v7849_v19, %v4222_v24  ;;  %v7850_v3 = vadd.f32 %v10764_v25, %v9954_v55  ;;  %v4522_v57 = vadd.f32 %v4521_v33, %v4520_v51  ;;  %v4549_v41 = vrot.slane %v4548_v49, 2  ;;  %v10769_v25 = vld [vmem:[#allocation42_spill] sm:$0xff] }
 0x555   :  { %v4546_v30 = vadd.f32 %v4545_v29, %v4544_v6  ;;  %v4561_v44 = vrot.slane %v4560_v48, 2  ;;  %v4482_v59 = vadd.f32 %v4481_v36, %v10191_v58  ;;  %v4554_v8 = vadd.f32 %v4553_v18, %v4284_v61 }
 0x556   :  { %v4565_v60 = vrot.slane %v4286_v15, 4  ;;  %v4223_v54 = vmul.f32 0.2, %v7818_v0  ;;  %v4467_v42 = vrot.slane %v10171_v37, 1  ;;  %v4459_v31 = vrot.slane %v10178_v7, 2 }
 0x557   :  { %v10236_v32 = vsel %vm5267_vm7, %v4546_v30, %v4522_v57  ;;  %vm4159_vm5 = vcmp.gt.f32.partialorder %v7818_v0, 0.0  ;;  %v4471_v2 = vrot.slane %v4470_v21, 2  ;;  %v4478_v40 = vadd.f32 %v4477_v1, %v10187_v4 }
 0x558   :  { %10765 = vst [vmem:[#allocation37_spill] sm:$0xff] %v10236_v32  ;;  %v4490_v51 = vadd.f32 %v4489_v17, %v10189_v12  ;;  %v4225_v33 = vmul.f32 0.2, %v7850_v3  ;;  %v4494_v5 = vadd.f32 %v4493_v46, %v10202_v26  ;;  %v4550_v58 = vadd.f32 %v4549_v41, %v4548_v49  ;;  %v10767_v12 = vld [vmem:[#allocation40_spill] sm:$0xff] }
 0x559   :  { %v4562_v19 = vadd.f32 %v4561_v44, %v4560_v48  ;;  %vm4161_vm6 = vcmp.gt.f32.partialorder %v7850_v3, 0.0  ;;  %v4483_v53 = vrot.slane %v4482_v59, 2  ;;  %v4555_v10 = vrot.slane %v4554_v8, 2 }
 0x55a   :  { %v4566_v16 = vadd.f32 %v4565_v60, %v4286_v15  ;;  %v4287_v38 = vsel %vm4159_vm5, %v7818_v0, %v4223_v54  ;;  %v10244_v6 = vadd.f32 %v4455_v14, %v10167_v45  ;;  %v10247_v36 = vadd.f32 %v4467_v42, %v10171_v37  ;;  %v5076_v54 = vld [vmem:[#allocation16 + $0x408] sm:$0xff] }
 0x55b   :  { %v4460_v4 = vadd.f32 %v4459_v31, %v10178_v7  ;;  %v7819_v26 = vadd.f32 %v10767_v12, %v9957_v52  ;;  %vm5273_vm7 = vcmask 1044484   ;;  %v10252_v49 = vadd.f32 %v4471_v2, %v4470_v21  ;;  %v10768_v7 = vld [vmem:[#allocation39_spill] sm:$0xff]  ;;  %v5078_v12 = vld [vmem:[#allocation16 + $0x418] sm:$0xff] }
 0x55c   :  { %10766 = vst [vmem:[#allocation61_spill] sm:$0xff] %v10247_v36  ;;  %v4479_v48 = vrot.slane %v4478_v40, 1  ;;  %v4491_v61 = vrot.slane %v4490_v51, 1  ;;  %v4289_v24 = vsel %vm4161_vm6, %v7850_v3, %v4225_v33  ;;  %vm5275_vm8 = vcmask 1045509   ;;  %v5080_v42 = vld [vmem:[#allocation16 + $0x428] sm:$0xff] }
 0x55d   :  { %v4495_v0 = vrot.slane %v4494_v5, 2  ;;  %v4551_v1 = vrot.slane %v4550_v58, 1  ;;  %v4563_v29 = vrot.slane %v4562_v19, 1  ;;  %v4571_v45 = vrot.slane %v4287_v38, 4 }
 0x55e   :  { %vm5277_vm9 = vcmask 1046534   ;;  %v4484_v14 = vadd.f32 %v4483_v53, %v4482_v59  ;;  %v4556_v37 = vadd.f32 %v4555_v10, %v4554_v8  ;;  %v4567_v18 = vrot.slane %v4566_v16, 2  ;;  %v10772_v10 = vld [vmem:[#allocation41_spill] sm:$0xff] }
 0x55f   :  { %v7851_v17 = vadd.f32 %v10768_v7, %v9960_v50  ;;  %vm5279_vm10 = vcmask 1047559   ;;  %v4461_v46 = vrot.slane %v4460_v4, 1  ;;  %v4583_v15 = vrot.slane %v4289_v24, 4 }
 0x560   :  { %v4224_v21 = vmul.f32 0.2, %v7819_v26  ;;  %v7820_v57 = vadd.f32 %v10769_v25, %v9951_v20  ;;  %v10259_v30 = vadd.f32 %v4479_v48, %v4478_v40  ;;  %v10261_v41 = vadd.f32 %v4491_v61, %v4490_v51  ;;  %v10773_v48 = vld [vmem:[#allocation36_spill] sm:$0xff] }
 0x561   :  { %vm4160_vm11 = vcmp.gt.f32.partialorder %v7819_v26, 0.0  ;;  %v10263_v44 = vadd.f32 %v4495_v0, %v4494_v5  ;;  %v10265_v59 = vadd.f32 %v4551_v1, %v4550_v58  ;;  %v10267_v8 = vadd.f32 %v4563_v29, %v4562_v19  ;;  %v5082_v58 = vld [vmem:[#allocation16 + $0x438] sm:$0xff] }
 0x562   :  { %10770 = vst [vmem:[#allocation40_spill] sm:$0xff] %v10261_v41  ;;  %v4572_v60 = vadd.f32 %v4571_v45, %v4287_v38  ;;  %v4557_v31 = vrot.slane %v4556_v37, 1  ;;  %v10269_v2 = vadd.f32 %v4567_v18, %v4566_v16  ;;  %vm4162_vm12 = vcmp.gt.f32.partialorder %v7851_v17, 0.0  ;;  %v10774_v18 = vld [vmem:[#allocation47_spill] sm:$0xff] }
 0x563   :  { %10771 = vst [vmem:[#allocation39_spill] sm:$0xff] %v10267_v8  ;;  %v4485_v33 = vrot.slane %v4484_v14, 1  ;;  %v10271_v53 = vadd.f32 %v4583_v15, %v4289_v24  ;;  %v4288_v40 = vsel %vm4160_vm11, %v7819_v26, %v4224_v21  ;;  %v4227_v51 = vmul.f32 0.2, %v7820_v57  ;;  %v5075_v21 = vld [vmem:[#allocation16 + $0x400] sm:$0xff] }
 0x564   :  { %v7852_v5 = vadd.f32 %v10772_v10, %v9954_v55  ;;  %vm4163_vm14 = vcmp.gt.f32.partialorder %v7820_v57, 0.0  ;;  %v4462_v19 = vadd.f32 %v4461_v46, %v4460_v4  ;;  %v5282_v38 = vsel %vm5269_vm13, %v10133_v62, %v10773_v48 }
 0x565   :  { %v7284_v61 = vpack.c.bf16 %v5080_v42, %v5076_v54  ;;  %v4573_v16 = vrot.slane %v4572_v60, 2  ;;  %v4226_v0 = vmul.f32 0.2, %v7851_v17  ;;  %v4486_v1 = vadd.f32 %v4485_v33, %v4484_v14  ;;  %v5079_v42 = vld [vmem:[#allocation16 + $0x420] sm:$0xff]  ;;  %v5081_v33 = vld [vmem:[#allocation16 + $0x430] sm:$0xff] }
 0x566   :  { %v5283_v24 = vsel %vm5271_vm1, %v10139_v34, %v5282_v38  ;;  %v4577_v26 = vrot.slane %v4288_v40, 4  ;;  %v7412_v45 = vpack.c.bf16 %v5082_v58, %v5078_v12  ;;  %v7821_v4 = vadd.f32 %v10774_v18, %v9957_v52  ;;  %v10776_v12 = vld [vmem:[#allocation38_spill] sm:$0xff]  ;;  %v5090_v18 = vld [vmem:[#allocation16 + $0x478] sm:$0xff] }
 0x567   :  { %v5284_v29 = vsel %vm5273_vm7, %v10153_v22, %v5283_v24  ;;  %7285 = vmatprep.subr.bf16.mxu0 %v7284_v61  ;;  %v10284_v7 = vadd.f32 %v4557_v31, %v4556_v37  ;;  %v4291_v46 = vsel %vm4163_vm14, %v7820_v57, %v4227_v51  ;;  %v4229_v62 = vmul.f32 0.2, %v7852_v5  ;;  %v10775_v37 = vld [vmem:[#allocation46_spill] sm:$0xff]  ;;  %v5077_v31 = vld [vmem:[#allocation16 + $0x410] sm:$0xff] }
 0x568   :  { %v5285_v15 = vsel %vm5275_vm8, %v10165_v13, %v5284_v29  ;;  %vm4165_vm15 = vcmp.gt.f32.partialorder %v7852_v5, 0.0  ;;  %7413 = vmatprep.subr.bf16.mxu1 %v7412_v45  ;;  %vm4164_vm0 = vcmp.gt.f32.partialorder %v7821_v4, 0.0  ;;  %v4228_v34 = vmul.f32 0.2, %v7821_v4  ;;  %v5084_v24 = vld [vmem:[#allocation16 + $0x448] sm:$0xff]  ;;  %v5086_v45 = vld [vmem:[#allocation16 + $0x458] sm:$0xff] }
 0x569   :  { %v5286_v14 = vsel %vm5277_vm9, %v4462_v19, %v5285_v15  ;;  %v4290_v25 = vsel %vm4162_vm12, %v7851_v17, %v4226_v0  ;;  %v7853_v57 = vadd.f32 %v10775_v37, %v9960_v50  ;;  %v4578_v13 = vadd.f32 %v4577_v26, %v4288_v40  ;;  %v5088_v26 = vld [vmem:[#allocation16 + $0x468] sm:$0xff] }
 0x56a   :  { %v5287_v54 = vsel %vm5279_vm10, %v4486_v1, %v5286_v14  ;;  %v4595_v51 = vrot.slane %v4291_v46, 4  ;;  %v4292_v10 = vsel %vm4164_vm0, %v7821_v4, %v4228_v34  ;;  %v5274_v58 = vsel %vm5273_vm7, %v10147_v47, %v10776_v12  ;;  %v10780_v12 = vld [vmem:[#allocation50_spill] sm:$0xff] }
 0x56b   :  { %5402 = vmatprep.mubr.f32.mxu0 %v5287_v54  ;;  %5556 = vmatprep.mubr.f32.mxu1 %v5287_v54  ;;  %v10297_v19 = vadd.f32 %v4573_v16, %v4572_v60  ;;  %v4585_v17 = vrot.slane %v10271_v53, 2  ;;  %v4293_v48 = vsel %vm4165_vm15, %v7852_v5, %v4229_v62  ;;  %v4601_v38 = vrot.slane %v4292_v10, 4  ;;  %v10777_v60 = vld [vmem:[#allocation44_spill] sm:$0xff]  ;;  %v5087_v54 = vld [vmem:[#allocation16 + $0x460] sm:$0xff] }
 0x56c   :  { %v4230_v61 = vmul.f32 0.2, %v7853_v57  ;;  %v5276_v0 = vsel %vm5275_vm8, %v10157_v39, %v5274_v58  ;;  %v7286_v40 = vpack.c.bf16 %v5079_v42, %v5075_v21  ;;  %v7414_v1 = vpack.c.bf16 %v5081_v33, %v5077_v31  ;;  %v10778_v39 = vld [vmem:[#allocation43_spill] sm:$0xff] }
 0x56d   :  { %v4589_v29 = vrot.slane %v4290_v25, 4  ;;  %vm4166_vm2 = vcmp.gt.f32.partialorder %v7853_v57, 0.0  ;;  %v5278_v47 = vsel %vm5277_vm9, %v10244_v6, %v5276_v0  ;;  %v7822_v16 = vadd.f32 %v10777_v60, %v9951_v20  ;;  %v5083_v6 = vld [vmem:[#allocation16 + $0x440] sm:$0xff] }
 0x56e   :  { %v4579_v5 = vrot.slane %v4578_v13, 2  ;;  %v4596_v4 = vadd.f32 %v4595_v51, %v4291_v46  ;;  %v5280_v62 = vsel %vm5279_vm10, %v10259_v30, %v5278_v47  ;;  %v7854_v15 = vadd.f32 %v10778_v39, %v9954_v55  ;;  %v10779_v30 = vld [vmem:[#allocation35_spill] sm:$0xff] }
 0x56f   :  { %v4607_v14 = vrot.slane %v4293_v48, 4  ;;  %5403 = vmatmul.mubr.f32.vlgmr.msra.gmra.mrb[72].mxu0 %v5280_v62  ;;  %5557 = vmatmul.mubr.f32.vlgmr.msra.gmra.mrb[72].mxu1 %v5280_v62  ;;  %vm4167_vm3 = vcmp.gt.f32.partialorder %v7822_v16, 0.0  ;;  %v4231_v34 = vmul.f32 0.2, %v7822_v16  ;;  %v7288_v21 = vpack.c.bf16 %v5088_v26, %v5084_v24  ;;  %v5092_v39 = vld [vmem:[#allocation16 + $0x488] sm:$0xff] }
 0x570   :  { %v4602_v37 = vadd.f32 %v4601_v38, %v4292_v10  ;;  %v4294_v42 = vsel %vm4166_vm2, %v7853_v57, %v4230_v61  ;;  %7287 = vmatpush1.bf16.msra.mxu0 %v7286_v40  ;;  %7415 = vmatpush1.bf16.msra.mxu1 %v7414_v1  ;;  %v4233_v46 = vmul.f32 0.2, %v7854_v15  ;;  %v7416_v31 = vpack.c.bf16 %v5090_v18, %v5086_v45  ;;  %v5085_v38 = vld [vmem:[#allocation16 + $0x450] sm:$0xff] }
 0x571   :  { %v4295_v33 = vsel %vm4167_vm3, %v7822_v16, %v4231_v34  ;;  %vm4169_vm4 = vcmp.gt.f32.partialorder %v7854_v15, 0.0  ;;  %7289 = vmatprep.subr.bf16.mxu0 %v7288_v21  ;;  %v7823_v51 = vadd.f32 %v10779_v30, %v9957_v52  ;;  %v7855_v58 = vadd.f32 %v10780_v12, %v9960_v50  ;;  %v5089_v57 = vld [vmem:[#allocation16 + $0x470] sm:$0xff]  ;;  %v5096_v34 = vld [vmem:[#allocation16 + $0x4a8] sm:$0xff]  ;;  %v5098_v30 = vld [vmem:[#allocation16 + $0x4b8] sm:$0xff] }
 0x572   :  { %v4590_v0 = vadd.f32 %v4589_v29, %v4290_v25  ;;  %v4597_v24 = vrot.slane %v4596_v4, 2  ;;  %v4619_v26 = vrot.slane %v4295_v33, 4  ;;  %7417 = vmatprep.subr.bf16.mxu1 %v7416_v31  ;;  %v7290_v10 = vpack.c.bf16 %v5087_v54, %v5083_v6 }
 0x573   :  { %v4580_v61 = vadd.f32 %v4579_v5, %v4578_v13  ;;  %v4613_v40 = vrot.slane %v4294_v42, 4  ;;  %vm4168_vm5 = vcmp.gt.f32.partialorder %v7823_v51, 0.0  ;;  %v4232_v1 = vmul.f32 0.2, %v7823_v51 }
 0x574   :  { %v4608_v47 = vadd.f32 %v4607_v14, %v4293_v48  ;;  %v4603_v60 = vrot.slane %v4602_v37, 2  ;;  %v4620_v16 = vadd.f32 %v4619_v26, %v4295_v33  ;;  %v4297_v45 = vsel %vm4169_vm4, %v7854_v15, %v4233_v46  ;;  %7291 = vmatpush1.bf16.msra.mxu0 %v7290_v10  ;;  %v10781_v15 = vld [vmem:[#allocation49_spill] sm:$0xff] }
 0x575   :  { %v4575_v18 = vrot.slane %v10297_v19, 1  ;;  %v10319_v25 = vadd.f32 %v4585_v17, %v10271_v53  ;;  %v4234_v29 = vmul.f32 0.2, %v7855_v58  ;;  %v7418_v62 = vpack.c.bf16 %v5089_v57, %v5085_v38  ;;  %v5094_v17 = vld [vmem:[#allocation16 + $0x498] sm:$0xff] }
 0x576   :  { %v4591_v21 = vrot.slane %v4590_v0, 2  ;;  %v4598_v13 = vadd.f32 %v4597_v24, %v4596_v4  ;;  %v4296_v5 = vsel %vm4168_vm5, %v7823_v51, %v4232_v1  ;;  %vm4170_vm6 = vcmp.gt.f32.partialorder %v7855_v58, 0.0  ;;  %v5091_v1 = vld [vmem:[#allocation16 + $0x480] sm:$0xff] }
 0x577   :  { %v4581_v6 = vrot.slane %v4580_v61, 1  ;;  %v4614_v48 = vadd.f32 %v4613_v40, %v4294_v42  ;;  %v4631_v14 = vrot.slane %v4297_v45, 4  ;;  %7419 = vmatpush1.bf16.msra.mxu1 %v7418_v62  ;;  %v7824_v54 = vadd.f32 %v10781_v15, %v9951_v20 }
 0x578   :  { %v4609_v46 = vrot.slane %v4608_v47, 2  ;;  %v4604_v31 = vadd.f32 %v4603_v60, %v4602_v37  ;;  %v4621_v33 = vrot.slane %v4620_v16, 2  ;;  %v7292_v53 = vpack.c.bf16 %v5096_v34, %v5092_v39  ;;  %v5095_v60 = vld [vmem:[#allocation16 + $0x4a0] sm:$0xff] }
 0x579   :  { %v4625_v26 = vrot.slane %v4296_v5, 4  ;;  %v4298_v10 = vsel %vm4170_vm6, %v7855_v58, %v4234_v29  ;;  %v4235_v4 = vmul.f32 0.2, %v7824_v54  ;;  %v10325_v51 = vadd.f32 %v4575_v18, %v10297_v19 }
 0x57a   :  { %v10327_v42 = vadd.f32 %v4591_v21, %v4590_v0  ;;  %v4599_v24 = vrot.slane %v4598_v13, 1  ;;  %vm4171_vm11 = vcmp.gt.f32.partialorder %v7824_v54, 0.0  ;;  %7293 = vmatprep.subr.bf16.mxu0 %v7292_v53  ;;  %v10329_v38 = vadd.f32 %v4581_v6, %v4580_v61  ;;  %v10782_v0 = vld [vmem:[#allocation54_spill] sm:$0xff]  ;;  %v10783_v21 = vld [vmem:[#allocation53_spill] sm:$0xff] }
 0x57b   :  { %v4615_v37 = vrot.slane %v4614_v48, 2  ;;  %v4632_v57 = vadd.f32 %v4631_v14, %v4297_v45  ;;  %v7420_v40 = vpack.c.bf16 %v5098_v30, %v5094_v17  ;;  %v10331_v62 = vadd.f32 %v4609_v46, %v4608_v47  ;;  %v10784_v45 = vld [vmem:[#allocation52_spill] sm:$0xff] }
 0x57c   :  { %v4605_v39 = vrot.slane %v4604_v31, 1  ;;  %v4622_v58 = vadd.f32 %v4621_v33, %v4620_v16  ;;  %v4637_v29 = vrot.slane %v4298_v10, 4  ;;  %v4626_v34 = vadd.f32 %v4625_v26, %v4296_v5  ;;  %v5093_v47 = vld [vmem:[#allocation16 + $0x490] sm:$0xff]  ;;  %v5100_v26 = vld [vmem:[#allocation16 + $0x4c8] sm:$0xff] }
 0x57d   :  { %v4299_v19 = vsel %vm4171_vm11, %v7824_v54, %v4235_v4  ;;  %v7856_v18 = vadd.f32 %v10782_v0, %v9954_v55  ;;  %7421 = vmatprep.subr.bf16.mxu1 %v7420_v40  ;;  %v7825_v61 = vadd.f32 %v10783_v21, %v9957_v52  ;;  %v10337_v6 = vadd.f32 %v4599_v24, %v4598_v13  ;;  %v5097_v46 = vld [vmem:[#allocation16 + $0x4b0] sm:$0xff]  ;;  %v5104_v4 = vld [vmem:[#allocation16 + $0x4e8] sm:$0xff] }
 0x57e   :  { %v7857_v14 = vadd.f32 %v10784_v45, %v9960_v50  ;;  %v7294_v15 = vpack.c.bf16 %v5095_v60, %v5091_v1  ;;  %v10342_v33 = vadd.f32 %v4615_v37, %v4614_v48  ;;  %v4633_v5 = vrot.slane %v4632_v57, 2  ;;  %v10785_v37 = vld [vmem:[#allocation51_spill] sm:$0xff] }
 0x57f   :  { %vm4172_vm12 = vcmp.gt.f32.partialorder %v7825_v61, 0.0  ;;  %v4236_v54 = vmul.f32 0.2, %v7825_v61  ;;  %v10344_v53 = vadd.f32 %v4605_v39, %v4604_v31  ;;  %v4623_v17 = vrot.slane %v4622_v58, 1  ;;  %v10786_v31 = vld [vmem:[#allocation56_spill] sm:$0xff] }
 0x580   :  { %v10346_v30 = vadd.f32 %v4637_v29, %v4298_v10  ;;  %v4643_v13 = vrot.slane %v4299_v19, 4  ;;  %7295 = vmatpush1.bf16.msra.mxu0 %v7294_v15  ;;  %v4627_v24 = vrot.slane %v4626_v34, 2  ;;  %v4237_v40 = vmul.f32 0.2, %v7856_v18  ;;  %v5102_v29 = vld [vmem:[#allocation16 + $0x4d8] sm:$0xff] }
 0x581   :  { %v4300_v1 = vsel %vm4172_vm12, %v7825_v61, %v4236_v54  ;;  %v7422_v60 = vpack.c.bf16 %v5097_v46, %v5093_v47  ;;  %vm4173_vm14 = vcmp.gt.f32.partialorder %v7856_v18, 0.0  ;;  %v4238_v48 = vmul.f32 0.2, %v7857_v14  ;;  %v5106_v15 = vld [vmem:[#allocation16 + $0x4f8] sm:$0xff] }
 0x582   :  { %v4649_v0 = vrot.slane %v4300_v1, 4  ;;  %v7826_v21 = vadd.f32 %v10785_v37, %v9951_v20  ;;  %v10350_v45 = vadd.f32 %v4633_v5, %v4632_v57  ;;  %vm4174_vm15 = vcmp.gt.f32.partialorder %v7857_v14, 0.0 }
 0x583   :  { %7423 = vmatpush1.bf16.msra.mxu1 %v7422_v60  ;;  %v7858_v10 = vadd.f32 %v10786_v31, %v9954_v55  ;;  %v7296_v39 = vpack.c.bf16 %v5104_v4, %v5100_v26  ;;  %v4644_v12 = vadd.f32 %v4643_v13, %v4299_v19  ;;  %v10354_v47 = vadd.f32 %v4623_v17, %v4622_v58  ;;  %v10787_v26 = vld [vmem:[#allocation55_spill] sm:$0xff]  ;;  %v5099_v19 = vld [vmem:[#allocation16 + $0x4c0] sm:$0xff]  ;;  %v5110_v31 = vld [vmem:[#allocation16 + $0x518] sm:$0xff] }
 0x584   :  { %v4650_v22 = vadd.f32 %v4649_v0, %v4300_v1  ;;  %vm4175_vm0 = vcmp.gt.f32.partialorder %v7826_v21, 0.0  ;;  %v4239_v61 = vmul.f32 0.2, %v7826_v21  ;;  %v10356_v46 = vadd.f32 %v4627_v24, %v4626_v34  ;;  %v5103_v13 = vld [vmem:[#allocation16 + $0x4e0] sm:$0xff]  ;;  %v5101_v24 = vld [vmem:[#allocation16 + $0x4d0] sm:$0xff] }
 0x585   :  { %v4639_v20 = vrot.slane %v10346_v30, 2  ;;  %v10360_v57 = vsel %vm4173_vm14, %v7856_v18, %v4237_v40  ;;  %7297 = vmatprep.subr.bf16.mxu0 %v7296_v39  ;;  %v4302_v5 = vsel %vm4174_vm15, %v7857_v14, %v4238_v48  ;;  %v7424_v55 = vpack.c.bf16 %v5106_v15, %v5102_v29  ;;  %v10788_v34 = vld [vmem:[#allocation57_spill] sm:$0xff]  ;;  %v5105_v0 = vld [vmem:[#allocation16 + $0x4f0] sm:$0xff]  ;;  %v5108_v14 = vld [vmem:[#allocation16 + $0x508] sm:$0xff] }
 0x586   :  { %v4303_v54 = vsel %vm4175_vm0, %v7826_v21, %v4239_v61  ;;  %v7827_v4 = vadd.f32 %v10787_v26, %v9957_v52  ;;  %v4651_v1 = vrot.slane %v4650_v22, 2  ;;  %v4241_v58 = vmul.f32 0.2, %v7858_v10  ;;  %v5112_v21 = vld [vmem:[#allocation16 + $0x528] sm:$0xff]  ;;  %v5114_v61 = vld [vmem:[#allocation16 + $0x538] sm:$0xff]  ;;  %v5107_v26 = vld [vmem:[#allocation16 + $0x500] sm:$0xff] }
 0x587   :  { %v4667_v60 = vrot.slane %v4303_v54, 4  ;;  %v7859_v17 = vadd.f32 %v10788_v34, %v9960_v50  ;;  %v4645_v37 = vrot.slane %v4644_v12, 2  ;;  %vm4177_vm2 = vcmp.gt.f32.partialorder %v7858_v10, 0.0  ;;  %7425 = vmatprep.subr.bf16.mxu1 %v7424_v55  ;;  %v5111_v34 = vld [vmem:[#allocation16 + $0x520] sm:$0xff] }
 0x588   :  { %vm4176_vm3 = vcmp.gt.f32.partialorder %v7827_v4, 0.0  ;;  %v4240_v18 = vmul.f32 0.2, %v7827_v4  ;;  %v4661_v40 = vrot.slane %v4302_v5, 4  ;;  %v4629_v39 = vrot.slane %v10356_v46, 1 }
 0x589   :  { %v4668_v48 = vadd.f32 %v4667_v60, %v4303_v54  ;;  %vm4178_vm4 = vcmp.gt.f32.partialorder %v7859_v17, 0.0  ;;  %v4242_v52 = vmul.f32 0.2, %v7859_v17  ;;  %v4655_v29 = vrot.slane %v10360_v57, 4  ;;  %v5109_v54 = vld [vmem:[#allocation16 + $0x510] sm:$0xff] }
 0x58a   :  { %v4304_v15 = vsel %vm4176_vm3, %v7827_v4, %v4240_v18  ;;  %v7298_v50 = vpack.c.bf16 %v5103_v13, %v5099_v19  ;;  %v10368_v16 = vadd.f32 %v4651_v1, %v4650_v22  ;;  %v4305_v55 = vsel %vm4177_vm2, %v7858_v10, %v4241_v58  ;;  %v5113_v60 = vld [vmem:[#allocation16 + $0x530] sm:$0xff]  ;;  %v5120_v4 = vld [vmem:[#allocation16 + $0x568] sm:$0xff]  ;;  %v5118_v19 = vld [vmem:[#allocation16 + $0x558] sm:$0xff] }
 0x58b   :  { %v4673_v3 = vrot.slane %v4304_v15, 4  ;;  %v4306_v8 = vsel %vm4178_vm4, %v7859_v17, %v4242_v52  ;;  %v10371_v41 = vadd.f32 %v4645_v37, %v4644_v12  ;;  %v4669_v36 = vrot.slane %v4668_v48, 2  ;;  %v5122_v13 = vld [vmem:[#allocation16 + $0x578] sm:$0xff]  ;;  %v5115_v10 = vld [vmem:[#allocation16 + $0x540] sm:$0xff] }
 0x58c   :  { %7299 = vmatpush1.bf16.msra.mxu0 %v7298_v50  ;;  %v7426_v32 = vpack.c.bf16 %v5105_v0, %v5101_v24  ;;  %v7300_v43 = vpack.c.bf16 %v5112_v21, %v5108_v14  ;;  %v10373_v18 = vadd.f32 %v4661_v40, %v4302_v5  ;;  %v7428_v1 = vpack.c.bf16 %v5114_v61, %v5110_v31  ;;  %v5119_v58 = vld [vmem:[#allocation16 + $0x560] sm:$0xff]  ;;  %v5117_v24 = vld [vmem:[#allocation16 + $0x550] sm:$0xff]  ;;  %v5124_v0 = vld [vmem:[#allocation16 + $0x588] sm:$0xff] }
 0x58d   :  { %v4674_v22 = vadd.f32 %v4673_v3, %v4304_v15  ;;  %v7302_v9 = vpack.c.bf16 %v5111_v34, %v5107_v26  ;;  %v10376_v17 = vadd.f32 %v4639_v20, %v10346_v30  ;;  %v4679_v52 = vrot.slane %v4305_v55, 4  ;;  %v5128_v14 = vld [vmem:[#allocation16 + $0x5a8] sm:$0xff]  ;;  %v5121_v31 = vld [vmem:[#allocation16 + $0x570] sm:$0xff]  ;;  %v5126_v15 = vld [vmem:[#allocation16 + $0x598] sm:$0xff] }
 0x58e   :  { %v4685_v12 = vrot.slane %v4306_v8, 4  ;;  %7427 = vmatpush1.bf16.msra.mxu1 %v7426_v32  ;;  %7301 = vmatprep.subr.bf16.mxu0 %v7300_v43  ;;  %v7430_v37 = vpack.c.bf16 %v5113_v60, %v5109_v54  ;;  %v4653_v21 = vrot.slane %v10368_v16, 1  ;;  %v7304_v3 = vpack.c.bf16 %v5120_v4, %v5116_v23  ;;  %v5130_v50 = vld [vmem:[#allocation16 + $0x5b8] sm:$0xff]  ;;  %v5123_v61 = vld [vmem:[#allocation16 + $0x580] sm:$0xff]  ;;  %v10383_v34 = vld [vmem:[#allocation16 + $0x590] sm:$0xff] }
 0x58f   :  { %v4675_v5 = vrot.slane %v4674_v22, 2  ;;  %7429 = vmatprep.subr.bf16.mxu1 %v7428_v1  ;;  %v7432_v40 = vpack.c.bf16 %v5122_v13, %v5118_v19  ;;  %v4630_v30 = vadd.f32 %v4629_v39, %v10356_v46  ;;  %v10381_v20 = vadd.f32 %v4655_v29, %v10360_v57  ;;  %v5127_v26 = vld [vmem:[#allocation16 + $0x5a0] sm:$0xff]  ;;  %v5129_v19 = vld [vmem:[#allocation16 + $0x5b0] sm:$0xff]  ;;  %v5132_v13 = vld [vmem:[#allocation16 + $0x5c8] sm:$0xff] }
 0x590   :  { %v4670_v32 = vadd.f32 %v4669_v36, %v4668_v48  ;;  %7303 = vmatpush1.bf16.msra.mxu0 %v7302_v9  ;;  %v7306_v43 = vpack.c.bf16 %v5119_v58, %v5115_v10  ;;  %v4647_v54 = vrot.slane %v10371_v41, 1  ;;  %v4663_v23 = vrot.slane %v10373_v18, 2  ;;  %v5136_v46 = vld [vmem:[#allocation16 + $0x5e8] sm:$0xff]  ;;  %v5134_v29 = vld [vmem:[#allocation16 + $0x5d8] sm:$0xff]  ;;  %v5131_v10 = vld [vmem:[#allocation16 + $0x5c0] sm:$0xff] }
 0x591   :  { %v4676_v60 = vadd.f32 %v4675_v5, %v4674_v22  ;;  %7305 = vmatprep.subr.bf16.mxu0 %v7304_v3  ;;  %v7308_v4 = vpack.c.bf16 %v5128_v14, %v5124_v0  ;;  %v10387_v39 = vadd.f32 %v4679_v52, %v4305_v55  ;;  %v10389_v57 = vadd.f32 %v4685_v12, %v4306_v8  ;;  %v5138_v1 = vld [vmem:[#allocation16 + $0x5f8] sm:$0xff]  ;;  %v5135_v52 = vld [vmem:[#allocation16 + $0x5e0] sm:$0xff] }
 0x592   :  { %7431 = vmatpush1.bf16.msra.mxu1 %v7430_v37  ;;  %v7434_v9 = vpack.c.bf16 %v5121_v31, %v5117_v24  ;;  %v7436_v36 = vpack.c.bf16 %v5130_v50, %v5126_v15  ;;  %v7310_v48 = vpack.c.bf16 %v5127_v26, %v5123_v61  ;;  %v4654_v58 = vadd.f32 %v4653_v21, %v10368_v16  ;;  %v5140_v37 = vld [vmem:[#allocation16 + $0x608] sm:$0xff]  ;;  %v5133_v15 = vld [vmem:[#allocation16 + $0x5d0] sm:$0xff]  ;;  %v5146_v61 = vld [vmem:[#allocation16 + $0x638] sm:$0xff] }
 0x593   :  { %7433 = vmatprep.subr.bf16.mxu1 %v7432_v40  ;;  %v4677_v22 = vrot.slane %v4676_v60, 1  ;;  %v5310_v0 = vsel %vm5269_vm13, %v10284_v7, %v10219_v35  ;;  %v7438_v55 = vpack.c.bf16 %v5129_v19, %v10383_v34  ;;  %v7312_v8 = vpack.c.bf16 %v5136_v46, %v5132_v13  ;;  %v5144_v24 = vld [vmem:[#allocation16 + $0x628] sm:$0xff]  ;;  %v5137_v50 = vld [vmem:[#allocation16 + $0x5f0] sm:$0xff]  ;;  %v10790_v26 = vld [vmem:[#allocation45_spill] sm:$0xff] }
 0x594   :  { %7307 = vmatpush1.bf16.msra.mxu0 %v7306_v43  ;;  %v5311_v12 = vsel %vm5271_vm1, %v10329_v38, %v5310_v0  ;;  %v4671_v14 = vrot.slane %v4670_v32, 1  ;;  %v4648_v21 = vadd.f32 %v4647_v54, %v10371_v41  ;;  %v5303_v35 = vsel %vm5269_vm13, %v10265_v59, %v10213_v28  ;;  %v5142_v59 = vld [vmem:[#allocation16 + $0x618] sm:$0xff] }
 0x595   :  { %7309 = vmatprep.subr.bf16.mxu0 %v7308_v4  ;;  %v4678_v5 = vadd.f32 %v4677_v22, %v4676_v60  ;;  %v5312_v16 = vsel %vm5273_vm7, %v10344_v53, %v5311_v12  ;;  %v7440_v7 = vpack.c.bf16 %v5138_v1, %v5134_v29  ;;  %v5304_v38 = vsel %vm5271_vm1, %v10325_v51, %v5303_v35  ;;  %v5139_v60 = vld [vmem:[#allocation16 + $0x600] sm:$0xff]  ;;  %v5156_v35 = vld [vmem:[#allocation16 + $0x688] sm:$0xff] }
 0x596   :  { %7435 = vmatpush1.bf16.msra.mxu1 %v7434_v9  ;;  %v5313_v3 = vsel %vm5275_vm8, %v4630_v30, %v5312_v16  ;;  %v4672_v40 = vadd.f32 %v4671_v14, %v4670_v32  ;;  %v7314_v31 = vpack.c.bf16 %v5135_v52, %v5131_v10  ;;  %v7316_v43 = vpack.c.bf16 %v5144_v24, %v5140_v37  ;;  %v5143_v4 = vld [vmem:[#allocation16 + $0x620] sm:$0xff]  ;;  %v5145_v10 = vld [vmem:[#allocation16 + $0x630] sm:$0xff]  ;;  %v5154_v52 = vld [vmem:[#allocation16 + $0x678] sm:$0xff] }
 0x597   :  { %7437 = vmatprep.subr.bf16.mxu1 %v7436_v36  ;;  %v5314_v53 = vsel %vm5277_vm9, %v4654_v58, %v5313_v3  ;;  %v5305_v41 = vsel %vm5273_vm7, %v10337_v6, %v5304_v38  ;;  %v10789_v51 = vrot.slane %v10252_v49, 1  ;;  %v5296_v34 = vsel %vm5269_vm13, %v10137_v27, %v10790_v26  ;;  %v5148_v36 = vld [vmem:[#allocation16 + $0x648] sm:$0xff]  ;;  %v5147_v14 = vld [vmem:[#allocation16 + $0x640] sm:$0xff]  ;;  %v5161_v26 = vld [vmem:[#allocation16 + $0x6b0] sm:$0xff] }
 0x598   :  { %7311 = vmatpush1.bf16.msra.mxu0 %v7310_v48  ;;  %v5315_v28 = vsel %vm5279_vm10, %v4678_v5, %v5314_v53  ;;  %v5306_v30 = vsel %vm5275_vm8, %v10354_v47, %v5305_v41  ;;  %v4687_v54 = vrot.slane %v10389_v57, 2  ;;  %v10791_v19 = vrot.slane %v10263_v44, 1  ;;  %v5152_v48 = vld [vmem:[#allocation16 + $0x668] sm:$0xff]  ;;  %v5151_v5 = vld [vmem:[#allocation16 + $0x660] sm:$0xff] }
 0x599   :  { %v4474_v32 = vadd.f32 %v10789_v51, %v10252_v49  ;;  %7313 = vmatprep.subr.bf16.mxu0 %v7312_v8  ;;  %5408 = vmatprep.mubr.f32.mxu0 %v5315_v28  ;;  %v5307_v6 = vsel %vm5277_vm9, %v4648_v21, %v5306_v30  ;;  %v5297_v13 = vsel %vm5271_vm1, %v10145_v11, %v5296_v34  ;;  %v4657_v49 = vrot.slane %v10381_v20, 2  ;;  %v5141_v11 = vld [vmem:[#allocation16 + $0x610] sm:$0xff]  ;;  %v5150_v8 = vld [vmem:[#allocation16 + $0x658] sm:$0xff] }
 0x59a   :  { %v4498_v47 = vadd.f32 %v10791_v19, %v10263_v44  ;;  %7439 = vmatpush1.bf16.msra.mxu1 %v7438_v55  ;;  %v7442_v46 = vpack.c.bf16 %v5137_v50, %v5133_v15  ;;  %5562 = vmatprep.mubr.f32.mxu1 %v5315_v28  ;;  %v5308_v27 = vsel %vm5279_vm10, %v4672_v40, %v5307_v6  ;;  %v4593_v29 = vrot.slane %v10327_v42, 1  ;;  %v5153_v15 = vld [vmem:[#allocation16 + $0x670] sm:$0xff]  ;;  %v5158_v50 = vld [vmem:[#allocation16 + $0x698] sm:$0xff] }
 0x59b   :  { %v5298_v9 = vsel %vm5273_vm7, %v10155_v63, %v5297_v13  ;;  %v4681_v1 = vrot.slane %v10387_v39, 2  ;;  %7441 = vmatprep.subr.bf16.mxu1 %v7440_v7  ;;  %v7444_v44 = vpack.c.bf16 %v5146_v61, %v5142_v59  ;;  %5409 = vmatmul.mubr.f32.gmra.mrb[74].mxu0 %v5308_v27  ;;  %v4611_v22 = vrot.slane %v10331_v62, 1  ;;  %v5160_v7 = vld [vmem:[#allocation16 + $0x6a8] sm:$0xff]  ;;  %v5162_v59 = vld [vmem:[#allocation16 + $0x6b8] sm:$0xff]  ;;  %v5159_v61 = vld [vmem:[#allocation16 + $0x6a0] sm:$0xff] }
 0x59c   :  { %v5299_v58 = vsel %vm5275_vm8, %v10169_v56, %v5298_v9  ;;  %v10438_v63 = vadd.f32 %v4663_v23, %v10373_v18  ;;  %7315 = vmatpush1.bf16.msra.mxu0 %v7314_v31  ;;  %v7318_v0 = vpack.c.bf16 %v5143_v4, %v5139_v60  ;;  %5563 = vmatmul.mubr.f32.gmra.mrb[74].mxu1 %v5308_v27  ;;  %v4617_v12 = vrot.slane %v10342_v33, 1  ;;  %v5149_v31 = vld [vmem:[#allocation16 + $0x650] sm:$0xff]  ;;  %v5164_v60 = vld [vmem:[#allocation16 + $0x6c8] sm:$0xff]  ;;  %v5166_v27 = vld [vmem:[#allocation16 + $0x6d8] sm:$0xff] }
 0x59d   :  { %v5300_v55 = vsel %vm5277_vm9, %v4474_v32, %v5299_v58  ;;  %v4688_v37 = vadd.f32 %v4687_v54, %v10389_v57  ;;  %7317 = vmatprep.subr.bf16.mxu0 %v7316_v43  ;;  %v7320_v24 = vpack.c.bf16 %v5152_v48, %v5148_v36  ;;  %v4635_v18 = vrot.slane %v10350_v45, 1  ;;  %v5157_v32 = vld [vmem:[#allocation16 + $0x690] sm:$0xff]  ;;  %v5168_v4 = vld [vmem:[#allocation16 + $0x6e8] sm:$0xff]  ;;  %v5170_v9 = vld [vmem:[#allocation16 + $0x6f8] sm:$0xff] }
 0x59e   :  { %v5301_v56 = vsel %vm5279_vm10, %v4498_v47, %v5300_v55  ;;  %v4641_v23 = vrot.slane %v10376_v17, 1  ;;  %v4658_v16 = vadd.f32 %v4657_v49, %v10381_v20  ;;  %7443 = vmatpush1.bf16.msra.mxu1 %v7442_v46  ;;  %v7446_v21 = vpack.c.bf16 %v5145_v10, %v5141_v11  ;;  %v10795_v13 = vld [vmem:[#allocation58_spill] sm:$0xff]  ;;  %v10797_v48 = vld [vmem:[#allocation37_spill] sm:$0xff] }
 0x59f   :  { %5479 = vmatprep.mubr.f32.mxu0 %v5301_v56  ;;  %v10792_v57 = vrot.slane %v10269_v2, 1  ;;  %v4682_v40 = vadd.f32 %v4681_v1, %v10387_v39  ;;  %7445 = vmatprep.subr.bf16.mxu1 %v7444_v44  ;;  %v7448_v38 = vpack.c.bf16 %v5154_v52, %v5150_v8  ;;  %v10793_v20 = vrot.slane %v10319_v25, 1  ;;  %v5163_v44 = vld [vmem:[#allocation16 + $0x6c0] sm:$0xff]  ;;  %v5172_v55 = vld [vmem:[#allocation16 + $0x708] sm:$0xff]  ;;  %v10799_v52 = vld [vmem:[#allocation40_spill] sm:$0xff] }
 0x5a0   :  { %5633 = vmatprep.mubr.f32.mxu1 %v5301_v56  ;;  %v4594_v43 = vadd.f32 %v4593_v29, %v10327_v42  ;;  %v4665_v41 = vrot.slane %v10438_v63, 1  ;;  %7319 = vmatpush1.bf16.msra.mxu0 %v7318_v0  ;;  %v7322_v28 = vpack.c.bf16 %v5151_v5, %v5147_v14  ;;  %v4612_v39 = vadd.f32 %v4611_v22, %v10331_v62  ;;  %v10794_v62 = vld [vmem:[#allocation48_spill] sm:$0xff]  ;;  %v5167_v11 = vld [vmem:[#allocation16 + $0x6e0] sm:$0xff]  ;;  %v5176_v8 = vld [vmem:[#allocation16 + $0x728] sm:$0xff] }
 0x5a1   :  { %v4570_v3 = vadd.f32 %v10792_v57, %v10269_v2  ;;  %v4588_v53 = vadd.f32 %v10793_v20, %v10319_v25  ;;  %v5155_v2 = vld [vmem:[#allocation16 + $0x680] sm:$0xff]  ;;  %v4618_v30 = vadd.f32 %v4617_v12, %v10342_v33  ;;  %7321 = vmatprep.subr.bf16.mxu0 %v7320_v24  ;;  %v7324_v51 = vpack.c.bf16 %v5160_v7, %v5156_v35  ;;  %v10800_v24 = vld [vmem:[#allocation60_spill] sm:$0xff]  ;;  %v10801_v14 = vld [vmem:[#allocation39_spill] sm:$0xff] }
 0x5a2   :  { %v4689_v34 = vrot.slane %v4688_v37, 1  ;;  %v4636_v25 = vadd.f32 %v4635_v18, %v10350_v45  ;;  %v4642_v42 = vadd.f32 %v4641_v23, %v10376_v17  ;;  %v4659_v54 = vrot.slane %v4658_v16, 1  ;;  %7447 = vmatpush1.bf16.msra.mxu1 %v7446_v21  ;;  %v10796_v45 = vld [vmem:[#allocation59_spill] sm:$0xff]  ;;  %v10798_v10 = vld [vmem:[#allocation61_spill] sm:$0xff] }
 0x5a3   :  { %v7450_v6 = vpack.c.bf16 %v5153_v15, %v5149_v31  ;;  %7449 = vmatprep.subr.bf16.mxu1 %v7448_v38  ;;  %v7452_v19 = vpack.c.bf16 %v5162_v59, %v5158_v50  ;;  %v7326_v47 = vpack.c.bf16 %v5159_v61, %v5155_v2  ;;  %v5291_v33 = vsel %vm5273_vm7, %v10795_v13, %v10794_v62  ;;  %v5165_v23 = vld [vmem:[#allocation16 + $0x6d0] sm:$0xff]  ;;  %v5178_v38 = vld [vmem:[#allocation16 + $0x738] sm:$0xff]  ;;  %v5171_v50 = vld [vmem:[#allocation16 + $0x700] sm:$0xff] }
 0x5a4   :  { %v4683_v49 = vrot.slane %v4682_v40, 1  ;;  %7323 = vmatpush1.bf16.msra.mxu0 %v7322_v28  ;;  %v7454_v46 = vpack.c.bf16 %v5161_v26, %v5157_v32  ;;  %v5292_v17 = vsel %vm5275_vm8, %v10796_v45, %v5291_v33  ;;  %v4666_v36 = vadd.f32 %v4665_v41, %v10438_v63  ;;  %v5175_v20 = vld [vmem:[#allocation16 + $0x720] sm:$0xff]  ;;  %v5184_v28 = vld [vmem:[#allocation16 + $0x768] sm:$0xff]  ;;  %v5173_v61 = vld [vmem:[#allocation16 + $0x710] sm:$0xff] }
 0x5a5   :  { %v5324_v29 = vsel %vm5269_vm13, %v4570_v3, %v10797_v48  ;;  %7325 = vmatprep.subr.bf16.mxu0 %v7324_v51  ;;  %v7328_v1 = vpack.c.bf16 %v5168_v4, %v5164_v60  ;;  %v5293_v58 = vsel %vm5277_vm9, %v10798_v10, %v5292_v17  ;;  %v4690_v22 = vadd.f32 %v4689_v34, %v4688_v37  ;;  %v5169_v37 = vld [vmem:[#allocation16 + $0x6f0] sm:$0xff]  ;;  %v5174_v3 = vld [vmem:[#allocation16 + $0x718] sm:$0xff]  ;;  %v5192_v60 = vld [vmem:[#allocation16 + $0x7a8] sm:$0xff] }
 0x5a6   :  { %v5325_v0 = vsel %vm5271_vm1, %v4594_v43, %v5324_v29  ;;  %7451 = vmatpush1.bf16.msra.mxu1 %v7450_v6  ;;  %v10473_v12 = vsel %vm5279_vm10, %v10799_v52, %v5293_v58  ;;  %v4660_v56 = vadd.f32 %v4659_v54, %v4658_v16  ;;  %v5317_v5 = vsel %vm5269_vm13, %v10801_v14, %v10800_v24  ;;  %v5182_v32 = vld [vmem:[#allocation16 + $0x758] sm:$0xff]  ;;  %v5188_v6 = vld [vmem:[#allocation16 + $0x788] sm:$0xff]  ;;  %v5189_v48 = vld [vmem:[#allocation16 + $0x790] sm:$0xff] }
 0x5a7   :  { %v5326_v63 = vsel %vm5273_vm7, %v4618_v30, %v5325_v0  ;;  %7453 = vmatprep.subr.bf16.mxu1 %v7452_v19  ;;  %v7456_v18 = vpack.c.bf16 %v5170_v9, %v5166_v27  ;;  %v4684_v35 = vadd.f32 %v4683_v49, %v4682_v40  ;;  %v5318_v7 = vsel %vm5271_vm1, %v4588_v53, %v5317_v5  ;;  %v5180_v53 = vld [vmem:[#allocation16 + $0x748] sm:$0xff]  ;;  %v5177_v30 = vld [vmem:[#allocation16 + $0x730] sm:$0xff]  ;;  %v5186_v26 = vld [vmem:[#allocation16 + $0x778] sm:$0xff] }
 0x5a8   :  { %v5327_v21 = vsel %vm5275_vm8, %v4642_v42, %v5326_v63  ;;  %7327 = vmatpush1.bf16.msra.mxu0 %v7326_v47  ;;  %v7330_v57 = vpack.c.bf16 %v5167_v11, %v5163_v44  ;;  %v5319_v16 = vsel %vm5273_vm7, %v4612_v39, %v5318_v7  ;;  %v7332_v15 = vpack.c.bf16 %v5176_v8, %v5172_v55  ;;  %v5183_v42 = vld [vmem:[#allocation16 + $0x760] sm:$0xff]  ;;  %v5181_v19 = vld [vmem:[#allocation16 + $0x750] sm:$0xff]  ;;  %v5190_v13 = vld [vmem:[#allocation16 + $0x798] sm:$0xff] }
 0x5a9   :  { %v5328_v31 = vsel %vm5277_vm9, %v4666_v36, %v5327_v21  ;;  %7329 = vmatprep.subr.bf16.mxu0 %v7328_v1  ;;  %v5320_v41 = vsel %vm5275_vm8, %v4636_v25, %v5319_v16  ;;  %v7458_v40 = vpack.c.bf16 %v5169_v37, %v5165_v23  ;;  %v7460_v2 = vpack.c.bf16 %v5178_v38, %v5174_v3  ;;  %v5179_v25 = vld [vmem:[#allocation16 + $0x740] sm:$0xff]  ;;  %v5185_v47 = vld [vmem:[#allocation16 + $0x770] sm:$0xff]  ;;  %v5194_v33 = vld [vmem:[#allocation16 + $0x7b8] sm:$0xff] }
 0x5aa   :  { %v10484_v43 = vsel %vm5279_vm10, %v4690_v22, %v5328_v31  ;;  %7455 = vmatpush1.bf16.msra.mxu1 %v7454_v46  ;;  %v5321_v59 = vsel %vm5277_vm9, %v4660_v56, %v5320_v41  ;;  %v7334_v51 = vpack.c.bf16 %v5175_v20, %v5171_v50  ;;  %v7336_v34 = vpack.c.bf16 %v5184_v28, %v5180_v53  ;;  %v5187_v46 = vld [vmem:[#allocation16 + $0x780] sm:$0xff]  ;;  %v5196_v45 = vld [vmem:[#allocation16 + $0x7c8] sm:$0xff]  ;;  %v5193_v29 = vld [vmem:[#allocation16 + $0x7b0] sm:$0xff] }
 0x5ab   :  { %7457 = vmatprep.subr.bf16.mxu1 %v7456_v18  ;;  %v10489_v39 = vsel %vm5279_vm10, %v4684_v35, %v5321_v59  ;;  %v7462_v54 = vpack.c.bf16 %v5177_v30, %v5173_v61  ;;  %v7464_v4 = vpack.c.bf16 %v5186_v26, %v5182_v32  ;;  %v7338_v62 = vpack.c.bf16 %v5183_v42, %v5179_v25  ;;  %v5191_v27 = vld [vmem:[#allocation16 + $0x7a0] sm:$0xff]  ;;  %v5200_v17 = vld [vmem:[#allocation16 + $0x7e8] sm:$0xff]  ;;  %v5198_v44 = vld [vmem:[#allocation16 + $0x7d8] sm:$0xff] }
 0x5ac   :  { %7331 = vmatpush1.bf16.msra.mxu0 %v7330_v57  ;;  %v7340_v49 = vpack.c.bf16 %v5192_v60, %v5188_v6  ;;  %v7466_v9 = vpack.c.bf16 %v5185_v47, %v5181_v19  ;;  %v7468_v36 = vpack.c.bf16 %v5194_v33, %v5190_v13  ;;  %v7342_v1 = vpack.c.bf16 %v5191_v27, %v5187_v46  ;;  %v5202_v11 = vld [vmem:[#allocation16 + $0x7f8] sm:$0xff]  ;;  %v5195_v58 = vld [vmem:[#allocation16 + $0x7c0] sm:$0xff]  ;;  %v4692_v55 = vld [vmem:[#allocation14 + $0x8] sm:$0xff] }
 0x5ad   :  { %7333 = vmatprep.subr.bf16.mxu0 %v7332_v15  ;;  %v7344_v10 = vpack.c.bf16 %v5200_v17, %v5196_v45  ;;  %v5199_v22 = vld [vmem:[#allocation16 + $0x7e0] sm:$0xff]  ;;  %v7470_v0 = vpack.c.bf16 %v5193_v29, %v5189_v48  ;;  %v4696_v8 = vld [vmem:[#allocation14 + $0x28] sm:$0xff]  ;;  %v7472_v52 = vpack.c.bf16 %v5202_v11, %v5198_v44  ;;  %v5197_v63 = vld [vmem:[#allocation16 + $0x7d0] sm:$0xff] }
 0x5ae   :  { %7459 = vmatpush1.bf16.msra.mxu1 %v7458_v40  ;;  %v5201_v56 = vld [vmem:[#allocation16 + $0x7f0] sm:$0xff]  ;;  %v7346_v24 = vpack.c.bf16 %v5199_v22, %v5195_v58  ;;  %v4694_v14 = vld [vmem:[#allocation14 + $0x18] sm:$0xff]  ;;  %v7476_v18 = vpack.c.bf16 %v4696_v8, %v4692_v55  ;;  %v4691_v23 = vld [vmem:[#allocation14] sm:$0xff] }
 0x5af   :  { %7461 = vmatprep.subr.bf16.mxu1 %v7460_v2  ;;  %v4698_v5 = vld [vmem:[#allocation14 + $0x38] sm:$0xff]  ;;  %v4695_v37 = vld [vmem:[#allocation14 + $0x20] sm:$0xff]  ;;  %v7474_v21 = vpack.c.bf16 %v5201_v56, %v5197_v63  ;;  %v4700_v35 = vld [vmem:[#allocation14 + $0x48] sm:$0xff] }
 0x5b0   :  { %7335 = vmatpush1.bf16.msra.mxu0 %v7334_v51  ;;  %v4704_v7 = vld [vmem:[#allocation14 + $0x68] sm:$0xff]  ;;  %v7604_v57 = vpack.c.bf16 %v4698_v5, %v4694_v14  ;;  %v4693_v3 = vld [vmem:[#allocation14 + $0x10] sm:$0xff]  ;;  %v7478_v31 = vpack.c.bf16 %v4695_v37, %v4691_v23  ;;  %v4702_v16 = vld [vmem:[#allocation14 + $0x58] sm:$0xff] }
 0x5b1   :  { %7337 = vmatprep.subr.bf16.mxu0 %v7336_v34  ;;  %v4697_v38 = vld [vmem:[#allocation14 + $0x30] sm:$0xff]  ;;  %v4706_v15 = vld [vmem:[#allocation14 + $0x78] sm:$0xff]  ;;  %v7480_v50 = vpack.c.bf16 %v4704_v7, %v4700_v35  ;;  %v4699_v20 = vld [vmem:[#allocation14 + $0x40] sm:$0xff] }
 0x5b2   :  { %7463 = vmatpush1.bf16.msra.mxu1 %v7462_v54  ;;  %v4703_v41 = vld [vmem:[#allocation14 + $0x60] sm:$0xff]  ;;  %v7606_v40 = vpack.c.bf16 %v4697_v38, %v4693_v3  ;;  %v4708_v53 = vld [vmem:[#allocation14 + $0x88] sm:$0xff]  ;;  %v7608_v59 = vpack.c.bf16 %v4706_v15, %v4702_v16  ;;  %v4701_v2 = vld [vmem:[#allocation14 + $0x50] sm:$0xff] }
 0x5b3   :  { %7465 = vmatprep.subr.bf16.mxu1 %v7464_v4  ;;  %v4712_v28 = vld [vmem:[#allocation14 + $0xa8] sm:$0xff]  ;;  %v4705_v61 = vld [vmem:[#allocation14 + $0x70] sm:$0xff]  ;;  %v7482_v30 = vpack.c.bf16 %v4703_v41, %v4699_v20  ;;  %v4710_v51 = vld [vmem:[#allocation14 + $0x98] sm:$0xff] }
 0x5b4   :  { %7339 = vmatpush1.bf16.msra.mxu0 %v7338_v62  ;;  %v4714_v32 = vld [vmem:[#allocation14 + $0xb8] sm:$0xff]  ;;  %v7484_v26 = vpack.c.bf16 %v4712_v28, %v4708_v53  ;;  %v4707_v34 = vld [vmem:[#allocation14 + $0x80] sm:$0xff]  ;;  %v7610_v42 = vpack.c.bf16 %v4705_v61, %v4701_v2  ;;  %v4716_v54 = vld [vmem:[#allocation14 + $0xc8] sm:$0xff] }
 0x5b5   :  { %7341 = vmatprep.subr.bf16.mxu0 %v7340_v49  ;;  %v4711_v25 = vld [vmem:[#allocation14 + $0xa0] sm:$0xff]  ;;  %v4720_v6 = vld [vmem:[#allocation14 + $0xe8] sm:$0xff]  ;;  %v7612_v60 = vpack.c.bf16 %v4714_v32, %v4710_v51  ;;  %v4709_v4 = vld [vmem:[#allocation14 + $0x90] sm:$0xff] }
 0x5b6   :  { %7467 = vmatpush1.bf16.msra.mxu1 %v7466_v9  ;;  %v4713_v19 = vld [vmem:[#allocation14 + $0xb0] sm:$0xff]  ;;  %v7486_v47 = vpack.c.bf16 %v4711_v25, %v4707_v34  ;;  %v4718_v62 = vld [vmem:[#allocation14 + $0xd8] sm:$0xff]  ;;  %v4715_v33 = vld [vmem:[#allocation14 + $0xc0] sm:$0xff] }
 0x5b7   :  { %7469 = vmatprep.subr.bf16.mxu1 %v7468_v36  ;;  %v8058_v13 = vld [vmem:[#allocation2 + $0x8] sm:$0xff]  ;;  %v7614_v46 = vpack.c.bf16 %v4713_v19, %v4709_v4  ;;  %v4724_v27 = vld [vmem:[#allocation14 + $0x108] sm:$0xff]  ;;  %v4717_v17 = vld [vmem:[#allocation14 + $0xd0] sm:$0xff] }
 0x5b8   :  { %7343 = vmatpush1.bf16.msra.mxu0 %v7342_v1  ;;  %v4719_v49 = vld [vmem:[#allocation14 + $0xe0] sm:$0xff]  ;;  %v4728_v9 = vld [vmem:[#allocation14 + $0x128] sm:$0xff]  ;;  %v4721_v36 = vld [vmem:[#allocation14 + $0xf0] sm:$0xff] }
 0x5b9   :  { %7345 = vmatprep.subr.bf16.mxu0 %v7344_v10  ;;  %v7490_v48 = vpack.c.bf16 %v4719_v49, %v4715_v33  ;;  %v4726_v29 = vld [vmem:[#allocation14 + $0x118] sm:$0xff]  ;;  %v7492_v44 = vpack.c.bf16 %v4728_v9, %v4724_v27  ;;  %v4727_v11 = vld [vmem:[#allocation14 + $0x120] sm:$0xff]  ;;  %v7618_v10 = vpack.c.bf16 %v4721_v36, %v4717_v17  ;;  %v4732_v58 = vld [vmem:[#allocation14 + $0x148] sm:$0xff] }
 0x5ba   :  { %7471 = vmatpush1.bf16.msra.mxu1 %v7470_v0  ;;  %v4730_v1 = vld [vmem:[#allocation14 + $0x138] sm:$0xff]  ;;  %v4736_v22 = vld [vmem:[#allocation14 + $0x168] sm:$0xff]  ;;  %v4725_v55 = vld [vmem:[#allocation14 + $0x110] sm:$0xff] }
 0x5bb   :  { %7473 = vmatprep.subr.bf16.mxu1 %v7472_v52  ;;  %v7620_v0 = vpack.c.bf16 %v4730_v1, %v4726_v29  ;;  %v4729_v8 = vld [vmem:[#allocation14 + $0x130] sm:$0xff]  ;;  %v4734_v63 = vld [vmem:[#allocation14 + $0x158] sm:$0xff]  ;;  %v4731_v14 = vld [vmem:[#allocation14 + $0x140] sm:$0xff] }
 0x5bc   :  { %7347 = vmatpush1.bf16.msra.mxu0 %v7346_v24  ;;  %v4738_v56 = vld [vmem:[#allocation14 + $0x178] sm:$0xff]  ;;  %v7496_v24 = vpack.c.bf16 %v4736_v22, %v4732_v58  ;;  %v4735_v5 = vld [vmem:[#allocation14 + $0x160] sm:$0xff]  ;;  %v4740_v23 = vld [vmem:[#allocation14 + $0x188] sm:$0xff] }
 0x5bd   :  { %7477 = vmatprep.subr.bf16.mxu0 %v7476_v18  ;;  %v7622_v18 = vpack.c.bf16 %v4729_v8, %v4725_v55  ;;  %v4744_v37 = vld [vmem:[#allocation14 + $0x1a8] sm:$0xff]  ;;  %v4733_v35 = vld [vmem:[#allocation14 + $0x150] sm:$0xff]  ;;  %v4742_v3 = vld [vmem:[#allocation14 + $0x198] sm:$0xff] }
 0x5be   :  { %7475 = vmatpush1.bf16.msra.mxu1 %v7474_v21  ;;  %v7624_v21 = vpack.c.bf16 %v4738_v56, %v4734_v63  ;;  %v4737_v7 = vld [vmem:[#allocation14 + $0x170] sm:$0xff]  ;;  %v4746_v38 = vld [vmem:[#allocation14 + $0x1b8] sm:$0xff]  ;;  %v4739_v16 = vld [vmem:[#allocation14 + $0x180] sm:$0xff] }
 0x5bf   :  { %5480 = vmatmul.mubr.f32.vlgmr.msra.gmra.mrb[72].mxu0 %v10473_v12  ;;  %7605 = vmatprep.subr.bf16.mxu1 %v7604_v57  ;;  %v7498_v57 = vpack.c.bf16 %v4735_v5, %v4731_v14  ;;  %v4743_v15 = vld [vmem:[#allocation14 + $0x1a0] sm:$0xff]  ;;  %v4748_v20 = vld [vmem:[#allocation14 + $0x1c8] sm:$0xff]  ;;  %v4741_v53 = vld [vmem:[#allocation14 + $0x190] sm:$0xff] }
 0x5c0   :  { %5485 = vmatprep.mubr.f32.mxu0 %v10484_v43  ;;  %7479 = vmatpush1.bf16.msra.mxu0 %v7478_v31  ;;  %v7500_v31 = vpack.c.bf16 %v4744_v37, %v4740_v23  ;;  %v4752_v41 = vld [vmem:[#allocation14 + $0x1e8] sm:$0xff]  ;;  %v4745_v28 = vld [vmem:[#allocation14 + $0x1b0] sm:$0xff]  ;;  %v4750_v2 = vld [vmem:[#allocation14 + $0x1d8] sm:$0xff] }
 0x5c1   :  { %5634 = vmatmul.mubr.f32.vlgmr.msra.gmra.mrb[72].mxu1 %v10473_v12  ;;  %7481 = vmatprep.subr.bf16.mxu0 %v7480_v50  ;;  %v4722_v12 = vld [vmem:[#allocation14 + $0xf8] sm:$0xff]  ;;  %v7626_v50 = vpack.c.bf16 %v4737_v7, %v4733_v35  ;;  %v4747_v51 = vld [vmem:[#allocation14 + $0x1c0] sm:$0xff]  ;;  %v4756_v34 = vld [vmem:[#allocation14 + $0x208] sm:$0xff] }
 0x5c2   :  { %5639 = vmatprep.mubr.f32.mxu1 %v10484_v43  ;;  %7607 = vmatpush1.bf16.msra.mxu1 %v7606_v40  ;;  %v7488_v43 = vpack.c.bf16 %v4720_v6, %v4716_v54  ;;  %v7616_v45 = vpack.c.bf16 %v4722_v12, %v4718_v62  ;;  %v7628_v40 = vpack.c.bf16 %v4746_v38, %v4742_v3  ;;  %v4754_v61 = vld [vmem:[#allocation14 + $0x1f8] sm:$0xff]  ;;  %v4751_v32 = vld [vmem:[#allocation14 + $0x1e0] sm:$0xff]  ;;  %v4760_v25 = vld [vmem:[#allocation14 + $0x228] sm:$0xff] }
 0x5c3   :  { %5486 = vmatmul.mubr.f32.gmra.mrb[74].mxu0 %v10489_v39  ;;  %7609 = vmatprep.subr.bf16.mxu1 %v7608_v59  ;;  %v7502_v59 = vpack.c.bf16 %v4743_v15, %v4739_v16  ;;  %v4749_v54 = vld [vmem:[#allocation14 + $0x1d0] sm:$0xff]  ;;  %v4758_v4 = vld [vmem:[#allocation14 + $0x218] sm:$0xff]  ;;  %v4755_v62 = vld [vmem:[#allocation14 + $0x200] sm:$0xff] }
 0x5c4   :  { %7483 = vmatpush1.bf16.msra.mxu0 %v7482_v30  ;;  %5710 = vmatprep.mubr.f32.mxu0 %v8058_v13  ;;  %v7504_v30 = vpack.c.bf16 %v4752_v41, %v4748_v20  ;;  %v4753_v6 = vld [vmem:[#allocation14 + $0x1f0] sm:$0xff]  ;;  %v4762_v19 = vld [vmem:[#allocation14 + $0x238] sm:$0xff]  ;;  %v4759_v12 = vld [vmem:[#allocation14 + $0x220] sm:$0xff] }
 0x5c5   :  { %5640 = vmatmul.mubr.f32.gmra.mrb[74].mxu1 %v10489_v39  ;;  %7485 = vmatprep.subr.bf16.mxu0 %v7484_v26  ;;  %v4723_v39 = vld [vmem:[#allocation14 + $0x100] sm:$0xff]  ;;  %v7630_v26 = vpack.c.bf16 %v4745_v28, %v4741_v53  ;;  %v4768_v33 = vld [vmem:[#allocation14 + $0x268] sm:$0xff]  ;;  %v7636_v49 = vpack.c.bf16 %v4762_v19, %v4758_v4  ;;  %v4761_v27 = vld [vmem:[#allocation14 + $0x230] sm:$0xff]  ;;  %v7510_v9 = vpack.c.bf16 %v4759_v12, %v4755_v62 }
 0x5c6   :  { %7611 = vmatpush1.bf16.msra.mxu1 %v7610_v42  ;;  %5864 = vmatprep.mubr.f32.mxu1 %v8058_v13  ;;  %v7494_v52 = vpack.c.bf16 %v4727_v11, %v4723_v39  ;;  %v7632_v42 = vpack.c.bf16 %v4754_v61, %v4750_v2  ;;  %v7634_v13 = vpack.c.bf16 %v4753_v6, %v4749_v54  ;;  %v4770_v17 = vld [vmem:[#allocation14 + $0x278] sm:$0xff]  ;;  %v4767_v29 = vld [vmem:[#allocation14 + $0x260] sm:$0xff]  ;;  %v4776_v39 = vld [vmem:[#allocation14 + $0x2a8] sm:$0xff] }
 0x5c7   :  { %7613 = vmatprep.subr.bf16.mxu1 %v7612_v60  ;;  %v7506_v60 = vpack.c.bf16 %v4751_v32, %v4747_v51  ;;  %v4769_v58 = vld [vmem:[#allocation14 + $0x270] sm:$0xff]  ;;  %v4778_v55 = vld [vmem:[#allocation14 + $0x2b8] sm:$0xff]  ;;  %v4775_v63 = vld [vmem:[#allocation14 + $0x2a0] sm:$0xff] }
 0x5c8   :  { %7487 = vmatpush1.bf16.msra.mxu0 %v7486_v47  ;;  %v7508_v47 = vpack.c.bf16 %v4760_v25, %v4756_v34  ;;  %v4784_v14 = vld [vmem:[#allocation14 + $0x2e8] sm:$0xff]  ;;  %v4777_v23 = vld [vmem:[#allocation14 + $0x2b0] sm:$0xff]  ;;  %v4786_v35 = vld [vmem:[#allocation14 + $0x2f8] sm:$0xff] }
 0x5c9   :  { %7489 = vmatprep.subr.bf16.mxu0 %v7488_v43  ;;  %v4764_v43 = vld [vmem:[#allocation14 + $0x248] sm:$0xff]  ;;  %v4783_v3 = vld [vmem:[#allocation14 + $0x2e0] sm:$0xff]  ;;  %v4785_v20 = vld [vmem:[#allocation14 + $0x2f0] sm:$0xff] }
 0x5ca   :  { %7615 = vmatpush1.bf16.msra.mxu1 %v7614_v46  ;;  %v4757_v46 = vld [vmem:[#allocation14 + $0x210] sm:$0xff]  ;;  %v7512_v36 = vpack.c.bf16 %v4768_v33, %v4764_v43  ;;  %v4792_v16 = vld [vmem:[#allocation14 + $0x328] sm:$0xff]  ;;  %v4794_v53 = vld [vmem:[#allocation14 + $0x338] sm:$0xff] }
 0x5cb   :  { %7617 = vmatprep.subr.bf16.mxu1 %v7616_v45  ;;  %v4766_v45 = vld [vmem:[#allocation14 + $0x258] sm:$0xff]  ;;  %v7638_v1 = vpack.c.bf16 %v4761_v27, %v4757_v46  ;;  %v4791_v2 = vld [vmem:[#allocation14 + $0x320] sm:$0xff]  ;;  %v4800_v51 = vld [vmem:[#allocation14 + $0x368] sm:$0xff] }
 0x5cc   :  { %7491 = vmatpush1.bf16.msra.mxu0 %v7490_v48  ;;  %v4763_v48 = vld [vmem:[#allocation14 + $0x240] sm:$0xff]  ;;  %v7640_v11 = vpack.c.bf16 %v4770_v17, %v4766_v45  ;;  %v4793_v34 = vld [vmem:[#allocation14 + $0x330] sm:$0xff]  ;;  %v4802_v54 = vld [vmem:[#allocation14 + $0x378] sm:$0xff] }
 0x5cd   :  { %7493 = vmatprep.subr.bf16.mxu0 %v7492_v44  ;;  %v4772_v44 = vld [vmem:[#allocation14 + $0x288] sm:$0xff]  ;;  %v7514_v22 = vpack.c.bf16 %v4767_v29, %v4763_v48  ;;  %v4799_v4 = vld [vmem:[#allocation14 + $0x360] sm:$0xff]  ;;  %v4801_v43 = vld [vmem:[#allocation14 + $0x370] sm:$0xff] }
 0x5ce   :  { %7619 = vmatpush1.bf16.msra.mxu1 %v7618_v10  ;;  %v4765_v10 = vld [vmem:[#allocation14 + $0x250] sm:$0xff]  ;;  %v7516_v8 = vpack.c.bf16 %v4776_v39, %v4772_v44  ;;  %v4808_v62 = vld [vmem:[#allocation14 + $0x3a8] sm:$0xff]  ;;  %v4810_v46 = vld [vmem:[#allocation14 + $0x3b8] sm:$0xff] }
 0x5cf   :  { %7621 = vmatprep.subr.bf16.mxu1 %v7620_v0  ;;  %v4774_v0 = vld [vmem:[#allocation14 + $0x298] sm:$0xff]  ;;  %v7642_v56 = vpack.c.bf16 %v4769_v58, %v4765_v10  ;;  %v4807_v45 = vld [vmem:[#allocation14 + $0x3a0] sm:$0xff]  ;;  %v4816_v48 = vld [vmem:[#allocation14 + $0x3e8] sm:$0xff] }
 0x5d0   :  { %7495 = vmatpush1.bf16.msra.mxu0 %v7494_v52  ;;  %v4771_v52 = vld [vmem:[#allocation14 + $0x280] sm:$0xff]  ;;  %v7644_v5 = vpack.c.bf16 %v4778_v55, %v4774_v0  ;;  %v4809_v44 = vld [vmem:[#allocation14 + $0x3b0] sm:$0xff]  ;;  %v4818_v10 = vld [vmem:[#allocation14 + $0x3f8] sm:$0xff] }
 0x5d1   :  { %7497 = vmatprep.subr.bf16.mxu0 %v7496_v24  ;;  %v4780_v24 = vld [vmem:[#allocation14 + $0x2c8] sm:$0xff]  ;;  %v7518_v37 = vpack.c.bf16 %v4775_v63, %v4771_v52  ;;  %v4815_v0 = vld [vmem:[#allocation14 + $0x3e0] sm:$0xff] }
 0x5d2   :  { %7623 = vmatpush1.bf16.msra.mxu1 %v7622_v18  ;;  %v4773_v18 = vld [vmem:[#allocation14 + $0x290] sm:$0xff]  ;;  %v7520_v7 = vpack.c.bf16 %v4784_v14, %v4780_v24  ;;  %v4824_v52 = vld [vmem:[#allocation14 + $0x428] sm:$0xff] }
 0x5d3   :  { %7625 = vmatprep.subr.bf16.mxu1 %v7624_v21  ;;  %v4782_v21 = vld [vmem:[#allocation14 + $0x2d8] sm:$0xff]  ;;  %v7646_v38 = vpack.c.bf16 %v4777_v23, %v4773_v18  ;;  %v4817_v24 = vld [vmem:[#allocation14 + $0x3f0] sm:$0xff] }
 0x5d4   :  { %7499 = vmatpush1.bf16.msra.mxu0 %v7498_v57  ;;  %v4779_v57 = vld [vmem:[#allocation14 + $0x2c0] sm:$0xff]  ;;  %v7648_v15 = vpack.c.bf16 %v4786_v35, %v4782_v21  ;;  %v4826_v18 = vld [vmem:[#allocation14 + $0x438] sm:$0xff] }
 0x5d5   :  { %7501 = vmatprep.subr.bf16.mxu0 %v7500_v31  ;;  %v4788_v31 = vld [vmem:[#allocation14 + $0x308] sm:$0xff]  ;;  %v7522_v41 = vpack.c.bf16 %v4783_v3, %v4779_v57  ;;  %v4823_v21 = vld [vmem:[#allocation14 + $0x420] sm:$0xff] }
 0x5d6   :  { %7627 = vmatpush1.bf16.msra.mxu1 %v7626_v50  ;;  %v4781_v50 = vld [vmem:[#allocation14 + $0x2d0] sm:$0xff]  ;;  %v7524_v28 = vpack.c.bf16 %v4792_v16, %v4788_v31  ;;  %v4832_v57 = vld [vmem:[#allocation14 + $0x468] sm:$0xff] }
 0x5d7   :  { %7629 = vmatprep.subr.bf16.mxu1 %v7628_v40  ;;  %v4790_v40 = vld [vmem:[#allocation14 + $0x318] sm:$0xff]  ;;  %v7650_v61 = vpack.c.bf16 %v4785_v20, %v4781_v50  ;;  %v4825_v31 = vld [vmem:[#allocation14 + $0x430] sm:$0xff] }
 0x5d8   :  { %7503 = vmatpush1.bf16.msra.mxu0 %v7502_v59  ;;  %v4787_v59 = vld [vmem:[#allocation14 + $0x300] sm:$0xff]  ;;  %v7652_v32 = vpack.c.bf16 %v4794_v53, %v4790_v40  ;;  %v4834_v50 = vld [vmem:[#allocation14 + $0x478] sm:$0xff] }
 0x5d9   :  { %7505 = vmatprep.subr.bf16.mxu0 %v7504_v30  ;;  %v4796_v30 = vld [vmem:[#allocation14 + $0x348] sm:$0xff]  ;;  %v7526_v25 = vpack.c.bf16 %v4791_v2, %v4787_v59  ;;  %v4831_v40 = vld [vmem:[#allocation14 + $0x460] sm:$0xff]  ;;  %v8059_v2 = vld [vmem:[#allocation2] sm:$0xff] }
 0x5da   :  { %7631 = vmatpush1.bf16.msra.mxu1 %v7630_v26  ;;  %v4789_v26 = vld [vmem:[#allocation14 + $0x310] sm:$0xff]  ;;  %v7528_v6 = vpack.c.bf16 %v4800_v51, %v4796_v30  ;;  %v4840_v59 = vld [vmem:[#allocation14 + $0x4a8] sm:$0xff] }
 0x5db   :  { %7633 = vmatprep.subr.bf16.mxu1 %v7632_v42  ;;  %v4798_v42 = vld [vmem:[#allocation14 + $0x358] sm:$0xff]  ;;  %v7654_v19 = vpack.c.bf16 %v4793_v34, %v4789_v26  ;;  %v4829_v30 = vld [vmem:[#allocation14 + $0x450] sm:$0xff] }
 0x5dc   :  { %7507 = vmatpush1.bf16.msra.mxu0 %v7506_v60  ;;  %v4795_v60 = vld [vmem:[#allocation14 + $0x340] sm:$0xff]  ;;  %v7656_v12 = vpack.c.bf16 %v4802_v54, %v4798_v42  ;;  %v4833_v51 = vld [vmem:[#allocation14 + $0x470] sm:$0xff]  ;;  %v4838_v26 = vld [vmem:[#allocation14 + $0x498] sm:$0xff] }
 0x5dd   :  { %7509 = vmatprep.subr.bf16.mxu0 %v7508_v47  ;;  %v4804_v47 = vld [vmem:[#allocation14 + $0x388] sm:$0xff]  ;;  %v7530_v33 = vpack.c.bf16 %v4799_v4, %v4795_v60  ;;  %v4842_v34 = vld [vmem:[#allocation14 + $0x4b8] sm:$0xff]  ;;  %v4835_v54 = vld [vmem:[#allocation14 + $0x480] sm:$0xff]  ;;  %v7674_v60 = vpack.c.bf16 %v4833_v51, %v4829_v30 }
 0x5de   :  { %7635 = vmatpush1.bf16.msra.mxu1 %v7634_v13  ;;  %v4797_v13 = vld [vmem:[#allocation14 + $0x350] sm:$0xff]  ;;  %v7532_v27 = vpack.c.bf16 %v4808_v62, %v4804_v47  ;;  %v4844_v4 = vld [vmem:[#allocation14 + $0x4c8] sm:$0xff]  ;;  %v7676_v47 = vpack.c.bf16 %v4842_v34, %v4838_v26  ;;  %v4882_v26 = vld [vmem:[#allocation14 + $0x5f8] sm:$0xff] }
 0x5df   :  { %7637 = vmatprep.subr.bf16.mxu1 %v7636_v49  ;;  %v4806_v49 = vld [vmem:[#allocation14 + $0x398] sm:$0xff]  ;;  %v7658_v17 = vpack.c.bf16 %v4801_v43, %v4797_v13  ;;  %v4837_v62 = vld [vmem:[#allocation14 + $0x490] sm:$0xff] }
 0x5e0   :  { %7511 = vmatpush1.bf16.msra.mxu0 %v7510_v9  ;;  %v4803_v9 = vld [vmem:[#allocation14 + $0x380] sm:$0xff]  ;;  %v7660_v29 = vpack.c.bf16 %v4810_v46, %v4806_v49  ;;  %v8061_v13 = vld [vmem:[#allocation2 + $0x20] sm:$0xff]  ;;  %v8062_v46 = vld [vmem:[#allocation2 + $0x18] sm:$0xff] }
 0x5e1   :  { %7513 = vmatprep.subr.bf16.mxu0 %v7512_v36  ;;  %v4812_v36 = vld [vmem:[#allocation14 + $0x3c8] sm:$0xff]  ;;  %v7534_v39 = vpack.c.bf16 %v4807_v45, %v4803_v9  ;;  %v4850_v49 = vld [vmem:[#allocation14 + $0x4f8] sm:$0xff]  ;;  %v4843_v9 = vld [vmem:[#allocation14 + $0x4c0] sm:$0xff] }
 0x5e2   :  { %7639 = vmatpush1.bf16.msra.mxu1 %v7638_v1  ;;  %v4805_v1 = vld [vmem:[#allocation14 + $0x390] sm:$0xff]  ;;  %v7536_v58 = vpack.c.bf16 %v4816_v48, %v4812_v36  ;;  %v4847_v45 = vld [vmem:[#allocation14 + $0x4e0] sm:$0xff]  ;;  %v4852_v36 = vld [vmem:[#allocation14 + $0x508] sm:$0xff] }
 0x5e3   :  { %7641 = vmatprep.subr.bf16.mxu1 %v7640_v11  ;;  %v4814_v11 = vld [vmem:[#allocation14 + $0x3d8] sm:$0xff]  ;;  %v7662_v55 = vpack.c.bf16 %v4809_v44, %v4805_v1  ;;  %v4856_v48 = vld [vmem:[#allocation14 + $0x528] sm:$0xff]  ;;  %v4845_v1 = vld [vmem:[#allocation14 + $0x4d0] sm:$0xff] }
 0x5e4   :  { %7515 = vmatpush1.bf16.msra.mxu0 %v7514_v22  ;;  %v4811_v22 = vld [vmem:[#allocation14 + $0x3c0] sm:$0xff]  ;;  %v7664_v63 = vpack.c.bf16 %v4818_v10, %v4814_v11  ;;  %v4849_v44 = vld [vmem:[#allocation14 + $0x4f0] sm:$0xff]  ;;  %v4854_v11 = vld [vmem:[#allocation14 + $0x518] sm:$0xff] }
 0x5e5   :  { %7517 = vmatprep.subr.bf16.mxu0 %v7516_v8  ;;  %v4820_v8 = vld [vmem:[#allocation14 + $0x408] sm:$0xff]  ;;  %v7538_v14 = vpack.c.bf16 %v4815_v0, %v4811_v22  ;;  %v4858_v10 = vld [vmem:[#allocation14 + $0x538] sm:$0xff]  ;;  %v4851_v22 = vld [vmem:[#allocation14 + $0x500] sm:$0xff] }
 0x5e6   :  { %7643 = vmatpush1.bf16.msra.mxu1 %v7642_v56  ;;  %v4813_v56 = vld [vmem:[#allocation14 + $0x3d0] sm:$0xff]  ;;  %v7540_v23 = vpack.c.bf16 %v4824_v52, %v4820_v8  ;;  %v4855_v0 = vld [vmem:[#allocation14 + $0x520] sm:$0xff]  ;;  %v4860_v8 = vld [vmem:[#allocation14 + $0x548] sm:$0xff] }
 0x5e7   :  { %7645 = vmatprep.subr.bf16.mxu1 %v7644_v5  ;;  %v4822_v5 = vld [vmem:[#allocation14 + $0x418] sm:$0xff]  ;;  %v7666_v35 = vpack.c.bf16 %v4817_v24, %v4813_v56  ;;  %v4864_v52 = vld [vmem:[#allocation14 + $0x568] sm:$0xff]  ;;  %v4853_v56 = vld [vmem:[#allocation14 + $0x510] sm:$0xff] }
 0x5e8   :  { %7519 = vmatpush1.bf16.msra.mxu0 %v7518_v37  ;;  %v4819_v37 = vld [vmem:[#allocation14 + $0x400] sm:$0xff]  ;;  %v7668_v3 = vpack.c.bf16 %v4826_v18, %v4822_v5  ;;  %v4857_v24 = vld [vmem:[#allocation14 + $0x530] sm:$0xff]  ;;  %v4862_v5 = vld [vmem:[#allocation14 + $0x558] sm:$0xff] }
 0x5e9   :  { %7521 = vmatprep.subr.bf16.mxu0 %v7520_v7  ;;  %v4828_v7 = vld [vmem:[#allocation14 + $0x448] sm:$0xff]  ;;  %v7542_v16 = vpack.c.bf16 %v4823_v21, %v4819_v37  ;;  %v4866_v18 = vld [vmem:[#allocation14 + $0x578] sm:$0xff]  ;;  %v4859_v37 = vld [vmem:[#allocation14 + $0x540] sm:$0xff] }
 0x5ea   :  { %7647 = vmatpush1.bf16.msra.mxu1 %v7646_v38  ;;  %v4821_v38 = vld [vmem:[#allocation14 + $0x410] sm:$0xff]  ;;  %v7544_v20 = vpack.c.bf16 %v4832_v57, %v4828_v7  ;;  %v4863_v21 = vld [vmem:[#allocation14 + $0x560] sm:$0xff]  ;;  %v4868_v7 = vld [vmem:[#allocation14 + $0x588] sm:$0xff] }
 0x5eb   :  { %7649 = vmatprep.subr.bf16.mxu1 %v7648_v15  ;;  %v4830_v15 = vld [vmem:[#allocation14 + $0x458] sm:$0xff]  ;;  %v7670_v53 = vpack.c.bf16 %v4825_v31, %v4821_v38  ;;  %v4872_v57 = vld [vmem:[#allocation14 + $0x5a8] sm:$0xff]  ;;  %v4861_v38 = vld [vmem:[#allocation14 + $0x550] sm:$0xff] }
 0x5ec   :  { %7523 = vmatpush1.bf16.msra.mxu0 %v7522_v41  ;;  %v4827_v41 = vld [vmem:[#allocation14 + $0x440] sm:$0xff]  ;;  %v4865_v31 = vld [vmem:[#allocation14 + $0x570] sm:$0xff] }
 0x5ed   :  { %7525 = vmatprep.subr.bf16.mxu0 %v7524_v28  ;;  %v4836_v28 = vld [vmem:[#allocation14 + $0x488] sm:$0xff]  ;;  %v4873_v30 = vld [vmem:[#allocation14 + $0x5b0] sm:$0xff] }
 0x5ee   :  { %7651 = vmatpush1.bf16.msra.mxu1 %v7650_v61  ;;  %v7672_v61 = vpack.c.bf16 %v4834_v50, %v4830_v15  ;;  %v7548_v42 = vpack.c.bf16 %v4840_v59, %v4836_v28  ;;  %v4870_v15 = vld [vmem:[#allocation14 + $0x598] sm:$0xff]  ;;  %v4876_v28 = vld [vmem:[#allocation14 + $0x5c8] sm:$0xff] }
 0x5ef   :  { %7653 = vmatprep.subr.bf16.mxu1 %v7652_v32  ;;  %v7546_v32 = vpack.c.bf16 %v4831_v40, %v4827_v41  ;;  %v4874_v50 = vld [vmem:[#allocation14 + $0x5b8] sm:$0xff]  ;;  %v4867_v41 = vld [vmem:[#allocation14 + $0x580] sm:$0xff]  ;;  %v4880_v59 = vld [vmem:[#allocation14 + $0x5e8] sm:$0xff] }
 0x5f0   :  { %7527 = vmatpush1.bf16.msra.mxu0 %v7526_v25  ;;  %v8060_v25 = vld [vmem:[#allocation2 + $0x28] sm:$0xff]  ;;  %v7568_v34 = vpack.c.bf16 %v4880_v59, %v4876_v28  ;;  %v4913_v28 = vld [vmem:[#allocation14 + $0x6f0] sm:$0xff] }
 0x5f1   :  { %7529 = vmatprep.subr.bf16.mxu0 %v7528_v6  ;;  %v4839_v6 = vld [vmem:[#allocation14 + $0x4a0] sm:$0xff] }
 0x5f2   :  { %7655 = vmatpush1.bf16.msra.mxu1 %v7654_v19  ;;  %v4848_v19 = vld [vmem:[#allocation14 + $0x4e8] sm:$0xff]  ;;  %v7550_v43 = vpack.c.bf16 %v4839_v6, %v4835_v54  ;;  %v4871_v40 = vld [vmem:[#allocation14 + $0x5a0] sm:$0xff] }
 0x5f3   :  { %7657 = vmatprep.subr.bf16.mxu1 %v7656_v12  ;;  %v4841_v12 = vld [vmem:[#allocation14 + $0x4b0] sm:$0xff]  ;;  %v7566_v51 = vpack.c.bf16 %v4871_v40, %v4867_v41  ;;  %v4884_v6 = vld [vmem:[#allocation14 + $0x608] sm:$0xff] }
 0x5f4   :  { %7531 = vmatpush1.bf16.msra.mxu0 %v7530_v33  ;;  %v4846_v33 = vld [vmem:[#allocation14 + $0x4d8] sm:$0xff]  ;;  %v4920_v41 = vld [vmem:[#allocation14 + $0x728] sm:$0xff] }
 0x5f5   :  { %7533 = vmatprep.subr.bf16.mxu0 %v7532_v27  ;;  %v7552_v27 = vpack.c.bf16 %v4848_v19, %v4844_v4  ;;  %v4877_v19 = vld [vmem:[#allocation14 + $0x5d0] sm:$0xff] }
 0x5f6   :  { %7659 = vmatpush1.bf16.msra.mxu1 %v7658_v17  ;;  %v7678_v17 = vpack.c.bf16 %v4841_v12, %v4837_v62  ;;  %v4886_v12 = vld [vmem:[#allocation14 + $0x618] sm:$0xff] }
 0x5f7   :  { %7661 = vmatprep.subr.bf16.mxu1 %v7660_v29  ;;  %v7680_v29 = vpack.c.bf16 %v4850_v49, %v4846_v33  ;;  %v4883_v33 = vld [vmem:[#allocation14 + $0x600] sm:$0xff] }
 0x5f8   :  { %7535 = vmatpush1.bf16.msra.mxu0 %v7534_v39  ;;  %v7554_v39 = vpack.c.bf16 %v4847_v45, %v4843_v9  ;;  %v4887_v49 = vld [vmem:[#allocation14 + $0x620] sm:$0xff]  ;;  %v4896_v9 = vld [vmem:[#allocation14 + $0x668] sm:$0xff] }
 0x5f9   :  { %7537 = vmatprep.subr.bf16.mxu0 %v7536_v58  ;;  %v7556_v58 = vpack.c.bf16 %v4856_v48, %v4852_v36  ;;  %v4889_v36 = vld [vmem:[#allocation14 + $0x630] sm:$0xff]  ;;  %v7574_v48 = vpack.c.bf16 %v4887_v49, %v4883_v33  ;;  %v4936_v33 = vld [vmem:[#allocation14 + $0x7a8] sm:$0xff] }
 0x5fa   :  { %7663 = vmatpush1.bf16.msra.mxu1 %v7662_v55  ;;  %v7682_v55 = vpack.c.bf16 %v4849_v44, %v4845_v1  ;;  %v4898_v1 = vld [vmem:[#allocation14 + $0x678] sm:$0xff] }
 0x5fb   :  { %7665 = vmatprep.subr.bf16.mxu1 %v7664_v63  ;;  %v7684_v63 = vpack.c.bf16 %v4858_v10, %v4854_v11  ;;  %v4895_v11 = vld [vmem:[#allocation14 + $0x660] sm:$0xff] }
 0x5fc   :  { %7539 = vmatpush1.bf16.msra.mxu0 %v7538_v14  ;;  %v7558_v14 = vpack.c.bf16 %v4855_v0, %v4851_v22  ;;  %v4904_v22 = vld [vmem:[#allocation14 + $0x6a8] sm:$0xff] }
 0x5fd   :  { %7541 = vmatprep.subr.bf16.mxu0 %v7540_v23  ;;  %v7560_v23 = vpack.c.bf16 %v4864_v52, %v4860_v8  ;;  %v4897_v8 = vld [vmem:[#allocation14 + $0x670] sm:$0xff] }
 0x5fe   :  { %7667 = vmatpush1.bf16.msra.mxu1 %v7666_v35  ;;  %v7686_v35 = vpack.c.bf16 %v4857_v24, %v4853_v56  ;;  %v4906_v56 = vld [vmem:[#allocation14 + $0x6b8] sm:$0xff] }
 0x5ff   :  { %7669 = vmatprep.subr.bf16.mxu1 %v7668_v3  ;;  %5711 = vmatmul.mubr.f32.vlgmr.msra.gmra.mrb[72].mxu0 %v8059_v2  ;;  %v7688_v3 = vpack.c.bf16 %v4866_v18, %v4862_v5  ;;  %v4903_v5 = vld [vmem:[#allocation14 + $0x6a0] sm:$0xff] }
 0x600   :  { %7543 = vmatpush1.bf16.msra.mxu0 %v7542_v16  ;;  %5716 = vmatprep.mubr.f32.mxu0 %v8060_v25  ;;  %v7562_v16 = vpack.c.bf16 %v4863_v21, %v4859_v37  ;;  %v4912_v37 = vld [vmem:[#allocation14 + $0x6e8] sm:$0xff] }
 0x601   :  { %5865 = vmatmul.mubr.f32.vlgmr.msra.gmra.mrb[72].mxu1 %v8059_v2  ;;  %7545 = vmatprep.subr.bf16.mxu0 %v7544_v20  ;;  %v7564_v20 = vpack.c.bf16 %v4872_v57, %v4868_v7  ;;  %v7692_v2 = vpack.c.bf16 %v4874_v50, %v4870_v15  ;;  %v4905_v7 = vld [vmem:[#allocation14 + $0x6b0] sm:$0xff]  ;;  %v4911_v15 = vld [vmem:[#allocation14 + $0x6e0] sm:$0xff] }
 0x602   :  { %7671 = vmatpush1.bf16.msra.mxu1 %v7670_v53  ;;  %5870 = vmatprep.mubr.f32.mxu1 %v8060_v25  ;;  %v7690_v53 = vpack.c.bf16 %v4865_v31, %v4861_v38  ;;  %v4875_v25 = vld [vmem:[#allocation14 + $0x5c0] sm:$0xff]  ;;  %v4914_v38 = vld [vmem:[#allocation14 + $0x6f8] sm:$0xff] }
 0x603   :  { %7673 = vmatprep.subr.bf16.mxu1 %v7672_v61  ;;  %5717 = vmatmul.mubr.f32.gmra.mrb[74].mxu0 %v8061_v13  ;;  %v4869_v61 = vld [vmem:[#allocation14 + $0x590] sm:$0xff] }
 0x604   :  { %7547 = vmatpush1.bf16.msra.mxu0 %v7546_v32  ;;  %5787 = vmatprep.mubr.f32.mxu0 %v8062_v46  ;;  %v4878_v32 = vld [vmem:[#allocation14 + $0x5d8] sm:$0xff]  ;;  %v7694_v54 = vpack.c.bf16 %v4873_v30, %v4869_v61 }
 0x605   :  { %7549 = vmatprep.subr.bf16.mxu0 %v7548_v42  ;;  %5871 = vmatmul.mubr.f32.gmra.mrb[74].mxu1 %v8061_v13  ;;  %v4879_v42 = vld [vmem:[#allocation14 + $0x5e0] sm:$0xff]  ;;  %v7696_v4 = vpack.c.bf16 %v4882_v26, %v4878_v32  ;;  %v4890_v13 = vld [vmem:[#allocation14 + $0x638] sm:$0xff] }
 0x606   :  { %7675 = vmatpush1.bf16.msra.mxu1 %v7674_v60  ;;  %5941 = vmatprep.mubr.f32.mxu1 %v8062_v46  ;;  %v4888_v60 = vld [vmem:[#allocation14 + $0x628] sm:$0xff]  ;;  %v7570_v62 = vpack.c.bf16 %v4879_v42, %v4875_v25  ;;  %v7700_v45 = vpack.c.bf16 %v4890_v13, %v4886_v12  ;;  %v4922_v61 = vld [vmem:[#allocation14 + $0x738] sm:$0xff]  ;;  %v4919_v32 = vld [vmem:[#allocation14 + $0x720] sm:$0xff] }
 0x607   :  { %7677 = vmatprep.subr.bf16.mxu1 %v7676_v47  ;;  %v4881_v47 = vld [vmem:[#allocation14 + $0x5f0] sm:$0xff]  ;;  %v4928_v25 = vld [vmem:[#allocation14 + $0x768] sm:$0xff]  ;;  %v4927_v12 = vld [vmem:[#allocation14 + $0x760] sm:$0xff] }
 0x608   :  { %7551 = vmatpush1.bf16.msra.mxu0 %v7550_v43  ;;  %v7572_v43 = vpack.c.bf16 %v4888_v60, %v4884_v6  ;;  %v7698_v46 = vpack.c.bf16 %v4881_v47, %v4877_v19  ;;  %v4921_v6 = vld [vmem:[#allocation14 + $0x730] sm:$0xff]  ;;  %v4930_v19 = vld [vmem:[#allocation14 + $0x778] sm:$0xff] }
 0x609   :  { %7553 = vmatprep.subr.bf16.mxu0 %v7552_v27  ;;  %v4892_v27 = vld [vmem:[#allocation14 + $0x648] sm:$0xff] }
 0x60a   :  { %7679 = vmatpush1.bf16.msra.mxu1 %v7678_v17  ;;  %v4885_v17 = vld [vmem:[#allocation14 + $0x610] sm:$0xff]  ;;  %v7576_v44 = vpack.c.bf16 %v4896_v9, %v4892_v27 }
 0x60b   :  { %7681 = vmatprep.subr.bf16.mxu1 %v7680_v29  ;;  %v4894_v29 = vld [vmem:[#allocation14 + $0x658] sm:$0xff]  ;;  %v7702_v10 = vpack.c.bf16 %v4889_v36, %v4885_v17  ;;  %v4929_v27 = vld [vmem:[#allocation14 + $0x770] sm:$0xff] }
 0x60c   :  { %7555 = vmatpush1.bf16.msra.mxu0 %v7554_v39  ;;  %v4891_v39 = vld [vmem:[#allocation14 + $0x640] sm:$0xff]  ;;  %v7704_v0 = vpack.c.bf16 %v4898_v1, %v4894_v29  ;;  %v4938_v17 = vld [vmem:[#allocation14 + $0x7b8] sm:$0xff] }
 0x60d   :  { %7557 = vmatprep.subr.bf16.mxu0 %v7556_v58  ;;  %v4900_v58 = vld [vmem:[#allocation14 + $0x688] sm:$0xff]  ;;  %v7578_v52 = vpack.c.bf16 %v4895_v11, %v4891_v39  ;;  %v4935_v29 = vld [vmem:[#allocation14 + $0x7a0] sm:$0xff] }
 0x60e   :  { %7683 = vmatpush1.bf16.msra.mxu1 %v7682_v55  ;;  %v4893_v55 = vld [vmem:[#allocation14 + $0x650] sm:$0xff]  ;;  %v7580_v24 = vpack.c.bf16 %v4904_v22, %v4900_v58  ;;  %v4944_v39 = vld [vmem:[#allocation14 + $0x7e8] sm:$0xff] }
 0x60f   :  { %7685 = vmatprep.subr.bf16.mxu1 %v7684_v63  ;;  %v4902_v63 = vld [vmem:[#allocation14 + $0x698] sm:$0xff]  ;;  %v7706_v18 = vpack.c.bf16 %v4897_v8, %v4893_v55  ;;  %v4937_v58 = vld [vmem:[#allocation14 + $0x7b0] sm:$0xff] }
 0x610   :  { %7559 = vmatpush1.bf16.msra.mxu0 %v7558_v14  ;;  %v4899_v14 = vld [vmem:[#allocation14 + $0x680] sm:$0xff]  ;;  %v7708_v21 = vpack.c.bf16 %v4906_v56, %v4902_v63  ;;  %v4946_v55 = vld [vmem:[#allocation14 + $0x7f8] sm:$0xff] }
 0x611   :  { %7561 = vmatprep.subr.bf16.mxu0 %v7560_v23  ;;  %v4908_v23 = vld [vmem:[#allocation14 + $0x6c8] sm:$0xff]  ;;  %v7582_v57 = vpack.c.bf16 %v4903_v5, %v4899_v14  ;;  %v4943_v63 = vld [vmem:[#allocation14 + $0x7e0] sm:$0xff]  ;;  %v4941_v14 = vld [vmem:[#allocation14 + $0x7d0] sm:$0xff] }
 0x612   :  { %7687 = vmatpush1.bf16.msra.mxu1 %v7686_v35  ;;  %v4901_v35 = vld [vmem:[#allocation14 + $0x690] sm:$0xff]  ;;  %v7584_v31 = vpack.c.bf16 %v4912_v37, %v4908_v23  ;;  %v8063_v37 = vld [vmem:[#allocation2 + $0x10] sm:$0xff] }
 0x613   :  { %7689 = vmatprep.subr.bf16.mxu1 %v7688_v3  ;;  %v4910_v3 = vld [vmem:[#allocation14 + $0x6d8] sm:$0xff]  ;;  %v7710_v50 = vpack.c.bf16 %v4905_v7, %v4901_v35  ;;  %v4945_v5 = vld [vmem:[#allocation14 + $0x7f0] sm:$0xff]  ;;  %v8065_v35 = vld [vmem:[#allocation2 + $0x30] sm:$0xff] }
 0x614   :  { %7563 = vmatpush1.bf16.msra.mxu0 %v7562_v16  ;;  %v4907_v16 = vld [vmem:[#allocation14 + $0x6c0] sm:$0xff]  ;;  %v7712_v40 = vpack.c.bf16 %v4914_v38, %v4910_v3  ;;  %v7730_v23 = vpack.c.bf16 %v4945_v5, %v4941_v14  ;;  %v10802_v3 = vld [vmem:[#allocation31_spill] sm:$0xff] }
 0x615   :  { %7565 = vmatprep.subr.bf16.mxu0 %v7564_v20  ;;  %v4916_v20 = vld [vmem:[#allocation14 + $0x708] sm:$0xff]  ;;  %v7586_v59 = vpack.c.bf16 %v4911_v15, %v4907_v16  ;;  %v5954_v7 = vld [vmem:[#allocation17] sm:$0xf] }
 0x616   :  { %7691 = vmatpush1.bf16.msra.mxu1 %v7690_v53  ;;  %v4909_v53 = vld [vmem:[#allocation14 + $0x6d0] sm:$0xff]  ;;  %v7588_v30 = vpack.c.bf16 %v4920_v41, %v4916_v20  ;;  %v5959_v38 = vrot.slane %v5954_v7, %v10802_v3  ;;  %v10803_v15 = vld [vmem:[#allocation33_spill] sm:$0xff] }
 0x617   :  { %7693 = vmatprep.subr.bf16.mxu1 %v7692_v2  ;;  %v4918_v2 = vld [vmem:[#allocation14 + $0x718] sm:$0xff]  ;;  %v7714_v26 = vpack.c.bf16 %v4913_v28, %v4909_v53  ;;  %v10805_v53 = vld [vmem:[#allocation34_spill] sm:$0xff] }
 0x618   :  { %7567 = vmatpush1.bf16.msra.mxu0 %v7566_v51  ;;  %v4915_v51 = vld [vmem:[#allocation14 + $0x700] sm:$0xff]  ;;  %v7716_v42 = vpack.c.bf16 %v4922_v61, %v4918_v2  ;;  %v10804_v20 = vld [vmem:[#allocation32_spill] sm:$0xff]  ;;  %v5971_v28 = vrot.slane %v5954_v7, %v10805_v53 }
 0x619   :  { %7569 = vmatprep.subr.bf16.mxu0 %v7568_v34  ;;  %v4924_v34 = vld [vmem:[#allocation14 + $0x748] sm:$0xff]  ;;  %v7590_v60 = vpack.c.bf16 %v4919_v32, %v4915_v51  ;;  %v5967_v41 = vrot.slane %v5954_v7, %v10804_v20 }
 0x61a   :  { %7695 = vmatpush1.bf16.msra.mxu1 %v7694_v54  ;;  %v4917_v54 = vld [vmem:[#allocation14 + $0x710] sm:$0xff]  ;;  %v7592_v47 = vpack.c.bf16 %v4928_v25, %v4924_v34 }
 0x61b   :  { %7697 = vmatprep.subr.bf16.mxu1 %v7696_v4  ;;  %v4926_v4 = vld [vmem:[#allocation14 + $0x758] sm:$0xff]  ;;  %v7718_v13 = vpack.c.bf16 %v4921_v6, %v4917_v54 }
 0x61c   :  { %7571 = vmatpush1.bf16.msra.mxu0 %v7570_v62  ;;  %v4923_v62 = vld [vmem:[#allocation14 + $0x740] sm:$0xff]  ;;  %v7720_v49 = vpack.c.bf16 %v4930_v19, %v4926_v4 }
 0x61d   :  { %7573 = vmatprep.subr.bf16.mxu0 %v7572_v43  ;;  %v4932_v43 = vld [vmem:[#allocation14 + $0x788] sm:$0xff]  ;;  %v7594_v9 = vpack.c.bf16 %v4927_v12, %v4923_v62 }
 0x61e   :  { %7699 = vmatpush1.bf16.msra.mxu1 %v7698_v46  ;;  %v4925_v46 = vld [vmem:[#allocation14 + $0x750] sm:$0xff]  ;;  %v7596_v36 = vpack.c.bf16 %v4936_v33, %v4932_v43 }
 0x61f   :  { %7701 = vmatprep.subr.bf16.mxu1 %v7700_v45  ;;  %v4934_v45 = vld [vmem:[#allocation14 + $0x798] sm:$0xff]  ;;  %v7722_v1 = vpack.c.bf16 %v4929_v27, %v4925_v46 }
 0x620   :  { %7575 = vmatpush1.bf16.msra.mxu0 %v7574_v48  ;;  %v4931_v48 = vld [vmem:[#allocation14 + $0x780] sm:$0xff]  ;;  %v7724_v11 = vpack.c.bf16 %v4938_v17, %v4934_v45 }
 0x621   :  { %7577 = vmatprep.subr.bf16.mxu0 %v7576_v44  ;;  %v4940_v44 = vld [vmem:[#allocation14 + $0x7c8] sm:$0xff]  ;;  %v7598_v22 = vpack.c.bf16 %v4935_v29, %v4931_v48 }
 0x622   :  { %7703 = vmatpush1.bf16.msra.mxu1 %v7702_v10  ;;  %v4933_v10 = vld [vmem:[#allocation14 + $0x790] sm:$0xff]  ;;  %v7600_v8 = vpack.c.bf16 %v4944_v39, %v4940_v44 }
 0x623   :  { %7705 = vmatprep.subr.bf16.mxu1 %v7704_v0  ;;  %v4942_v0 = vld [vmem:[#allocation14 + $0x7d8] sm:$0xff]  ;;  %v7726_v56 = vpack.c.bf16 %v4937_v58, %v4933_v10 }
 0x624   :  { %7579 = vmatpush1.bf16.msra.mxu0 %v7578_v52  ;;  %v4939_v52 = vld [vmem:[#allocation14 + $0x7c0] sm:$0xff] }
 0x625   :  { %7581 = vmatprep.subr.bf16.mxu0 %v7580_v24  ;;  %v7728_v24 = vpack.c.bf16 %v4946_v55, %v4942_v0 }
 0x626   :  { %7707 = vmatpush1.bf16.msra.mxu1 %v7706_v18  ;;  %v7602_v18 = vpack.c.bf16 %v4943_v63, %v4939_v52 }
 0x627   :  { %7709 = vmatprep.subr.bf16.mxu1 %v7708_v21  ;;  %v8064_v21 = vld [vmem:[#allocation2 + $0x38] sm:$0xff] }
 0x628   :  { %7583 = vmatpush1.bf16.msra.mxu0 %v7582_v57 }
 0x629   :  { %7585 = vmatprep.subr.bf16.mxu0 %v7584_v31 }
 0x62a   :  { %7711 = vmatpush1.bf16.msra.mxu1 %v7710_v50  ;;  %v5963_v50 = vrot.slane %v5954_v7, %v10803_v15 }
 0x62b   :  { %7713 = vmatprep.subr.bf16.mxu1 %v7712_v40 }
 0x62c   :  { %7587 = vmatpush1.bf16.msra.mxu0 %v7586_v59 }
 0x62d   :  { %7589 = vmatprep.subr.bf16.mxu0 %v7588_v30 }
 0x62e   :  { %7715 = vmatpush1.bf16.msra.mxu1 %v7714_v26 }
 0x62f   :  { %7717 = vmatprep.subr.bf16.mxu1 %v7716_v42 }
 0x630   :  { %7591 = vmatpush1.bf16.msra.mxu0 %v7590_v60 }
 0x631   :  { %7593 = vmatprep.subr.bf16.mxu0 %v7592_v47 }
 0x632   :  { %7719 = vmatpush1.bf16.msra.mxu1 %v7718_v13 }
 0x633   :  { %7721 = vmatprep.subr.bf16.mxu1 %v7720_v49 }
 0x634   :  { %7595 = vmatpush1.bf16.msra.mxu0 %v7594_v9 }
 0x635   :  { %7597 = vmatprep.subr.bf16.mxu0 %v7596_v36 }
 0x636   :  { %7723 = vmatpush1.bf16.msra.mxu1 %v7722_v1 }
 0x637   :  { %7725 = vmatprep.subr.bf16.mxu1 %v7724_v11 }
 0x638   :  { %7599 = vmatpush1.bf16.msra.mxu0 %v7598_v22 }
 0x639   :  { %7601 = vmatprep.subr.bf16.mxu0 %v7600_v8 }
 0x63a   :  { %7727 = vmatpush1.bf16.msra.mxu1 %v7726_v56 }
 0x63b   :  { %7729 = vmatprep.subr.bf16.mxu1 %v7728_v24 }
 0x63c   :  { %7603 = vmatpush1.bf16.msra.mxu0 %v7602_v18 }
 0x63e   :  { %7731 = vmatpush1.bf16.msra.mxu1 %v7730_v23 }
 0x63f   :  { %5788 = vmatmul.mubr.f32.vlgmr.msra.gmra.mrb[72].mxu0 %v8063_v37 }
 0x640   :  { %5793 = vmatprep.mubr.f32.mxu0 %v8064_v21 }
 0x641   :  { %5942 = vmatmul.mubr.f32.vlgmr.msra.gmra.mrb[72].mxu1 %v8063_v37 }
 0x642   :  { %5947 = vmatprep.mubr.f32.mxu1 %v8064_v21 }
 0x643   :  { %5794 = vmatmul.mubr.f32.gmra.mrb[74].mxu0 %v8065_v35 }
 0x645   :  { %5948 = vmatmul.mubr.f32.gmra.mrb[74].mxu1 %v8065_v35 }
 0x712   :  { %v5789_v57 = vpop.f32.mrb[72].mxu0 }
 0x713   :  { %v5791_v31 = vpop.f32.mrb[73].mxu0  ;;  %v5976_v2 = vadd.f32 %v5959_v38, %v5789_v57 }
 0x714   :  { %v5943_v16 = vpop.f32.mrb[72].mxu1  ;;  %v5977_v51 = vadd.f32 %v5963_v50, %v5791_v31 }
 0x715   :  { %v5945_v40 = vpop.f32.mrb[73].mxu1  ;;  %v5978_v34 = vadd.f32 %v5967_v41, %v5943_v16 }
 0x716   :  { %v5795_v59 = vpop.f32.mrb[74].mxu0  ;;  %v5979_v6 = vadd.f32 %v5971_v28, %v5945_v40 }
 0x717   :  { %v5980_v61 = vadd.f32 %v5959_v38, %v5795_v59  ;;  %v5797_v30 = vpop.f32.mrb[75].mxu0 }
 0x718   :  { %v5949_v32 = vpop.f32.mrb[74].mxu1  ;;  %v5981_v26 = vadd.f32 %v5963_v50, %v5797_v30 }
 0x719   :  { %v5984_v25 = vadd.f32 %v5980_v61, %v5976_v2  ;;  %v5982_v42 = vadd.f32 %v5967_v41, %v5949_v32  ;;  %v5951_v54 = vpop.f32.mrb[75].mxu1 }
 0x71a   :  { %v5991_v60 = vadd.f32 %v5981_v26, %v5977_v51  ;;  %v5983_v4 = vadd.f32 %v5971_v28, %v5951_v54 }
 0x71b   :  { %v5985_v19 = vrot.slane %v5984_v25, 4  ;;  %v5998_v47 = vadd.f32 %v5982_v42, %v5978_v34 }
 0x71c   :  { %v5992_v62 = vrot.slane %v5991_v60, 4  ;;  %v6005_v12 = vadd.f32 %v5983_v4, %v5979_v6 }
 0x71d   :  { %v5986_v13 = vadd.f32 %v5985_v19, %v5984_v25  ;;  %v5999_v43 = vrot.slane %v5998_v47, 4 }
 0x71e   :  { %v5993_v33 = vadd.f32 %v5992_v62, %v5991_v60  ;;  %v6006_v49 = vrot.slane %v6005_v12, 4 }
 0x71f   :  { %v5987_v46 = vrot.slane %v5986_v13, 2  ;;  %v6000_v27 = vadd.f32 %v5999_v43, %v5998_v47 }
 0x720   :  { %v5994_v9 = vrot.slane %v5993_v33, 2  ;;  %v6007_v45 = vadd.f32 %v6006_v49, %v6005_v12 }
 0x721   :  { %v5988_v17 = vadd.f32 %v5987_v46, %v5986_v13  ;;  %v6001_v36 = vrot.slane %v6000_v27, 2 }
 0x722   :  { %v5995_v48 = vadd.f32 %v5994_v9, %v5993_v33  ;;  %v6008_v29 = vrot.slane %v6007_v45, 2 }
 0x723   :  { %v5989_v1 = vrot.slane %v5988_v17, 1  ;;  %v6002_v44 = vadd.f32 %v6001_v36, %v6000_v27 }
 0x724   :  { %v5996_v39 = vrot.slane %v5995_v48, 1  ;;  %v6009_v11 = vadd.f32 %v6008_v29, %v6007_v45 }
 0x725   :  { %v5990_v10 = vadd.f32 %v5989_v1, %v5988_v17  ;;  %v6003_v58 = vrot.slane %v6002_v44, 1 }
 0x726   :  { %v5997_v22 = vadd.f32 %v5996_v39, %v5995_v48  ;;  %v6010_v0 = vrot.slane %v6009_v11, 1 }
 0x727   :  { %v6013_v55 = vmul.f32 0.0625, %v5990_v10  ;;  %v6004_v8 = vadd.f32 %v6003_v58, %v6002_v44  ;;  %v6065_v10 = vld [vmem:[#allocation19] sm:$0xf] }
 0x728   :  { %v6014_v52 = vmul.f32 0.0625, %v5997_v22  ;;  %v6011_v63 = vadd.f32 %v6010_v0, %v6009_v11  ;;  %v6070_v0 = vrot.slane %v6065_v10, %v10802_v3 }
 0x729   :  { %v10501_v56 = vsub.f32 %v5976_v2, %v6013_v55  ;;  %v10503_v24 = vsub.f32 %v5980_v61, %v6013_v55  ;;  %v6015_v14 = vmul.f32 0.0625, %v6004_v8  ;;  %v6111_v55 = vld [vmem:[#allocation20] sm:$0xf]  ;;  %v6074_v8 = vrot.slane %v6065_v10, %v10803_v15 }
 0x72a   :  { %v10505_v5 = vsub.f32 %v5977_v51, %v6014_v52  ;;  %v10507_v18 = vsub.f32 %v5981_v26, %v6014_v52  ;;  %v6016_v23 = vmul.f32 0.0625, %v6011_v63  ;;  %v6078_v52 = vrot.slane %v6065_v10, %v10804_v20 }
 0x72b   :  { %v6025_v37 = vmul.f32 %v10501_v56, %v10501_v56  ;;  %v6029_v21 = vmul.f32 %v10503_v24, %v10503_v24  ;;  %v10513_v35 = vsub.f32 %v5978_v34, %v6015_v14  ;;  %v10515_v7 = vsub.f32 %v5982_v42, %v6015_v14 }
 0x72c   :  { %v6026_v57 = vmul.f32 %v10505_v5, %v10505_v5  ;;  %v6030_v38 = vmul.f32 %v10507_v18, %v10507_v18  ;;  %v10521_v16 = vsub.f32 %v5979_v6, %v6016_v23  ;;  %v10527_v59 = vsub.f32 %v5983_v4, %v6016_v23 }
 0x72d   :  { %v6033_v31 = vadd.f32 %v6029_v21, %v6025_v37  ;;  %v6027_v50 = vmul.f32 %v10513_v35, %v10513_v35  ;;  %v6031_v41 = vmul.f32 %v10515_v7, %v10515_v7  ;;  %v6087_v63 = vmul.f32 %v6070_v0, %v10501_v56 }
 0x72e   :  { %v6040_v28 = vadd.f32 %v6030_v38, %v6026_v57  ;;  %v6028_v2 = vmul.f32 %v10521_v16, %v10521_v16  ;;  %v6032_v32 = vmul.f32 %v10527_v59, %v10527_v59  ;;  %v6091_v14 = vmul.f32 %v6070_v0, %v10503_v24 }
 0x72f   :  { %v6034_v40 = vrot.slane %v6033_v31, 4  ;;  %v6047_v61 = vadd.f32 %v6031_v41, %v6027_v50  ;;  %v6116_v23 = vrot.slane %v6111_v55, %v10802_v3  ;;  %v6124_v21 = vrot.slane %v6111_v55, %v10804_v20 }
 0x730   :  { %v6041_v51 = vrot.slane %v6040_v28, 4  ;;  %v6054_v42 = vadd.f32 %v6032_v32, %v6028_v2  ;;  %v6082_v57 = vrot.slane %v6065_v10, %v10805_v53  ;;  %v6088_v50 = vmul.f32 %v6074_v8, %v10505_v5 }
 0x731   :  { %v6035_v30 = vadd.f32 %v6034_v40, %v6033_v31  ;;  %v6048_v26 = vrot.slane %v6047_v61, 4  ;;  %v6092_v41 = vmul.f32 %v6074_v8, %v10507_v18  ;;  %v6093_v56 = vmul.f32 %v6078_v52, %v10515_v7 }
 0x732   :  { %v6042_v25 = vadd.f32 %v6041_v51, %v6040_v28  ;;  %v6055_v19 = vrot.slane %v6054_v42, 4  ;;  %v6089_v28 = vmul.f32 %v6078_v52, %v10513_v35  ;;  %v6120_v24 = vrot.slane %v6111_v55, %v10803_v15 }
 0x733   :  { %v6036_v34 = vrot.slane %v6035_v30, 2  ;;  %v6049_v54 = vadd.f32 %v6048_v26, %v6047_v61  ;;  %v6128_v3 = vrot.slane %v6111_v55, %v10805_v53  ;;  %v6090_v5 = vmul.f32 %v6082_v57, %v10521_v16 }
 0x734   :  { %v6043_v60 = vrot.slane %v6042_v25, 2  ;;  %v6056_v12 = vadd.f32 %v6055_v19, %v6054_v42  ;;  %v6094_v18 = vmul.f32 %v6082_v57, %v10527_v59 }
 0x735   :  { %v6037_v6 = vadd.f32 %v6036_v34, %v6035_v30  ;;  %v6050_v47 = vrot.slane %v6049_v54, 2 }
 0x736   :  { %v6044_v62 = vadd.f32 %v6043_v60, %v6042_v25  ;;  %v6057_v49 = vrot.slane %v6056_v12, 2 }
 0x737   :  { %v6038_v4 = vrot.slane %v6037_v6, 1  ;;  %v6051_v13 = vadd.f32 %v6050_v47, %v6049_v54 }
 0x738   :  { %v6045_v33 = vrot.slane %v6044_v62, 1  ;;  %v6058_v45 = vadd.f32 %v6057_v49, %v6056_v12 }
 0x739   :  { %v6039_v43 = vadd.f32 %v6038_v4, %v6037_v6  ;;  %v6052_v46 = vrot.slane %v6051_v13, 1 }
 0x73a   :  { %v6046_v9 = vadd.f32 %v6045_v33, %v6044_v62  ;;  %v6059_v29 = vrot.slane %v6058_v45, 1 }
 0x73b   :  { %v6061_v27 = vmul.f32 0.0625, %v6039_v43  ;;  %v6053_v17 = vadd.f32 %v6052_v46, %v6051_v13 }
 0x73c   :  { %v6062_v48 = vmul.f32 0.0625, %v6046_v9  ;;  %v6060_v39 = vadd.f32 %v6059_v29, %v6058_v45 }
 0x73d   :  { %v6095_v36 = vadd.f32 1e-05, %v6061_v27  ;;  %v6063_v1 = vmul.f32 0.0625, %v6053_v17 }
 0x73e   :  { %v6096_v44 = vadd.f32 1e-05, %v6062_v48  ;;  %v6064_v58 = vmul.f32 0.0625, %v6060_v39 }
 0x73f   :  { %8046 = vrsqrt.f32 %v6095_v36  ;;  %v6097_v11 = vadd.f32 1e-05, %v6063_v1 }
 0x740   :  { %8048 = vrsqrt.f32 %v6096_v44  ;;  %v6098_v22 = vadd.f32 1e-05, %v6064_v58 }
 0x741   :  { %8050 = vrsqrt.f32 %v6097_v11 }
 0x742   :  { %8052 = vrsqrt.f32 %v6098_v22 }
 0x749   :  { %v8047_v37 = vpop.eup %8046 }
 0x74a   :  { %v6103_v38 = vmul.f32 %v8047_v37, %v6087_v63  ;;  %v6107_v31 = vmul.f32 %v8047_v37, %v6091_v14  ;;  %v8049_v40 = vpop.eup %8048 }
 0x74b   :  { %v8051_v2 = vpop.eup %8050  ;;  %v6104_v30 = vmul.f32 %v8049_v40, %v6088_v50  ;;  %v6108_v51 = vmul.f32 %v8049_v40, %v6092_v41 }
 0x74c   :  { %v6133_v61 = vadd.f32 %v6116_v23, %v6103_v38  ;;  %v6137_v20 = vadd.f32 %v6116_v23, %v6107_v31  ;;  %v6105_v32 = vmul.f32 %v8051_v2, %v6089_v28  ;;  %v6109_v26 = vmul.f32 %v8051_v2, %v6093_v56  ;;  %v8053_v7 = vpop.eup %8052 }
 0x74d   :  { %v6134_v42 = vadd.f32 %v6120_v24, %v6104_v30  ;;  %v6138_v53 = vadd.f32 %v6120_v24, %v6108_v51  ;;  %v6106_v60 = vmul.f32 %v8053_v7, %v6090_v5  ;;  %v6110_v19 = vmul.f32 %v8053_v7, %v6094_v18 }
 0x74e   :  { %vm6141_vm13 = vcmp.gt.f32.partialorder %v6133_v61, 0.0  ;;  %vm6145_vm1 = vcmp.gt.f32.partialorder %v6137_v20, 0.0  ;;  %v6149_v35 = vmul.f32 0.2, %v6133_v61  ;;  %v6153_v34 = vmul.f32 0.2, %v6137_v20 }
 0x74f   :  { %v6135_v25 = vadd.f32 %v6124_v21, %v6105_v32  ;;  %v6139_v15 = vadd.f32 %v6124_v21, %v6109_v26  ;;  %vm6142_vm9 = vcmp.gt.f32.partialorder %v6134_v42, 0.0  ;;  %vm6146_vm10 = vcmp.gt.f32.partialorder %v6138_v53, 0.0 }
 0x750   :  { %v6157_v54 = vsel %vm6141_vm13, %v6133_v61, %v6149_v35  ;;  %v6161_v6 = vsel %vm6145_vm1, %v6137_v20, %v6153_v34  ;;  %v6150_v59 = vmul.f32 0.2, %v6134_v42  ;;  %v6154_v4 = vmul.f32 0.2, %v6138_v53 }
 0x751   :  { %6165 = vst [vmem:[#allocation22] sm:$0xff] %v6157_v54  ;;  %6169 = vst [vmem:[#allocation22 + $0x20] sm:$0xff] %v6161_v6  ;;  %vm6143_vm7 = vcmp.gt.f32.partialorder %v6135_v25, 0.0  ;;  %vm6147_vm8 = vcmp.gt.f32.partialorder %v6139_v15, 0.0  ;;  %v6151_v16 = vmul.f32 0.2, %v6135_v25  ;;  %v6136_v13 = vadd.f32 %v6128_v3, %v6106_v60 }
 0x752   :  { %v6155_v47 = vmul.f32 0.2, %v6139_v15  ;;  %v6140_v43 = vadd.f32 %v6128_v3, %v6110_v19  ;;  %v6158_v33 = vsel %vm6142_vm9, %v6134_v42, %v6150_v59  ;;  %v6162_v49 = vsel %vm6146_vm10, %v6138_v53, %v6154_v4 }
 0x753   :  { %v6159_v62 = vsel %vm6143_vm7, %v6135_v25, %v6151_v16  ;;  %6166 = vst [vmem:[#allocation22 + $0x8] sm:$0xff] %v6158_v33  ;;  %6170 = vst [vmem:[#allocation22 + $0x28] sm:$0xff] %v6162_v49  ;;  %vm6144_vm5 = vcmp.gt.f32.partialorder %v6136_v13, 0.0  ;;  %v6152_v46 = vmul.f32 0.2, %v6136_v13 }
 0x754   :  { %v6163_v12 = vsel %vm6147_vm8, %v6139_v15, %v6155_v47  ;;  %6167 = vst [vmem:[#allocation22 + $0x10] sm:$0xff] %v6159_v62  ;;  %vm6148_vm6 = vcmp.gt.f32.partialorder %v6140_v43, 0.0  ;;  %v6156_v27 = vmul.f32 0.2, %v6140_v43 }
 0x755   :  { %6171 = vst [vmem:[#allocation22 + $0x30] sm:$0xff] %v6163_v12  ;;  %v6160_v9 = vsel %vm6144_vm5, %v6136_v13, %v6152_v46 }
 0x756   :  { %v6164_v45 = vsel %vm6148_vm6, %v6140_v43, %v6156_v27  ;;  %6168 = vst [vmem:[#allocation22 + $0x18] sm:$0xff] %v6160_v9 }
 0x757   :  { %6172 = vst [vmem:[#allocation22 + $0x38] sm:$0xff] %v6164_v45 }
 0x758   :  { %8341 = shalt.err (!%p8338_p2)
}
 0x759   :  { %s8342_s15 = scalar_lea.hbm %s10576_s12, 1024 }
 0x75a   :  { %p8343_p3 = scmp.ne.s32.totalorder %s10576_s12, %s8342_s15  ;;  %p8346_p4 = scmp.lt.u32.totalorder %s8342_s15, %s10576_s12 }
 0x75c   :  { %p8348_p5 = pnand %p8346_p4, %p8343_p3 }
 0x75e   :  { %8351 = shalt.err (!%p8348_p5)
}
 0x75f   :  { %6184 = dma.vmem_to_hbm [thread:$0]  %s6179_s24, 1024, %s10576_s12, [#allocation4], %s8373_s22, %s8373_s22, %s8374_s29  }
 0x760   :  { %8366 = dma.done.wait [#allocation4], 1024  }
 0x761   :  { %8367 = vsyncadd [#allocation4], 4294966272 }
 0x762   :  { %6188 = vsyncpa [#allocation3], 1 }
 0x763   :  { %6189 = vsyncpa [#allocation6], 1 }
 0x764   :  { %6190 = vsyncpa [#allocation9], 1 }
 0x765   :  { %6191 = vsyncpa [#allocation12], 1 }
 0x766   :  { %6192 = vsyncpa [#allocation15], 1 }
 0x767   :  { %6193 = vsyncpa [#allocation18], 1 }
 0x768   :  { %6194 = vsyncpa [#allocation21], 1 }
 0x769   :  { %6195 = vsyncpa [#allocation4], 1 }

</bundles_post_ra>
